<compile_context>
chip_gen: v5e
topology: v5e:2x2
jax: 0.10.0
libtpu: 0.0.40
codegen_flags: <defaults>
</compile_context>

<pallas_src>
import functools
import math

import numpy as np
import jax
import jax.numpy as jnp
from jax.experimental import pallas as pl
from jax.experimental.pallas import tpu as pltpu


def _round_up(v: int, m: int) -> int:
    return ((v + m - 1) // m) * m


def _pos_enc_kernel(x_ref, s_ref, phase_ref, idmask_ref, o_ref, *, include_input: bool):
    # x_ref:      (bm, in_w)     g original rows packed per super-row (lane-dense)
    # s_ref:      (in_w, out_w)  one power-of-two nonzero per column (replicate+scale)
    # phase_ref:  (1, out_w)     0.0 on sin/identity columns, pi/2 on cos columns
    # idmask_ref: (1, out_w)     1.0 on identity (raw-input) columns, else 0.0
    # o_ref:      (bm, out_w)
    x = x_ref[...].astype(jnp.float32)   # compute in f32 on every generation

    # Replication + 2^k scaling in one MXU op.  HIGHEST precision keeps the full
    # f32 mantissa of x (the scales are powers of two, so scaling itself is exact).
    arg = jax.lax.dot_general(
        x, s_ref[...],
        dimension_numbers=(((1,), (0,)), ((), ())),
        preferred_element_type=jnp.float32,
        precision=jax.lax.Precision.HIGHEST)

    # One transcendental per output element: cos(t) == sin(t + pi/2).
    enc = jnp.sin(arg + phase_ref[...])
    if include_input:
        # Identity columns have scale 1.0, so `arg` is the raw input there.
        enc = jnp.where(idmask_ref[...] != 0.0, arg, enc)

    # Single lane-dense full-block store.
    o_ref[...] = enc.astype(o_ref.dtype)


def _build_tables(d: int, num_freqs: int, include_input: bool, g: int):
    """Constant tables for the packed column layout (numpy, built once, host-side)."""
    n_copies = 2 * num_freqs + (1 if include_input else 0)
    grp_w = d * n_copies          # columns per original row
    in_w = g * d
    out_w = g * grp_w

    col = np.arange(out_w)
    grp = col // grp_w            # which original row within the super-row
    within = col % grp_w
    copy_idx = within // d        # 0..n_copies-1  (identity | sin f0 | cos f0 | ...)
    feat = within % d
    src_lane = grp * d + feat     # which input lane feeds this output column

    if include_input:
        is_id = copy_idx == 0
        band = np.maximum(copy_idx - 1, 0) // 2
        is_cos = (((copy_idx - 1) % 2) == 1) & (~is_id)
    else:
        is_id = np.zeros(out_w, dtype=bool)
        band = copy_idx // 2
        is_cos = (copy_idx % 2) == 1

    scale = np.where(is_id, 1.0, np.exp2(band)).astype(np.float32)   # exact powers of 2
    s_mat = np.zeros((in_w, out_w), np.float32)
    s_mat[src_lane, col] = scale
    phase = np.where(is_cos, np.float32(np.pi / 2.0), np.float32(0.0))[None, :]
    idmask = is_id.astype(np.float32)[None, :]
    return jnp.asarray(s_mat), jnp.asarray(phase.astype(np.float32)), jnp.asarray(idmask)


def positional_encoding(x, num_freqs: int, include_input: bool = True, *,
                        block_super_rows: int = 512, min_grid_steps: int = 8,
                        out_dtype=None):
    """x: (..., D) -> (..., D * (2 * num_freqs + include_input))."""
    orig_shape = x.shape
    d = int(orig_shape[-1])
    out_dtype = jnp.dtype(x.dtype if out_dtype is None else out_dtype)
    n_copies = 2 * num_freqs + (1 if include_input else 0)
    out_d = d * n_copies

    x2 = x.reshape(-1, d)
    n = x2.shape[0]

    # Pack g original rows per super-row so input (g*d) and output (g*out_d) lane
    # widths are both multiples of 128 (lane-dense, unmasked stores).
    g = 128 // math.gcd(d, 128)
    in_w = g * d                 # = lcm(d, 128)
    out_w = g * out_d

    n_pad = _round_up(max(n, 1), g)
    if n_pad != n:
        x2 = jnp.pad(x2, ((0, n_pad - n), (0, 0)))
    n_super = n_pad // g
    xs = x2.reshape(n_super, in_w)                 # contiguity-preserving (free)

    s_mat, phase, idmask = _build_tables(d, num_freqs, include_input, g)
    s_bytes = in_w * out_w * 4

    # Tile super-rows: aim for >= min_grid_steps grid steps (pipelining + megacore
    # sharding on v7x), cap at block_super_rows and by a conservative VMEM budget.
    if n_super <= 8:
        bm = n_super
    else:
        target = _round_up(pl.cdiv(n_super, min_grid_steps), 8)
        bm = int(min(_round_up(block_super_rows, 8), max(8, target)))
        vmem_budget = 20 * 1024 * 1024
        fixed = 2 * s_bytes + 4 * (out_w * 4)                 # S + phase/idmask (x2 bufs)
        per_row = 2 * (in_w + out_w) * 4                      # double-buffered in+out, f32
        max_bm = max(8, ((max(vmem_budget - fixed, per_row * 8) // per_row) // 8) * 8)
        bm = min(bm, max_bm)
    grid = (pl.cdiv(n_super, bm),)

    kernel = functools.partial(_pos_enc_kernel, include_input=include_input)

    cost = pl.CostEstimate(
        flops=int(2 * n_super * in_w * out_w + 2 * n_super * out_w),
        transcendentals=int(n_super * out_w),          # one sin per output element
        bytes_accessed=int(n_super * in_w * xs.dtype.itemsize + s_bytes + 2 * out_w * 4
                           + n_super * out_w * out_dtype.itemsize))

    out = pl.pallas_call(
        kernel,
        out_shape=jax.ShapeDtypeStruct((n_super, out_w), out_dtype),
        grid_spec=pltpu.PrefetchScalarGridSpec(
            num_scalar_prefetch=0,
            grid=grid,
            in_specs=[
                pl.BlockSpec((bm, in_w), lambda i: (i, 0)),        # x (lane-dense)
                pl.BlockSpec((in_w, out_w), lambda i: (0, 0)),     # S (constant block)
                pl.BlockSpec((1, out_w), lambda i: (0, 0)),        # phase row
                pl.BlockSpec((1, out_w), lambda i: (0, 0)),        # identity mask row
            ],
            out_specs=pl.BlockSpec((bm, out_w), lambda i: (i, 0)),
        ),
        compiler_params=pltpu.CompilerParams(
            dimension_semantics=("parallel",),     # row grid shards across TCs (v7x)
            vmem_limit_bytes=32 * 1024 * 1024),
        cost_estimate=cost,
    )(xs, s_mat, phase, idmask)

    out = out.reshape(n_pad, out_d)                # contiguity-preserving (free)
    if n_pad != n:
        out = out[:n]
    return out.reshape(*orig_shape[:-1], out_d)


def positional_encoding_ref(x, num_freqs: int, include_input: bool = True):
    """Pure-JAX reference mirroring the PyTorch forward."""
    parts = [x] if include_input else []
    for k in range(num_freqs):
        f = jnp.asarray(2.0 ** k, x.dtype)
        parts.append(jnp.sin(f * x))
        parts.append(jnp.cos(f * x))
    return jnp.concatenate(parts, axis=-1)


if __name__ == "__main__":
    key = jax.random.PRNGKey(0)
    k1, k2, k3 = jax.random.split(key, 3)
    num_freqs = 6

    # 1) NeRF-like positions in [-1, 1]: batch=2, 64 samples, dim=4.
    x = jax.random.uniform(k1, (2, 64, 4), jnp.float32, minval=-1.0, maxval=1.0)
    out = jax.block_until_ready(positional_encoding(x, num_freqs, True))
    ref = positional_encoding_ref(x, num_freqs, True)
    assert out.shape == (2, 64, 4 * (2 * num_freqs + 1)), out.shape
    assert jnp.allclose(out, ref, atol=1e-5, rtol=1e-5), "mismatch vs reference (main)"

    # 2) Multi-block + ragged path: N = 3*345 = 1035 rows (not a multiple of 32 or 8)
    #    -> row padding, a multi-step grid and a masked final block.
    xb = jax.random.uniform(k2, (3, 345, 4), jnp.float32, minval=-1.0, maxval=1.0)
    outb = jax.block_until_ready(positional_encoding(xb, num_freqs, True))
    refb = positional_encoding_ref(xb, num_freqs, True)
    assert outb.shape == (3, 345, 4 * (2 * num_freqs + 1)), outb.shape
    assert jnp.allclose(outb, refb, atol=1e-5, rtol=1e-5), "mismatch vs reference (ragged)"

    # 3) dim=3 (true NeRF positions), include_input=False, tiny N.
    xc = jax.random.uniform(k3, (11, 3), jnp.float32, minval=-1.0, maxval=1.0)
    outc = jax.block_until_ready(positional_encoding(xc, 2, False))
    refc = positional_encoding_ref(xc, 2, False)
    assert outc.shape == (11, 12), outc.shape
    assert jnp.allclose(outc, refc, atol=1e-5, rtol=1e-5), "mismatch vs reference (dim=3)"

    # 4) bf16 output (halves the dominant 13x-expanded output HBM traffic).
    out16 = jax.block_until_ready(
        positional_encoding(x, num_freqs, True, out_dtype=jnp.bfloat16))
    assert jnp.allclose(out16.astype(jnp.float32), ref, atol=8e-3, rtol=8e-3), \
        "mismatch vs reference (bf16 out)"

    print("KERNEL_OK")
</pallas_src>

<mosaic_0001>
module attributes {stable_mosaic.version = 11 : i64} {
  func.func @_pos_enc_kernel(%arg0: i32, %arg1: memref<4x128xf32, #tpu.memory_space<vmem>>, %arg2: memref<128x1664xf32, #tpu.memory_space<vmem>>, %arg3: memref<1x1664xf32, #tpu.memory_space<vmem>>, %arg4: memref<1x1664xf32, #tpu.memory_space<vmem>>, %arg5: memref<4x1664xf32, #tpu.memory_space<vmem>>) attributes {dimension_semantics = [#tpu.dimension_semantics<parallel>], iteration_bounds = array<i64: 1>, scalar_prefetch = 0 : i64, scratch_operands = 0 : i64, tpu.core_type = #tpu.core_type<tc>, window_params = [{transform_indices = @transform_0, window_bounds = array<i64: 4, 128>}, {pipeline_mode = #tpu.pipeline_mode<synchronous>, transform_indices = @transform_1, window_bounds = array<i64: 128, 1664>}, {pipeline_mode = #tpu.pipeline_mode<synchronous>, transform_indices = @transform_2, window_bounds = array<i64: 1, 1664>}, {pipeline_mode = #tpu.pipeline_mode<synchronous>, transform_indices = @transform_3, window_bounds = array<i64: 1, 1664>}, {transform_indices = @transform_4, window_bounds = array<i64: 4, 1664>}]} {
    %c0 = arith.constant 0 : index
    %c0_0 = arith.constant 0 : index
    %0 = vector.load %arg1[%c0, %c0_0] : memref<4x128xf32, #tpu.memory_space<vmem>>, vector<4x128xf32>
    %c0_1 = arith.constant 0 : index
    %c0_2 = arith.constant 0 : index
    %1 = vector.load %arg2[%c0_1, %c0_2] : memref<128x1664xf32, #tpu.memory_space<vmem>>, vector<128x1664xf32>
    %cst = arith.constant dense<0.000000e+00> : vector<4x1664xf32>
    %2 = tpu.matmul %0, %1, %cst {dimension_numbers = #tpu.dot_dimension_numbers<[1], [0], [0], [1], [0, 0, 1, 1], [], []>, precision = #tpu.contract_precision<fp32>} : vector<4x128xf32>, vector<128x1664xf32>, vector<4x1664xf32> -> vector<4x1664xf32>
    %c0_3 = arith.constant 0 : index
    %c0_4 = arith.constant 0 : index
    %3 = vector.load %arg3[%c0_3, %c0_4] : memref<1x1664xf32, #tpu.memory_space<vmem>>, vector<1x1664xf32>
    %4 = vector.broadcast %3 : vector<1x1664xf32> to vector<4x1664xf32>
    %5 = arith.addf %2, %4 : vector<4x1664xf32>
    %6 = math.sin %5 : vector<4x1664xf32>
    %c0_5 = arith.constant 0 : index
    %c0_6 = arith.constant 0 : index
    %7 = vector.load %arg4[%c0_5, %c0_6] : memref<1x1664xf32, #tpu.memory_space<vmem>>, vector<1x1664xf32>
    %cst_7 = arith.constant 0.000000e+00 : f32
    %8 = vector.broadcast %cst_7 : f32 to vector<1x1664xf32>
    %9 = arith.cmpf one, %7, %8 : vector<1x1664xf32>
    %10 = vector.shape_cast %9 : vector<1x1664xi1> to vector<1x1664xi1>
    %11 = vector.broadcast %10 : vector<1x1664xi1> to vector<4x1664xi1>
    %12 = arith.select %11, %2, %6 : vector<4x1664xi1>, vector<4x1664xf32>
    %c0_8 = arith.constant 0 : index
    %c0_9 = arith.constant 0 : index
    %13 = vector.load %arg5[%c0_8, %c0_9] : memref<4x1664xf32, #tpu.memory_space<vmem>>, vector<4x1664xf32>
    tpu.vector_store %arg5[%c0_8, %c0_9], %12 {strides = array<i32>} : memref<4x1664xf32, #tpu.memory_space<vmem>>, vector<4x1664xf32>,
    return
  }
  func.func @transform_0(%arg0: i32) -> (i32, i32) {
    %c0_i32 = arith.constant 0 : i32
    %c0_i32_0 = arith.constant 0 : i32
    return %arg0, %c0_i32 : i32, i32
  }
  func.func @transform_1(%arg0: i32) -> (i32, i32) {
    %c0_i32 = arith.constant 0 : i32
    %c0_i32_0 = arith.constant 0 : i32
    %c0_i32_1 = arith.constant 0 : i32
    return %c0_i32, %c0_i32_0 : i32, i32
  }
  func.func @transform_2(%arg0: i32) -> (i32, i32) {
    %c0_i32 = arith.constant 0 : i32
    %c0_i32_0 = arith.constant 0 : i32
    %c0_i32_1 = arith.constant 0 : i32
    return %c0_i32, %c0_i32_0 : i32, i32
  }
  func.func @transform_3(%arg0: i32) -> (i32, i32) {
    %c0_i32 = arith.constant 0 : i32
    %c0_i32_0 = arith.constant 0 : i32
    %c0_i32_1 = arith.constant 0 : i32
    return %c0_i32, %c0_i32_0 : i32, i32
  }
  func.func @transform_4(%arg0: i32) -> (i32, i32) {
    %c0_i32 = arith.constant 0 : i32
    %c0_i32_0 = arith.constant 0 : i32
    return %arg0, %c0_i32 : i32, i32
  }
}

</mosaic_0001>

<bundles_post_ra>
// kernel: tpu_custom_call.1
= control target key start
LH: loop header
LB: loop body
LE: loop exit
PB: predicated region body
PF: predicated region fallthrough
CT: control target
= control target key end

     0   :  { %9 = vsyncpa [#allocation3], 0  ;;  %s12411_s0 = inlined_call_operand.hbm [shape: f32[4,128], index: 0, kind: input, shape index: {}]   ;;  %s12412_s1 = inlined_call_operand.hbm [shape: f32[128,1664], index: 1, kind: input, shape index: {}]   ;;  %s12413_s2 = inlined_call_operand.hbm [shape: f32[1,1664], index: 2, kind: input, shape index: {}]   ;;  %s12414_s3 = inlined_call_operand.hbm [shape: f32[1,1664], index: 3, kind: input, shape index: {}]   ;;  %s12415_s4 = inlined_call_operand.hbm [shape: f32[4,1664], index: 4, kind: output, shape index: {}]  }
   0x1   :  { %10 = vsyncpa [#allocation6], 0 }
   0x2   :  { %11 = vsyncpa [#allocation9], 0  ;;  %s28_s17 = sshll.u32 %s12412_s1, 4  ;;  %s29_s17 = int_to_ptr.hbm [resolvable:$true] %s28_s17 }
   0x3   :  { %12 = vsyncpa [#allocation4], 0  ;;  %s7062_s18 = smov [#allocation5]   ;;  %s18_s22 = sshll.u32 %s12411_s0, 4  ;;  %s19_s22 = int_to_ptr.hbm [resolvable:$true] %s18_s22 }
   0x4   :  { %s30_s19 = sshll.u32 %s7062_s18, 4  ;;  %s7063_s23 = smov 1664   ;;  %s31_s19 = int_to_ptr.vmem [resolvable:$true] %s30_s19 }
   0x5   :  { %s7064_s24 = smov 104   ;;  %s7065_s25 = smov [#allocation2]  }
   0x6   :  { %36 = dma.hbm_to_vmem [thread:$0]  %s29_s17, 26624, %s31_s19, [#allocation6], %s7063_s23, %s7063_s23, %s7064_s24  }
   0x7   :  { %s20_s26 = sshll.u32 %s7065_s25, 4  ;;  %s42_s29 = sshll.u32 %s12413_s2, 4  ;;  %s21_s26 = int_to_ptr.vmem [resolvable:$true] %s20_s26  ;;  %s43_s29 = int_to_ptr.hbm [resolvable:$true] %s42_s29 }
   0x8   :  { %23 = dma.hbm_to_vmem [thread:$0]  %s19_s22, 64, %s21_s26, [#allocation3]  }
   0x9   :  { %s53_s5 = sshll.u32 %s12414_s3, 4  ;;  %s7066_s6 = smov [#allocation7]   ;;  %s54_s5 = int_to_ptr.hbm [resolvable:$true] %s53_s5 }
   0xa   :  { %s44_s7 = sshll.u32 %s7066_s6, 4  ;;  %s7067_s0 = smov [#allocation8]   ;;  %s45_s7 = int_to_ptr.vmem [resolvable:$true] %s44_s7 }
   0xb   :  { %47 = dma.hbm_to_vmem [thread:$0]  %s43_s29, 208, %s45_s7, [#allocation6]  }
   0xc   :  { %s55_s8 = sshll.u32 %s7067_s0, 4  ;;  %s56_s8 = int_to_ptr.vmem [resolvable:$true] %s55_s8 }
   0xd   :  { %58 = dma.hbm_to_vmem [thread:$0]  %s54_s5, 208, %s56_s8, [#allocation9]  }
   0xe   :  { %7054 = dma.done.wait [#allocation3], 64  }
   0xf   :  { %7055 = vsyncadd [#allocation3], 4294967232 }
  0x10   :  { %7056 = dma.done.wait [#allocation6], 26832  }
  0x11   :  { %7057 = vsyncadd [#allocation6], 4294940464 }
  0x12   :  { %7058 = dma.done.wait [#allocation9], 208  }
  0x13   :  { %7059 = vsyncadd [#allocation9], 4294967088  ;;  %v271_v0 = vld [vmem:[#allocation5 + $0x618] sm:$0xff]  ;;  %v258_v1 = vld [vmem:[#allocation5 + $0x5b0] sm:$0xff]  ;;  %s7075_s2 = smov [#allocation10]   ;;  %s6865_s11 = sshll.u32 %s12415_s4, 4  ;;  %s6866_s11 = int_to_ptr.hbm [resolvable:$true] %s6865_s11 }
  0x14   :  { %v245_v2 = vld [vmem:[#allocation5 + $0x548] sm:$0xff]  ;;  %v7113_v3 = vand.u32 4294901760, %v271_v0  ;;  %v7115_v4 = vand.u32 4294901760, %v258_v1  ;;  %v232_v6 = vld [vmem:[#allocation5 + $0x4e0] sm:$0xff]  ;;  %v219_v7 = vld [vmem:[#allocation5 + $0x478] sm:$0xff]  ;;  %s6863_s3 = sshll.u32 %s7075_s2, 4  ;;  %s6864_s3 = int_to_ptr.vmem [resolvable:$true] %s6863_s3 }
  0x15   :  { %v7117_v5 = vand.u32 4294901760, %v245_v2  ;;  %v206_v8 = vld [vmem:[#allocation5 + $0x410] sm:$0xff]  ;;  %v7119_v9 = vand.u32 4294901760, %v232_v6  ;;  %v7121_v10 = vand.u32 4294901760, %v219_v7  ;;  %v193_v12 = vld [vmem:[#allocation5 + $0x3a8] sm:$0xff]  ;;  %v180_v13 = vld [vmem:[#allocation5 + $0x340] sm:$0xff] }
  0x16   :  { %v7123_v11 = vand.u32 4294901760, %v206_v8  ;;  %285 = vmatpush.msra.mxu0 %v7113_v3  ;;  %v7127_v14 = vsub.f32 %v271_v0, %v7113_v3  ;;  %v7130_v15 = vsub.f32 %v258_v1, %v7115_v4  ;;  %481 = vmatpush.msra.mxu3 %v7113_v3  ;;  %v7136_v17 = vand.u32 4294901760, %v193_v12  ;;  %v167_v21 = vld [vmem:[#allocation5 + $0x2d8] sm:$0xff]  ;;  %v154_v34 = vld [vmem:[#allocation5 + $0x270] sm:$0xff]  ;;  %v141_v35 = vld [vmem:[#allocation5 + $0x208] sm:$0xff] }
  0x17   :  { %v7134_v16 = vsub.f32 %v245_v2, %v7117_v5  ;;  %v7139_v18 = vsub.f32 %v232_v6, %v7119_v9  ;;  %v7142_v19 = vsub.f32 %v219_v7, %v7121_v10  ;;  %v7144_v20 = vand.u32 4294901760, %v180_v13  ;;  %v128_v42 = vld [vmem:[#allocation5 + $0x1a0] sm:$0xff]  ;;  %v115_v48 = vld [vmem:[#allocation5 + $0x138] sm:$0xff]  ;;  %v102_v53 = vld [vmem:[#allocation5 + $0xd0] sm:$0xff] }
  0x18   :  { %428 = vmatpush.msra.mxu2 %v7127_v14  ;;  %287 = vmatpush.msra.mxu0 %v7115_v4  ;;  %v12430_v22 = vand.u32 4294901760, %v7127_v14  ;;  %v12429_v23 = vand.u32 4294901760, %v7130_v15  ;;  %v7152_v25 = vsub.f32 %v206_v8, %v7123_v11  ;;  %v7158_v28 = vsub.f32 %v193_v12, %v7136_v17  ;;  %v272_v55 = vld [vmem:[#allocation5 + $0x620] sm:$0xff]  ;;  %v89_v60 = vld [vmem:[#allocation5 + $0x68] sm:$0xff]  ;;  %v259_v63 = vld [vmem:[#allocation5 + $0x5b8] sm:$0xff] }
  0x19   :  { %v12428_v24 = vand.u32 4294901760, %v7134_v16  ;;  %483 = vmatpush.msra.mxu3 %v7115_v4  ;;  %v12425_v26 = vand.u32 4294901760, %v7139_v18  ;;  %v12424_v27 = vand.u32 4294901760, %v7142_v19  ;;  %v7171_v32 = vand.u32 4294901760, %v167_v21  ;;  %v76_v6 = vld [vmem:[#allocation5] sm:$0xff] }
  0x1a   :  { %431 = vmatpush.msra.mxu2 %v7130_v15  ;;  %289 = vmatpush.msra.mxu0 %v7117_v5  ;;  %v328_v29 = vsub.f32 %v7127_v14, %v12430_v22  ;;  %v334_v30 = vsub.f32 %v7130_v15, %v12429_v23  ;;  %v7175_v33 = vsub.f32 %v180_v13, %v7144_v20  ;;  %v12422_v39 = vand.u32 4294901760, %v7152_v25  ;;  %v246_v13 = vld [vmem:[#allocation5 + $0x550] sm:$0xff] }
  0x1b   :  { %v340_v31 = vsub.f32 %v7134_v16, %v12428_v24  ;;  %485 = vmatpush.msra.mxu3 %v7117_v5  ;;  %v346_v38 = vsub.f32 %v7139_v18, %v12425_v26  ;;  %v352_v40 = vsub.f32 %v7142_v19, %v12424_v27  ;;  %v7188_v41 = vsub.f32 %v167_v21, %v7171_v32 }
  0x1c   :  { %v329_v36 = vand.u32 4294901760, %v328_v29  ;;  %434 = vmatpush.msra.mxu2 %v7134_v16  ;;  %291 = vmatpush.msra.mxu0 %v7119_v9  ;;  %v335_v37 = vand.u32 4294901760, %v334_v30  ;;  %v12421_v44 = vand.u32 4294901760, %v7158_v28  ;;  %v7192_v45 = vand.u32 4294901760, %v154_v34 }
  0x1d   :  { %487 = vmatpush.msra.mxu3 %v7119_v9  ;;  %v341_v43 = vand.u32 4294901760, %v340_v31  ;;  %v7194_v46 = vand.u32 4294901760, %v141_v35  ;;  %v12420_v47 = vand.u32 4294901760, %v7175_v33  ;;  %v347_v49 = vand.u32 4294901760, %v346_v38 }
  0x1e   :  { %330 = vmatpush.msra.mxu1 %v329_v36  ;;  %437 = vmatpush.msra.mxu2 %v7139_v18  ;;  %v358_v50 = vsub.f32 %v7152_v25, %v12422_v39  ;;  %v7204_v51 = vsub.f32 %v154_v34, %v7192_v45  ;;  %v7206_v52 = vand.u32 4294901760, %v128_v42  ;;  %v12418_v54 = vand.u32 4294901760, %v7188_v41  ;;  %v181_v39 = vld [vmem:[#allocation5 + $0x348] sm:$0xff] }
  0x1f   :  { %293 = vmatpush.msra.mxu0 %v7121_v10  ;;  %489 = vmatpush.msra.mxu3 %v7121_v10  ;;  %v353_v56 = vand.u32 4294901760, %v352_v40  ;;  %v364_v57 = vsub.f32 %v7158_v28, %v12421_v44  ;;  %v7216_v58 = vsub.f32 %v141_v35, %v7194_v46  ;;  %v7218_v59 = vand.u32 4294901760, %v115_v48 }
  0x20   :  { %336 = vmatpush.msra.mxu1 %v335_v37  ;;  %440 = vmatpush.msra.mxu2 %v7142_v19  ;;  %v370_v61 = vsub.f32 %v7175_v33, %v12420_v47  ;;  %v7225_v62 = vand.u32 4294901760, %v102_v53  ;;  %v359_v0 = vand.u32 4294901760, %v358_v50  ;;  %v12417_v1 = vand.u32 4294901760, %v7204_v51  ;;  %v233_v37 = vld [vmem:[#allocation5 + $0x4e8] sm:$0xff] }
  0x21   :  { %295 = vmatpush.msra.mxu0 %v7123_v11  ;;  %491 = vmatpush.msra.mxu3 %v7123_v11  ;;  %v7230_v2 = vsub.f32 %v128_v42, %v7206_v52  ;;  %v7232_v7 = vand.u32 4294901760, %v272_v55  ;;  %v376_v8 = vsub.f32 %v7188_v41, %v12418_v54  ;;  %v7239_v12 = vand.u32 4294901760, %v89_v60 }
  0x22   :  { %342 = vmatpush.msra.mxu1 %v341_v43  ;;  %443 = vmatpush.msra.mxu2 %v7152_v25  ;;  %v365_v21 = vand.u32 4294901760, %v364_v57  ;;  %v12416_v29 = vand.u32 4294901760, %v7216_v58  ;;  %v7244_v30 = vsub.f32 %v115_v48, %v7218_v59  ;;  %v7246_v31 = vand.u32 4294901760, %v259_v63  ;;  %v220_v48 = vld [vmem:[#allocation5 + $0x480] sm:$0xff] }
  0x23   :  { %297 = vmatpush.msra.mxu0 %v7136_v17  ;;  %493 = vmatpush.msra.mxu3 %v7136_v17  ;;  %12759 = vst [vmem:[#allocation15_spill] sm:$0xff] %v7239_v12  ;;  %v371_v34 = vand.u32 4294901760, %v370_v61  ;;  %v7251_v35 = vsub.f32 %v102_v53, %v7225_v62  ;;  %v7253_v36 = vand.u32 4294901760, %v76_v6  ;;  %v382_v38 = vsub.f32 %v7204_v51, %v12417_v1  ;;  %v207_v61 = vld [vmem:[#allocation5 + $0x418] sm:$0xff] }
  0x24   :  { %348 = vmatpush.msra.mxu1 %v347_v49  ;;  %446 = vmatpush.msra.mxu2 %v7158_v28  ;;  %v12419_v40 = vand.u32 4294901760, %v7230_v2  ;;  %v7261_v42 = vsub.f32 %v272_v55, %v7232_v7  ;;  %v7263_v43 = vand.u32 4294901760, %v246_v13  ;;  %v377_v49 = vand.u32 4294901760, %v376_v8 }
  0x25   :  { %299 = vmatpush.msra.mxu0 %v7144_v20  ;;  %495 = vmatpush.msra.mxu3 %v7144_v20  ;;  %12760 = vst [vmem:[#allocation16_spill] sm:$0xff] %v7253_v36  ;;  %v7268_v50 = vsub.f32 %v89_v60, %v7239_v12  ;;  %v388_v53 = vsub.f32 %v7216_v58, %v12416_v29  ;;  %v12423_v55 = vand.u32 4294901760, %v7244_v30  ;;  %v7278_v57 = vand.u32 4294901760, %v233_v37 }
  0x26   :  { %354 = vmatpush.msra.mxu1 %v353_v56  ;;  %449 = vmatpush.msra.mxu2 %v7175_v33  ;;  %v7276_v56 = vsub.f32 %v259_v63, %v7246_v31  ;;  %v12427_v60 = vand.u32 4294901760, %v7251_v35  ;;  %v7286_v8 = vand.u32 4294901760, %v220_v48  ;;  %v394_v63 = vsub.f32 %v7230_v2, %v12419_v40 }
  0x27   :  { %301 = vmatpush.msra.mxu0 %v7171_v32  ;;  %497 = vmatpush.msra.mxu3 %v7171_v32  ;;  %v12426_v29 = vand.u32 4294901760, %v7261_v42  ;;  %v7294_v1 = vsub.f32 %v246_v13, %v7263_v43  ;;  %v7299_v54 = vand.u32 4294901760, %v207_v61  ;;  %v400_v40 = vsub.f32 %v7244_v30, %v12423_v55 }
  0x28   :  { %360 = vmatpush.msra.mxu1 %v359_v0  ;;  %452 = vmatpush.msra.mxu2 %v7188_v41  ;;  %12761 = vst [vmem:[#allocation17_spill] sm:$0xff] %v7276_v56  ;;  %v7284_v0 = vsub.f32 %v76_v6, %v7253_v36  ;;  %v12432_v6 = vand.u32 4294901760, %v7268_v50  ;;  %v12431_v13 = vand.u32 4294901760, %v7276_v56  ;;  %v7307_v47 = vsub.f32 %v233_v37, %v7278_v57 }
  0x29   :  { %303 = vmatpush.msra.mxu0 %v7192_v45  ;;  %499 = vmatpush.msra.mxu3 %v7192_v45  ;;  %12762 = vst [vmem:[#allocation18_spill] sm:$0xff] %v7294_v1  ;;  %v395_v55 = vand.u32 4294901760, %v394_v63  ;;  %v669_v37 = vsub.f32 %v7261_v42, %v12426_v29  ;;  %v12436_v27 = vand.u32 4294901760, %v7294_v1  ;;  %v168_v63 = vld [vmem:[#allocation5 + $0x2e0] sm:$0xff]  ;;  %v401_v29 = vand.u32 4294901760, %v400_v40  ;;  %v155_v40 = vld [vmem:[#allocation5 + $0x278] sm:$0xff] }
  0x2a   :  { %366 = vmatpush.msra.mxu1 %v365_v21  ;;  %455 = vmatpush.msra.mxu2 %v7204_v51  ;;  %v383_v21 = vand.u32 4294901760, %v382_v38  ;;  %v389_v38 = vand.u32 4294901760, %v388_v53  ;;  %12763 = vst [vmem:[#allocation19_spill] sm:$0xff] %v7307_v47  ;;  %v12435_v44 = vand.u32 4294901760, %v7284_v0  ;;  %v7316_v53 = vsub.f32 %v220_v48, %v7286_v8 }
  0x2b   :  { %305 = vmatpush.msra.mxu0 %v7194_v46  ;;  %501 = vmatpush.msra.mxu3 %v7194_v46  ;;  %v412_v48 = vsub.f32 %v7268_v50, %v12432_v6  ;;  %v7338_v23 = vand.u32 4294901760, %v181_v39  ;;  %v681_v6 = vsub.f32 %v7294_v1, %v12436_v27  ;;  %v7365_v1 = vand.u32 4294901760, %v155_v40 }
  0x2c   :  { %372 = vmatpush.msra.mxu1 %v371_v34  ;;  %458 = vmatpush.msra.mxu2 %v7216_v58  ;;  %v194_v34 = vld [vmem:[#allocation5 + $0x3b0] sm:$0xff] }
  0x2d   :  { %307 = vmatpush.msra.mxu0 %v7206_v52  ;;  %503 = vmatpush.msra.mxu3 %v7206_v52  ;;  %v7323_v26 = vand.u32 4294901760, %v194_v34 }
  0x2e   :  { %378 = vmatpush.msra.mxu1 %v377_v49  ;;  %461 = vmatpush.msra.mxu2 %v7230_v2  ;;  %v406_v49 = vsub.f32 %v7251_v35, %v12427_v60  ;;  %v675_v60 = vsub.f32 %v7276_v56, %v12431_v13  ;;  %v670_v13 = vand.u32 4294901760, %v669_v37  ;;  %v413_v56 = vand.u32 4294901760, %v412_v48 }
  0x2f   :  { %309 = vmatpush.msra.mxu0 %v7218_v59  ;;  %505 = vmatpush.msra.mxu3 %v7218_v59  ;;  %v7351_v24 = vsub.f32 %v194_v34, %v7323_v26  ;;  %v7363_v34 = vsub.f32 %v181_v39, %v7338_v23  ;;  %v12765_v48 = vand.u32 4294901760, %v7127_v14  ;;  %v12767_v14 = vand.u32 4294901760, %v7130_v15 }
  0x30   :  { %384 = vmatpush.msra.mxu1 %v383_v21  ;;  %464 = vmatpush.msra.mxu2 %v7244_v30  ;;  %v7331_v21 = vsub.f32 %v207_v61, %v7299_v54  ;;  %v407_v22 = vand.u32 4294901760, %v406_v49  ;;  %v418_v61 = vsub.f32 %v7284_v0, %v12435_v44  ;;  %v7353_v49 = vand.u32 4294901760, %v168_v63 }
  0x31   :  { %311 = vmatpush.msra.mxu0 %v7225_v62  ;;  %507 = vmatpush.msra.mxu3 %v7225_v62  ;;  %v676_v37 = vand.u32 4294901760, %v675_v60  ;;  %v129_v60 = vld [vmem:[#allocation5 + $0x1a8] sm:$0xff]  ;;  %v12769_v15 = vand.u32 4294901760, %v7134_v16 }
  0x32   :  { %390 = vmatpush.msra.mxu1 %v389_v38  ;;  %467 = vmatpush.msra.mxu2 %v7251_v35  ;;  %v12764_v38 = vand.u32 4294901760, %v7307_v47  ;;  %v419_v44 = vand.u32 4294901760, %v418_v61  ;;  %v7375_v39 = vsub.f32 %v168_v63, %v7353_v49  ;;  %v12768_v61 = vand.u32 4294901760, %v7331_v21 }
  0x33   :  { %313 = vmatpush.msra.mxu0 %v7239_v12  ;;  %509 = vmatpush.msra.mxu3 %v7239_v12  ;;  %v682_v12 = vand.u32 4294901760, %v681_v6  ;;  %v710_v6 = vand.u32 4294901760, %v7363_v34  ;;  %v7389_v63 = vand.u32 4294901760, %v129_v60 }
  0x34   :  { %396 = vmatpush.msra.mxu1 %v395_v55  ;;  %470 = vmatpush.msra.mxu2 %v7268_v50  ;;  %v142_v55 = vld [vmem:[#allocation5 + $0x210] sm:$0xff]  ;;  %v687_v27 = vsub.f32 %v7307_v47, %v12764_v38  ;;  %v704_v38 = vand.u32 4294901760, %v7351_v24 }
  0x35   :  { %315 = vmatpush.msra.mxu0 %v7253_v36  ;;  %511 = vmatpush.msra.mxu3 %v7253_v36  ;;  %v7377_v47 = vand.u32 4294901760, %v142_v55 }
  0x36   :  { %402 = vmatpush.msra.mxu1 %v401_v29  ;;  %473 = vmatpush.msra.mxu2 %v7284_v0  ;;  %v12766_v29 = vand.u32 4294901760, %v7316_v53 }
  0x37   :  { %522 = vmatpush.msrb.mxu0 %v12765_v48  ;;  %671 = vmatpush.msrb.mxu3 %v670_v13  ;;  %v699_v48 = vsub.f32 %v7331_v21, %v12768_v61  ;;  %v7387_v13 = vsub.f32 %v155_v40, %v7365_v1  ;;  %v7399_v40 = vsub.f32 %v142_v55, %v7377_v47  ;;  %v116_v61 = vld [vmem:[#allocation5 + $0x140] sm:$0xff] }
  0x38   :  { %626 = vmatpush.msrb.mxu2 %v7232_v7  ;;  %v693_v36 = vsub.f32 %v7316_v53, %v12766_v29  ;;  %408 = vmatpush.msra.mxu1 %v407_v22  ;;  %v688_v22 = vand.u32 4294901760, %v687_v27  ;;  %v75_v29 = vld [vmem:[#allocation2] sm:$0xf]  ;;  %v705_v27 = vsub.f32 %v7351_v24, %v704_v38  ;;  %v7412_v55 = vsub.f32 %v129_v60, %v7389_v63  ;;  %v90_v60 = vld [vmem:[#allocation5 + $0x70] sm:$0xff] }
  0x39   :  { %526 = vmatpush.msrb.mxu0 %v12767_v14  ;;  %677 = vmatpush.msrb.mxu3 %v676_v37  ;;  %v12770_v37 = vand.u32 4294901760, %v7139_v18  ;;  %v7404_v16 = vand.u32 4294901760, %v75_v29  ;;  %v103_v18 = vld [vmem:[#allocation5 + $0xd8] sm:$0xff] }
  0x3a   :  { %628 = vmatpush.msrb.mxu2 %v7246_v31  ;;  %414 = vmatpush.msra.mxu1 %v413_v56  ;;  %v694_v14 = vand.u32 4294901760, %v693_v36  ;;  %v12443_v56 = vand.u32 4294901760, %v7375_v39  ;;  %v722_v36 = vand.u32 4294901760, %v7387_v13 }
  0x3b   :  { %530 = vmatpush.msrb.mxu0 %v12769_v15  ;;  %683 = vmatpush.msrb.mxu3 %v682_v12  ;;  %12771 = vst [vmem:[#allocation20_spill] sm:$0xff] %v7404_v16  ;;  %v711_v12 = vsub.f32 %v7363_v34, %v710_v6  ;;  %v728_v15 = vand.u32 4294901760, %v7399_v40 }
  0x3c   :  { %630 = vmatpush.msrb.mxu2 %v7263_v43  ;;  %420 = vmatpush.msra.mxu1 %v419_v44  ;;  %v700_v44 = vand.u32 4294901760, %v699_v48  ;;  %v717_v48 = vsub.f32 %v7375_v39, %v12443_v56  ;;  %v7435_v56 = vand.u32 4294901760, %v103_v18 }
  0x3d   :  { %534 = vmatpush.msrb.mxu0 %v12770_v37  ;;  %689 = vmatpush.msrb.mxu3 %v688_v22  ;;  %v706_v22 = vand.u32 4294901760, %v705_v27  ;;  %v7422_v37 = vand.u32 4294901760, %v116_v61  ;;  %v723_v27 = vsub.f32 %v7387_v13, %v722_v36 }
  0x3e   :  { %589 = vmatpush.msrb.mxu1 %v7113_v3  ;;  %632 = vmatpush.msrb.mxu2 %v7278_v57  ;;  %v12772_v3 = vand.u32 4294901760, %v7142_v19  ;;  %v7428_v19 = vsub.f32 %v75_v29, %v7404_v16  ;;  %v718_v29 = vand.u32 4294901760, %v717_v48 }
  0x3f   :  { %695 = vmatpush.msrb.mxu3 %v694_v14  ;;  %v712_v14 = vand.u32 4294901760, %v711_v12  ;;  %v7445_v12 = vsub.f32 %v116_v61, %v7422_v37  ;;  %v7460_v61 = vsub.f32 %v103_v18, %v7435_v56  ;;  %v12779_v18 = vand.u32 4294901760, %v7204_v51  ;;  %422 = vmatmul.f32.vlgmr.msra.gmra.mxu1 %v7404_v16 }
  0x40   :  { %591 = vmatpush.msrb.mxu1 %v7115_v4  ;;  %538 = vmatpush.msrb.mxu0 %v12772_v3  ;;  %v12773_v4 = vand.u32 4294901760, %v7152_v25  ;;  %12774 = vst [vmem:[#allocation21_spill] sm:$0xff] %v7428_v19  ;;  %v734_v3 = vand.u32 4294901760, %v7412_v55  ;;  %v77_v25 = vld [vmem:[#allocation5 + $0x8] sm:$0xff] }
  0x41   :  { %634 = vmatpush.msrb.mxu2 %v7286_v8  ;;  %701 = vmatpush.msrb.mxu3 %v700_v44  ;;  %v729_v44 = vsub.f32 %v7399_v40, %v728_v15 }
  0x42   :  { %593 = vmatpush.msrb.mxu1 %v7117_v5  ;;  %542 = vmatpush.msrb.mxu0 %v12773_v4  ;;  %v12775_v5 = vand.u32 4294901760, %v7158_v28  ;;  %v7447_v4 = vand.u32 4294901760, %v90_v60  ;;  %v7453_v28 = vand.u32 4294901760, %v7428_v19  ;;  %v735_v48 = vsub.f32 %v7412_v55, %v734_v3 }
  0x43   :  { %636 = vmatpush.msrb.mxu2 %v7299_v54  ;;  %707 = vmatpush.msrb.mxu3 %v706_v22  ;;  %v724_v22 = vand.u32 4294901760, %v723_v27 }
  0x44   :  { %595 = vmatpush.msrb.mxu1 %v7119_v9  ;;  %546 = vmatpush.msrb.mxu0 %v12775_v5  ;;  %v12776_v9 = vand.u32 4294901760, %v7175_v33  ;;  %12777 = vst [vmem:[#allocation22_spill] sm:$0xff] %v7453_v28  ;;  %v7462_v5 = vand.u32 4294901760, %v77_v25  ;;  %v730_v33 = vand.u32 4294901760, %v729_v44  ;;  %v7470_v27 = vsub.f32 %v90_v60, %v7447_v4 }
  0x45   :  { %638 = vmatpush.msrb.mxu2 %v7323_v26  ;;  %713 = vmatpush.msrb.mxu3 %v712_v14  ;;  %v740_v14 = vand.u32 4294901760, %v7445_v12  ;;  %v12780_v60 = vand.u32 4294901760, %v7216_v58 }
  0x46   :  { %597 = vmatpush.msrb.mxu1 %v7121_v10  ;;  %550 = vmatpush.msrb.mxu0 %v12776_v9  ;;  %v12778_v10 = vand.u32 4294901760, %v7188_v41  ;;  %v736_v41 = vand.u32 4294901760, %v735_v48  ;;  %v7480_v44 = vsub.f32 %v77_v25, %v7462_v5  ;;  %v752_v51 = vand.u32 4294901760, %v7470_v27 }
  0x47   :  { %640 = vmatpush.msrb.mxu2 %v7338_v23  ;;  %719 = vmatpush.msrb.mxu3 %v718_v29  ;;  %v746_v29 = vand.u32 4294901760, %v7460_v61  ;;  %v12781_v9 = vand.u32 4294901760, %v7230_v2 }
  0x48   :  { %599 = vmatpush.msrb.mxu1 %v7123_v11  ;;  %554 = vmatpush.msrb.mxu0 %v12778_v10  ;;  %v319_v11 = vsub.f32 %v7428_v19, %v7453_v28  ;;  %v758_v58 = vand.u32 4294901760, %v7480_v44  ;;  %v12785_v10 = vand.u32 4294901760, %v7268_v50  ;;  %v12788_v50 = vld [vmem:[#allocation15_spill] sm:$0xff] }
  0x49   :  { %642 = vmatpush.msrb.mxu2 %v7353_v49  ;;  %725 = vmatpush.msrb.mxu3 %v724_v22  ;;  %v753_v22 = vsub.f32 %v7470_v27, %v752_v51 }
  0x4a   :  { %601 = vmatpush.msrb.mxu1 %v7136_v17  ;;  %558 = vmatpush.msrb.mxu0 %v12779_v18  ;;  %v741_v17 = vsub.f32 %v7445_v12, %v740_v14  ;;  %v7493_v25 = vand.u32 4294901760, %v319_v11 }
  0x4b   :  { %644 = vmatpush.msrb.mxu2 %v7365_v1  ;;  %731 = vmatpush.msrb.mxu3 %v730_v33  ;;  %v12786_v33 = vand.u32 4294901760, %v7284_v0  ;;  %v12792_v0 = vld [vmem:[#allocation18_spill] sm:$0xff] }
  0x4c   :  { %603 = vmatpush.msrb.mxu1 %v7144_v20  ;;  %562 = vmatpush.msrb.mxu0 %v12780_v60  ;;  %12782 = vst [vmem:[#allocation23_spill] sm:$0xff] %v7493_v25  ;;  %v747_v20 = vsub.f32 %v7460_v61, %v746_v29  ;;  %v742_v2 = vand.u32 4294901760, %v741_v17  ;;  %v12793_v11 = vand.u32 4294901760, %v12792_v0  ;;  %v12796_v60 = vand.u32 4294901760, %v7316_v53 }
  0x4d   :  { %646 = vmatpush.msrb.mxu2 %v7377_v47  ;;  %737 = vmatpush.msrb.mxu3 %v736_v41 }
  0x4e   :  { %605 = vmatpush.msrb.mxu1 %v7171_v32  ;;  %566 = vmatpush.msrb.mxu0 %v12781_v9  ;;  %v12783_v32 = vand.u32 4294901760, %v7244_v30  ;;  %v748_v48 = vand.u32 4294901760, %v747_v20  ;;  %v759_v30 = vsub.f32 %v7480_v44, %v758_v58 }
  0x4f   :  { %648 = vmatpush.msrb.mxu2 %v7389_v63  ;;  %321 = vmatmul.f32.vlgmr.msra.gmra.mxu0 %v7493_v25 }
  0x50   :  { %607 = vmatpush.msrb.mxu1 %v7192_v45  ;;  %476 = vmatmul.f32.vlgmr.msra.gmra.mxu2 %v7428_v19  ;;  %v12784_v45 = vand.u32 4294901760, %v7251_v35  ;;  %v760_v35 = vand.u32 4294901760, %v759_v30  ;;  %v130_v30 = vld [vmem:[#allocation5 + $0x1b0] sm:$0xff] }
  0x51   :  { %570 = vmatpush.msrb.mxu0 %v12783_v32  ;;  %650 = vmatpush.msrb.mxu2 %v7422_v37 }
  0x52   :  { %609 = vmatpush.msrb.mxu1 %v7194_v46  ;;  %515 = vmatmul.f32.vlgmr.msra.gmra.mxu3 %v7453_v28  ;;  %v754_v46 = vand.u32 4294901760, %v753_v22 }
  0x53   :  { %574 = vmatpush.msrb.mxu0 %v12784_v45  ;;  %652 = vmatpush.msrb.mxu2 %v7435_v56 }
  0x54   :  { %611 = vmatpush.msrb.mxu1 %v7206_v52  ;;  %743 = vmatpush.msrb.mxu3 %v742_v2  ;;  %v12787_v52 = vand.u32 4294901760, %v7261_v42 }
  0x55   :  { %578 = vmatpush.msrb.mxu0 %v12785_v10  ;;  %654 = vmatpush.msrb.mxu2 %v7447_v4 }
  0x56   :  { %613 = vmatpush.msrb.mxu1 %v7218_v59  ;;  %749 = vmatpush.msrb.mxu3 %v748_v48  ;;  %v12789_v59 = vld [vmem:[#allocation17_spill] sm:$0xff] }
  0x57   :  { %582 = vmatpush.msrb.mxu0 %v12786_v33  ;;  %656 = vmatpush.msrb.mxu2 %v7462_v5  ;;  %v12790_v18 = vand.u32 4294901760, %v12789_v59 }
  0x58   :  { %615 = vmatpush.msrb.mxu1 %v7225_v62  ;;  %755 = vmatpush.msrb.mxu3 %v754_v46  ;;  %v12791_v62 = vld [vmem:[#allocation16_spill] sm:$0xff] }
  0x59   :  { %769 = vmatpush.msra.mxu0 %v7261_v42  ;;  %863 = vmatpush.msra.mxu2 %v12787_v52  ;;  %v12794_v42 = vld [vmem:[#allocation19_spill] sm:$0xff]  ;;  %v117_v52 = vld [vmem:[#allocation5 + $0x148] sm:$0xff] }
  0x5a   :  { %617 = vmatpush.msrb.mxu1 %v12788_v50  ;;  %761 = vmatpush.msrb.mxu3 %v760_v35  ;;  %v12795_v41 = vand.u32 4294901760, %v12794_v42 }
  0x5b   :  { %584 = vmatmul.f32.vlgmr.msrb.gmra.mxu0 %v7404_v16  ;;  %867 = vmatpush.msra.mxu2 %v12790_v18 }
  0x5c   :  { %772 = vmatpush.msra.mxu0 %v12789_v59  ;;  %930 = vmatpush.msra.mxu3 %v7232_v7 }
  0x5d   :  { %619 = vmatpush.msrb.mxu1 %v12791_v62  ;;  %871 = vmatpush.msra.mxu2 %v12793_v11  ;;  %v7706_v62 = vand.u32 4294901760, %v130_v30  ;;  %v104_v11 = vld [vmem:[#allocation5 + $0xe0] sm:$0xff] }
  0x5e   :  { %621 = vmatmul.f32.vlgmr.msrb.gmra.mxu1 %v7404_v16  ;;  %775 = vmatpush.msra.mxu0 %v12792_v0 }
  0x5f   :  { %822 = vmatpush.msra.mxu1 %v7232_v7  ;;  %932 = vmatpush.msra.mxu3 %v7246_v31  ;;  %v12797_v7 = vand.u32 4294901760, %v7331_v21 }
  0x60   :  { %778 = vmatpush.msra.mxu0 %v12794_v42  ;;  %875 = vmatpush.msra.mxu2 %v12795_v41 }
  0x61   :  { %824 = vmatpush.msra.mxu1 %v7246_v31  ;;  %934 = vmatpush.msra.mxu3 %v7263_v43  ;;  %v12798_v31 = vand.u32 4294901760, %v7375_v39 }
  0x62   :  { %781 = vmatpush.msra.mxu0 %v7316_v53  ;;  %879 = vmatpush.msra.mxu2 %v12796_v60 }
  0x63   :  { %826 = vmatpush.msra.mxu1 %v7263_v43  ;;  %936 = vmatpush.msra.mxu3 %v7278_v57 }
  0x64   :  { %784 = vmatpush.msra.mxu0 %v7331_v21  ;;  %883 = vmatpush.msra.mxu2 %v12797_v7  ;;  %v221_v21 = vld [vmem:[#allocation5 + $0x488] sm:$0xff]  ;;  %v7718_v7 = vand.u32 4294901760, %v117_v52 }
  0x65   :  { %828 = vmatpush.msra.mxu1 %v7278_v57  ;;  %938 = vmatpush.msra.mxu3 %v7286_v8  ;;  %v234_v57 = vld [vmem:[#allocation5 + $0x4f0] sm:$0xff] }
  0x66   :  { %787 = vmatpush.msra.mxu0 %v7351_v24  ;;  %887 = vmatpush.msra.mxu2 %v704_v38  ;;  %v273_v24 = vld [vmem:[#allocation5 + $0x628] sm:$0xff] }
  0x67   :  { %830 = vmatpush.msra.mxu1 %v7286_v8  ;;  %940 = vmatpush.msra.mxu3 %v7299_v54  ;;  %v7581_v43 = vand.u32 4294901760, %v273_v24 }
  0x68   :  { %790 = vmatpush.msra.mxu0 %v7363_v34  ;;  %891 = vmatpush.msra.mxu2 %v710_v6  ;;  %v208_v34 = vld [vmem:[#allocation5 + $0x420] sm:$0xff]  ;;  %v195_v6 = vld [vmem:[#allocation5 + $0x3b8] sm:$0xff] }
  0x69   :  { %832 = vmatpush.msra.mxu1 %v7299_v54  ;;  %942 = vmatpush.msra.mxu3 %v7323_v26  ;;  %v260_v54 = vld [vmem:[#allocation5 + $0x5c0] sm:$0xff]  ;;  %v7595_v8 = vsub.f32 %v273_v24, %v7581_v43  ;;  %v91_v24 = vld [vmem:[#allocation5 + $0x78] sm:$0xff] }
  0x6a   :  { %793 = vmatpush.msra.mxu0 %v7375_v39  ;;  %895 = vmatpush.msra.mxu2 %v12798_v31  ;;  %v7618_v39 = vand.u32 4294901760, %v221_v21 }
  0x6b   :  { %834 = vmatpush.msra.mxu1 %v7323_v26  ;;  %944 = vmatpush.msra.mxu3 %v7338_v23  ;;  %v247_v26 = vld [vmem:[#allocation5 + $0x558] sm:$0xff] }
  0x6c   :  { %796 = vmatpush.msra.mxu0 %v7387_v13  ;;  %899 = vmatpush.msra.mxu2 %v722_v36  ;;  %v7597_v53 = vand.u32 4294901760, %v247_v26  ;;  %v182_v36 = vld [vmem:[#allocation5 + $0x350] sm:$0xff] }
  0x6d   :  { %836 = vmatpush.msra.mxu1 %v7338_v23  ;;  %946 = vmatpush.msra.mxu3 %v7353_v49  ;;  %v7588_v23 = vand.u32 4294901760, %v260_v54 }
  0x6e   :  { %799 = vmatpush.msra.mxu0 %v7399_v40  ;;  %903 = vmatpush.msra.mxu2 %v728_v15  ;;  %v7616_v38 = vsub.f32 %v247_v26, %v7597_v53  ;;  %v7629_v40 = vand.u32 4294901760, %v208_v34 }
  0x6f   :  { %838 = vmatpush.msra.mxu1 %v7353_v49  ;;  %948 = vmatpush.msra.mxu3 %v7365_v1  ;;  %v7607_v49 = vand.u32 4294901760, %v234_v57 }
  0x70   :  { %802 = vmatpush.msra.mxu0 %v7412_v55  ;;  %907 = vmatpush.msra.mxu2 %v734_v3  ;;  %v7633_v55 = vand.u32 4294901760, %v195_v6  ;;  %v7643_v3 = vsub.f32 %v221_v21, %v7618_v39  ;;  %v7730_v21 = vand.u32 4294901760, %v104_v11 }
  0x71   :  { %840 = vmatpush.msra.mxu1 %v7365_v1  ;;  %950 = vmatpush.msra.mxu3 %v7377_v47  ;;  %v7605_v1 = vsub.f32 %v260_v54, %v7588_v23 }
  0x72   :  { %662 = vmatmul.f32.vlgmr.msrb.gmra.mxu2 %v7493_v25  ;;  %805 = vmatpush.msra.mxu0 %v7445_v12  ;;  %v169_v12 = vld [vmem:[#allocation5 + $0x2e8] sm:$0xff]  ;;  %12799 = vst [vmem:[#allocation15_spill] sm:$0xff] %v7730_v21 }
  0x73   :  { %842 = vmatpush.msra.mxu1 %v7377_v47  ;;  %911 = vmatpush.msra.mxu2 %v740_v14  ;;  %v12460_v47 = vand.u32 4294901760, %v7595_v8  ;;  %v12457_v13 = vand.u32 4294901760, %v7605_v1  ;;  %v7669_v9 = vand.u32 4294901760, %v169_v12 }
  0x74   :  { %952 = vmatpush.msra.mxu3 %v7389_v63  ;;  %808 = vmatpush.msra.mxu0 %v7460_v61 }
  0x75   :  { %763 = vmatmul.f32.vlgmr.msrb.gmra.mxu3 %v7404_v16  ;;  %844 = vmatpush.msra.mxu1 %v7389_v63  ;;  %v7627_v63 = vsub.f32 %v234_v57, %v7607_v49  ;;  %v1010_v15 = vsub.f32 %v7595_v8, %v12460_v47  ;;  %v1016_v61 = vsub.f32 %v7605_v1, %v12457_v13 }
  0x76   :  { %915 = vmatpush.msra.mxu2 %v746_v29  ;;  %954 = vmatpush.msra.mxu3 %v7422_v37  ;;  %v7661_v29 = vsub.f32 %v195_v6, %v7633_v55  ;;  %v7692_v10 = vsub.f32 %v169_v12, %v7669_v9  ;;  %v7728_v57 = vsub.f32 %v130_v30, %v7706_v62 }
  0x77   :  { %811 = vmatpush.msra.mxu0 %v7470_v27  ;;  %846 = vmatpush.msra.mxu1 %v7422_v37  ;;  %v12456_v37 = vand.u32 4294901760, %v7616_v38  ;;  %v12454_v14 = vand.u32 4294901760, %v7627_v63  ;;  %v7656_v27 = vsub.f32 %v208_v34, %v7629_v40  ;;  %v1017_v32 = vand.u32 4294901760, %v1016_v61  ;;  %v274_v34 = vld [vmem:[#allocation5 + $0x630] sm:$0xff] }
  0x78   :  { %919 = vmatpush.msra.mxu2 %v752_v51  ;;  %956 = vmatpush.msra.mxu3 %v7435_v56  ;;  %v12453_v51 = vand.u32 4294901760, %v7643_v3  ;;  %v12450_v48 = vand.u32 4294901760, %v7661_v29  ;;  %v12447_v41 = vand.u32 4294901760, %v7692_v10  ;;  %v7740_v61 = vsub.f32 %v117_v52, %v7718_v7 }
  0x79   :  { %814 = vmatpush.msra.mxu0 %v7480_v44  ;;  %848 = vmatpush.msra.mxu1 %v7435_v56  ;;  %v7647_v56 = vand.u32 4294901760, %v182_v36  ;;  %v156_v44 = vld [vmem:[#allocation5 + $0x280] sm:$0xff]  ;;  %v1022_v17 = vsub.f32 %v7616_v38, %v12456_v37  ;;  %v1028_v2 = vsub.f32 %v7627_v63, %v12454_v14  ;;  %v12451_v22 = vand.u32 4294901760, %v7656_v27 }
  0x7a   :  { %923 = vmatpush.msra.mxu2 %v758_v58  ;;  %958 = vmatpush.msra.mxu3 %v7447_v4  ;;  %v143_v58 = vld [vmem:[#allocation5 + $0x218] sm:$0xff]  ;;  %v7682_v45 = vand.u32 4294901760, %v156_v44  ;;  %v1034_v46 = vsub.f32 %v7643_v3, %v12453_v51  ;;  %v1046_v0 = vsub.f32 %v7661_v29, %v12450_v48  ;;  %v7754_v30 = vsub.f32 %v104_v11, %v7730_v21 }
  0x7b   :  { %925 = vmatmul.f32.vlgmr.msra.gmra.mxu2 %v7404_v16  ;;  %967 = vmatpush.msrb.mxu0 %v7581_v43  ;;  %v7674_v20 = vsub.f32 %v182_v36, %v7647_v56  ;;  %v7694_v35 = vand.u32 4294901760, %v143_v58  ;;  %v1029_v50 = vand.u32 4294901760, %v1028_v2  ;;  %v1040_v59 = vsub.f32 %v7656_v27, %v12451_v22  ;;  %v78_v36 = vld [vmem:[#allocation5 + $0x10] sm:$0xff]  ;;  %v196_v22 = vld [vmem:[#allocation5 + $0x3c0] sm:$0xff] }
  0x7c   :  { %1110 = vmatpush.msrb.mxu2 %v7595_v8  ;;  %850 = vmatpush.msra.mxu1 %v7447_v4  ;;  %v1011_v4 = vand.u32 4294901760, %v1010_v15  ;;  %v7704_v18 = vsub.f32 %v156_v44, %v7682_v45  ;;  %v1035_v42 = vand.u32 4294901760, %v1034_v46  ;;  %v1047_v6 = vand.u32 4294901760, %v1046_v0  ;;  %v248_v46 = vld [vmem:[#allocation5 + $0x560] sm:$0xff] }
  0x7d   :  { %960 = vmatpush.msra.mxu3 %v7462_v5  ;;  %817 = vmatmul.f32.vlgmr.msra.gmra.mxu0 %v7428_v19  ;;  %v12449_v33 = vand.u32 4294901760, %v7674_v20  ;;  %v7716_v60 = vsub.f32 %v143_v58, %v7694_v35  ;;  %v1041_v54 = vand.u32 4294901760, %v1040_v59  ;;  %v1058_v15 = vsub.f32 %v7692_v10, %v12447_v41 }
  0x7e   :  { %962 = vmatmul.f32.vlgmr.msra.gmra.mxu3 %v7404_v16  ;;  %969 = vmatpush.msrb.mxu0 %v7588_v23  ;;  %v12446_v26 = vand.u32 4294901760, %v7704_v18  ;;  %v7742_v44 = vand.u32 4294901760, %v91_v24  ;;  %v7746_v58 = vand.u32 4294901760, %v274_v34  ;;  %v12445_v2 = vand.u32 4294901760, %v7728_v57 }
  0x7f   :  { %1113 = vmatpush.msrb.mxu2 %v7605_v1  ;;  %1163 = vmatpush.msrb.mxu3 %v7581_v43  ;;  %v1052_v31 = vsub.f32 %v7674_v20, %v12449_v33  ;;  %v12444_v12 = vand.u32 4294901760, %v7716_v60  ;;  %v12448_v0 = vand.u32 4294901760, %v7740_v61  ;;  %v7835_v13 = vand.u32 4294901760, %v196_v22 }
  0x80   :  { %852 = vmatpush.msra.mxu1 %v7462_v5  ;;  %971 = vmatpush.msrb.mxu0 %v7597_v53  ;;  %v1023_v5 = vand.u32 4294901760, %v1022_v17  ;;  %v7768_v11 = vsub.f32 %v91_v24, %v7742_v44  ;;  %v12452_v24 = vand.u32 4294901760, %v7754_v30 }
  0x81   :  { %856 = vmatmul.f32.vlgmr.msra.gmra.mxu1 %v7453_v28  ;;  %1116 = vmatpush.msrb.mxu2 %v7616_v38  ;;  %v1053_v17 = vand.u32 4294901760, %v1052_v31  ;;  %v1070_v59 = vsub.f32 %v7716_v60, %v12444_v12  ;;  %v7775_v31 = vand.u32 4294901760, %v248_v46 }
  0x82   :  { %1012 = vmatpush.msrb.mxu1 %v1011_v4  ;;  %1165 = vmatpush.msrb.mxu3 %v7588_v23  ;;  %v261_v4 = vld [vmem:[#allocation5 + $0x5c8] sm:$0xff] }
  0x83   :  { %973 = vmatpush.msrb.mxu0 %v7607_v49  ;;  %1119 = vmatpush.msrb.mxu2 %v7627_v63  ;;  %v7760_v52 = vand.u32 4294901760, %v261_v4  ;;  %v7801_v41 = vsub.f32 %v248_v46, %v7775_v31 }
  0x84   :  { %1018 = vmatpush.msrb.mxu1 %v1017_v32  ;;  %1167 = vmatpush.msrb.mxu3 %v7597_v53  ;;  %v1064_v32 = vsub.f32 %v7704_v18, %v12446_v26  ;;  %v12455_v26 = vand.u32 4294901760, %v7768_v11 }
  0x85   :  { %975 = vmatpush.msrb.mxu0 %v7618_v39  ;;  %1122 = vmatpush.msrb.mxu2 %v7643_v3 }
  0x86   :  { %1024 = vmatpush.msrb.mxu1 %v1023_v5  ;;  %1169 = vmatpush.msrb.mxu3 %v7607_v49  ;;  %v7756_v5 = vand.u32 4294901760, %v78_v36 }
  0x87   :  { %977 = vmatpush.msrb.mxu0 %v7629_v40  ;;  %1125 = vmatpush.msrb.mxu2 %v7656_v27 }
  0x88   :  { %1030 = vmatpush.msrb.mxu1 %v1029_v50  ;;  %1171 = vmatpush.msrb.mxu3 %v7618_v39  ;;  %v1059_v50 = vand.u32 4294901760, %v1058_v15  ;;  %v1076_v15 = vsub.f32 %v7728_v57, %v12445_v2  ;;  %v7783_v12 = vsub.f32 %v78_v36, %v7756_v5  ;;  %v1082_v2 = vsub.f32 %v7740_v61, %v12448_v0 }
  0x89   :  { %979 = vmatpush.msrb.mxu0 %v7633_v55  ;;  %1128 = vmatpush.msrb.mxu2 %v7661_v29  ;;  %v1088_v0 = vsub.f32 %v7754_v30, %v12452_v24 }
  0x8a   :  { %1036 = vmatpush.msrb.mxu1 %v1035_v42  ;;  %1173 = vmatpush.msrb.mxu3 %v7629_v40  ;;  %v7773_v42 = vsub.f32 %v274_v34, %v7746_v58  ;;  %12801 = vst [vmem:[#allocation16_spill] sm:$0xff] %v7783_v12  ;;  %v7788_v34 = vsub.f32 %v261_v4, %v7760_v52  ;;  %v12459_v33 = vand.u32 4294901760, %v7783_v12 }
  0x8b   :  { %981 = vmatpush.msrb.mxu0 %v7647_v56  ;;  %1131 = vmatpush.msrb.mxu2 %v7674_v20 }
  0x8c   :  { %1042 = vmatpush.msrb.mxu1 %v1041_v54  ;;  %1175 = vmatpush.msrb.mxu3 %v7633_v55  ;;  %12800 = vst [vmem:[#allocation17_spill] sm:$0xff] %v7773_v42  ;;  %v235_v54 = vld [vmem:[#allocation5 + $0x4f8] sm:$0xff]  ;;  %v12458_v4 = vand.u32 4294901760, %v7773_v42  ;;  %v12463_v46 = vand.u32 4294901760, %v7788_v34 }
  0x8d   :  { %983 = vmatpush.msrb.mxu0 %v7669_v9  ;;  %1134 = vmatpush.msrb.mxu2 %v7692_v10  ;;  %12802 = vst [vmem:[#allocation18_spill] sm:$0xff] %v7788_v34  ;;  %v7795_v36 = vand.u32 4294901760, %v235_v54 }
  0x8e   :  { %1048 = vmatpush.msrb.mxu1 %v1047_v6  ;;  %1177 = vmatpush.msrb.mxu3 %v7647_v56  ;;  %v1065_v6 = vand.u32 4294901760, %v1064_v32  ;;  %v1071_v32 = vand.u32 4294901760, %v1070_v59  ;;  %v1077_v59 = vand.u32 4294901760, %v1076_v15  ;;  %v1094_v15 = vsub.f32 %v7768_v11, %v12455_v26 }
  0x8f   :  { %985 = vmatpush.msrb.mxu0 %v7682_v45  ;;  %1137 = vmatpush.msrb.mxu2 %v7704_v18  ;;  %v7818_v24 = vsub.f32 %v235_v54, %v7795_v36  ;;  %v1089_v26 = vand.u32 4294901760, %v1088_v0  ;;  %v1100_v54 = vsub.f32 %v7783_v12, %v12459_v33 }
  0x90   :  { %1054 = vmatpush.msrb.mxu1 %v1053_v17  ;;  %1179 = vmatpush.msrb.mxu3 %v7669_v9  ;;  %v222_v17 = vld [vmem:[#allocation5 + $0x490] sm:$0xff]  ;;  %v1095_v0 = vand.u32 4294901760, %v1094_v15 }
  0x91   :  { %987 = vmatpush.msrb.mxu0 %v7694_v35  ;;  %1140 = vmatpush.msrb.mxu2 %v7716_v60  ;;  %v7808_v48 = vand.u32 4294901760, %v222_v17  ;;  %12803 = vst [vmem:[#allocation19_spill] sm:$0xff] %v7818_v24  ;;  %v1101_v15 = vand.u32 4294901760, %v1100_v54 }
  0x92   :  { %1060 = vmatpush.msrb.mxu1 %v1059_v50  ;;  %1181 = vmatpush.msrb.mxu3 %v7682_v45  ;;  %v209_v50 = vld [vmem:[#allocation5 + $0x428] sm:$0xff] }
  0x93   :  { %989 = vmatpush.msrb.mxu0 %v7706_v62  ;;  %1143 = vmatpush.msrb.mxu2 %v7728_v57  ;;  %v7820_v51 = vand.u32 4294901760, %v209_v50  ;;  %v7833_v37 = vsub.f32 %v222_v17, %v7808_v48 }
  0x94   :  { %1066 = vmatpush.msrb.mxu1 %v1065_v6  ;;  %1183 = vmatpush.msrb.mxu3 %v7694_v35  ;;  %v1083_v6 = vand.u32 4294901760, %v1082_v2  ;;  %v183_v2 = vld [vmem:[#allocation5 + $0x358] sm:$0xff] }
  0x95   :  { %991 = vmatpush.msrb.mxu0 %v7718_v7  ;;  %1146 = vmatpush.msrb.mxu2 %v7740_v61  ;;  %v7845_v17 = vsub.f32 %v209_v50, %v7820_v51  ;;  %v7847_v47 = vand.u32 4294901760, %v183_v2  ;;  %v7857_v50 = vsub.f32 %v196_v22, %v7835_v13 }
  0x96   :  { %1072 = vmatpush.msrb.mxu1 %v1071_v32  ;;  %1185 = vmatpush.msrb.mxu3 %v7706_v62  ;;  %v1351_v32 = vsub.f32 %v7773_v42, %v12458_v4  ;;  %v170_v4 = vld [vmem:[#allocation5 + $0x2f0] sm:$0xff]  ;;  %v12804_v42 = vand.u32 4294901760, %v7801_v41 }
  0x97   :  { %993 = vmatpush.msrb.mxu0 %v7730_v21  ;;  %1149 = vmatpush.msrb.mxu2 %v7754_v30  ;;  %v7870_v22 = vsub.f32 %v183_v2, %v7847_v47 }
  0x98   :  { %1078 = vmatpush.msrb.mxu1 %v1077_v59  ;;  %1187 = vmatpush.msrb.mxu3 %v7718_v7  ;;  %v1357_v59 = vsub.f32 %v7788_v34, %v12463_v46  ;;  %v1352_v14 = vand.u32 4294901760, %v1351_v32  ;;  %v1363_v46 = vsub.f32 %v7801_v41, %v12804_v42  ;;  %v7859_v34 = vand.u32 4294901760, %v170_v4 }
  0x99   :  { %995 = vmatpush.msrb.mxu0 %v7742_v44  ;;  %1152 = vmatpush.msrb.mxu2 %v7768_v11 }
  0x9a   :  { %1084 = vmatpush.msrb.mxu1 %v1083_v6  ;;  %1189 = vmatpush.msrb.mxu3 %v7730_v21  ;;  %v157_v6 = vld [vmem:[#allocation5 + $0x288] sm:$0xff]  ;;  %v12805_v21 = vand.u32 4294901760, %v7595_v8  ;;  %v1358_v32 = vand.u32 4294901760, %v1357_v59  ;;  %v12807_v8 = vand.u32 4294901760, %v7605_v1  ;;  %v12808_v59 = vand.u32 4294901760, %v7833_v37 }
  0x9b   :  { %997 = vmatpush.msrb.mxu0 %v7756_v5  ;;  %1155 = vmatpush.msrb.mxu2 %v7783_v12  ;;  %v144_v12 = vld [vmem:[#allocation5 + $0x220] sm:$0xff]  ;;  %v7872_v33 = vand.u32 4294901760, %v157_v6  ;;  %v7882_v54 = vsub.f32 %v170_v4, %v7859_v34  ;;  %v12809_v1 = vand.u32 4294901760, %v7616_v38 }
  0x9c   :  { %1090 = vmatpush.msrb.mxu1 %v1089_v26  ;;  %1191 = vmatpush.msrb.mxu3 %v7742_v44  ;;  %v12806_v26 = vand.u32 4294901760, %v7818_v24  ;;  %v7884_v2 = vand.u32 4294901760, %v144_v12 }
  0x9d   :  { %1204 = vmatpush.msra.mxu0 %v12805_v21  ;;  %1308 = vmatpush.msra.mxu2 %v7746_v58  ;;  %v1364_v21 = vand.u32 4294901760, %v1363_v46  ;;  %v12810_v46 = vand.u32 4294901760, %v7845_v17  ;;  %v7895_v4 = vsub.f32 %v157_v6, %v7872_v33 }
  0x9e   :  { %1096 = vmatpush.msrb.mxu1 %v1095_v0  ;;  %1193 = vmatpush.msrb.mxu3 %v7756_v5  ;;  %v1369_v42 = vsub.f32 %v7818_v24, %v12806_v26  ;;  %v1375_v0 = vsub.f32 %v7833_v37, %v12808_v59  ;;  %v1386_v26 = vand.u32 4294901760, %v7857_v50  ;;  %v131_v24 = vld [vmem:[#allocation5 + $0x1b8] sm:$0xff]  ;;  %v12811_v59 = vand.u32 4294901760, %v7627_v63 }
  0x9f   :  { %1208 = vmatpush.msra.mxu0 %v12807_v8  ;;  %1310 = vmatpush.msra.mxu2 %v7760_v52  ;;  %v12470_v8 = vand.u32 4294901760, %v7870_v22  ;;  %v7900_v38 = vand.u32 4294901760, %v131_v24  ;;  %v7908_v6 = vsub.f32 %v144_v12, %v7884_v2  ;;  %v12812_v63 = vand.u32 4294901760, %v7643_v3  ;;  %v92_v3 = vld [vmem:[#allocation5 + $0x80] sm:$0xff] }
  0xa0   :  { %1353 = vmatpush.msra.mxu3 %v1352_v14  ;;  %1102 = vmatpush.msrb.mxu1 %v1101_v15  ;;  %v1370_v14 = vand.u32 4294901760, %v1369_v42  ;;  %v1381_v15 = vsub.f32 %v7845_v17, %v12810_v46  ;;  %v1387_v42 = vsub.f32 %v7857_v50, %v1386_v26  ;;  %v1404_v46 = vand.u32 4294901760, %v7895_v4 }
  0xa1   :  { %1212 = vmatpush.msra.mxu0 %v12809_v1  ;;  %1312 = vmatpush.msra.mxu2 %v7775_v31  ;;  %v12471_v1 = vand.u32 4294901760, %v7882_v54  ;;  %v12813_v12 = vand.u32 4294901760, %v7656_v27  ;;  %v12814_v27 = vand.u32 4294901760, %v7661_v29 }
  0xa2   :  { %1271 = vmatpush.msra.mxu1 %v7581_v43  ;;  %1359 = vmatpush.msra.mxu3 %v1358_v32  ;;  %v118_v43 = vld [vmem:[#allocation5 + $0x150] sm:$0xff]  ;;  %v1376_v32 = vand.u32 4294901760, %v1375_v0  ;;  %v1393_v0 = vsub.f32 %v7870_v22, %v12470_v8 }
  0xa3   :  { %1216 = vmatpush.msra.mxu0 %v12811_v59  ;;  %1314 = vmatpush.msra.mxu2 %v7795_v36  ;;  %v7918_v59 = vand.u32 4294901760, %v118_v43 }
  0xa4   :  { %1273 = vmatpush.msra.mxu1 %v7588_v23  ;;  %1365 = vmatpush.msra.mxu3 %v1364_v21  ;;  %v105_v23 = vld [vmem:[#allocation5 + $0xe8] sm:$0xff]  ;;  %v1382_v21 = vand.u32 4294901760, %v1381_v15  ;;  %v1399_v15 = vsub.f32 %v7882_v54, %v12471_v1  ;;  %v12815_v1 = vand.u32 4294901760, %v7674_v20  ;;  %v12816_v20 = vand.u32 4294901760, %v7692_v10 }
  0xa5   :  { %1220 = vmatpush.msra.mxu0 %v12812_v63  ;;  %1316 = vmatpush.msra.mxu2 %v7808_v48  ;;  %v1410_v63 = vand.u32 4294901760, %v7908_v6  ;;  %v7931_v8 = vand.u32 4294901760, %v105_v23 }
  0xa6   :  { %1275 = vmatpush.msra.mxu1 %v7597_v53  ;;  %1371 = vmatpush.msra.mxu3 %v1370_v14  ;;  %v7924_v53 = vsub.f32 %v131_v24, %v7900_v38  ;;  %v1388_v14 = vand.u32 4294901760, %v1387_v42  ;;  %v1394_v24 = vand.u32 4294901760, %v1393_v0  ;;  %v7941_v42 = vsub.f32 %v118_v43, %v7918_v59 }
  0xa7   :  { %1224 = vmatpush.msra.mxu0 %v12813_v12  ;;  %1318 = vmatpush.msra.mxu2 %v7820_v51  ;;  %v7943_v12 = vand.u32 4294901760, %v92_v3  ;;  %v1400_v29 = vand.u32 4294901760, %v1399_v15  ;;  %v7954_v43 = vsub.f32 %v105_v23, %v7931_v8  ;;  %v12817_v15 = vand.u32 4294901760, %v7704_v18 }
  0xa8   :  { %1277 = vmatpush.msra.mxu1 %v7607_v49  ;;  %1377 = vmatpush.msra.mxu3 %v1376_v32  ;;  %v79_v49 = vld [vmem:[#allocation5 + $0x18] sm:$0xff]  ;;  %v1405_v32 = vsub.f32 %v7895_v4, %v1404_v46 }
  0xa9   :  { %1228 = vmatpush.msra.mxu0 %v12814_v27  ;;  %1320 = vmatpush.msra.mxu2 %v7835_v13  ;;  %v7956_v0 = vand.u32 4294901760, %v79_v49  ;;  %v1428_v23 = vand.u32 4294901760, %v7954_v43 }
  0xaa   :  { %1279 = vmatpush.msra.mxu1 %v7618_v39  ;;  %1383 = vmatpush.msra.mxu3 %v1382_v21  ;;  %v1416_v39 = vand.u32 4294901760, %v7924_v53  ;;  %v1411_v21 = vsub.f32 %v7908_v6, %v1410_v63 }
  0xab   :  { %1232 = vmatpush.msra.mxu0 %v12815_v1  ;;  %1322 = vmatpush.msra.mxu2 %v7847_v47  ;;  %v1422_v1 = vand.u32 4294901760, %v7941_v42  ;;  %v7975_v27 = vsub.f32 %v79_v49, %v7956_v0 }
  0xac   :  { %1281 = vmatpush.msra.mxu1 %v7629_v40  ;;  %1389 = vmatpush.msra.mxu3 %v1388_v14  ;;  %v1406_v40 = vand.u32 4294901760, %v1405_v32  ;;  %v7964_v14 = vsub.f32 %v92_v3, %v7943_v12  ;;  %v1417_v10 = vsub.f32 %v7924_v53, %v1416_v39  ;;  %v12818_v3 = vand.u32 4294901760, %v7716_v60 }
  0xad   :  { %1236 = vmatpush.msra.mxu0 %v12816_v20  ;;  %1324 = vmatpush.msra.mxu2 %v7859_v34  ;;  %v1440_v60 = vand.u32 4294901760, %v7975_v27  ;;  %v12820_v32 = vand.u32 4294901760, %v7740_v61  ;;  %v12822_v20 = vand.u32 4294901760, %v7768_v11 }
  0xae   :  { %1283 = vmatpush.msra.mxu1 %v7633_v55  ;;  %1395 = vmatpush.msra.mxu3 %v1394_v24  ;;  %v1412_v55 = vand.u32 4294901760, %v1411_v21  ;;  %v1434_v18 = vand.u32 4294901760, %v7964_v14  ;;  %v12819_v24 = vand.u32 4294901760, %v7728_v57  ;;  %v1418_v49 = vand.u32 4294901760, %v1417_v10  ;;  %v12825_v10 = vld [vmem:[#allocation15_spill] sm:$0xff] }
  0xaf   :  { %1240 = vmatpush.msra.mxu0 %v12817_v15  ;;  %1326 = vmatpush.msra.mxu2 %v7872_v33 }
  0xb0   :  { %1285 = vmatpush.msra.mxu1 %v7647_v56  ;;  %1401 = vmatpush.msra.mxu3 %v1400_v29  ;;  %v1423_v56 = vsub.f32 %v7941_v42, %v1422_v1  ;;  %v1435_v57 = vsub.f32 %v7964_v14, %v1434_v18  ;;  %v12821_v29 = vand.u32 4294901760, %v7754_v30 }
  0xb1   :  { %1244 = vmatpush.msra.mxu0 %v12818_v3  ;;  %1328 = vmatpush.msra.mxu2 %v7884_v2  ;;  %v275_v3 = vld [vmem:[#allocation5 + $0x638] sm:$0xff] }
  0xb2   :  { %1287 = vmatpush.msra.mxu1 %v7669_v9  ;;  %1407 = vmatpush.msra.mxu3 %v1406_v40  ;;  %v1429_v9 = vsub.f32 %v7954_v43, %v1428_v23  ;;  %v1436_v61 = vand.u32 4294901760, %v1435_v57  ;;  %v12823_v40 = vld [vmem:[#allocation16_spill] sm:$0xff] }
  0xb3   :  { %1248 = vmatpush.msra.mxu0 %v12819_v24  ;;  %1330 = vmatpush.msra.mxu2 %v7900_v38  ;;  %v12824_v15 = vand.u32 4294901760, %v12823_v40  ;;  %v12830_v24 = vand.u32 4294901760, %v7801_v41 }
  0xb4   :  { %1289 = vmatpush.msra.mxu1 %v7682_v45  ;;  %1413 = vmatpush.msra.mxu3 %v1412_v55  ;;  %v1424_v45 = vand.u32 4294901760, %v1423_v56  ;;  %v1430_v21 = vand.u32 4294901760, %v1429_v9  ;;  %v262_v56 = vld [vmem:[#allocation5 + $0x5d0] sm:$0xff] }
  0xb5   :  { %1158 = vmatmul.f32.vlgmr.msrb.gmra.mxu2 %v7428_v19  ;;  %1252 = vmatpush.msra.mxu0 %v12820_v32  ;;  %v8037_v9 = vand.u32 4294901760, %v262_v56  ;;  %v236_v32 = vld [vmem:[#allocation5 + $0x500] sm:$0xff] }
  0xb6   :  { %1291 = vmatpush.msra.mxu1 %v7694_v35  ;;  %1332 = vmatpush.msra.mxu2 %v7918_v59  ;;  %v1441_v35 = vsub.f32 %v7975_v27, %v1440_v60 }
  0xb7   :  { %1419 = vmatpush.msra.mxu3 %v1418_v49  ;;  %1003 = vmatmul.f32.vlgmr.msrb.gmra.mxu0 %v7493_v25  ;;  %v249_v49 = vld [vmem:[#allocation5 + $0x568] sm:$0xff]  ;;  %12832 = vst [vmem:[#allocation15_spill] sm:$0xff] %v8037_v9 }
  0xb8   :  { %1197 = vmatmul.f32.vlgmr.msrb.gmra.mxu3 %v7453_v28  ;;  %1256 = vmatpush.msra.mxu0 %v12821_v29  ;;  %v1442_v30 = vand.u32 4294901760, %v1441_v35  ;;  %v8042_v57 = vand.u32 4294901760, %v249_v49  ;;  %v223_v29 = vld [vmem:[#allocation5 + $0x498] sm:$0xff]  ;;  %v8057_v35 = vsub.f32 %v262_v56, %v8037_v9 }
  0xb9   :  { %1293 = vmatpush.msra.mxu1 %v7706_v62  ;;  %1334 = vmatpush.msra.mxu2 %v7931_v8  ;;  %v12826_v62 = vld [vmem:[#allocation17_spill] sm:$0xff] }
  0xba   :  { %1425 = vmatpush.msra.mxu3 %v1424_v45  ;;  %1104 = vmatmul.f32.vlgmr.msrb.gmra.mxu1 %v7404_v16  ;;  %v12827_v55 = vand.u32 4294901760, %v12826_v62  ;;  %v12833_v45 = vld [vmem:[#allocation19_spill] sm:$0xff]  ;;  %12835 = vst [vmem:[#allocation17_spill] sm:$0xff] %v8042_v57 }
  0xbb   :  { %1260 = vmatpush.msra.mxu0 %v12822_v20  ;;  %1295 = vmatpush.msra.mxu1 %v7718_v7  ;;  %v12828_v7 = vld [vmem:[#allocation18_spill] sm:$0xff]  ;;  %12838 = vst [vmem:[#allocation19_spill] sm:$0xff] %v8057_v35  ;;  %v210_v20 = vld [vmem:[#allocation5 + $0x430] sm:$0xff] }
  0xbc   :  { %1336 = vmatpush.msra.mxu2 %v7943_v12  ;;  %1431 = vmatpush.msra.mxu3 %v1430_v21  ;;  %v12829_v11 = vand.u32 4294901760, %v12828_v7 }
  0xbd   :  { %1264 = vmatpush.msra.mxu0 %v12824_v15  ;;  %1297 = vmatpush.msra.mxu1 %v12825_v10  ;;  %v197_v15 = vld [vmem:[#allocation5 + $0x3c8] sm:$0xff]  ;;  %v12845_v10 = vand.u32 4294901760, %v7882_v54 }
  0xbe   :  { %1338 = vmatpush.msra.mxu2 %v7956_v0  ;;  %1437 = vmatpush.msra.mxu3 %v1436_v61  ;;  %v12840_v61 = vand.u32 4294901760, %v7845_v17 }
  0xbf   :  { %1451 = vmatpush.msrb.mxu0 %v12826_v62  ;;  %1299 = vmatpush.msra.mxu1 %v7742_v44  ;;  %v8035_v44 = vand.u32 4294901760, %v275_v3 }
  0xc0   :  { %1545 = vmatpush.msrb.mxu2 %v12827_v55  ;;  %1443 = vmatpush.msra.mxu3 %v1442_v30  ;;  %v12475_v30 = vand.u32 4294901760, %v8057_v35  ;;  %v184_v55 = vld [vmem:[#allocation5 + $0x360] sm:$0xff] }
  0xc1   :  { %1266 = vmatmul.f32.vlgmr.msra.gmra.mxu0 %v7404_v16  ;;  %1301 = vmatpush.msra.mxu1 %v7756_v5  ;;  %12831 = vst [vmem:[#allocation16_spill] sm:$0xff] %v8035_v44  ;;  %v12834_v5 = vand.u32 4294901760, %v12833_v45  ;;  %v8054_v21 = vsub.f32 %v275_v3, %v8035_v44 }
  0xc2   :  { %1549 = vmatpush.msrb.mxu2 %v12829_v11  ;;  %1454 = vmatpush.msrb.mxu0 %v12828_v7  ;;  %v8104_v7 = vsub.f32 %v8057_v35, %v12475_v30  ;;  %v171_v11 = vld [vmem:[#allocation5 + $0x2f8] sm:$0xff] }
  0xc3   :  { %1612 = vmatpush.msrb.mxu3 %v7746_v58  ;;  %1303 = vmatmul.f32.vlgmr.msra.gmra.mxu1 %v7404_v16 }
  0xc4   :  { %1553 = vmatpush.msrb.mxu2 %v12830_v24  ;;  %1457 = vmatpush.msrb.mxu0 %v7801_v41  ;;  %v12836_v41 = vand.u32 4294901760, %v7833_v37  ;;  %v8115_v24 = vand.u32 4294901760, %v197_v15 }
  0xc5   :  { %1504 = vmatpush.msrb.mxu1 %v7746_v58  ;;  %1614 = vmatpush.msrb.mxu3 %v7760_v52  ;;  %v8049_v58 = vand.u32 4294901760, %v236_v32 }
  0xc6   :  { %1460 = vmatpush.msrb.mxu0 %v12833_v45  ;;  %1557 = vmatpush.msrb.mxu2 %v12834_v5  ;;  %v158_v5 = vld [vmem:[#allocation5 + $0x290] sm:$0xff] }
  0xc7   :  { %1506 = vmatpush.msrb.mxu1 %v7760_v52  ;;  %1616 = vmatpush.msrb.mxu3 %v7775_v31  ;;  %12837 = vst [vmem:[#allocation18_spill] sm:$0xff] %v8049_v58  ;;  %v8059_v52 = vand.u32 4294901760, %v223_v29 }
  0xc8   :  { %1463 = vmatpush.msrb.mxu0 %v7833_v37  ;;  %1561 = vmatpush.msrb.mxu2 %v12836_v41  ;;  %v8065_v37 = vsub.f32 %v249_v49, %v8042_v57  ;;  %v8119_v49 = vld [vmem:[#allocation7] sm:$0xff] }
  0xc9   :  { %1508 = vmatpush.msrb.mxu1 %v7775_v31  ;;  %1618 = vmatpush.msrb.mxu3 %v7795_v36  ;;  %12839 = vst [vmem:[#allocation24_spill] sm:$0xff] %v8059_v52  ;;  %v8073_v31 = vsub.f32 %v236_v32, %v8049_v58 }
  0xca   :  { %1466 = vmatpush.msrb.mxu0 %v7845_v17  ;;  %1565 = vmatpush.msrb.mxu2 %v12840_v61  ;;  %12841 = vst [vmem:[#allocation25_spill] sm:$0xff] %v8065_v37  ;;  %v12476_v17 = vand.u32 4294901760, %v8054_v21  ;;  %v12474_v40 = vand.u32 4294901760, %v8065_v37 }
  0xcb   :  { %1510 = vmatpush.msrb.mxu1 %v7795_v36  ;;  %1620 = vmatpush.msrb.mxu3 %v7808_v48  ;;  %12842 = vst [vmem:[#allocation26_spill] sm:$0xff] %v8073_v31  ;;  %v8080_v36 = vsub.f32 %v223_v29, %v8059_v52  ;;  %v12473_v62 = vand.u32 4294901760, %v8073_v31 }
  0xcc   :  { %1469 = vmatpush.msrb.mxu0 %v7857_v50  ;;  %1569 = vmatpush.msrb.mxu2 %v1386_v26  ;;  %v12844_v50 = vand.u32 4294901760, %v7870_v22  ;;  %v322_v26 = vpop.f32.mrf.mxu0  ;;  %v8113_v56 = vsub.f32 %v8065_v37, %v12474_v40  ;;  %v106_v40 = vld [vmem:[#allocation5 + $0xf0] sm:$0xff] }
  0xcd   :  { %1512 = vmatpush.msrb.mxu1 %v7808_v48  ;;  %1622 = vmatpush.msrb.mxu3 %v7820_v51  ;;  %12843 = vst [vmem:[#allocation27_spill] sm:$0xff] %v8080_v36  ;;  %v8088_v48 = vand.u32 4294901760, %v210_v20  ;;  %v8132_v45 = vsub.f32 %v8073_v31, %v12473_v62  ;;  %v8180_v30 = vand.u32 4294901760, %v106_v40 }
  0xce   :  { %1472 = vmatpush.msrb.mxu0 %v7870_v22  ;;  %1573 = vmatpush.msrb.mxu2 %v12844_v50  ;;  %v423_v22 = vpop.f32.mrf.mxu1  ;;  %v4721_v50 = vperm.slane %v8119_v49, 0 }
  0xcf   :  { %1514 = vmatpush.msrb.mxu1 %v7820_v51  ;;  %1624 = vmatpush.msrb.mxu3 %v7835_v13  ;;  %v8099_v51 = vsub.f32 %v8054_v21, %v12476_v17  ;;  %v8122_v32 = vsub.f32 %v210_v20, %v8088_v48  ;;  %v132_v20 = vld [vmem:[#allocation5 + $0x1c0] sm:$0xff] }
  0xd0   :  { %1475 = vmatpush.msrb.mxu0 %v7882_v54  ;;  %1577 = vmatpush.msrb.mxu2 %v12845_v10  ;;  %v12472_v54 = vand.u32 4294901760, %v8080_v36  ;;  %v8151_v10 = vsub.f32 %v197_v15, %v8115_v24  ;;  %v276_v15 = vld [vmem:[#allocation5 + $0x640] sm:$0xff] }
  0xd1   :  { %1516 = vmatpush.msrb.mxu1 %v7835_v13  ;;  %1626 = vmatpush.msrb.mxu3 %v7847_v47  ;;  %v424_v13 = vadd.f32 %v423_v22, %v322_v26  ;;  %12846 = vst [vmem:[#allocation28_spill] sm:$0xff] %v8122_v32  ;;  %v12477_v22 = vand.u32 4294901760, %v8122_v32 }
  0xd2   :  { %1478 = vmatpush.msrb.mxu0 %v7895_v4  ;;  %1581 = vmatpush.msrb.mxu2 %v1404_v46  ;;  %v8124_v4 = vand.u32 4294901760, %v184_v55 }
  0xd3   :  { %v477_v3 = vpop.f32.mrf.mxu2  ;;  %1518 = vmatpush.msrb.mxu1 %v7847_v47  ;;  %1628 = vmatpush.msrb.mxu3 %v7859_v34  ;;  %v8134_v47 = vand.u32 4294901760, %v171_v11 }
  0xd4   :  { %1481 = vmatpush.msrb.mxu0 %v7908_v6  ;;  %1585 = vmatpush.msrb.mxu2 %v1410_v63  ;;  %v478_v46 = vadd.f32 %v477_v3, %v424_v13  ;;  %v8143_v6 = vsub.f32 %v8080_v36, %v12472_v54  ;;  %v145_v63 = vld [vmem:[#allocation5 + $0x228] sm:$0xff]  ;;  %v8157_v13 = vsub.f32 %v184_v55, %v8124_v4  ;;  %v8159_v3 = vand.u32 4294901760, %v158_v5 }
  0xd5   :  { %12847 = vst [vmem:[#allocation29_spill] sm:$0xff] %v8134_v47  ;;  %1520 = vmatpush.msrb.mxu1 %v7859_v34  ;;  %1630 = vmatpush.msrb.mxu3 %v7872_v33  ;;  %v516_v29 = vpop.f32.mrf.mxu3 }
  0xd6   :  { %1484 = vmatpush.msrb.mxu0 %v7924_v53  ;;  %1589 = vmatpush.msrb.mxu2 %v1416_v39  ;;  %v517_v34 = vadd.f32 %v516_v29, %v478_v46  ;;  %12848 = vst [vmem:[#allocation30_spill] sm:$0xff] %v8159_v3  ;;  %v119_v53 = vld [vmem:[#allocation5 + $0x158] sm:$0xff]  ;;  %v8165_v46 = vsub.f32 %v171_v11, %v8134_v47  ;;  %v8169_v29 = vand.u32 4294901760, %v132_v20  ;;  %v12478_v11 = vand.u32 4294901760, %v8151_v10 }
  0xd7   :  { %1522 = vmatpush.msrb.mxu1 %v7872_v33  ;;  %1632 = vmatpush.msrb.mxu3 %v7884_v2  ;;  %v8167_v33 = vand.u32 4294901760, %v145_v63  ;;  %v8175_v62 = vand.u32 4294901760, %v119_v53 }
  0xd8   :  { %1344 = vmatmul.f32.vlgmr.msra.gmra.mxu2 %v7493_v25  ;;  %1487 = vmatpush.msrb.mxu0 %v7941_v42  ;;  %v585_v39 = vpop.f32.mrf.mxu0  ;;  %v8187_v42 = vsub.f32 %v8122_v32, %v12477_v22  ;;  %v8203_v22 = vsub.f32 %v132_v20, %v8169_v29 }
  0xd9   :  { %12849 = vst [vmem:[#allocation31_spill] sm:$0xff] %v8167_v33  ;;  %1524 = vmatpush.msrb.mxu1 %v7884_v2  ;;  %1593 = vmatpush.msrb.mxu2 %v1422_v1  ;;  %v586_v55 = vadd.f32 %v585_v39, %v517_v34  ;;  %v12479_v1 = vand.u32 4294901760, %v8157_v13  ;;  %v8191_v34 = vsub.f32 %v158_v5, %v8159_v3  ;;  %v93_v39 = vld [vmem:[#allocation5 + $0x88] sm:$0xff] }
  0xda   :  { %1634 = vmatpush.msrb.mxu3 %v7900_v38  ;;  %1490 = vmatpush.msrb.mxu0 %v7954_v43  ;;  %v8200_v54 = vsub.f32 %v145_v63, %v8167_v33  ;;  %v8208_v43 = vsub.f32 %v119_v53, %v8175_v62  ;;  %v8213_v5 = vand.u32 4294901760, %v93_v39  ;;  %v263_v53 = vld [vmem:[#allocation5 + $0x5d8] sm:$0xff] }
  0xdb   :  { %1445 = vmatmul.f32.vlgmr.msra.gmra.mxu3 %v7404_v16  ;;  %1526 = vmatpush.msrb.mxu1 %v7900_v38  ;;  %v622_v2 = vpop.f32.mrf.mxu1  ;;  %v12480_v38 = vand.u32 4294901760, %v8165_v46 }
  0xdc   :  { %1597 = vmatpush.msrb.mxu2 %v1428_v23  ;;  %1636 = vmatpush.msrb.mxu3 %v7918_v59  ;;  %v8196_v17 = vadd.f32 %v622_v2, %v586_v55  ;;  %v8211_v23 = vsub.f32 %v106_v40, %v8180_v30  ;;  %v80_v55 = vld [vmem:[#allocation5 + $0x20] sm:$0xff]  ;;  %v8215_v2 = vand.u32 4294901760, %v276_v15  ;;  %v8239_v20 = vsub.f32 %v93_v39, %v8213_v5 }
  0xdd   :  { %1493 = vmatpush.msrb.mxu0 %v7964_v14  ;;  %1528 = vmatpush.msrb.mxu1 %v7918_v59  ;;  %v8226_v59 = vsub.f32 %v8151_v10, %v12478_v11  ;;  %v8228_v40 = vand.u32 4294901760, %v80_v55  ;;  %v8235_v14 = vsub.f32 %v8157_v13, %v12479_v1  ;;  %v8268_v1 = vand.u32 4294901760, %v263_v53 }
  0xde   :  { %12850 = vst [vmem:[#allocation32_spill] sm:$0xff] %v8196_v17  ;;  %1601 = vmatpush.msrb.mxu2 %v1434_v18  ;;  %1638 = vmatpush.msrb.mxu3 %v7931_v8  ;;  %v8221_v63 = vadd.f32 %v4721_v50, %v8196_v17  ;;  %v12482_v18 = vand.u32 4294901760, %v8191_v34  ;;  %v8242_v50 = vsub.f32 %v276_v15, %v8215_v2  ;;  %v12856_v26 = vand.u32 4294901760, %v8208_v43 }
  0xdf   :  { %1496 = vmatpush.msrb.mxu0 %v7975_v27  ;;  %1530 = vmatpush.msrb.mxu1 %v7931_v8  ;;  %v8256_v15 = vsub.f32 %v8165_v46, %v12480_v38  ;;  %v8261_v39 = vsub.f32 %v80_v55, %v8228_v40  ;;  %12853 = vst [vmem:[#allocation35_spill] sm:$0xff] %v8268_v1  ;;  %v12855_v27 = vand.u32 4294901760, %v8203_v22 }
  0xe0   :  { %12851 = vst [vmem:[#allocation33_spill] sm:$0xff] %v8221_v63  ;;  %1605 = vmatpush.msrb.mxu2 %v1440_v60  ;;  %1640 = vmatpush.msrb.mxu3 %v7943_v12  ;;  %v12481_v8 = vand.u32 2147483647, %v8221_v63  ;;  %v4763_v11 = vand.u32 2139095040, %v8221_v63  ;;  %v8276_v55 = vsub.f32 %v8191_v34, %v12482_v18  ;;  %v12854_v60 = vand.u32 4294901760, %v8200_v54 }
  0xe1   :  { %12852 = vst [vmem:[#allocation34_spill] sm:$0xff] %v8242_v50  ;;  %1607 = vmatmul.f32.vlgmr.msrb.gmra.mxu2 %v7404_v16  ;;  %1649 = vmatpush.msra.mxu0 %v8035_v44  ;;  %v8291_v18 = vsub.f32 %v8203_v22, %v12855_v27  ;;  %v8300_v17 = vsub.f32 %v8208_v43, %v12856_v26  ;;  %v237_v26 = vld [vmem:[#allocation5 + $0x508] sm:$0xff] }
  0xe2   :  { %1792 = vmatpush.msra.mxu2 %v8054_v21  ;;  %1532 = vmatpush.msrb.mxu1 %v7943_v12  ;;  %v4764_v61 = vshrl.u32 %v4763_v11, 23  ;;  %v4767_v41 = vand.u32 8388607, %v12481_v8  ;;  %v8286_v38 = vsub.f32 %v8200_v54, %v12854_v60  ;;  %v250_v12 = vld [vmem:[#allocation5 + $0x570] sm:$0xff]  ;;  %v12857_v60 = vand.u32 4294901760, %v8211_v23 }
  0xe3   :  { %1642 = vmatpush.msrb.mxu3 %v7956_v0  ;;  %1499 = vmatmul.f32.vlgmr.msrb.gmra.mxu0 %v7428_v19  ;;  %v12858_v11 = vand.u32 4294901760, %v8239_v20  ;;  %v8315_v19 = vsub.f32 %v263_v53, %v8268_v1  ;;  %v8330_v63 = vand.u32 4294901760, %v250_v12  ;;  %v12865_v53 = vand.u32 4294901760, %v8099_v51 }
  0xe4   :  { %1644 = vmatmul.f32.vlgmr.msrb.gmra.mxu3 %v7404_v16  ;;  %1651 = vmatpush.msra.mxu0 %v8037_v9  ;;  %v6877_v8 = vadd.s32 4294967169, %v4764_v61  ;;  %v8305_v16 = vsub.f32 %v8211_v23, %v12857_v60  ;;  %v4768_v27 = vor.u32 8388608, %v4767_v41  ;;  %v224_v60 = vld [vmem:[#allocation5 + $0x4a0] sm:$0xff]  ;;  %v12868_v1 = vand.u32 4294901760, %v8113_v56 }
  0xe5   :  { %1795 = vmatpush.msra.mxu2 %v8057_v35  ;;  %1845 = vmatpush.msra.mxu3 %v8035_v44  ;;  %v8312_v61 = vsub.f32 %v8239_v20, %v12858_v11  ;;  %12859 = vst [vmem:[#allocation36_spill] sm:$0xff] %v8315_v19 }
  0xe6   :  { %1534 = vmatpush.msrb.mxu1 %v7956_v0  ;;  %1653 = vmatpush.msra.mxu0 %v8042_v57  ;;  %v4770_v25 = vadd.s32 1, %v6877_v8  ;;  %v12860_v0 = vand.u32 4294901760, %v8242_v50  ;;  %v12862_v8 = vand.u32 4294901760, %v8261_v39  ;;  %12864 = vst [vmem:[#allocation39_spill] sm:$0xff] %v8330_v63 }
  0xe7   :  { %1538 = vmatmul.f32.vlgmr.msrb.gmra.mxu1 %v7453_v28  ;;  %1798 = vmatpush.msra.mxu2 %v8065_v37 }
  0xe8   :  { %v8323_v41 = vsub.f32 %v8242_v50, %v12860_v0  ;;  %v8328_v11 = vsub.f32 %v8261_v39, %v12862_v8  ;;  %1694 = vmatpush.msra.mxu1 %v12865_v53  ;;  %1847 = vmatpush.msra.mxu3 %v8037_v9  ;;  %vm4771_vm0 = vcmp.gt.s32.totalorder %v4770_v25, 0  ;;  %v8341_v50 = vand.u32 4294901760, %v237_v26 }
  0xe9   :  { %v4772_v44 = vsel %vm4771_vm0, %v4770_v25, 0  ;;  %1655 = vmatpush.msra.mxu0 %v8049_v58  ;;  %1801 = vmatpush.msra.mxu2 %v8073_v31  ;;  %v8343_v53 = vshll.u32 %v4768_v27, 8  ;;  %v12866_v9 = vand.u32 4294901760, %v8104_v7  ;;  %v8357_v7 = vsub.f32 %v250_v12, %v8330_v63 }
  0xea   :  { %12861 = vst [vmem:[#allocation37_spill] sm:$0xff] %v8323_v41  ;;  %v4774_v51 = vand.u32 31, %v4772_v44  ;;  %1849 = vmatpush.msra.mxu3 %v8042_v57  ;;  %v8350_v31 = vshrl.u32 %v4772_v44, 5  ;;  %v12505_v0 = vmov 683565275  }
  0xeb   :  { %12863 = vst [vmem:[#allocation38_spill] sm:$0xff] %v8328_v11  ;;  %1700 = vmatpush.msra.mxu1 %v12866_v9  ;;  %1657 = vmatpush.msra.mxu0 %v8059_v52  ;;  %v12507_v57 = vmov 2475754826   ;;  %v12509_v44 = vmov 2131351028   ;;  %v8378_v11 = vand.u32 65535, %v8343_v53 }
  0xec   :  { %1804 = vmatpush.msra.mxu2 %v8080_v36  ;;  %12867 = vst [vmem:[#allocation40_spill] sm:$0xff] %v8357_v7  ;;  %v4775_v9 = vsub.s32 32, %v4774_v51  ;;  %v4777_v25 = vshll.u32 %v12505_v0, %v4774_v51  ;;  %v4780_v28 = vshll.u32 %v12507_v57, %v4774_v51  ;;  %v4783_v37 = vshll.u32 %v12509_v44, %v4774_v51 }
  0xed   :  { %1706 = vmatpush.msra.mxu1 %v12868_v1  ;;  %1851 = vmatpush.msra.mxu3 %v8049_v58  ;;  %v12518_v8 = vmov 2102212464   ;;  %v12520_v12 = vmov 920167782   ;;  %v8369_v0 = vand.u32 4294901760, %v224_v60  ;;  %v8372_v57 = vsub.f32 %v237_v26, %v8341_v50 }
  0xee   :  { %v4786_v27 = vshll.u32 %v12518_v8, %v4774_v51  ;;  %v4789_v36 = vshll.u32 %v12520_v12, %v4774_v51  ;;  %1659 = vmatpush.msra.mxu0 %v8088_v48  ;;  %1807 = vmatpush.msra.mxu2 %v8122_v32  ;;  %v12871_v44 = vmov 2475754826   ;;  %v12872_v1 = vmov 2131351028  }
  0xef   :  { %12869 = vst [vmem:[#allocation41_spill] sm:$0xff] %v8369_v0  ;;  %v4778_v56 = vshrl.u32 %v12871_v44, %v4775_v9  ;;  %v4781_v63 = vshrl.u32 %v12872_v1, %v4775_v9  ;;  %v4784_v58 = vshrl.u32 %v12518_v8, %v4775_v9  ;;  %v12873_v51 = vand.u32 4294901760, %v8132_v45  ;;  %1853 = vmatpush.msra.mxu3 %v8059_v52  ;;  %v211_v1 = vld [vmem:[#allocation5 + $0x438] sm:$0xff] }
  0xf0   :  { %12870 = vst [vmem:[#allocation42_spill] sm:$0xff] %v8372_v57  ;;  %v4787_v41 = vshrl.u32 %v12520_v12, %v4775_v9  ;;  %v12522_v32 = vmov 1326507024   ;;  %vm4792_vm1 = vcmp.lt.s32.totalorder %v8350_v31, 1  ;;  %1661 = vmatpush.msra.mxu0 %v8115_v24  ;;  %v12874_v26 = vand.u32 4294901760, %v8315_v19  ;;  %1810 = vmatpush.msra.mxu2 %v8151_v10 }
  0xf1   :  { %1712 = vmatpush.msra.mxu1 %v12873_v51  ;;  %v4790_v35 = vshrl.u32 %v12522_v32, %v4775_v9  ;;  %v4779_v44 = vor.u32 %v4778_v56, %v4777_v25  ;;  %v4782_v45 = vor.u32 %v4781_v63, %v4780_v28  ;;  %v4785_v51 = vor.u32 %v4784_v58, %v4783_v37 }
  0xf2   :  { %v8390_v8 = vsub.f32 %v8315_v19, %v12874_v26  ;;  %vm4795_vm2 = vcmp.lt.s32.totalorder %v8350_v31, 4  ;;  %v12875_v12 = vand.u32 4294901760, %v8143_v6  ;;  %v4788_v32 = vor.u32 %v4787_v41, %v4786_v27  ;;  %1855 = vmatpush.msra.mxu3 %v8088_v48  ;;  %1663 = vmatpush.msra.mxu0 %v8124_v4 }
  0xf3   :  { %v4791_v52 = vor.u32 %v4790_v35, %v4789_v36  ;;  %vm4794_vm3 = vcmp.lt.s32.totalorder %v8350_v31, 3  ;;  %v12525_v26 = vand.u32 4294901760, %v8357_v7  ;;  %v4800_v28 = vsel %vm4792_vm1, %v4779_v44, %v4782_v45  ;;  %1813 = vmatpush.msra.mxu2 %v8157_v13 }
  0xf4   :  { %1718 = vmatpush.msra.mxu1 %v12875_v12  ;;  %v4804_v58 = vsel %vm4792_vm1, %v4782_v45, %v4785_v51  ;;  %v12876_v37 = vand.u32 4294901760, %v8187_v42  ;;  %v12526_v35 = vand.u32 4294901760, %v8372_v57  ;;  %v8408_v36 = vand.u32 4294901760, %v211_v1  ;;  %1857 = vmatpush.msra.mxu3 %v8115_v24 }
  0xf5   :  { %v12878_v6 = vmov 683565275   ;;  %v4801_v41 = vsel %vm4795_vm2, %v4788_v32, 920167782  ;;  %v4805_v25 = vsel %vm4795_vm2, %v4791_v52, 1326507024  ;;  %1665 = vmatpush.msra.mxu0 %v8134_v47  ;;  %v8418_v42 = vsub.f32 %v224_v60, %v8369_v0  ;;  %1816 = vmatpush.msra.mxu2 %v8165_v46 }
  0xf6   :  { %1724 = vmatpush.msra.mxu1 %v12876_v37  ;;  %12877 = vst [vmem:[#allocation43_spill] sm:$0xff] %v8408_v36  ;;  %v4776_v63 = vshrl.u32 %v12878_v6, %v4775_v9  ;;  %vm4793_vm4 = vcmp.lt.s32.totalorder %v8350_v31, 2  ;;  %v4797_v27 = vsel %vm4795_vm2, %v4785_v51, 2102212464  ;;  %v4802_v9 = vsel %vm4794_vm3, %v4785_v51, %v4801_v41  ;;  %1859 = vmatpush.msra.mxu3 %v8124_v4  ;;  %v663_v51 = vpop.f32.mrf.mxu2 }
  0xf7   :  { %v4806_v12 = vsel %vm4794_vm3, %v4788_v32, %v4805_v25  ;;  %v12879_v52 = vand.u32 4294901760, %v8226_v59  ;;  %v4803_v60 = vsel %vm4793_vm4, %v4800_v28, %v4802_v9  ;;  %v4810_v37 = vshrl.u32 %v8343_v53, 16  ;;  %1667 = vmatpush.msra.mxu0 %v8159_v3  ;;  %v8442_v59 = vld [vmem:[#allocation5 + $0x3d0] sm:$0xff]  ;;  %1819 = vmatpush.msra.mxu2 %v8191_v34 }
  0xf8   :  { %v4807_v56 = vsel %vm4793_vm4, %v4804_v58, %v4806_v12  ;;  %v8440_v32 = vsub.f32 %v8357_v7, %v12525_v26  ;;  %v4833_v28 = vand.u32 65535, %v4803_v60  ;;  %v4834_v9 = vshrl.u32 %v4803_v60, 16  ;;  %1861 = vmatpush.msra.mxu3 %v8134_v47  ;;  %v185_v7 = vld [vmem:[#allocation5 + $0x368] sm:$0xff] }
  0xf9   :  { %1730 = vmatpush.msra.mxu1 %v12879_v52  ;;  %v4811_v41 = vand.u32 65535, %v4807_v56  ;;  %v4812_v25 = vshrl.u32 %v4807_v56, 16  ;;  %v12880_v58 = vand.u32 4294901760, %v8235_v14  ;;  %v4796_v12 = vsel %vm4792_vm1, %v4776_v63, %v4779_v44  ;;  %1669 = vmatpush.msra.mxu0 %v8167_v33 }
  0xfa   :  { %v4798_v52 = vsel %vm4794_vm3, %v4782_v45, %v4797_v27  ;;  %v8457_v60 = vsub.f32 %v8372_v57, %v12526_v35  ;;  %v12881_v44 = vand.u32 4294901760, %v8256_v15  ;;  %v764_v45 = vpop.f32.mrf.mxu3  ;;  %v8467_v63 = vand.u32 4294901760, %v8442_v59  ;;  %1822 = vmatpush.msra.mxu2 %v8200_v54  ;;  %1863 = vmatpush.msra.mxu3 %v8159_v3 }
  0xfb   :  { %1736 = vmatpush.msra.mxu1 %v12880_v58  ;;  %v8460_v14 = vmul.u32 %v4812_v25, %v8378_v11  ;;  %v8462_v56 = vmul.u32 %v4811_v41, %v4810_v37  ;;  %v8470_v27 = vsub.f32 %v211_v1, %v8408_v36  ;;  %v8473_v58 = vmul.u32 %v4834_v9, %v8378_v11 }
  0xfc   :  { %12882 = vst [vmem:[#allocation44_spill] sm:$0xff] %v8467_v63  ;;  %v8475_v35 = vmul.u32 %v4833_v28, %v4810_v37  ;;  %v8482_v15 = vsel %vm4793_vm4, %v4796_v12, %v4798_v52  ;;  %1671 = vmatpush.msra.mxu0 %v8169_v29  ;;  %v4816_v19 = vmul.u32 %v4812_v25, %v4810_v37  ;;  %v12883_v31 = vand.u32 4294901760, %v8276_v55 }
  0xfd   :  { %1742 = vmatpush.msra.mxu1 %v12881_v44  ;;  %v4813_v44 = vmul.u32 %v4811_v41, %v8378_v11  ;;  %v4817_v1 = vshll.u32 %v8460_v14, 16  ;;  %v4835_v47 = vmul.u32 %v4833_v28, %v8378_v11  ;;  %v4838_v26 = vmul.u32 %v4834_v9, %v4810_v37  ;;  %1825 = vmatpush.msra.mxu2 %v8203_v22  ;;  %v818_v41 = vpop.f32.mrf.mxu0 }
  0xfe   :  { %v4839_v57 = vshll.u32 %v8473_v58, 16  ;;  %v4819_v12 = vshll.u32 %v8462_v56, 16  ;;  %1865 = vmatpush.msra.mxu3 %v8167_v33  ;;  %1673 = vmatpush.msra.mxu0 %v8175_v62  ;;  %v765_v25 = vadd.f32 %v764_v45, %v663_v51  ;;  %v12536_v11 = vmov 0   ;;  %v857_v45 = vpop.f32.mrf.mxu1 }
  0xff   :  { %1748 = vmatpush.msra.mxu1 %v12883_v31  ;;  %vm4821_vm5 = vc.u32 %v4813_v44, %v4817_v1  ;;  %v4823_v52 = vadd.s32 %v4817_v1, %v4813_v44  ;;  %v4841_v28 = vshll.u32 %v8475_v35, 16  ;;  %v12884_v9 = vand.u32 4294901760, %v8286_v38  ;;  %1828 = vmatpush.msra.mxu2 %v8208_v43  ;;  %v172_v1 = vld [vmem:[#allocation5 + $0x300] sm:$0xff]  ;;  %v159_v38 = vld [vmem:[#allocation5 + $0x298] sm:$0xff] }
 0x100   :  { %v4822_v37 = vsel %vm4821_vm5, 1, %v12536_v11  ;;  %vm4843_vm6 = vc.u32 %v4835_v47, %v4839_v57  ;;  %v4845_v55 = vadd.s32 %v4839_v57, %v4835_v47  ;;  %1867 = vmatpush.msra.mxu3 %v8169_v29  ;;  %1675 = vmatpush.msra.mxu0 %v8180_v30  ;;  %v819_v51 = vadd.f32 %v818_v41, %v765_v25 }
 0x101   :  { %1754 = vmatpush.msra.mxu1 %v12884_v9  ;;  %v4824_v31 = vadd.s32 %v4822_v37, %v4816_v19  ;;  %vm4825_vm7 = vc.u32 %v4823_v52, %v4819_v12  ;;  %v4844_v44 = vsel %vm4843_vm6, 1, %v12536_v11  ;;  %v12885_v57 = vand.u32 4294901760, %v8291_v18  ;;  %1831 = vmatpush.msra.mxu2 %v8211_v23  ;;  %v926_v19 = vpop.f32.mrf.mxu2 }
 0x102   :  { %v4826_v33 = vsel %vm4825_vm7, 1, %v12536_v11  ;;  %v4846_v3 = vadd.s32 %v4844_v44, %v4838_v26  ;;  %vm4847_vm8 = vc.u32 %v4845_v55, %v4841_v28  ;;  %v8509_v47 = vand.u32 4294901760, %v185_v7  ;;  %1869 = vmatpush.msra.mxu3 %v8175_v62  ;;  %1677 = vmatpush.msra.mxu0 %v8213_v5  ;;  %v963_v9 = vpop.f32.mrf.mxu3 }
 0x103   :  { %1760 = vmatpush.msra.mxu1 %v12885_v57  ;;  %v4818_v12 = vshrl.u32 %v8460_v14, 16  ;;  %v4828_v52 = vadd.s32 %v4826_v33, %v4824_v31  ;;  %v4848_v41 = vsel %vm4847_vm8, 1, %v12536_v11  ;;  %v858_v26 = vadd.f32 %v857_v45, %v819_v51  ;;  %1834 = vmatpush.msra.mxu2 %v8239_v20  ;;  %v146_v31 = vld [vmem:[#allocation5 + $0x230] sm:$0xff]  ;;  %v133_v57 = vld [vmem:[#allocation5 + $0x1c8] sm:$0xff] }
 0x104   :  { %12886 = vst [vmem:[#allocation45_spill] sm:$0xff] %v8509_v47  ;;  %v4840_v25 = vshrl.u32 %v8473_v58, 16  ;;  %v4850_v18 = vadd.s32 %v4848_v41, %v4846_v3  ;;  %v12887_v37 = vand.u32 4294901760, %v8300_v17  ;;  %v12888_v44 = vand.u32 4294901760, %v8418_v42  ;;  %1871 = vmatpush.msra.mxu3 %v8180_v30  ;;  %1679 = vmatpush.msra.mxu0 %v8228_v40 }
 0x105   :  { %v8524_v14 = vand.u32 4294901760, %v172_v1  ;;  %v4820_v51 = vshrl.u32 %v8462_v56, 16  ;;  %v4829_v45 = vadd.s32 %v4828_v52, %v4818_v12  ;;  %v927_v17 = vadd.f32 %v926_v19, %v858_v26  ;;  %1837 = vmatpush.msra.mxu2 %v8261_v39 }
 0x106   :  { %1766 = vmatpush.msra.mxu1 %v12887_v37  ;;  %v8522_v33 = vsub.f32 %v8418_v42, %v12888_v44  ;;  %v8529_v3 = vand.u32 4294901760, %v159_v38  ;;  %v4842_v58 = vshrl.u32 %v8475_v35, 16  ;;  %v8532_v41 = vadd.s32 %v4845_v55, %v4841_v28  ;;  %1873 = vmatpush.msra.mxu3 %v8213_v5 }
 0x107   :  { %12889 = vst [vmem:[#allocation46_spill] sm:$0xff] %v8524_v14  ;;  %v4851_v37 = vadd.s32 %v4850_v18, %v4840_v25  ;;  %v12891_v44 = vand.u32 4294901760, %v8305_v16  ;;  %v8539_v56 = vsub.f32 %v8442_v59, %v8467_v63  ;;  %v8541_v12 = vadd.s32 %v4829_v45, %v4820_v51  ;;  %v120_v16 = vld [vmem:[#allocation5 + $0x160] sm:$0xff]  ;;  %1990 = vmatpush.msrb.mxu2 %v8215_v2  ;;  %v12896_v18 = vld [vmem:[#allocation19_spill] sm:$0xff] }
 0x108   :  { %12890 = vst [vmem:[#allocation47_spill] sm:$0xff] %v8529_v3  ;;  %v12892_v19 = vand.u32 4294901760, %v8054_v21  ;;  %v8546_v35 = vadd.f32 %v963_v9, %v927_v17  ;;  %v8548_v28 = vand.u32 4294901760, %v146_v31  ;;  %v8550_v55 = vand.u32 4294901760, %v133_v57  ;;  %1875 = vmatpush.msra.mxu3 %v8228_v40 }
 0x109   :  { %1772 = vmatpush.msra.mxu1 %v12891_v44  ;;  %v4852_v52 = vadd.s32 %v4851_v37, %v4842_v58  ;;  %v12894_v59 = vand.u32 4294901760, %v8312_v61  ;;  %v12539_v26 = vand.u32 4294901760, %v8470_v27  ;;  %v8557_v25 = vsub.f32 %v185_v7, %v8509_v47  ;;  %v12901_v58 = vld [vmem:[#allocation35_spill] sm:$0xff]  ;;  %v12902_v37 = vld [vmem:[#allocation37_spill] sm:$0xff] }
 0x10a   :  { %1886 = vmatpush.msrb.mxu0 %v12892_v19  ;;  %12893 = vst [vmem:[#allocation48_spill] sm:$0xff] %v8546_v35  ;;  %v8560_v21 = vsub.f32 %v172_v1, %v8524_v14  ;;  %vm4855_vm9 = vc.u32 %v8541_v12, %v8532_v41  ;;  %v12897_v9 = vand.u32 4294901760, %v12896_v18  ;;  %v2052_v51 = vand.u32 4294901760, %v8457_v60  ;;  %1992 = vmatpush.msrb.mxu2 %v12901_v58  ;;  %v12906_v18 = vld [vmem:[#allocation25_spill] sm:$0xff]  ;;  %v12913_v19 = vld [vmem:[#allocation26_spill] sm:$0xff] }
 0x10b   :  { %1778 = vmatpush.msra.mxu1 %v12894_v59  ;;  %v12898_v61 = vperm.slane %v8119_v49, 1  ;;  %v8574_v7 = vsub.f32 %v159_v38, %v8529_v3  ;;  %v4853_v1 = vmul.u32 %v8343_v53, %v8482_v15  ;;  %v4856_v17 = vadd.s32 1, %v4852_v52  ;;  %v12904_v59 = vld [vmem:[#allocation38_spill] sm:$0xff] }
 0x10c   :  { %12895 = vst [vmem:[#allocation49_spill] sm:$0xff] %v8560_v21  ;;  %1890 = vmatpush.msrb.mxu0 %v12897_v9  ;;  %v12903_v44 = vand.u32 4294901760, %v12902_v37  ;;  %v8582_v60 = vand.u32 4294901760, %v120_v16  ;;  %v12905_v49 = vand.u32 4294901760, %v12904_v59  ;;  %v12907_v9 = vand.u32 4294901760, %v12906_v18  ;;  %v107_v37 = vld [vmem:[#allocation5 + $0xf8] sm:$0xff] }
 0x10d   :  { %v8571_v45 = vadd.f32 %v12898_v61, %v8546_v35  ;;  %12900 = vst [vmem:[#allocation50_spill] sm:$0xff] %v8574_v7  ;;  %v8591_v15 = vsub.f32 %v146_v31, %v8548_v28  ;;  %v8594_v61 = vsub.f32 %v133_v57, %v8550_v55  ;;  %v12910_v59 = vld [vmem:[#allocation16_spill] sm:$0xff]  ;;  %v2063_v18 = vsub.f32 %v8470_v27, %v12539_v26  ;;  %v12915_v35 = vld [vmem:[#allocation15_spill] sm:$0xff] }
 0x10e   :  { %2035 = vmatpush.msrb.mxu3 %v12903_v44  ;;  %1784 = vmatpush.msra.mxu1 %v12905_v49  ;;  %v4857_v44 = vsel %vm4855_vm9, %v4856_v17, %v4852_v52  ;;  %v12911_v49 = vld [vmem:[#allocation39_spill] sm:$0xff]  ;;  %v12912_v57 = vand.u32 4294901760, %v8390_v8  ;;  %v12914_v38 = vand.u32 4294901760, %v12913_v19  ;;  %v2058_v17 = vand.u32 4294901760, %v8522_v33 }
 0x10f   :  { %12899 = vst [vmem:[#allocation19_spill] sm:$0xff] %v8571_v45  ;;  %1894 = vmatpush.msrb.mxu0 %v12907_v9  ;;  %v4918_v53 = vand.u32 2139095040, %v8571_v45  ;;  %1994 = vmatpush.msrb.mxu2 %v12911_v49  ;;  %v4858_v11 = vadd.s32 %v4857_v44, %v4853_v1  ;;  %v12916_v26 = vand.u32 2147483647, %v8571_v45  ;;  %v8617_v44 = vand.u32 4294901760, %v107_v37  ;;  %v12919_v33 = vld [vmem:[#allocation27_spill] sm:$0xff] }
 0x110   :  { %12908 = vst [vmem:[#allocation35_spill] sm:$0xff] %v8591_v15  ;;  %1953 = vmatpush.msrb.mxu1 %v12910_v59  ;;  %2041 = vmatpush.msrb.mxu3 %v12912_v57  ;;  %v8620_v8 = vsub.f32 %v120_v16, %v8582_v60  ;;  %v12921_v57 = vand.u32 4294901760, %v8539_v56  ;;  %v12922_v1 = vld [vmem:[#allocation17_spill] sm:$0xff]  ;;  %v12923_v16 = vand.u32 4294901760, %v8557_v25 }
 0x111   :  { %12909 = vst [vmem:[#allocation37_spill] sm:$0xff] %v8594_v61  ;;  %1898 = vmatpush.msrb.mxu0 %v12914_v38  ;;  %v4919_v52 = vshrl.u32 %v4918_v53, 23  ;;  %1996 = vmatpush.msrb.mxu2 %v8341_v50  ;;  %v4922_v9 = vand.u32 8388607, %v12916_v26  ;;  %v4859_v19 = vadd.s32 536870912, %v4858_v11  ;;  %v12918_v38 = vand.u32 4294901760, %v8440_v32 }
 0x112   :  { %1955 = vmatpush.msrb.mxu1 %v12915_v35  ;;  %12917 = vst [vmem:[#allocation38_spill] sm:$0xff] %v8620_v8  ;;  %v12920_v53 = vand.u32 4294901760, %v12919_v33  ;;  %v2069_v59 = vsub.f32 %v8539_v56, %v12921_v57  ;;  %v2075_v31 = vsub.f32 %v8557_v25, %v12923_v16  ;;  %v12924_v32 = vand.u32 4294901760, %v8560_v21  ;;  %v12928_v16 = vld [vmem:[#allocation18_spill] sm:$0xff] }
 0x113   :  { %2047 = vmatpush.msrb.mxu3 %v12918_v38  ;;  %v6880_v35 = vadd.s32 4294967169, %v4919_v52  ;;  %1998 = vmatpush.msrb.mxu2 %v8369_v0  ;;  %v8640_v52 = vshrl.u32 %v4859_v19, 30  ;;  %v2064_v26 = vand.u32 4294901760, %v2063_v18  ;;  %v4923_v0 = vor.u32 8388608, %v4922_v9 }
 0x114   :  { %1902 = vmatpush.msrb.mxu0 %v12920_v53  ;;  %1957 = vmatpush.msrb.mxu1 %v12922_v1  ;;  %v8638_v38 = vsub.f32 %v8560_v21, %v12924_v32  ;;  %v12925_v53 = vld [vmem:[#allocation28_spill] sm:$0xff]  ;;  %v12927_v1 = vand.u32 4294901760, %v8574_v7  ;;  %v12929_v32 = vand.u32 4294901760, %v8591_v15  ;;  %v8658_v18 = vsub.f32 %v107_v37, %v8617_v44 }
 0x115   :  { %2053 = vmatpush.msrb.mxu3 %v2052_v51  ;;  %v4925_v33 = vadd.s32 1, %v6880_v35  ;;  %v12926_v57 = vand.u32 4294901760, %v12925_v53  ;;  %2000 = vmatpush.msrb.mxu2 %v8408_v36  ;;  %v94_v35 = vld [vmem:[#allocation5 + $0x90] sm:$0xff]  ;;  %v4861_v53 = vshll.u32 %v8640_v52, 30  ;;  %v12930_v9 = vand.u32 4294901760, %v8151_v10  ;;  %v12932_v37 = vld [vmem:[#allocation24_spill] sm:$0xff] }
 0x116   :  { %v8647_v45 = vsub.f32 %v8574_v7, %v12927_v1  ;;  %1959 = vmatpush.msrb.mxu1 %v12928_v16  ;;  %v8654_v19 = vsub.f32 %v8591_v15, %v12929_v32  ;;  %v12931_v1 = vand.u32 4294901760, %v8594_v61  ;;  %v8670_v32 = vadd.s32 %v8532_v41, %v8541_v12  ;;  %v12933_v10 = vld [vmem:[#allocation33_spill] sm:$0xff] }
 0x117   :  { %1906 = vmatpush.msrb.mxu0 %v12926_v57  ;;  %vm4926_vm10 = vcmp.gt.s32.totalorder %v4925_v33, 0  ;;  %2059 = vmatpush.msrb.mxu3 %v2058_v17  ;;  %v2070_v57 = vand.u32 4294901760, %v2069_v59  ;;  %v2076_v15 = vand.u32 4294901760, %v2075_v31  ;;  %v2082_v17 = vand.u32 4294901760, %v8638_v38 }
 0x118   :  { %v8666_v16 = vsub.f32 %v8594_v61, %v12931_v1  ;;  %v4927_v51 = vsel %vm4926_vm10, %v4925_v33, 0  ;;  %1961 = vmatpush.msrb.mxu1 %v12932_v37  ;;  %2002 = vmatpush.msrb.mxu2 %v8467_v63  ;;  %vm4762_vm11 = vcmp.lt.s32.totalorder %v12933_v10, 0  ;;  %v8676_v59 = vsub.s32 %v4858_v11, %v4861_v53 }
 0x119   :  { %1910 = vmatpush.msrb.mxu0 %v12930_v9  ;;  %v4929_v9 = vand.u32 31, %v4927_v51  ;;  %2065 = vmatpush.msrb.mxu3 %v2064_v26  ;;  %v12934_v1 = vand.u32 4294901760, %v8157_v13  ;;  %v2088_v41 = vand.u32 4294901760, %v8647_v45  ;;  %v8681_v12 = vand.u32 4294901760, %v94_v35 }
 0x11a   :  { %v8683_v33 = vshll.u32 %v4923_v0, 8  ;;  %1963 = vmatpush.msrb.mxu1 %v8088_v48  ;;  %2004 = vmatpush.msrb.mxu2 %v8509_v47  ;;  %v2094_v31 = vand.u32 4294901760, %v8654_v19  ;;  %v12935_v11 = vand.u32 4294901760, %v8620_v8  ;;  %vm4863_vm12 = vcmp.lt.s32.totalorder %v8676_v59, 0 }
 0x11b   :  { %1914 = vmatpush.msrb.mxu0 %v12934_v1  ;;  %v4864_v45 = vsub.s32 0, %v8676_v59  ;;  %v4930_v26 = vsub.s32 32, %v4929_v9  ;;  %2071 = vmatpush.msrb.mxu3 %v2070_v57  ;;  %v12936_v0 = vand.u32 4294901760, %v8165_v46  ;;  %v4884_v19 = vsub.s32 4, %v8640_v52 }
 0x11c   :  { %v8691_v38 = vsub.f32 %v8620_v8, %v12935_v11  ;;  %v4932_v53 = vshll.u32 %v12878_v6, %v4929_v9  ;;  %v12937_v37 = vmov 2475754826   ;;  %v12938_v11 = vmov 2131351028   ;;  %1965 = vmatpush.msrb.mxu1 %v8115_v24  ;;  %2006 = vmatpush.msrb.mxu2 %v8524_v14 }
 0x11d   :  { %1918 = vmatpush.msrb.mxu0 %v12936_v0  ;;  %v4935_v1 = vshll.u32 %v12937_v37, %v4929_v9  ;;  %v4938_v8 = vshll.u32 %v12938_v11, %v4929_v9  ;;  %v4865_v13 = vsel %vm4863_vm12, %v4864_v45, %v8676_v59  ;;  %v8705_v61 = vshrl.u32 %v4927_v51, 5  ;;  %2077 = vmatpush.msrb.mxu3 %v2076_v15 }
 0x11e   :  { %v4933_v57 = vshrl.u32 %v12937_v37, %v4930_v26  ;;  %v12939_v46 = vmov 2102212464   ;;  %v12940_v48 = vand.u32 2147483647, %v12933_v10  ;;  %v4866_v7 = vclz %v4865_v13  ;;  %1967 = vmatpush.msrb.mxu1 %v8124_v4  ;;  %2008 = vmatpush.msrb.mxu2 %v8529_v3 }
 0x11f   :  { %v4941_v0 = vshll.u32 %v12939_v46, %v4929_v9  ;;  %v4936_v24 = vshrl.u32 %v12938_v11, %v4930_v26  ;;  %v4939_v45 = vshrl.u32 %v12939_v46, %v4930_v26  ;;  %v12943_v51 = vmov 920167782   ;;  %2083 = vmatpush.msrb.mxu3 %v2082_v17  ;;  %v12947_v17 = vld [vmem:[#allocation29_spill] sm:$0xff] }
 0x120   :  { %vm8712_vm13 = vcmp.le.f32.partialorder %v12940_v48, 0.7853982  ;;  %v4942_v63 = vshrl.u32 %v12943_v51, %v4930_v26  ;;  %v12944_v37 = vand.u32 4294901760, %v8191_v34  ;;  %v8723_v15 = vand.u32 65535, %v8683_v33  ;;  %1969 = vmatpush.msrb.mxu1 %v12947_v17  ;;  %2010 = vmatpush.msrb.mxu2 %v8548_v28  ;;  %v8785_v17 = vld [vmem:[#allocation5 + $0x28] sm:$0xff] }
 0x121   :  { %v2106_v48 = vand.u32 4294901760, %v8691_v38  ;;  %v12945_v13 = vand.u32 4294901760, %v8658_v18  ;;  %v8733_v46 = vsub.f32 %v94_v35, %v8681_v12  ;;  %v6878_v34 = vadd.s32 4294967294, %v4866_v7  ;;  %2089 = vmatpush.msrb.mxu3 %v2088_v41 }
 0x122   :  { %1922 = vmatpush.msrb.mxu0 %v12944_v37  ;;  %v8735_v37 = vor.u32 %v4933_v57, %v4932_v53  ;;  %v8737_v4 = vor.u32 %v4936_v24, %v4935_v1  ;;  %v4940_v14 = vor.u32 %v4939_v45, %v4938_v8  ;;  %v12946_v21 = vand.u32 4294901760, %v8200_v54  ;;  %2012 = vmatpush.msrb.mxu2 %v8550_v55  ;;  %v12953_v57 = vld [vmem:[#allocation31_spill] sm:$0xff] }
 0x123   :  { %v8730_v11 = vsub.f32 %v8658_v18, %v12945_v13  ;;  %v4943_v38 = vor.u32 %v4942_v63, %v4941_v0  ;;  %v4944_v3 = vshll.u32 %v12943_v51, %v4929_v9  ;;  %v12948_v36 = vmov 1326507024   ;;  %2095 = vmatpush.msrb.mxu3 %v2094_v31 }
 0x124   :  { %1926 = vmatpush.msrb.mxu0 %v12946_v21  ;;  %v4945_v13 = vshrl.u32 %v12948_v36, %v4930_v26  ;;  %vm4947_vm14 = vcmp.lt.s32.totalorder %v8705_v61, 1  ;;  %vm6879_vm15 = vcmp.lt.s32.totalorder %v6878_v34, 0  ;;  %v4885_v7 = vsel %vm4762_vm11, %v4884_v19, %v8640_v52  ;;  %v12950_v21 = vld [vmem:[#allocation30_spill] sm:$0xff]  ;;  %v12951_v19 = vld [vmem:[#allocation21_spill] sm:$0xff]  ;;  %2014 = vmatpush.msrb.mxu2 %v8582_v60 }
 0x125   :  { %vm4950_vm0 = vcmp.lt.s32.totalorder %v8705_v61, 4  ;;  %v8751_v54 = vshrl.u32 %v8683_v33, 16  ;;  %v12949_v63 = vand.u32 4294901760, %v8203_v22  ;;  %1971 = vmatpush.msrb.mxu1 %v12950_v21  ;;  %v4869_v8 = vsel %vm6879_vm15, 0, %v6878_v34  ;;  %1840 = vmatmul.f32.vlgmr.msra.gmra.mxu2 %v12951_v19  ;;  %v12955_v34 = vld [vmem:[#allocation23_spill] sm:$0xff]  ;;  %v12956_v21 = vld [vmem:[#allocation22_spill] sm:$0xff] }
 0x126   :  { %v4931_v35 = vshrl.u32 %v12878_v6, %v4930_v26  ;;  %v4946_v9 = vor.u32 %v4945_v13, %v4944_v3  ;;  %vm4949_vm1 = vcmp.lt.s32.totalorder %v8705_v61, 3  ;;  %v4870_v52 = vsub.s32 32, %v4869_v8  ;;  %1685 = vmatmul.f32.vlgmr.msra.gmra.mxu0 %v12955_v34  ;;  %1879 = vmatmul.f32.vlgmr.msra.gmra.mxu3 %v12956_v21 }
 0x127   :  { %1930 = vmatpush.msrb.mxu0 %v12949_v63  ;;  %v4874_v41 = vsub.s32 4294967266, %v4869_v8  ;;  %vm4948_vm2 = vcmp.lt.s32.totalorder %v8705_v61, 2  ;;  %v4955_v22 = vsel %vm4947_vm14, %v8735_v37, %v8737_v4  ;;  %v12952_v53 = vand.u32 4294901760, %v8208_v43  ;;  %1973 = vmatpush.msrb.mxu1 %v12953_v57 }
 0x128   :  { %v4871_v3 = vshll.u32 %v8676_v59, %v4869_v8  ;;  %v4956_v26 = vsel %vm4950_vm0, %v4943_v38, 920167782  ;;  %v4959_v31 = vsel %vm4947_vm14, %v8737_v4, %v4940_v14  ;;  %v4960_v1 = vsel %vm4950_vm0, %v4946_v9, 1326507024  ;;  %2016 = vmatpush.msrb.mxu2 %v8617_v44 }
 0x129   :  { %1934 = vmatpush.msrb.mxu0 %v12952_v53  ;;  %v4872_v0 = vshrl.u32 %v8670_v32, %v4870_v52  ;;  %v4875_v43 = vadd.s32 127, %v4874_v41  ;;  %v4957_v59 = vsel %vm4949_vm1, %v4940_v14, %v4956_v26  ;;  %v4961_v24 = vsel %vm4949_vm1, %v4943_v38, %v4960_v1  ;;  %1975 = vmatpush.msrb.mxu1 %v8169_v29  ;;  %v12958_v53 = vld [vmem:[#allocation20_spill] sm:$0xff] }
 0x12a   :  { %v12954_v45 = vand.u32 4294901760, %v8666_v16  ;;  %v4887_v13 = vsel %vm8712_vm13, 0, %v4885_v7  ;;  %v4958_v32 = vsel %vm4948_vm2, %v4955_v22, %v4957_v59  ;;  %v4962_v63 = vsel %vm4948_vm2, %v4959_v31, %v4961_v24  ;;  %1786 = vmatmul.f32.vlgmr.msra.gmra.mxu1 %v12958_v53  ;;  %2018 = vmatpush.msrb.mxu2 %v8681_v12 }
 0x12b   :  { %v12957_v38 = vand.u32 4294901760, %v8211_v23  ;;  %v2112_v16 = vand.u32 4294901760, %v8730_v11  ;;  %v4873_v8 = vor.u32 %v4872_v0, %v4871_v3  ;;  %v4876_v9 = vshll.u32 %v4875_v43, 23  ;;  %1977 = vmatpush.msrb.mxu1 %v8175_v62 }
 0x12c   :  { %2101 = vmatpush.msrb.mxu3 %v12954_v45  ;;  %v4966_v52 = vand.u32 65535, %v4962_v63  ;;  %v4967_v41 = vshrl.u32 %v4962_v63, 16  ;;  %v4988_v7 = vand.u32 65535, %v4958_v32  ;;  %v4989_v22 = vshrl.u32 %v4958_v32, 16 }
 0x12d   :  { %1938 = vmatpush.msrb.mxu0 %v12957_v38  ;;  %v8801_v26 = vand.u32 4294901760, %v8785_v17  ;;  %v12570_v23 = vand.u32 4294901760, %v8733_v46  ;;  %v4877_v31 = vor.u32 4788187, %v4876_v9  ;;  %v8804_v11 = vadd.s32 3, %v4887_v13  ;;  %1979 = vmatpush.msrb.mxu1 %v8180_v30 }
 0x12e   :  { %2107 = vmatpush.msrb.mxu3 %v2106_v48  ;;  %v4951_v3 = vsel %vm4947_vm14, %v4931_v35, %v8735_v37  ;;  %v4952_v29 = vsel %vm4950_vm0, %v4940_v14, 2102212464  ;;  %v12959_v1 = vand.u32 4294901760, %v8239_v20  ;;  %v4880_v48 = vcvt.s32.f32 %v4873_v8 }
 0x12f   :  { %v4968_v57 = vmul.u32 %v4966_v52, %v8723_v15  ;;  %v4969_v0 = vmul.u32 %v4967_v41, %v8723_v15  ;;  %v8817_v43 = vmul.u32 %v4966_v52, %v8751_v54  ;;  %v4878_v37 = vand.u32 2147483647, %v4877_v31  ;;  %2020 = vmatpush.msrb.mxu2 %v8801_v26  ;;  %1981 = vmatpush.msrb.mxu1 %v8213_v5 }
 0x130   :  { %1942 = vmatpush.msrb.mxu0 %v12959_v1  ;;  %2113 = vmatpush.msrb.mxu3 %v2112_v16  ;;  %v4990_v35 = vmul.u32 %v4988_v7, %v8723_v15  ;;  %v8822_v14 = vmul.u32 %v4989_v22, %v8723_v15  ;;  %v8825_v20 = vmul.u32 %v4988_v7, %v8751_v54  ;;  %v12960_v62 = vand.u32 4294901760, %v8261_v39  ;;  %v12961_v15 = vld [vmem:[#allocation34_spill] sm:$0xff]  ;;  %v12964_v7 = vld [vmem:[#allocation36_spill] sm:$0xff] }
 0x131   :  { %v4953_v59 = vsel %vm4949_vm1, %v8737_v4, %v4952_v29  ;;  %v4971_v24 = vmul.u32 %v4967_v41, %v8751_v54  ;;  %v4972_v45 = vshll.u32 %v4969_v0, 16  ;;  %v4974_v13 = vshll.u32 %v8817_v43, 16  ;;  %2026 = vmatmul.f32.vlgmr.msrb.gmra.mxu2 %v12955_v34  ;;  %1983 = vmatpush.msrb.mxu1 %v8228_v40  ;;  %v277_v40 = vld [vmem:[#allocation5 + $0x648] sm:$0xff] }
 0x132   :  { %1946 = vmatpush.msrb.mxu0 %v12960_v62  ;;  %v4881_v32 = vmul.f32 %v4880_v48, %v4878_v37  ;;  %v4993_v63 = vmul.u32 %v4989_v22, %v8751_v54  ;;  %v4994_v39 = vshll.u32 %v8822_v14, 16  ;;  %v2117_v30 = vsub.f32 %v8733_v46, %v12570_v23  ;;  %1985 = vmatmul.f32.vlgmr.msrb.gmra.mxu1 %v12958_v53 }
 0x133   :  { %v12962_v4 = vand.u32 4294901760, %v12961_v15  ;;  %v4973_v38 = vshrl.u32 %v4969_v0, 16  ;;  %vm4976_vm3 = vc.u32 %v4968_v57, %v4972_v45  ;;  %v4978_v16 = vadd.s32 %v4972_v45, %v4968_v57  ;;  %1948 = vmatmul.f32.vlgmr.msrb.gmra.mxu0 %v12958_v53  ;;  %2186 = vmatpush.msra.mxu1 %v8215_v2 }
 0x134   :  { %2133 = vmatpush.msra.mxu0 %v12961_v15  ;;  %v4996_v8 = vshll.u32 %v8825_v20, 16  ;;  %v4882_v54 = vxor.u32 2147483648, %v4881_v32  ;;  %v4975_v9 = vshrl.u32 %v8817_v43, 16  ;;  %v12963_v52 = vmov 0   ;;  %v12966_v43 = vld [vmem:[#allocation40_spill] sm:$0xff] }
 0x135   :  { %2227 = vmatpush.msra.mxu2 %v12962_v4  ;;  %v4977_v41 = vsel %vm4976_vm3, 1, %v12963_v52  ;;  %vm4998_vm4 = vc.u32 %v4990_v35, %v4994_v39  ;;  %v12965_v22 = vand.u32 4294901760, %v12964_v7  ;;  %vm4980_vm5 = vc.u32 %v4978_v16, %v4974_v13  ;;  %2188 = vmatpush.msra.mxu1 %v12901_v58  ;;  %v6775_v4 = vld [vmem:[#allocation8] sm:$0xff] }
 0x136   :  { %2136 = vmatpush.msra.mxu0 %v12964_v7  ;;  %v4979_v5 = vadd.s32 %v4977_v41, %v4971_v24  ;;  %v4999_v31 = vsel %vm4998_vm4, 1, %v12963_v52  ;;  %v5000_v29 = vadd.s32 %v4994_v39, %v4990_v35  ;;  %v4883_v1 = vsel %vm4762_vm11, %v4882_v54, %v4881_v32  ;;  %v12968_v39 = vld [vmem:[#allocation42_spill] sm:$0xff] }
 0x137   :  { %2231 = vmatpush.msra.mxu2 %v12965_v22  ;;  %v4981_v48 = vsel %vm4980_vm5, 1, %v12963_v52  ;;  %v5001_v57 = vadd.s32 %v4999_v31, %v4993_v63  ;;  %v2118_v0 = vand.u32 4294901760, %v2117_v30  ;;  %v8863_v37 = vsel %vm8712_vm13, %v12933_v10, %v4883_v1  ;;  %2190 = vmatpush.msra.mxu1 %v12911_v49 }
 0x138   :  { %2139 = vmatpush.msra.mxu0 %v12966_v43  ;;  %v4983_v62 = vadd.s32 %v4981_v48, %v4979_v5  ;;  %v4995_v35 = vshrl.u32 %v8822_v14, 16  ;;  %vm5002_vm6 = vc.u32 %v5000_v29, %v4996_v8  ;;  %v4888_v24 = vmul.f32 %v8863_v37, %v8863_v37 }
 0x139   :  { %v8871_v45 = vsel %vm4948_vm2, %v4951_v3, %v4953_v59  ;;  %v5003_v13 = vsel %vm5002_vm6, 1, %v12963_v52  ;;  %2119 = vmatpush.msrb.mxu3 %v2118_v0  ;;  %v8876_v47 = vsub.f32 %v8785_v17, %v8801_v26  ;;  %v12967_v14 = vand.u32 4294901760, %v12966_v43  ;;  %v264_v3 = vld [vmem:[#allocation5 + $0x5e0] sm:$0xff]  ;;  %2192 = vmatpush.msra.mxu1 %v8341_v50 }
 0x13a   :  { %v4984_v15 = vadd.s32 %v4983_v62, %v4973_v38  ;;  %v4997_v32 = vshrl.u32 %v8825_v20, 16  ;;  %v5005_v63 = vadd.s32 %v5003_v13, %v5001_v57  ;;  %2142 = vmatpush.msra.mxu0 %v12968_v39  ;;  %v8883_v61 = vand.u32 4294901760, %v277_v40  ;;  %v12972_v62 = vld [vmem:[#allocation41_spill] sm:$0xff] }
 0x13b   :  { %2235 = vmatpush.msra.mxu2 %v12967_v14  ;;  %v4889_v59 = vmul.f32 -0.001358992, %v4888_v24  ;;  %v4896_v30 = vmul.f32 -0.00019511016, %v4888_v24  ;;  %v8885_v16 = vadd.s32 %v5000_v29, %v4996_v8  ;;  %v12569_v17 = vand.u32 4294901760, %v8876_v47  ;;  %2194 = vmatpush.msra.mxu1 %v12972_v62 }
 0x13c   :  { %v12969_v54 = vand.u32 4294901760, %v12968_v39  ;;  %v8891_v20 = vand.u32 3, %v8804_v11  ;;  %v8893_v38 = vadd.s32 %v4984_v15, %v4975_v9  ;;  %v5006_v41 = vadd.s32 %v5005_v63, %v4995_v35  ;;  %2145 = vmatpush.msra.mxu0 %v8418_v42  ;;  %v251_v9 = vld [vmem:[#allocation5 + $0x578] sm:$0xff]  ;;  %v1004_v35 = vpop.f32.mrf.mxu0  ;;  %v12975_v63 = vld [vmem:[#allocation19_spill] sm:$0xff] }
 0x13d   :  { %v8897_v7 = vand.u32 4294901760, %v264_v3  ;;  %v4890_v22 = vadd.f32 0.041655596, %v4889_v59  ;;  %v4897_v8 = vadd.f32 0.008332121, %v4896_v30  ;;  %v5008_v5 = vmul.u32 %v8683_v33, %v8871_v45  ;;  %v238_v45 = vld [vmem:[#allocation5 + $0x510] sm:$0xff] }
 0x13e   :  { %2239 = vmatpush.msra.mxu2 %v12969_v54  ;;  %v2123_v31 = vsub.f32 %v8876_v47, %v12569_v17  ;;  %v12970_v11 = vand.u32 4294901760, %v8418_v42  ;;  %vm6777_vm7 = vcmp.ne.f32.partialorder %v6775_v4, 0.0  ;;  %v5007_v29 = vadd.s32 %v5006_v41, %v4997_v32  ;;  %2148 = vmatpush.msra.mxu0 %v8470_v27  ;;  %v225_v32 = vld [vmem:[#allocation5 + $0x4a8] sm:$0xff]  ;;  %v9003_v17 = vld [vmem:[#allocation7] sm:$0xff] }
 0x13f   :  { %v8909_v1 = vsub.f32 %v277_v40, %v8883_v61  ;;  %v8911_v48 = vand.u32 4294901760, %v251_v9  ;;  %v4891_v33 = vmul.f32 %v4890_v22, %v4888_v24  ;;  %v4898_v57 = vmul.f32 %v4897_v8, %v4888_v24  ;;  %v12979_v22 = vld [vmem:[#allocation43_spill] sm:$0xff]  ;;  %v1105_v8 = vpop.f32.mrf.mxu1  ;;  %12994 = vst [vmem:[#allocation39_spill] sm:$0xff] %v9003_v17 }
 0x140   :  { %2243 = vmatpush.msra.mxu2 %v12970_v11  ;;  %vm5010_vm8 = vc.u32 %v8893_v38, %v8885_v16  ;;  %v2124_v0 = vand.u32 4294901760, %v2123_v31  ;;  %v12971_v42 = vand.u32 4294901760, %v8470_v27  ;;  %v5011_v43 = vadd.s32 1, %v5007_v29  ;;  %2151 = vmatpush.msra.mxu0 %v8539_v56  ;;  %v212_v11 = vld [vmem:[#allocation5 + $0x440] sm:$0xff] }
 0x141   :  { %v8920_v40 = vsub.f32 %v264_v3, %v8897_v7  ;;  %v4892_v13 = vadd.f32 -0.4999988, %v4891_v33  ;;  %v4899_v14 = vadd.f32 -0.16666654, %v4898_v57  ;;  %v8924_v15 = vsel %vm6777_vm7, 1, %v12963_v52  ;;  %2196 = vmatpush.msra.mxu1 %v12979_v22  ;;  %v1159_v33 = vpop.f32.mrf.mxu2  ;;  %v12997_v52 = vld [vmem:[#allocation38_spill] sm:$0xff] }
 0x142   :  { %2247 = vmatpush.msra.mxu2 %v12971_v42  ;;  %12973 = vst [vmem:[#allocation25_spill] sm:$0xff] %v8924_v15  ;;  %2125 = vmatpush.msrb.mxu3 %v2124_v0  ;;  %v12974_v27 = vand.u32 4294901760, %v8539_v56  ;;  %vm4907_vm9 = vcmp.eq.s32.totalorder %v8891_v20, 0  ;;  %vm4917_vm10 = vcmp.lt.s32.totalorder %v12975_v63, 0  ;;  %v5012_v39 = vsel %vm5010_vm8, %v5011_v43, %v5007_v29  ;;  %v12982_v43 = vld [vmem:[#allocation44_spill] sm:$0xff] }
 0x143   :  { %2154 = vmatpush.msra.mxu0 %v8557_v25  ;;  %v12567_v3 = vand.u32 4294901760, %v8909_v1  ;;  %v8937_v59 = vsub.f32 %v251_v9, %v8911_v48  ;;  %v4893_v56 = vmul.f32 %v4892_v13, %v4888_v24  ;;  %v4900_v30 = vmul.f32 %v4899_v14, %v4888_v24  ;;  %v12981_v9 = vld [vmem:[#allocation49_spill] sm:$0xff]  ;;  %2198 = vmatpush.msra.mxu1 %v12982_v43 }
 0x144   :  { %2251 = vmatpush.msra.mxu2 %v12974_v27  ;;  %2294 = vmatpush.msra.mxu3 %v8215_v2  ;;  %v12976_v4 = vand.u32 2147483647, %v12975_v63  ;;  %v5013_v41 = vadd.s32 %v5012_v39, %v5008_v5  ;;  %v12980_v2 = vand.u32 4294901760, %v8557_v25  ;;  %v8948_v31 = vand.u32 4294901760, %v238_v45 }
 0x145   :  { %vm4906_vm12 = vcmp.lt.s32.totalorder %v8891_v20, 2  ;;  %v6781_v24 = vperm.slane %v8924_v15, 0  ;;  %2157 = vmatpush.msra.mxu0 %v12981_v9  ;;  %v1106_v29 = vadd.f32 %v1105_v8, %v1004_v35  ;;  %v12568_v5 = vand.u32 4294901760, %v8920_v40  ;;  %v1198_v8 = vpop.f32.mrf.mxu3  ;;  %2127 = vmatmul.f32.vlgmr.msrb.gmra.mxu3 %v12958_v53 }
 0x146   :  { %vm8941_vm11 = vcmp.le.f32.partialorder %v12976_v4, 0.7853982  ;;  %2255 = vmatpush.msra.mxu2 %v12980_v2  ;;  %2296 = vmatpush.msra.mxu3 %v12901_v58  ;;  %v8955_v57 = vand.u32 4294901760, %v225_v32  ;;  %v4894_v25 = vadd.f32 1.0, %v4893_v56  ;;  %v4901_v0 = vadd.f32 1.0, %v4900_v30  ;;  %v12984_v58 = vld [vmem:[#allocation50_spill] sm:$0xff] }
 0x147   :  { %vm4910_vm13 = vcmp.eq.s32.totalorder %v8891_v20, 2  ;;  %v5014_v42 = vadd.s32 536870912, %v5013_v41  ;;  %v12983_v13 = vand.u32 4294901760, %v12981_v9  ;;  %2160 = vmatpush.msra.mxu0 %v12984_v58  ;;  %v1160_v35 = vadd.f32 %v1159_v33, %v1106_v29  ;;  %v12985_v2 = vld [vmem:[#allocation45_spill] sm:$0xff]  ;;  %v199_v29 = vld [vmem:[#allocation5 + $0x3d8] sm:$0xff] }
 0x148   :  { %2298 = vmatpush.msra.mxu3 %v12911_v49  ;;  %v8966_v14 = vsub.f32 %v8909_v1, %v12567_v3  ;;  %v12573_v27 = vand.u32 4294901760, %v8937_v59  ;;  %v8969_v39 = vand.u32 4294901760, %v212_v11  ;;  %v4902_v56 = vmul.f32 %v4901_v0, %v8863_v37  ;;  %2200 = vmatpush.msra.mxu1 %v12985_v2  ;;  %v12990_v37 = vld [vmem:[#allocation35_spill] sm:$0xff] }
 0x149   :  { %2259 = vmatpush.msra.mxu2 %v12983_v13  ;;  %vm4903_vm14 = vweird.f32 %v12933_v10  ;;  %v4911_v30 = vxor.u32 2147483648, %v4894_v25  ;;  %v5015_v4 = vshrl.u32 %v5014_v42, 30  ;;  %v12986_v49 = vand.u32 4294901760, %v12984_v58  ;;  %2163 = vmatpush.msra.mxu0 %v12990_v37 }
 0x14a   :  { %v8977_v9 = vsub.f32 %v238_v45, %v8948_v31  ;;  %vm8979_vm15 = vcmp.eq.s32.totalorder %v6781_v24, 1  ;;  %2300 = vmatpush.msra.mxu3 %v8341_v50  ;;  %v1199_v0 = vadd.f32 %v1198_v8, %v1160_v35  ;;  %v8988_v42 = vsub.f32 %v8920_v40, %v12568_v5  ;;  %v12991_v24 = vld [vmem:[#allocation46_spill] sm:$0xff]  ;;  %v186_v35 = vld [vmem:[#allocation5 + $0x370] sm:$0xff]  ;;  %v12993_v5 = vld [vmem:[#allocation37_spill] sm:$0xff] }
 0x14b   :  { %2263 = vmatpush.msra.mxu2 %v12986_v49  ;;  %v8991_v13 = vsub.f32 %v225_v32, %v8955_v57  ;;  %v4908_v45 = vxor.u32 2147483648, %v4902_v56  ;;  %v5016_v58 = vshll.u32 %v5015_v4, 30  ;;  %v5039_v49 = vsub.s32 4, %v5015_v4  ;;  %2202 = vmatpush.msra.mxu1 %v12991_v24  ;;  %v1267_v32 = vpop.f32.mrf.mxu0 }
 0x14c   :  { %12987 = vst [vmem:[#allocation16_spill] sm:$0xff] %v8977_v9  ;;  %v12992_v3 = vand.u32 4294901760, %v12990_v37  ;;  %v8997_v50 = vsub.f32 %v212_v11, %v8969_v39  ;;  %v4912_v8 = vsel %vm4910_vm13, %v4911_v30, %v4902_v56  ;;  %2302 = vmatpush.msra.mxu3 %v12972_v62  ;;  %2166 = vmatpush.msra.mxu0 %v12993_v5  ;;  %v4723_v23 = vperm.slane %v9003_v17, 2  ;;  %v12995_v30 = vld [vmem:[#allocation47_spill] sm:$0xff] }
 0x14d   :  { %v9011_v11 = vand.u32 4294901760, %v199_v29  ;;  %v4909_v37 = vsel %vm4907_vm9, %v4894_v25, %v4908_v45  ;;  %v9015_v56 = vsub.s32 %v5013_v41, %v5016_v58  ;;  %v5040_v62 = vsel %vm4917_vm10, %v5039_v49, %v5015_v4  ;;  %2204 = vmatpush.msra.mxu1 %v12995_v30  ;;  %v173_v4 = vld [vmem:[#allocation5 + $0x308] sm:$0xff] }
 0x14e   :  { %2267 = vmatpush.msra.mxu2 %v12992_v3  ;;  %v9009_v3 = vsub.f32 %v8937_v59, %v12573_v27  ;;  %v12996_v34 = vand.u32 4294901760, %v12993_v5  ;;  %v12577_v17 = vand.u32 4294901760, %v8977_v9  ;;  %v5042_v27 = vsel %vm8941_vm11, 0, %v5040_v62  ;;  %2304 = vmatpush.msra.mxu3 %v12979_v22  ;;  %v1304_v22 = vpop.f32.mrf.mxu1 }
 0x14f   :  { %2169 = vmatpush.msra.mxu0 %v12997_v52  ;;  %v1268_v25 = vadd.f32 %v1267_v32, %v1199_v0  ;;  %v12575_v41 = vand.u32 4294901760, %v8991_v13  ;;  %v9028_v45 = vand.u32 4294901760, %v186_v35  ;;  %v4913_v58 = vsel %vm4906_vm12, %v4909_v37, %v4912_v8  ;;  %2206 = vmatpush.msra.mxu1 %v8548_v28 }
 0x150   :  { %2271 = vmatpush.msra.mxu2 %v12996_v34  ;;  %vm5018_vm0 = vcmp.lt.s32.totalorder %v9015_v56, 0  ;;  %v5019_v34 = vsub.s32 0, %v9015_v56  ;;  %v12998_v5 = vand.u32 4294901760, %v12997_v52  ;;  %v12576_v0 = vand.u32 4294901760, %v8997_v50  ;;  %2306 = vmatpush.msra.mxu3 %v12982_v43 }
 0x151   :  { %v9040_v49 = vadd.s32 %v8885_v16, %v8893_v38  ;;  %2172 = vmatpush.msra.mxu0 %v8658_v18  ;;  %v9045_v8 = vadd.f32 %v1304_v22, %v1268_v25  ;;  %v9048_v32 = vsub.f32 %v199_v29, %v9011_v11  ;;  %v5059_v37 = vadd.s32 3, %v5042_v27  ;;  %2208 = vmatpush.msra.mxu1 %v8550_v55 }
 0x152   :  { %2275 = vmatpush.msra.mxu2 %v12998_v5  ;;  %v5020_v52 = vsel %vm5018_vm0, %v5019_v34, %v9015_v56  ;;  %v9056_v16 = vsub.f32 %v8977_v9, %v12577_v17  ;;  %v9058_v38 = vand.u32 4294901760, %v173_v4  ;;  %v9062_v43 = vsel %vm4903_vm14, nan, %v4913_v58  ;;  %2308 = vmatpush.msra.mxu3 %v12985_v2 }
 0x153   :  { %12999 = vst [vmem:[#allocation26_spill] sm:$0xff] %v9045_v8  ;;  %v5021_v29 = vclz %v5020_v52  ;;  %v13000_v27 = vand.u32 4294901760, %v8658_v18  ;;  %v9068_v62 = vadd.f32 %v4723_v23, %v9045_v8  ;;  %v9073_v25 = vsub.f32 %v8991_v13, %v12575_v41  ;;  %2175 = vmatpush.msra.mxu0 %v8733_v46  ;;  %2210 = vmatpush.msra.mxu1 %v8582_v60  ;;  %v13003_v41 = vld [vmem:[#allocation32_spill] sm:$0xff] }
 0x154   :  { %v9082_v18 = vsub.f32 %v8997_v50, %v12576_v0  ;;  %v9085_v23 = vsub.f32 %v186_v35, %v9028_v45  ;;  %2310 = vmatpush.msra.mxu3 %v12991_v24  ;;  %v13002_v34 = vand.u32 4294901760, %v8733_v46  ;;  %v12579_v52 = vand.u32 4294901760, %v9048_v32  ;;  %v147_v0 = vld [vmem:[#allocation5 + $0x238] sm:$0xff] }
 0x155   :  { %2279 = vmatpush.msra.mxu2 %v13000_v27  ;;  %13001 = vst [vmem:[#allocation15_spill] sm:$0xff] %v9068_v62  ;;  %v6881_v2 = vadd.s32 4294967294, %v5021_v29  ;;  %v12578_v5 = vand.u32 2147483647, %v9068_v62  ;;  %v5073_v22 = vand.u32 2139095040, %v9068_v62  ;;  %v160_v27 = vld [vmem:[#allocation5 + $0x2a0] sm:$0xff]  ;;  %2178 = vmatpush.msra.mxu0 %v8876_v47  ;;  %v9103_v24 = vsub.f32 %v173_v4, %v9058_v38 }
 0x156   :  { %v9097_v35 = vand.u32 3, %v5059_v37  ;;  %2212 = vmatpush.msra.mxu1 %v8617_v44  ;;  %2312 = vmatpush.msra.mxu3 %v12995_v30  ;;  %v13004_v29 = vand.u32 4294901760, %v8876_v47  ;;  %v9114_v46 = vand.u32 4294901760, %v160_v27  ;;  %v12582_v30 = vand.u32 4294901760, %v9085_v23 }
 0x157   :  { %2283 = vmatpush.msra.mxu2 %v13002_v34  ;;  %vm6882_vm1 = vcmp.lt.s32.totalorder %v6881_v2, 0  ;;  %v5074_v34 = vshrl.u32 %v5073_v22, 23  ;;  %v5077_v37 = vand.u32 8388607, %v12578_v5  ;;  %2331 = vmatpush.msrb.mxu0 %v8883_v61  ;;  %v134_v5 = vld [vmem:[#allocation5 + $0x1d0] sm:$0xff]  ;;  %vm5058_vm12 = vweird.f32 %v12975_v63 }
 0x158   :  { %v5024_v58 = vsel %vm6882_vm1, 0, %v6881_v2  ;;  %2314 = vmatpush.msra.mxu3 %v8548_v28  ;;  %v9122_v2 = vsub.f32 %v9048_v32, %v12579_v52  ;;  %2214 = vmatpush.msra.mxu1 %v8681_v12  ;;  %v9129_v17 = vsub.f32 %v9085_v23, %v12582_v30  ;;  %v9131_v28 = vand.u32 4294901760, %v147_v0 }
 0x159   :  { %2287 = vmatpush.msra.mxu2 %v13004_v29  ;;  %v5025_v47 = vsub.s32 32, %v5024_v58  ;;  %v5029_v29 = vsub.s32 4294967266, %v5024_v58  ;;  %v6883_v22 = vadd.s32 4294967169, %v5074_v34  ;;  %2181 = vmatmul.f32.vlgmr.msra.gmra.mxu0 %v12951_v19  ;;  %v5078_v4 = vor.u32 8388608, %v5077_v37 }
 0x15a   :  { %2289 = vmatmul.f32.vlgmr.msra.gmra.mxu2 %v12958_v53  ;;  %v12583_v34 = vand.u32 4294901760, %v9103_v24  ;;  %v5026_v10 = vshll.u32 %v9015_v56, %v5024_v58  ;;  %2316 = vmatpush.msra.mxu3 %v8550_v55  ;;  %v9143_v30 = vsub.f32 %v160_v27, %v9114_v46  ;;  %v13008_v19 = vmov 2131351028  }
 0x15b   :  { %2474 = vmatpush.msrb.mxu2 %v8909_v1  ;;  %v5027_v52 = vshrl.u32 %v9040_v49, %v5025_v47  ;;  %v5030_v20 = vadd.s32 127, %v5029_v29  ;;  %2333 = vmatpush.msrb.mxu0 %v8897_v7  ;;  %v5080_v8 = vadd.s32 1, %v6883_v22  ;;  %v9140_v37 = vshll.u32 %v5078_v4, 8 }
 0x15c   :  { %2216 = vmatpush.msra.mxu1 %v8801_v26  ;;  %v9148_v56 = vsub.f32 %v9103_v24, %v12583_v34  ;;  %v9150_v49 = vand.u32 4294901760, %v134_v5  ;;  %2318 = vmatpush.msra.mxu3 %v8582_v60  ;;  %v9155_v4 = vsub.f32 %v147_v0, %v9131_v28  ;;  %v13005_v47 = vand.u32 4294901760, %v8966_v14 }
 0x15d   :  { %2477 = vmatpush.msrb.mxu2 %v8920_v40  ;;  %v5028_v55 = vor.u32 %v5027_v52, %v5026_v10  ;;  %v5031_v58 = vshll.u32 %v5030_v20, 23  ;;  %2220 = vmatmul.f32.vlgmr.msra.gmra.mxu1 %v12956_v21  ;;  %vm5081_vm2 = vcmp.gt.s32.totalorder %v5080_v8, 0  ;;  %v9163_v10 = vld [vmem:[#allocation5 + $0x168] sm:$0xff]  ;;  %v9168_v0 = vand.u32 65535, %v9140_v37 }
 0x15e   :  { %2335 = vmatpush.msrb.mxu0 %v8911_v48  ;;  %2376 = vmatpush.msrb.mxu1 %v13005_v47  ;;  %v5082_v29 = vsel %vm5081_vm2, %v5080_v8, 0  ;;  %v9171_v52 = vshrl.u32 %v9140_v37, 16  ;;  %v9183_v20 = vsub.f32 %v134_v5, %v9150_v49  ;;  %v13010_v5 = vmov 2102212464  }
 0x15f   :  { %v5032_v60 = vor.u32 4788187, %v5031_v58  ;;  %2320 = vmatpush.msra.mxu3 %v8617_v44  ;;  %2480 = vmatpush.msrb.mxu2 %v8937_v59  ;;  %v5035_v8 = vcvt.s32.f32 %v5028_v55  ;;  %v9174_v47 = vshrl.u32 %v5082_v29, 5  ;;  %v5084_v34 = vand.u32 31, %v5082_v29 }
 0x160   :  { %2337 = vmatpush.msrb.mxu0 %v8948_v31  ;;  %v13006_v58 = vand.u32 4294901760, %v8988_v42  ;;  %v9186_v55 = vand.u32 4294901760, %v9163_v10  ;;  %v13007_v42 = vmov 2475754826   ;;  %vm5065_vm7 = vcmp.eq.s32.totalorder %v9097_v35, 2 }
 0x161   :  { %v5033_v27 = vand.u32 2147483647, %v5032_v60  ;;  %2322 = vmatpush.msra.mxu3 %v8681_v12  ;;  %2483 = vmatpush.msrb.mxu2 %v8977_v9  ;;  %v5085_v14 = vsub.s32 32, %v5084_v34  ;;  %v5087_v22 = vshll.u32 %v12878_v6, %v5084_v34  ;;  %v5093_v44 = vshll.u32 %v13008_v19, %v5084_v34 }
 0x162   :  { %2382 = vmatpush.msrb.mxu1 %v13006_v58  ;;  %v5090_v58 = vshll.u32 %v13007_v42, %v5084_v34  ;;  %2339 = vmatpush.msrb.mxu0 %v8955_v57  ;;  %v13009_v12 = vand.u32 4294901760, %v9009_v3  ;;  %v5096_v62 = vshll.u32 %v13010_v5, %v5084_v34  ;;  %v5099_v21 = vshll.u32 %v12943_v51, %v5084_v34 }
 0x163   :  { %v5036_v60 = vmul.f32 %v5035_v8, %v5033_v27  ;;  %2324 = vmatpush.msra.mxu3 %v8801_v26  ;;  %vm5102_vm3 = vcmp.lt.s32.totalorder %v9174_v47, 1  ;;  %2486 = vmatpush.msrb.mxu2 %v8991_v13  ;;  %v5086_v29 = vshrl.u32 %v12878_v6, %v5085_v14  ;;  %v5088_v9 = vshrl.u32 %v13007_v42, %v5085_v14 }
 0x164   :  { %2388 = vmatpush.msrb.mxu1 %v13009_v12  ;;  %2326 = vmatmul.f32.vlgmr.msra.gmra.mxu3 %v12958_v53  ;;  %v5091_v3 = vshrl.u32 %v13008_v19, %v5085_v14  ;;  %v5094_v27 = vshrl.u32 %v13010_v5, %v5085_v14  ;;  %v5097_v26 = vshrl.u32 %v12943_v51, %v5085_v14  ;;  %vm5103_vm4 = vcmp.lt.s32.totalorder %v9174_v47, 2 }
 0x165   :  { %v5037_v8 = vxor.u32 2147483648, %v5036_v60  ;;  %2527 = vmatpush.msrb.mxu3 %v8883_v61  ;;  %v5100_v34 = vshrl.u32 %v12948_v36, %v5085_v14  ;;  %2341 = vmatpush.msrb.mxu0 %v8969_v39  ;;  %v5089_v12 = vor.u32 %v5088_v9, %v5087_v22  ;;  %vm5104_vm5 = vcmp.lt.s32.totalorder %v9174_v47, 3  ;;  %v9219_v9 = vld [vmem:[#allocation5 + $0x100] sm:$0xff] }
 0x166   :  { %v5092_v53 = vor.u32 %v5091_v3, %v5090_v58  ;;  %v5095_v6 = vor.u32 %v5094_v27, %v5093_v44  ;;  %v13011_v19 = vand.u32 4294901760, %v9056_v16  ;;  %2489 = vmatpush.msrb.mxu2 %v8997_v50  ;;  %v5098_v14 = vor.u32 %v5097_v26, %v5096_v62 }
 0x167   :  { %v5038_v5 = vsel %vm4917_vm10, %v5037_v8, %v5036_v60  ;;  %2529 = vmatpush.msrb.mxu3 %v8897_v7  ;;  %v5101_v36 = vor.u32 %v5100_v34, %v5099_v21  ;;  %vm5105_vm6 = vcmp.lt.s32.totalorder %v9174_v47, 4  ;;  %2343 = vmatpush.msrb.mxu0 %v9011_v11  ;;  %v13012_v62 = vand.u32 4294901760, %v9073_v25 }
 0x168   :  { %2394 = vmatpush.msrb.mxu1 %v13011_v19  ;;  %v9224_v16 = vsel %vm8941_vm11, %v12975_v63, %v5038_v5  ;;  %v5106_v19 = vsel %vm5102_vm3, %v5086_v29, %v5089_v12  ;;  %v5107_v22 = vsel %vm5105_vm6, %v5095_v6, 2102212464  ;;  %v5110_v21 = vsel %vm5102_vm3, %v5089_v12, %v5092_v53  ;;  %2492 = vmatpush.msrb.mxu2 %v9048_v32 }
 0x169   :  { %v5043_v44 = vmul.f32 %v9224_v16, %v9224_v16  ;;  %v5108_v54 = vsel %vm5104_vm5, %v5092_v53, %v5107_v22  ;;  %v5111_v29 = vsel %vm5105_vm6, %v5098_v14, 920167782  ;;  %v5114_v58 = vsel %vm5102_vm3, %v5092_v53, %v5095_v6  ;;  %2531 = vmatpush.msrb.mxu3 %v8911_v48  ;;  %2345 = vmatpush.msrb.mxu0 %v9028_v45 }
 0x16a   :  { %2400 = vmatpush.msrb.mxu1 %v13012_v62  ;;  %v9247_v25 = vsel %vm5103_vm4, %v5106_v19, %v5108_v54  ;;  %v5112_v60 = vsel %vm5104_vm5, %v5095_v6, %v5111_v29  ;;  %v5115_v5 = vsel %vm5105_vm6, %v5101_v36, 1326507024  ;;  %v13013_v3 = vand.u32 4294901760, %v9082_v18  ;;  %2495 = vmatpush.msrb.mxu2 %v9085_v23 }
 0x16b   :  { %v9257_v53 = vand.u32 4294901760, %v9219_v9  ;;  %v5044_v27 = vmul.f32 -0.001358992, %v5043_v44  ;;  %v5051_v8 = vmul.f32 -0.00019511016, %v5043_v44  ;;  %v5113_v26 = vsel %vm5103_vm4, %v5110_v21, %v5112_v60  ;;  %2533 = vmatpush.msrb.mxu3 %v8948_v31  ;;  %2347 = vmatpush.msrb.mxu0 %v9058_v38 }
 0x16c   :  { %2406 = vmatpush.msrb.mxu1 %v13013_v3  ;;  %v5116_v34 = vsel %vm5104_vm5, %v5098_v14, %v5115_v5  ;;  %v5143_v6 = vand.u32 65535, %v5113_v26  ;;  %v5144_v18 = vshrl.u32 %v5113_v26, 16  ;;  %v13014_v12 = vand.u32 4294901760, %v9122_v2  ;;  %2498 = vmatpush.msrb.mxu2 %v9103_v24 }
 0x16d   :  { %v5117_v36 = vsel %vm5103_vm4, %v5114_v58, %v5116_v34  ;;  %v13015_v19 = vand.u32 4294901760, %v9143_v30  ;;  %v5045_v21 = vadd.f32 0.041655596, %v5044_v27  ;;  %v5052_v14 = vadd.f32 0.008332121, %v5051_v8  ;;  %2535 = vmatpush.msrb.mxu3 %v8955_v57  ;;  %2349 = vmatpush.msrb.mxu0 %v9114_v46 }
 0x16e   :  { %2412 = vmatpush.msrb.mxu1 %v13014_v12  ;;  %v5121_v62 = vand.u32 65535, %v5117_v36  ;;  %v5122_v54 = vshrl.u32 %v5117_v36, 16  ;;  %v5145_v47 = vmul.u32 %v5143_v6, %v9168_v0  ;;  %v9277_v29 = vmul.u32 %v5144_v18, %v9168_v0  ;;  %2501 = vmatpush.msrb.mxu2 %v9143_v30 }
 0x16f   :  { %v2428_v22 = vsub.f32 %v9143_v30, %v13015_v19  ;;  %v9280_v2 = vmul.u32 %v5143_v6, %v9171_v52  ;;  %v5148_v58 = vmul.u32 %v5144_v18, %v9171_v52  ;;  %v13016_v60 = vand.u32 4294901760, %v9129_v17  ;;  %2537 = vmatpush.msrb.mxu3 %v8969_v39  ;;  %2351 = vmatpush.msrb.mxu0 %v9131_v28 }
 0x170   :  { %v5046_v5 = vmul.f32 %v5045_v21, %v5043_v44  ;;  %v5053_v3 = vmul.f32 %v5052_v14, %v5043_v44  ;;  %v5123_v27 = vmul.u32 %v5121_v62, %v9168_v0  ;;  %v5124_v8 = vmul.u32 %v5122_v54, %v9168_v0  ;;  %2504 = vmatpush.msrb.mxu2 %v9155_v4 }
 0x171   :  { %2418 = vmatpush.msrb.mxu1 %v13016_v60  ;;  %v9290_v26 = vmul.u32 %v5121_v62, %v9171_v52  ;;  %v5126_v34 = vmul.u32 %v5122_v54, %v9171_v52  ;;  %v5149_v36 = vshll.u32 %v9277_v29, 16  ;;  %v5150_v17 = vshrl.u32 %v9277_v29, 16  ;;  %2539 = vmatpush.msrb.mxu3 %v9011_v11 }
 0x172   :  { %v5047_v6 = vadd.f32 -0.4999988, %v5046_v5  ;;  %v5054_v18 = vadd.f32 -0.16666654, %v5053_v3  ;;  %v5127_v0 = vshll.u32 %v5124_v8, 16  ;;  %v5128_v12 = vshrl.u32 %v5124_v8, 16  ;;  %2353 = vmatpush.msrb.mxu0 %v9150_v49  ;;  %2507 = vmatpush.msrb.mxu2 %v9183_v20 }
 0x173   :  { %v13017_v19 = vand.u32 4294901760, %v9148_v56  ;;  %vm5062_vm8 = vcmp.eq.s32.totalorder %v9097_v35, 0  ;;  %v5129_v52 = vshll.u32 %v9290_v26, 16  ;;  %v5130_v21 = vshrl.u32 %v9290_v26, 16  ;;  %2541 = vmatpush.msrb.mxu3 %v9028_v45 }
 0x174   :  { %v5151_v14 = vshll.u32 %v9280_v2, 16  ;;  %v5048_v54 = vmul.f32 %v5047_v6, %v5043_v44  ;;  %v5055_v60 = vmul.f32 %v5054_v18, %v5043_v44  ;;  %vm5061_vm9 = vcmp.lt.s32.totalorder %v9097_v35, 2  ;;  %2355 = vmatpush.msrb.mxu0 %v9186_v55 }
 0x175   :  { %2424 = vmatpush.msrb.mxu1 %v13017_v19  ;;  %v13018_v56 = vperm.slane %v8924_v15, 1  ;;  %vm5131_vm11 = vc.u32 %v5123_v27, %v5127_v0  ;;  %v5133_v3 = vadd.s32 %v5127_v0, %v5123_v27  ;;  %v13021_v8 = vmov 0   ;;  %2543 = vmatpush.msrb.mxu3 %v9058_v38 }
 0x176   :  { %v5132_v26 = vsel %vm5131_vm11, 1, %v13021_v8  ;;  %vm5153_vm13 = vc.u32 %v5145_v47, %v5149_v36  ;;  %v5155_v19 = vadd.s32 %v5149_v36, %v5145_v47  ;;  %v2429_v6 = vand.u32 4294901760, %v2428_v22  ;;  %2357 = vmatpush.msrb.mxu0 %v9257_v53 }
 0x177   :  { %vm9310_vm10 = vcmp.eq.s32.totalorder %v13018_v56, 1  ;;  %v5049_v44 = vadd.f32 1.0, %v5048_v54  ;;  %v5056_v18 = vadd.f32 1.0, %v5055_v60  ;;  %v5134_v56 = vadd.s32 %v5132_v26, %v5126_v34  ;;  %2545 = vmatpush.msrb.mxu3 %v9114_v46  ;;  %v95_v34 = vld [vmem:[#allocation5 + $0x98] sm:$0xff] }
 0x178   :  { %vm5135_vm14 = vc.u32 %v5133_v3, %v5129_v52  ;;  %vm6838_vm0 = vcmask 1043456   ;;  %v5154_v0 = vsel %vm5153_vm13, 1, %v13021_v8  ;;  %vm5157_vm1 = vc.u32 %v5155_v19, %v5151_v14  ;;  %2430 = vmatpush.msrb.mxu1 %v2429_v6 }
 0x179   :  { %v5136_v27 = vsel %vm5135_vm14, 1, %v13021_v8  ;;  %v9322_v62 = vadd.s32 %v5155_v19, %v5151_v14  ;;  %v5057_v22 = vmul.f32 %v5056_v18, %v9224_v16  ;;  %v5066_v47 = vxor.u32 2147483648, %v5049_v44  ;;  %2547 = vmatpush.msrb.mxu3 %v9131_v28  ;;  %v82_v18 = vld [vmem:[#allocation5 + $0x30] sm:$0xff] }
 0x17a   :  { %v5138_v36 = vadd.s32 %v5136_v27, %v5134_v56  ;;  %v5156_v54 = vadd.s32 %v5154_v0, %v5148_v58  ;;  %v5158_v52 = vsel %vm5157_vm1, 1, %v13021_v8  ;;  %v13022_v60 = vand.u32 4294901760, %v9155_v4 }
 0x17b   :  { %v9333_v14 = vsub.f32 %v9163_v10, %v9186_v55  ;;  %v12599_v26 = vand.u32 4294901760, %v9183_v20  ;;  %v5063_v19 = vxor.u32 2147483648, %v5057_v22  ;;  %v5067_v16 = vsel %vm5065_vm7, %v5066_v47, %v5057_v22  ;;  %2549 = vmatpush.msrb.mxu3 %v9150_v49 }
 0x17c   :  { %v2434_v3 = vsub.f32 %v9155_v4, %v13022_v60  ;;  %v5139_v58 = vadd.s32 %v5138_v36, %v5128_v12  ;;  %v5160_v6 = vadd.s32 %v5158_v52, %v5156_v54  ;;  %v9345_v10 = vsub.f32 %v9219_v9, %v9257_v53  ;;  %v1345_v60 = vpop.f32.mrf.mxu2 }
 0x17d   :  { %2510 = vmatpush.msrb.mxu2 %v9333_v14  ;;  %v2440_v27 = vsub.f32 %v9183_v20, %v12599_v26  ;;  %v9347_v0 = vand.u32 4294901760, %v95_v34  ;;  %v5064_v12 = vsel %vm5062_vm8, %v5049_v44, %v5063_v19  ;;  %v12598_v36 = vand.u32 4294901760, %v9333_v14  ;;  %2551 = vmatpush.msrb.mxu3 %v9186_v55 }
 0x17e   :  { %v2435_v56 = vand.u32 4294901760, %v2434_v3  ;;  %v9351_v22 = vadd.s32 %v5139_v58, %v5130_v21  ;;  %v5161_v47 = vadd.s32 %v5160_v6, %v5150_v17  ;;  %v5068_v54 = vsel %vm5061_vm9, %v5064_v12, %v5067_v16  ;;  %v278_v21 = vld [vmem:[#allocation5 + $0x650] sm:$0xff]  ;;  %v1446_v3 = vpop.f32.mrf.mxu3  ;;  %v13024_v16 = vld [vmem:[#allocation48_spill] sm:$0xff] }
 0x17f   :  { %v2441_v9 = vand.u32 4294901760, %v2440_v27  ;;  %2513 = vmatpush.msrb.mxu2 %v9345_v10  ;;  %v9361_v52 = vsub.f32 %v95_v34, %v9347_v0  ;;  %v9363_v44 = vand.u32 4294901760, %v82_v18  ;;  %v5069_v29 = vsel %vm5058_vm12, nan, %v5068_v54  ;;  %2359 = vmatpush.msrb.mxu0 %v9347_v0  ;;  %v265_v34 = vld [vmem:[#allocation5 + $0x5e8] sm:$0xff]  ;;  %v252_v27 = vld [vmem:[#allocation5 + $0x580] sm:$0xff] }
 0x180   :  { %2436 = vmatpush.msrb.mxu1 %v2435_v56  ;;  %v13023_v17 = vshrl.u32 %v9280_v2, 16  ;;  %v5163_v35 = vmul.u32 %v9140_v37, %v9247_v25  ;;  %vm5165_vm2 = vc.u32 %v9351_v22, %v9322_v62  ;;  %v6808_v58 = vsel %vm9310_vm10, %v13024_v16, %v5069_v29  ;;  %2553 = vmatpush.msrb.mxu3 %v9257_v53  ;;  %v1500_v29 = vpop.f32.mrf.mxu0 }
 0x181   :  { %v2446_v63 = vsub.f32 %v9333_v14, %v12598_v36  ;;  %2516 = vmatpush.msrb.mxu2 %v9361_v52  ;;  %v12597_v37 = vand.u32 4294901760, %v9345_v10  ;;  %v9384_v25 = vsub.f32 %v82_v18, %v9363_v44  ;;  %v6832_v2 = vrot.slane %v6808_v58, 4  ;;  %2361 = vmatpush.msrb.mxu0 %v9363_v44  ;;  %v239_v58 = vld [vmem:[#allocation5 + $0x518] sm:$0xff] }
 0x182   :  { %v5162_v19 = vadd.s32 %v5161_v47, %v13023_v17  ;;  %2442 = vmatpush.msrb.mxu1 %v2441_v9  ;;  %v9388_v5 = vand.u32 4294901760, %v278_v21  ;;  %v1447_v56 = vadd.f32 %v1446_v3, %v1345_v60  ;;  %v13025_v18 = vand.u32 4294901760, %v8909_v1  ;;  %2555 = vmatpush.msrb.mxu3 %v9347_v0 }
 0x183   :  { %v2447_v12 = vand.u32 4294901760, %v2446_v63  ;;  %v2452_v47 = vsub.f32 %v9345_v10, %v12597_v37  ;;  %2519 = vmatpush.msrb.mxu2 %v9384_v25  ;;  %v12595_v54 = vand.u32 4294901760, %v9361_v52  ;;  %v9397_v9 = vand.u32 4294901760, %v265_v34  ;;  %v213_v37 = vld [vmem:[#allocation5 + $0x448] sm:$0xff] }
 0x184   :  { %v5166_v6 = vadd.s32 1, %v5162_v19  ;;  %2568 = vmatpush.msra.mxu0 %v13025_v18  ;;  %v13026_v60 = vsel %vm8979_vm15, %v13003_v41, %v9062_v43  ;;  %v9411_v1 = vsub.f32 %v278_v21, %v9388_v5  ;;  %v12594_v16 = vand.u32 4294901760, %v9384_v25  ;;  %2557 = vmatpush.msrb.mxu3 %v9363_v44 }
 0x185   :  { %v6839_v3 = vsel %vm6838_vm0, %v13026_v60, %v6832_v2  ;;  %2672 = vmatpush.msra.mxu2 %v9388_v5  ;;  %2448 = vmatpush.msrb.mxu1 %v2447_v12  ;;  %v2453_v41 = vand.u32 4294901760, %v2452_v47  ;;  %v2458_v43 = vsub.f32 %v9361_v52, %v12595_v54  ;;  %v9419_v63 = vand.u32 4294901760, %v252_v27  ;;  %v1539_v2 = vpop.f32.mrf.mxu1  ;;  %v226_v47 = vld [vmem:[#allocation5 + $0x4b0] sm:$0xff] }
 0x186   :  { %v5167_v17 = vsel %vm5165_vm2, %v5166_v6, %v5162_v19  ;;  %6851 = vst [vmem:[#allocation10] sm:$0xff] %v6839_v3  ;;  %v13027_v19 = vand.u32 4294901760, %v8920_v40  ;;  %v12596_v21 = vand.u32 4294901760, %v9411_v1  ;;  %v1501_v6 = vadd.f32 %v1500_v29, %v1447_v56  ;;  %v1608_v56 = vpop.f32.mrf.mxu2 }
 0x187   :  { %v5168_v33 = vadd.s32 %v5167_v17, %v5163_v35  ;;  %2674 = vmatpush.msra.mxu2 %v9397_v9  ;;  %v2464_v35 = vsub.f32 %v9384_v25, %v12594_v16  ;;  %v9428_v12 = vsub.f32 %v265_v34, %v9397_v9  ;;  %2454 = vmatpush.msrb.mxu1 %v2453_v41  ;;  %v2459_v18 = vand.u32 4294901760, %v2458_v43  ;;  %v13029_v43 = vld [vmem:[#allocation23_spill] sm:$0xff] }
 0x188   :  { %2572 = vmatpush.msra.mxu0 %v13027_v19  ;;  %v13028_v60 = vand.u32 4294901760, %v8937_v59  ;;  %v9432_v3 = vand.u32 4294901760, %v239_v58  ;;  %v9435_v17 = vsub.f32 %v252_v27, %v9419_v63  ;;  %v2715_v29 = vsub.f32 %v9411_v1, %v12596_v21 }
 0x189   :  { %v5169_v40 = vadd.s32 536870912, %v5168_v33  ;;  %v2465_v19 = vand.u32 4294901760, %v2464_v35  ;;  %2676 = vmatpush.msra.mxu2 %v9419_v63  ;;  %v12600_v34 = vand.u32 4294901760, %v9428_v12  ;;  %v1540_v41 = vadd.f32 %v1539_v2, %v1501_v6  ;;  %2367 = vmatmul.f32.vlgmr.msrb.gmra.mxu0 %v13029_v43  ;;  %v1645_v35 = vpop.f32.mrf.mxu3 }
 0x18a   :  { %2576 = vmatpush.msra.mxu0 %v13028_v60  ;;  %2460 = vmatpush.msrb.mxu1 %v2459_v18  ;;  %v13030_v60 = vld [vmem:[#allocation16_spill] sm:$0xff]  ;;  %v12601_v27 = vand.u32 4294901760, %v9435_v17  ;;  %v9448_v54 = vand.u32 4294901760, %v226_v47  ;;  %v9451_v21 = vsub.f32 %v239_v58, %v9432_v3  ;;  %v2716_v36 = vand.u32 4294901760, %v2715_v29 }
 0x18b   :  { %v9443_v59 = vshrl.u32 %v5169_v40, 30  ;;  %v13031_v16 = vand.u32 4294901760, %v13030_v60  ;;  %v2721_v2 = vsub.f32 %v9428_v12, %v12600_v34  ;;  %2678 = vmatpush.msra.mxu2 %v9432_v3  ;;  %v1609_v6 = vadd.f32 %v1608_v56, %v1540_v41  ;;  %v13032_v40 = vld [vmem:[#allocation39_spill] sm:$0xff]  ;;  %v200_v34 = vld [vmem:[#allocation5 + $0x3e0] sm:$0xff] }
 0x18c   :  { %v4724_v18 = vperm.slane %v13032_v40, 3  ;;  %2466 = vmatpush.msrb.mxu1 %v2465_v19  ;;  %v2727_v58 = vsub.f32 %v9435_v17, %v12601_v27  ;;  %v13034_v29 = vand.u32 4294901760, %v8991_v13  ;;  %v12606_v26 = vand.u32 4294901760, %v9451_v21  ;;  %2717 = vmatpush.msra.mxu3 %v2716_v36 }
 0x18d   :  { %2580 = vmatpush.msra.mxu0 %v13031_v16  ;;  %v13033_v16 = vld [vmem:[#allocation22_spill] sm:$0xff]  ;;  %v5171_v60 = vshll.u32 %v9443_v59, 30  ;;  %v2722_v56 = vand.u32 4294901760, %v2721_v2  ;;  %v9467_v41 = vadd.f32 %v1645_v35, %v1609_v6  ;;  %v9469_v40 = vand.u32 4294901760, %v213_v37  ;;  %2680 = vmatpush.msra.mxu2 %v9448_v54  ;;  %v9489_v35 = vld [vmem:[#allocation5 + $0x378] sm:$0xff] }
 0x18e   :  { %2561 = vmatmul.f32.vlgmr.msrb.gmra.mxu3 %v13033_v16  ;;  %2635 = vmatpush.msra.mxu1 %v8883_v61  ;;  %v9472_v19 = vsub.f32 %v226_v47, %v9448_v54  ;;  %v2728_v27 = vand.u32 4294901760, %v2727_v58  ;;  %v2733_v13 = vsub.f32 %v9451_v21, %v12606_v26  ;;  %v13036_v36 = vand.u32 4294901760, %v8997_v50 }
 0x18f   :  { %2584 = vmatpush.msra.mxu0 %v13034_v29  ;;  %13035 = vst [vmem:[#allocation27_spill] sm:$0xff] %v9467_v41  ;;  %v9474_v16 = vsub.s32 %v5168_v33, %v5171_v60  ;;  %2723 = vmatpush.msra.mxu3 %v2722_v56  ;;  %v9484_v61 = vadd.f32 %v4724_v18, %v9467_v41  ;;  %v9487_v33 = vand.u32 4294901760, %v200_v34  ;;  %v13038_v50 = vand.u32 4294901760, %v9048_v32 }
 0x190   :  { %2637 = vmatpush.msra.mxu1 %v8897_v7  ;;  %v12602_v47 = vand.u32 4294901760, %v9472_v19  ;;  %v2734_v6 = vand.u32 4294901760, %v2733_v13  ;;  %2682 = vmatpush.msra.mxu2 %v9469_v40  ;;  %v9503_v58 = vsub.f32 %v213_v37, %v9469_v40  ;;  %v5194_v56 = vsub.s32 4, %v9443_v59 }
 0x191   :  { %2588 = vmatpush.msra.mxu0 %v13036_v36  ;;  %13037 = vst [vmem:[#allocation17_spill] sm:$0xff] %v9484_v61  ;;  %vm5173_vm15 = vcmp.lt.s32.totalorder %v9474_v16, 0  ;;  %v5174_v2 = vsub.s32 0, %v9474_v16  ;;  %2729 = vmatpush.msra.mxu3 %v2728_v27  ;;  %v12605_v7 = vand.u32 2147483647, %v9484_v61  ;;  %v5228_v18 = vand.u32 2139095040, %v9484_v61 }
 0x192   :  { %2639 = vmatpush.msra.mxu1 %v8911_v48  ;;  %v2739_v60 = vsub.f32 %v9472_v19, %v12602_v47  ;;  %2684 = vmatpush.msra.mxu2 %v9487_v33  ;;  %v13039_v32 = vand.u32 4294901760, %v9085_v23  ;;  %v9511_v48 = vand.u32 4294901760, %v9489_v35  ;;  %v9514_v27 = vsub.f32 %v200_v34, %v9487_v33  ;;  %v13041_v34 = vld [vmem:[#allocation15_spill] sm:$0xff] }
 0x193   :  { %2592 = vmatpush.msra.mxu0 %v13038_v50  ;;  %v5175_v29 = vsel %vm5173_vm15, %v5174_v2, %v9474_v16  ;;  %2735 = vmatpush.msra.mxu3 %v2734_v6  ;;  %v5229_v36 = vshrl.u32 %v5228_v18, 23  ;;  %v5232_v37 = vand.u32 8388607, %v12605_v7  ;;  %v9519_v50 = vld [vmem:[#allocation5 + $0x310] sm:$0xff]  ;;  %v12604_v23 = vand.u32 4294901760, %v9503_v58 }
 0x194   :  { %v5176_v13 = vclz %v5175_v29  ;;  %2641 = vmatpush.msra.mxu1 %v8948_v31  ;;  %v2740_v2 = vand.u32 4294901760, %v2739_v60  ;;  %2686 = vmatpush.msra.mxu2 %v9511_v48  ;;  %vm5072_vm3 = vcmp.lt.s32.totalorder %v13041_v34, 0  ;;  %v12603_v18 = vand.u32 4294901760, %v9514_v27 }
 0x195   :  { %2596 = vmatpush.msra.mxu0 %v13039_v32  ;;  %v13040_v32 = vand.u32 4294901760, %v9103_v24  ;;  %v6886_v6 = vadd.s32 4294967169, %v5229_v36  ;;  %v5195_v31 = vsel %vm5072_vm3, %v5194_v56, %v9443_v59  ;;  %v5233_v60 = vor.u32 8388608, %v5232_v37  ;;  %v13043_v36 = vld [vmem:[#allocation21_spill] sm:$0xff] }
 0x196   :  { %v6884_v29 = vadd.s32 4294967294, %v5176_v13  ;;  %2741 = vmatpush.msra.mxu3 %v2740_v2  ;;  %2643 = vmatpush.msra.mxu1 %v8955_v57  ;;  %v2745_v47 = vsub.f32 %v9503_v58, %v12604_v23  ;;  %v9535_v24 = vand.u32 4294901760, %v9519_v50  ;;  %v13042_v13 = vand.u32 4294901760, %v9143_v30 }
 0x197   :  { %2600 = vmatpush.msra.mxu0 %v13040_v32  ;;  %2522 = vmatmul.f32.vlgmr.msrb.gmra.mxu2 %v13043_v36  ;;  %v5235_v57 = vadd.s32 1, %v6886_v6  ;;  %v2751_v59 = vsub.f32 %v9514_v27, %v12603_v18  ;;  %v13044_v56 = vand.u32 2147483647, %v13041_v34  ;;  %v5164_v30 = vadd.s32 %v9322_v62, %v9351_v22  ;;  %v9562_v22 = vld [vmem:[#allocation5 + $0x240] sm:$0xff] }
 0x198   :  { %vm6885_vm4 = vcmp.lt.s32.totalorder %v6884_v29, 0  ;;  %2645 = vmatpush.msra.mxu1 %v8969_v39  ;;  %v2746_v32 = vand.u32 4294901760, %v2745_v47  ;;  %2688 = vmatpush.msra.mxu2 %v9535_v24  ;;  %v13047_v6 = vand.u32 4294901760, %v9155_v4  ;;  %v9560_v7 = vshll.u32 %v5233_v60, 8 }
 0x199   :  { %2604 = vmatpush.msra.mxu0 %v13042_v13  ;;  %vm9546_vm5 = vcmp.le.f32.partialorder %v13044_v56, 0.7853982  ;;  %v5179_v2 = vsel %vm6885_vm4, 0, %v6884_v29  ;;  %vm5236_vm6 = vcmp.gt.s32.totalorder %v5235_v57, 0  ;;  %v9558_v56 = vld [vmem:[#allocation5 + $0x2a8] sm:$0xff]  ;;  %v2752_v62 = vand.u32 4294901760, %v2751_v59 }
 0x19a   :  { %v5180_v39 = vsub.s32 32, %v5179_v2  ;;  %v5184_v13 = vsub.s32 4294967266, %v5179_v2  ;;  %v5197_v18 = vsel %vm9546_vm5, 0, %v5195_v31  ;;  %2647 = vmatpush.msra.mxu1 %v9011_v11  ;;  %v5237_v23 = vsel %vm5236_vm6, %v5235_v57, 0  ;;  %2747 = vmatpush.msra.mxu3 %v2746_v32 }
 0x19b   :  { %2608 = vmatpush.msra.mxu0 %v13047_v6  ;;  %v13048_v4 = vand.u32 4294901760, %v9183_v20  ;;  %v5181_v47 = vshll.u32 %v9474_v16, %v5179_v2  ;;  %v5239_v31 = vand.u32 31, %v5237_v23  ;;  %v9568_v11 = vadd.s32 3, %v5197_v18 }
 0x19c   :  { %v5182_v29 = vshrl.u32 %v5164_v30, %v5180_v39  ;;  %v5185_v6 = vadd.s32 127, %v5184_v13  ;;  %2649 = vmatpush.msra.mxu1 %v9028_v45  ;;  %v9570_v26 = vshrl.u32 %v5237_v23, 5  ;;  %2753 = vmatpush.msra.mxu3 %v2752_v62  ;;  %v9573_v60 = vand.u32 4294901760, %v9558_v56 }
 0x19d   :  { %2612 = vmatpush.msra.mxu0 %v13048_v4  ;;  %v13049_v57 = vand.u32 4294901760, %v9333_v14  ;;  %v5240_v32 = vsub.s32 32, %v5239_v31  ;;  %v9579_v16 = vand.u32 4294901760, %v9562_v22  ;;  %v13050_v45 = vmov 683565275  }
 0x19e   :  { %v5183_v20 = vor.u32 %v5182_v29, %v5181_v47  ;;  %v5186_v59 = vshll.u32 %v5185_v6, 23  ;;  %2651 = vmatpush.msra.mxu1 %v9058_v38  ;;  %v5242_v18 = vshll.u32 %v13050_v45, %v5239_v31  ;;  %v5245_v23 = vshll.u32 %v13007_v42, %v5239_v31  ;;  %2690 = vmatpush.msra.mxu2 %v9573_v60 }
 0x19f   :  { %2616 = vmatpush.msra.mxu0 %v13049_v57  ;;  %v13051_v30 = vmov 2131351028   ;;  %v13052_v39 = vmov 2102212464   ;;  %v9587_v4 = vand.u32 65535, %v9560_v7  ;;  %v9591_v38 = vsub.f32 %v9489_v35, %v9511_v48 }
 0x1a0   :  { %v5248_v2 = vshll.u32 %v13051_v30, %v5239_v31  ;;  %v5251_v13 = vshll.u32 %v13052_v39, %v5239_v31  ;;  %v5187_v14 = vor.u32 4788187, %v5186_v59  ;;  %v5190_v62 = vcvt.s32.f32 %v5183_v20  ;;  %2653 = vmatpush.msra.mxu1 %v9114_v46  ;;  %2692 = vmatpush.msra.mxu2 %v9579_v16 }
 0x1a1   :  { %v13053_v47 = vand.u32 4294901760, %v9345_v10  ;;  %v5243_v29 = vshrl.u32 %v13007_v42, %v5240_v32  ;;  %v5246_v6 = vshrl.u32 %v13051_v30, %v5240_v32  ;;  %v5249_v57 = vshrl.u32 %v13052_v39, %v5240_v32  ;;  %v13056_v42 = vld [vmem:[#allocation20_spill] sm:$0xff] }
 0x1a2   :  { %v5252_v20 = vshrl.u32 %v12943_v51, %v5240_v32  ;;  %v5188_v59 = vand.u32 2147483647, %v5187_v14  ;;  %v5254_v41 = vshll.u32 %v12943_v51, %v5239_v31  ;;  %v13054_v35 = vmov 1326507024   ;;  %2655 = vmatpush.msra.mxu1 %v9131_v28 }
 0x1a3   :  { %2620 = vmatpush.msra.mxu0 %v13053_v47  ;;  %v5255_v36 = vshrl.u32 %v13054_v35, %v5240_v32  ;;  %vm5257_vm7 = vcmp.lt.s32.totalorder %v9570_v26, 1  ;;  %v13055_v46 = vand.u32 4294901760, %v9361_v52  ;;  %v5244_v10 = vor.u32 %v5243_v29, %v5242_v18  ;;  %2468 = vmatmul.f32.vlgmr.msrb.gmra.mxu1 %v13056_v42 }
 0x1a4   :  { %v5247_v47 = vor.u32 %v5246_v6, %v5245_v23  ;;  %v5250_v30 = vor.u32 %v5249_v57, %v5248_v2  ;;  %v5253_v39 = vor.u32 %v5252_v20, %v5251_v13  ;;  %v5191_v15 = vmul.f32 %v5190_v62, %v5188_v59  ;;  %2657 = vmatpush.msra.mxu1 %v9150_v49 }
 0x1a5   :  { %2624 = vmatpush.msra.mxu0 %v13055_v46  ;;  %v5241_v14 = vshrl.u32 %v13050_v45, %v5240_v32  ;;  %v5256_v61 = vor.u32 %v5255_v36, %v5254_v41  ;;  %vm5259_vm8 = vcmp.lt.s32.totalorder %v9570_v26, 3  ;;  %v13057_v31 = vand.u32 4294901760, %v9384_v25 }
 0x1a6   :  { %vm5258_vm9 = vcmp.lt.s32.totalorder %v9570_v26, 2  ;;  %vm5260_vm10 = vcmp.lt.s32.totalorder %v9570_v26, 4  ;;  %v5265_v28 = vsel %vm5257_vm7, %v5244_v10, %v5247_v47  ;;  %v5275_v52 = vshrl.u32 %v9560_v7, 16  ;;  %2659 = vmatpush.msra.mxu1 %v9186_v55 }
 0x1a7   :  { %2628 = vmatpush.msra.mxu0 %v13057_v31  ;;  %v5192_v32 = vxor.u32 2147483648, %v5191_v15  ;;  %v5266_v41 = vsel %vm5260_vm10, %v5253_v39, 920167782  ;;  %v5269_v36 = vsel %vm5257_vm7, %v5247_v47, %v5250_v30  ;;  %v12623_v49 = vand.u32 4294901760, %v9591_v38 }
 0x1a8   :  { %2630 = vmatmul.f32.vlgmr.msra.gmra.mxu0 %v13056_v42  ;;  %v5262_v25 = vsel %vm5260_vm10, %v5250_v30, 2102212464  ;;  %v5267_v18 = vsel %vm5259_vm8, %v5250_v30, %v5266_v41  ;;  %v5270_v23 = vsel %vm5260_vm10, %v5256_v61, 1326507024  ;;  %v9628_v2 = vsub.f32 %v9519_v50, %v9535_v24  ;;  %2661 = vmatpush.msra.mxu1 %v9257_v53 }
 0x1a9   :  { %2815 = vmatpush.msrb.mxu0 %v9411_v1  ;;  %v5193_v13 = vsel %vm5072_vm3, %v5192_v32, %v5191_v15  ;;  %v5261_v62 = vsel %vm5257_vm7, %v5241_v14, %v5244_v10  ;;  %v5268_v55 = vsel %vm5258_vm9, %v5265_v28, %v5267_v18  ;;  %v5271_v29 = vsel %vm5259_vm8, %v5253_v39, %v5270_v23 }
 0x1aa   :  { %v9643_v61 = vsel %vm9546_vm5, %v13041_v34, %v5193_v13  ;;  %v5272_v50 = vsel %vm5258_vm9, %v5269_v36, %v5271_v29  ;;  %v5298_v15 = vand.u32 65535, %v5268_v55  ;;  %v5299_v30 = vshrl.u32 %v5268_v55, 16  ;;  %2663 = vmatpush.msra.mxu1 %v9347_v0 }
 0x1ab   :  { %2818 = vmatpush.msrb.mxu0 %v9428_v12  ;;  %v9650_v6 = vmul.f32 %v9643_v61, %v9643_v61  ;;  %v5263_v39 = vsel %vm5259_vm8, %v5247_v47, %v5262_v25  ;;  %v5276_v53 = vand.u32 65535, %v5272_v50  ;;  %v5277_v57 = vshrl.u32 %v5272_v50, 16 }
 0x1ac   :  { %v9656_v37 = vmul.u32 %v5299_v30, %v9587_v4  ;;  %v9658_v20 = vmul.u32 %v5298_v15, %v5275_v52  ;;  %v2757_v59 = vsub.f32 %v9591_v38, %v12623_v49  ;;  %v12620_v46 = vand.u32 4294901760, %v9628_v2  ;;  %2665 = vmatpush.msra.mxu1 %v9363_v44 }
 0x1ad   :  { %2821 = vmatpush.msrb.mxu0 %v9435_v17  ;;  %v5199_v10 = vmul.f32 -0.001358992, %v9650_v6  ;;  %v5206_v47 = vmul.f32 -0.00019511016, %v9650_v6  ;;  %v5278_v14 = vmul.u32 %v5276_v53, %v9587_v4  ;;  %v5279_v0 = vmul.u32 %v5277_v57, %v9587_v4  ;;  %2667 = vmatmul.f32.vlgmr.msra.gmra.mxu1 %v13056_v42 }
 0x1ae   :  { %v9672_v31 = vsel %vm5258_vm9, %v5261_v62, %v5263_v39  ;;  %v9674_v28 = vmul.u32 %v5276_v53, %v5275_v52  ;;  %v5300_v32 = vmul.u32 %v5298_v15, %v9587_v4  ;;  %v5304_v41 = vshll.u32 %v9656_v37, 16  ;;  %2868 = vmatpush.msrb.mxu1 %v9388_v5 }
 0x1af   :  { %2824 = vmatpush.msrb.mxu0 %v9451_v21  ;;  %v5200_v36 = vadd.f32 0.041655596, %v5199_v10  ;;  %v5207_v25 = vadd.f32 0.008332121, %v5206_v47  ;;  %v5281_v18 = vmul.u32 %v5277_v57, %v5275_v52  ;;  %v5282_v23 = vshll.u32 %v5279_v0, 16  ;;  %v135_v57 = vld [vmem:[#allocation5 + $0x1d8] sm:$0xff] }
 0x1b0   :  { %v5284_v26 = vshll.u32 %v9674_v28, 16  ;;  %v5303_v44 = vmul.u32 %v5299_v30, %v5275_v52  ;;  %v5305_v13 = vshrl.u32 %v9656_v37, 16  ;;  %v5306_v62 = vshll.u32 %v9658_v20, 16  ;;  %2870 = vmatpush.msrb.mxu1 %v9397_v9 }
 0x1b1   :  { %2827 = vmatpush.msrb.mxu0 %v9472_v19  ;;  %v5201_v4 = vmul.f32 %v5200_v36, %v9650_v6  ;;  %v5208_v55 = vmul.f32 %v5207_v25, %v9650_v6  ;;  %vm5286_vm11 = vc.u32 %v5278_v14, %v5282_v23  ;;  %v5288_v29 = vadd.s32 %v5282_v23, %v5278_v14 }
 0x1b2   :  { %v5287_v50 = vsel %vm5286_vm11, 1, %v13021_v8  ;;  %vm5308_vm12 = vc.u32 %v5300_v32, %v5304_v41  ;;  %v5310_v15 = vadd.s32 %v5304_v41, %v5300_v32  ;;  %v2758_v39 = vand.u32 4294901760, %v2757_v59  ;;  %2872 = vmatpush.msrb.mxu1 %v9419_v63  ;;  %v122_v41 = vld [vmem:[#allocation5 + $0x170] sm:$0xff] }
 0x1b3   :  { %2830 = vmatpush.msrb.mxu0 %v9503_v58  ;;  %v5209_v52 = vadd.f32 -0.16666654, %v5208_v55  ;;  %v5283_v30 = vshrl.u32 %v5279_v0, 16  ;;  %v5289_v53 = vadd.s32 %v5287_v50, %v5281_v18  ;;  %vm5290_vm13 = vc.u32 %v5288_v29, %v5284_v26  ;;  %v109_v55 = vld [vmem:[#allocation5 + $0x108] sm:$0xff] }
 0x1b4   :  { %v5285_v37 = vshrl.u32 %v9674_v28, 16  ;;  %v5291_v10 = vsel %vm5290_vm13, 1, %v13021_v8  ;;  %v5309_v47 = vsel %vm5308_vm12, 1, %v13021_v8  ;;  %vm5312_vm14 = vc.u32 %v5310_v15, %v5306_v62  ;;  %2759 = vmatpush.msra.mxu3 %v2758_v39  ;;  %2874 = vmatpush.msrb.mxu1 %v9432_v3 }
 0x1b5   :  { %2833 = vmatpush.msrb.mxu0 %v9514_v27  ;;  %v5202_v59 = vadd.f32 -0.4999988, %v5201_v4  ;;  %v5210_v14 = vmul.f32 %v5209_v52, %v9650_v6  ;;  %v5293_v32 = vadd.s32 %v5291_v10, %v5289_v53  ;;  %v5311_v0 = vadd.s32 %v5309_v47, %v5303_v44 }
 0x1b6   :  { %v5313_v36 = vsel %vm5312_vm14, 1, %v13021_v8  ;;  %v2763_v28 = vsub.f32 %v9628_v2, %v12620_v46  ;;  %v9703_v25 = vsub.f32 %v9558_v56, %v9573_v60  ;;  %v9705_v18 = vand.u32 4294901760, %v135_v57  ;;  %2876 = vmatpush.msrb.mxu1 %v9448_v54  ;;  %v253_v8 = vld [vmem:[#allocation5 + $0x588] sm:$0xff] }
 0x1b7   :  { %2836 = vmatpush.msrb.mxu0 %v9591_v38  ;;  %v5294_v23 = vadd.s32 %v5293_v32, %v5283_v30  ;;  %v5307_v26 = vshrl.u32 %v9658_v20, 16  ;;  %v9709_v44 = vadd.s32 %v5310_v15, %v5306_v62  ;;  %v5315_v4 = vadd.s32 %v5313_v36, %v5311_v0 }
 0x1b8   :  { %v2764_v29 = vand.u32 4294901760, %v2763_v28  ;;  %v12619_v50 = vand.u32 4294901760, %v9703_v25  ;;  %2694 = vmatpush.msra.mxu2 %v9705_v18  ;;  %v9716_v56 = vsub.f32 %v9562_v22, %v9579_v16  ;;  %v9718_v39 = vand.u32 4294901760, %v122_v41  ;;  %2878 = vmatpush.msrb.mxu1 %v9469_v40 }
 0x1b9   :  { %2839 = vmatpush.msrb.mxu0 %v9628_v2  ;;  %v5203_v20 = vmul.f32 %v5202_v59, %v9650_v6  ;;  %v5211_v62 = vadd.f32 1.0, %v5210_v14  ;;  %v9722_v15 = vadd.s32 %v5294_v23, %v5285_v37  ;;  %v5316_v52 = vadd.s32 %v5315_v4, %v5305_v13  ;;  %v96_v6 = vld [vmem:[#allocation5 + $0xa0] sm:$0xff] }
 0x1ba   :  { %2765 = vmatpush.msra.mxu3 %v2764_v29  ;;  %v2769_v30 = vsub.f32 %v9703_v25, %v12619_v50  ;;  %v12618_v22 = vand.u32 4294901760, %v9716_v56  ;;  %2696 = vmatpush.msra.mxu2 %v9718_v39  ;;  %v9731_v53 = vsub.f32 %v135_v57, %v9705_v18  ;;  %v9733_v10 = vand.u32 4294901760, %v109_v55 }
 0x1bb   :  { %2842 = vmatpush.msrb.mxu0 %v9703_v25  ;;  %v9736_v37 = vand.u32 3, %v9568_v11  ;;  %v5317_v13 = vadd.s32 %v5316_v52, %v5307_v26  ;;  %v5318_v47 = vmul.u32 %v9560_v7, %v9672_v31  ;;  %2880 = vmatpush.msrb.mxu1 %v9487_v33  ;;  %vm5320_vm1 = vc.u32 %v9722_v15, %v9709_v44  ;;  %v83_v11 = vld [vmem:[#allocation5 + $0x38] sm:$0xff] }
 0x1bc   :  { %v2770_v59 = vand.u32 4294901760, %v2769_v30  ;;  %v2775_v57 = vsub.f32 %v9716_v56, %v12618_v22  ;;  %v12617_v14 = vand.u32 4294901760, %v9731_v53  ;;  %2698 = vmatpush.msra.mxu2 %v9733_v10  ;;  %v5204_v32 = vadd.f32 1.0, %v5203_v20 }
 0x1bd   :  { %2845 = vmatpush.msrb.mxu0 %v9716_v56  ;;  %v5321_v0 = vadd.s32 1, %v5317_v13  ;;  %v9750_v7 = vsub.f32 %v122_v41, %v9718_v39  ;;  %v9752_v31 = vand.u32 4294901760, %v96_v6  ;;  %2882 = vmatpush.msrb.mxu1 %v9511_v48  ;;  %v5212_v36 = vmul.f32 %v5211_v62, %v9643_v61 }
 0x1be   :  { %2771 = vmatpush.msra.mxu3 %v2770_v59  ;;  %v2776_v28 = vand.u32 4294901760, %v2775_v57  ;;  %v2781_v23 = vsub.f32 %v9731_v53, %v12617_v14  ;;  %v9761_v26 = vsub.f32 %v109_v55, %v9733_v10  ;;  %v9768_v29 = vand.u32 4294901760, %v83_v11 }
 0x1bf   :  { %2848 = vmatpush.msrb.mxu0 %v9731_v53  ;;  %v5322_v41 = vsel %vm5320_vm1, %v5321_v0, %v5317_v13  ;;  %v12616_v4 = vand.u32 4294901760, %v9750_v7  ;;  %2700 = vmatpush.msra.mxu2 %v9752_v31  ;;  %vm5216_vm2 = vcmp.lt.s32.totalorder %v9736_v37, 2  ;;  %vm5217_vm15 = vcmp.eq.s32.totalorder %v9736_v37, 0 }
 0x1c0   :  { %2884 = vmatpush.msrb.mxu1 %v9535_v24  ;;  %v5323_v61 = vadd.s32 %v5322_v41, %v5318_v47  ;;  %2777 = vmatpush.msra.mxu3 %v2776_v28  ;;  %v2782_v20 = vand.u32 4294901760, %v2781_v23  ;;  %v12615_v55 = vand.u32 4294901760, %v9761_v26  ;;  %v9780_v52 = vsub.f32 %v96_v6, %v9752_v31  ;;  %v279_v28 = vld [vmem:[#allocation5 + $0x658] sm:$0xff] }
 0x1c1   :  { %2851 = vmatpush.msrb.mxu0 %v9750_v7  ;;  %v2787_v62 = vsub.f32 %v9750_v7, %v12616_v4  ;;  %2702 = vmatpush.msra.mxu2 %v9768_v29  ;;  %v9783_v30 = vsub.f32 %v83_v11, %v9768_v29  ;;  %v5218_v13 = vxor.u32 2147483648, %v5212_v36  ;;  %v5221_v47 = vxor.u32 2147483648, %v5204_v32 }
 0x1c2   :  { %2886 = vmatpush.msrb.mxu1 %v9573_v60  ;;  %v5324_v59 = vadd.s32 536870912, %v5323_v61  ;;  %2783 = vmatpush.msra.mxu3 %v2782_v20  ;;  %v2793_v57 = vsub.f32 %v9761_v26, %v12615_v55  ;;  %v13058_v0 = vand.u32 4294901760, %v9411_v1  ;;  %v12621_v6 = vand.u32 4294901760, %v9780_v52  ;;  %v13059_v20 = vld [vmem:[#allocation17_spill] sm:$0xff] }
 0x1c3   :  { %v2788_v23 = vand.u32 4294901760, %v2787_v62  ;;  %v12622_v11 = vand.u32 4294901760, %v9783_v30  ;;  %2708 = vmatmul.f32.vlgmr.msra.gmra.mxu2 %v13029_v43  ;;  %v9795_v41 = vand.u32 4294901760, %v279_v28  ;;  %vm5220_vm3 = vcmp.eq.s32.totalorder %v9736_v37, 2  ;;  %v1686_v62 = vpop.f32.mrf.mxu0  ;;  %2854 = vmatpush.msrb.mxu0 %v9761_v26 }
 0x1c4   :  { %2909 = vmatpush.msrb.mxu2 %v13058_v0  ;;  %2888 = vmatpush.msrb.mxu1 %v9579_v16  ;;  %vm5227_vm4 = vcmp.lt.s32.totalorder %v13059_v20, 0  ;;  %v5325_v55 = vshrl.u32 %v5324_v59, 30  ;;  %v2794_v4 = vand.u32 4294901760, %v2793_v57  ;;  %v13060_v1 = vand.u32 4294901760, %v9428_v12  ;;  %v266_v0 = vld [vmem:[#allocation5 + $0x5f0] sm:$0xff] }
 0x1c5   :  { %2789 = vmatpush.msra.mxu3 %v2788_v23  ;;  %v2799_v14 = vsub.f32 %v9780_v52, %v12621_v6  ;;  %v2805_v22 = vsub.f32 %v9783_v30, %v12622_v11  ;;  %v9810_v59 = vsub.f32 %v279_v28, %v9795_v41  ;;  %v9812_v12 = vand.u32 4294901760, %v266_v0  ;;  %v1787_v6 = vpop.f32.mrf.mxu1  ;;  %2857 = vmatpush.msrb.mxu0 %v9780_v52 }
 0x1c6   :  { %2913 = vmatpush.msrb.mxu2 %v13060_v1  ;;  %2890 = vmatpush.msrb.mxu1 %v9705_v18  ;;  %v5219_v57 = vsel %vm5217_vm15, %v5204_v32, %v5218_v13  ;;  %v5222_v1 = vsel %vm5220_vm3, %v5221_v47, %v5212_v36  ;;  %v5326_v23 = vshll.u32 %v5325_v55, 30  ;;  %v5349_v50 = vsub.s32 4, %v5325_v55  ;;  %v13063_v13 = vld [vmem:[#allocation25_spill] sm:$0xff] }
 0x1c7   :  { %v13061_v46 = vand.u32 4294901760, %v9435_v17  ;;  %2795 = vmatpush.msra.mxu3 %v2794_v4  ;;  %v2800_v11 = vand.u32 4294901760, %v2799_v14  ;;  %v2806_v49 = vand.u32 4294901760, %v2805_v22  ;;  %v1788_v43 = vadd.f32 %v1787_v6, %v1686_v62  ;;  %2860 = vmatpush.msrb.mxu0 %v9783_v30 }
 0x1c8   :  { %2892 = vmatpush.msrb.mxu1 %v9718_v39  ;;  %v9821_v28 = vsub.f32 %v266_v0, %v9812_v12  ;;  %v9823_v32 = vsub.s32 %v5323_v61, %v5326_v23  ;;  %v5350_v36 = vsel %vm5227_vm4, %v5349_v50, %v5325_v55  ;;  %v13062_v17 = vand.u32 4294901760, %v9451_v21  ;;  %v240_v50 = vld [vmem:[#allocation5 + $0x520] sm:$0xff]  ;;  %v1880_v0 = vpop.f32.mrf.mxu3 }
 0x1c9   :  { %2917 = vmatpush.msrb.mxu2 %v13061_v46  ;;  %v1841_v46 = vpop.f32.mrf.mxu2  ;;  %v9830_v14 = vand.u32 4294901760, %v253_v8  ;;  %v12627_v22 = vand.u32 4294901760, %v9810_v59  ;;  %v5223_v4 = vsel %vm5216_vm2, %v5219_v57, %v5222_v1  ;;  %v6783_v47 = vperm.slane %v13063_v13, 2  ;;  %2801 = vmatpush.msra.mxu3 %v2800_v11 }
 0x1ca   :  { %v13064_v61 = vand.u32 2147483647, %v13059_v20  ;;  %v1842_v21 = vadd.f32 %v1841_v46, %v1788_v43  ;;  %2894 = vmatpush.msrb.mxu1 %v9733_v10  ;;  %vm5328_vm6 = vcmp.lt.s32.totalorder %v9823_v32, 0  ;;  %v5329_v55 = vsub.s32 0, %v9823_v32  ;;  %3013 = vmatpush.msra.mxu0 %v9795_v41 }
 0x1cb   :  { %2921 = vmatpush.msrb.mxu2 %v13062_v17  ;;  %v13067_v62 = vand.u32 4294901760, %v9472_v19  ;;  %v3056_v43 = vsub.f32 %v9810_v59, %v12627_v22  ;;  %2807 = vmatpush.msra.mxu3 %v2806_v49  ;;  %v9855_v57 = vsub.f32 %v253_v8, %v9830_v14  ;;  %v9857_v1 = vand.u32 4294901760, %v240_v50  ;;  %v227_v19 = vld [vmem:[#allocation5 + $0x4b8] sm:$0xff]  ;;  %v13069_v8 = vld [vmem:[#allocation21_spill] sm:$0xff] }
 0x1cc   :  { %vm9838_vm5 = vcmp.le.f32.partialorder %v13064_v61, 0.7853982  ;;  %v1881_v11 = vadd.f32 %v1880_v0, %v1842_v21  ;;  %2896 = vmatpush.msrb.mxu1 %v9752_v31  ;;  %v12626_v23 = vand.u32 4294901760, %v9821_v28  ;;  %vm5213_vm7 = vweird.f32 %v13041_v34  ;;  %2809 = vmatmul.f32.vlgmr.msra.gmra.mxu3 %v13056_v42  ;;  %v1949_v61 = vpop.f32.mrf.mxu0 }
 0x1cd   :  { %v5352_v37 = vsel %vm9838_vm5, 0, %v5350_v36  ;;  %2925 = vmatpush.msrb.mxu2 %v13067_v62  ;;  %v5330_v36 = vsel %vm5328_vm6, %v5329_v55, %v9823_v32  ;;  %2976 = vmatpush.msrb.mxu3 %v9388_v5  ;;  %v13068_v17 = vand.u32 4294901760, %v9503_v58  ;;  %v9865_v49 = vand.u32 4294901760, %v227_v19  ;;  %v214_v55 = vld [vmem:[#allocation5 + $0x450] sm:$0xff] }
 0x1ce   :  { %v5331_v46 = vclz %v5330_v36  ;;  %2863 = vmatmul.f32.vlgmr.msrb.gmra.mxu0 %v13069_v8  ;;  %v3062_v21 = vsub.f32 %v9821_v28, %v12626_v23  ;;  %v9873_v34 = vsub.f32 %v240_v50, %v9857_v1  ;;  %v12628_v5 = vand.u32 4294901760, %v9855_v57  ;;  %2898 = vmatpush.msrb.mxu1 %v9768_v29 }
 0x1cf   :  { %2929 = vmatpush.msrb.mxu2 %v13068_v17  ;;  %v9876_v58 = vsel %vm5213_vm7, nan, %v5223_v4  ;;  %vm9878_vm8 = vcmp.eq.s32.totalorder %v6783_v47, 1  ;;  %v5319_v0 = vadd.s32 %v9709_v44, %v9722_v15  ;;  %v9884_v36 = vadd.s32 3, %v5352_v37  ;;  %2978 = vmatpush.msrb.mxu3 %v9397_v9  ;;  %v1986_v47 = vpop.f32.mrf.mxu1  ;;  %v201_v15 = vld [vmem:[#allocation5 + $0x3e8] sm:$0xff]  ;;  %v9902_v37 = vld [vmem:[#allocation7] sm:$0xff] }
 0x1d0   :  { %v13072_v17 = vand.u32 4294901760, %v9514_v27  ;;  %v1950_v50 = vadd.f32 %v1949_v61, %v1881_v11  ;;  %v6887_v23 = vadd.s32 4294967294, %v5331_v46  ;;  %3015 = vmatpush.msra.mxu0 %v9812_v12  ;;  %v3057_v4 = vand.u32 4294901760, %v3056_v43  ;;  %13075 = vst [vmem:[#allocation18_spill] sm:$0xff] %v9902_v37  ;;  %v13076_v61 = vld [vmem:[#allocation22_spill] sm:$0xff] }
 0x1d1   :  { %v3068_v22 = vsub.f32 %v9855_v57, %v12628_v5  ;;  %v9895_v44 = vsub.f32 %v227_v19, %v9865_v49  ;;  %2980 = vmatpush.msrb.mxu3 %v9419_v63  ;;  %v13073_v9 = vand.u32 4294901760, %v9591_v38  ;;  %v4725_v43 = vperm.slane %v9902_v37, 4  ;;  %2902 = vmatmul.f32.vlgmr.msrb.gmra.mxu1 %v13076_v61 }
 0x1d2   :  { %2933 = vmatpush.msrb.mxu2 %v13072_v17  ;;  %v9900_v27 = vadd.f32 %v1986_v47, %v1950_v50  ;;  %v9905_v11 = vand.u32 4294901760, %v214_v55  ;;  %v12629_v46 = vand.u32 4294901760, %v9873_v34  ;;  %vm6888_vm9 = vcmp.lt.s32.totalorder %v6887_v23, 0  ;;  %3017 = vmatpush.msra.mxu0 %v9830_v14  ;;  %v188_v17 = vld [vmem:[#allocation5 + $0x380] sm:$0xff] }
 0x1d3   :  { %v3063_v19 = vand.u32 4294901760, %v3062_v21  ;;  %v9910_v63 = vand.u32 4294901760, %v201_v15  ;;  %v12632_v38 = vand.u32 4294901760, %v9895_v44  ;;  %v5334_v50 = vsel %vm6888_vm9, 0, %v6887_v23  ;;  %2982 = vmatpush.msrb.mxu3 %v9432_v3  ;;  %3058 = vmatpush.msra.mxu1 %v3057_v4 }
 0x1d4   :  { %2937 = vmatpush.msrb.mxu2 %v13073_v9  ;;  %13074 = vst [vmem:[#allocation28_spill] sm:$0xff] %v9900_v27  ;;  %v13077_v47 = vand.u32 4294901760, %v9628_v2  ;;  %v9917_v9 = vadd.f32 %v4725_v43, %v9900_v27  ;;  %v3074_v5 = vsub.f32 %v9873_v34, %v12629_v46  ;;  %v9923_v21 = vsub.f32 %v214_v55, %v9905_v11  ;;  %v175_v2 = vld [vmem:[#allocation5 + $0x318] sm:$0xff] }
 0x1d5   :  { %v5335_v61 = vsub.s32 32, %v5334_v50  ;;  %v5339_v8 = vsub.s32 4294967266, %v5334_v50  ;;  %3019 = vmatpush.msra.mxu0 %v9857_v1  ;;  %v3069_v23 = vand.u32 4294901760, %v3068_v22  ;;  %v3080_v3 = vsub.f32 %v9895_v44, %v12632_v38  ;;  %2984 = vmatpush.msrb.mxu3 %v9448_v54 }
 0x1d6   :  { %2941 = vmatpush.msrb.mxu2 %v13077_v47  ;;  %v5336_v43 = vshll.u32 %v9823_v32, %v5334_v50  ;;  %v13078_v47 = vand.u32 4294901760, %v9703_v25  ;;  %v5383_v55 = vand.u32 2139095040, %v9917_v9  ;;  %v9935_v46 = vsub.f32 %v201_v15, %v9910_v63  ;;  %3064 = vmatpush.msra.mxu1 %v3063_v19  ;;  %v13081_v19 = vld [vmem:[#allocation26_spill] sm:$0xff] }
 0x1d7   :  { %v9937_v4 = vand.u32 4294901760, %v188_v17  ;;  %v5337_v22 = vshrl.u32 %v5319_v0, %v5335_v61  ;;  %v5340_v27 = vadd.s32 127, %v5339_v8  ;;  %3021 = vmatpush.msra.mxu0 %v9865_v49  ;;  %v3075_v38 = vand.u32 4294901760, %v3074_v5  ;;  %2986 = vmatpush.msrb.mxu3 %v9469_v40 }
 0x1d8   :  { %2945 = vmatpush.msrb.mxu2 %v13078_v47  ;;  %v12638_v32 = vand.u32 4294901760, %v9923_v21  ;;  %v13079_v54 = vand.u32 4294901760, %v9716_v56  ;;  %v5384_v25 = vshrl.u32 %v5383_v55, 23  ;;  %v3081_v50 = vand.u32 4294901760, %v3080_v3  ;;  %3070 = vmatpush.msra.mxu1 %v3069_v23  ;;  %v162_v56 = vld [vmem:[#allocation5 + $0x2b0] sm:$0xff] }
 0x1d9   :  { %v9944_v47 = vand.u32 4294901760, %v175_v2  ;;  %v12637_v15 = vand.u32 4294901760, %v9935_v46  ;;  %v5338_v37 = vor.u32 %v5337_v22, %v5336_v43  ;;  %v5341_v0 = vshll.u32 %v5340_v27, 23  ;;  %3023 = vmatpush.msra.mxu0 %v9905_v11  ;;  %2988 = vmatpush.msrb.mxu3 %v9487_v33 }
 0x1da   :  { %2949 = vmatpush.msrb.mxu2 %v13079_v54  ;;  %v3086_v8 = vsub.f32 %v9923_v21, %v12638_v32  ;;  %v9952_v40 = vsub.f32 %v188_v17, %v9937_v4  ;;  %v13080_v5 = vand.u32 4294901760, %v9731_v53  ;;  %v6889_v61 = vadd.s32 4294967169, %v5384_v25  ;;  %3076 = vmatpush.msra.mxu1 %v3075_v38  ;;  %v149_v53 = vld [vmem:[#allocation5 + $0x248] sm:$0xff] }
 0x1db   :  { %v3092_v27 = vsub.f32 %v9935_v46, %v12637_v15  ;;  %v5342_v3 = vor.u32 4788187, %v5341_v0  ;;  %3025 = vmatpush.msra.mxu0 %v9910_v63  ;;  %v9966_v33 = vsub.f32 %v175_v2, %v9944_v47  ;;  %v9969_v43 = vand.u32 3, %v9884_v36  ;;  %2990 = vmatpush.msrb.mxu3 %v9511_v48 }
 0x1dc   :  { %2953 = vmatpush.msrb.mxu2 %v13080_v5  ;;  %v3087_v17 = vand.u32 4294901760, %v3086_v8  ;;  %v13082_v55 = vand.u32 4294901760, %v9750_v7  ;;  %v12634_v22 = vand.u32 2147483647, %v9917_v9  ;;  %v5390_v54 = vadd.s32 1, %v6889_v61  ;;  %3082 = vmatpush.msra.mxu1 %v3081_v50 }
 0x1dd   :  { %v9975_v25 = vand.u32 4294901760, %v162_v56  ;;  %v5343_v38 = vand.u32 2147483647, %v5342_v3  ;;  %v5345_v0 = vcvt.s32.f32 %v5338_v37  ;;  %3027 = vmatpush.msra.mxu0 %v9937_v4  ;;  %v3093_v2 = vand.u32 4294901760, %v3092_v27  ;;  %2992 = vmatpush.msrb.mxu3 %v9535_v24 }
 0x1de   :  { %2957 = vmatpush.msrb.mxu2 %v13082_v55  ;;  %v12636_v8 = vand.u32 4294901760, %v9952_v40  ;;  %v13083_v48 = vand.u32 4294901760, %v9761_v26  ;;  %v5387_v7 = vand.u32 8388607, %v12634_v22  ;;  %vm5391_vm10 = vcmp.gt.s32.totalorder %v5390_v54, 0  ;;  %3088 = vmatpush.msra.mxu1 %v3087_v17  ;;  %v10000_v17 = vld [vmem:[#allocation5 + $0x1e0] sm:$0xff] }
 0x1df   :  { %v9985_v5 = vand.u32 4294901760, %v149_v53  ;;  %v5346_v37 = vmul.f32 %v5345_v0, %v5343_v38  ;;  %v5392_v50 = vsel %vm5391_vm10, %v5390_v54, 0  ;;  %3029 = vmatpush.msra.mxu0 %v9944_v47  ;;  %v12635_v24 = vand.u32 4294901760, %v9966_v33  ;;  %2994 = vmatpush.msrb.mxu3 %v9573_v60 }
 0x1e0   :  { %2961 = vmatpush.msrb.mxu2 %v13083_v48  ;;  %v3098_v61 = vsub.f32 %v9952_v40, %v12636_v8  ;;  %v13084_v26 = vand.u32 4294901760, %v9780_v52  ;;  %v5388_v27 = vor.u32 8388608, %v5387_v7  ;;  %v9995_v3 = vshrl.u32 %v5392_v50, 5  ;;  %3094 = vmatpush.msra.mxu1 %v3093_v2 }
 0x1e1   :  { %v5394_v55 = vand.u32 31, %v5392_v50  ;;  %v9998_v54 = vsub.f32 %v162_v56, %v9975_v25  ;;  %v5347_v38 = vxor.u32 2147483648, %v5346_v37  ;;  %3031 = vmatpush.msra.mxu0 %v9975_v25  ;;  %v10006_v60 = vsub.f32 %v9966_v33, %v12635_v24  ;;  %2996 = vmatpush.msrb.mxu3 %v9579_v16 }
 0x1e2   :  { %2965 = vmatpush.msrb.mxu2 %v13084_v26  ;;  %v3099_v0 = vand.u32 4294901760, %v3098_v61  ;;  %v10009_v52 = vsub.f32 %v149_v53, %v9985_v5  ;;  %v13085_v56 = vand.u32 4294901760, %v9783_v30  ;;  %v13086_v2 = vmov 2475754826  }
 0x1e3   :  { %v5395_v48 = vsub.s32 32, %v5394_v55  ;;  %v5397_v7 = vshll.u32 %v13050_v45, %v5394_v55  ;;  %v5400_v50 = vshll.u32 %v13086_v2, %v5394_v55  ;;  %v13087_v26 = vmov 2131351028   ;;  %2998 = vmatpush.msrb.mxu3 %v9705_v18  ;;  %3033 = vmatpush.msra.mxu0 %v9985_v5 }
 0x1e4   :  { %2969 = vmatpush.msrb.mxu2 %v13085_v56  ;;  %v5403_v61 = vshll.u32 %v13087_v26, %v5394_v55  ;;  %v5348_v22 = vsel %vm5227_vm4, %v5347_v38, %v5346_v37  ;;  %v13088_v24 = vmov 2102212464   ;;  %v5409_v8 = vshll.u32 %v12943_v51, %v5394_v55  ;;  %3100 = vmatpush.msra.mxu1 %v3099_v0 }
 0x1e5   :  { %2971 = vmatmul.f32.vlgmr.msrb.gmra.mxu2 %v13056_v42  ;;  %v5406_v53 = vshll.u32 %v13088_v24, %v5394_v55  ;;  %v10023_v16 = vand.u32 4294901760, %v10000_v17  ;;  %v10028_v30 = vsel %vm9838_vm5, %v13059_v20, %v5348_v22  ;;  %v5396_v37 = vshrl.u32 %v13050_v45, %v5395_v48  ;;  %3000 = vmatpush.msrb.mxu3 %v9718_v39 }
 0x1e6   :  { %3156 = vmatpush.msra.mxu2 %v9810_v59  ;;  %v5398_v38 = vshrl.u32 %v13086_v2, %v5395_v48  ;;  %vm5412_vm11 = vcmp.lt.s32.totalorder %v9995_v3, 1  ;;  %v5353_v55 = vmul.f32 %v10028_v30, %v10028_v30  ;;  %v5401_v0 = vshrl.u32 %v13087_v26, %v5395_v48 }
 0x1e7   :  { %v5404_v56 = vshrl.u32 %v13088_v24, %v5395_v48  ;;  %v5407_v6 = vshrl.u32 %v12943_v51, %v5395_v48  ;;  %v5410_v22 = vshrl.u32 %v13054_v35, %v5395_v48  ;;  %vm5413_vm12 = vcmp.lt.s32.totalorder %v9995_v3, 2  ;;  %3035 = vmatpush.msra.mxu0 %v10023_v16  ;;  %3002 = vmatpush.msrb.mxu3 %v9733_v10 }
 0x1e8   :  { %3159 = vmatpush.msra.mxu2 %v9821_v28  ;;  %v5399_v18 = vor.u32 %v5398_v38, %v5397_v7  ;;  %vm5415_vm13 = vcmp.lt.s32.totalorder %v9995_v3, 4  ;;  %v5354_v15 = vmul.f32 -0.001358992, %v5353_v55  ;;  %v5361_v32 = vmul.f32 -0.00019511016, %v5353_v55 }
 0x1e9   :  { %v5402_v23 = vor.u32 %v5401_v0, %v5400_v50  ;;  %v5405_v36 = vor.u32 %v5404_v56, %v5403_v61  ;;  %v5408_v39 = vor.u32 %v5407_v6, %v5406_v53  ;;  %v5411_v51 = vor.u32 %v5410_v22, %v5409_v8  ;;  %3004 = vmatpush.msrb.mxu3 %v9752_v31 }
 0x1ea   :  { %3162 = vmatpush.msra.mxu2 %v9855_v57  ;;  %vm5414_vm14 = vcmp.lt.s32.totalorder %v9995_v3, 3  ;;  %v10050_v7 = vshll.u32 %v5388_v27, 8  ;;  %v5355_v48 = vadd.f32 0.041655596, %v5354_v15  ;;  %v5362_v38 = vadd.f32 0.008332121, %v5361_v32 }
 0x1eb   :  { %v5417_v35 = vsel %vm5415_vm13, %v5405_v36, 2102212464  ;;  %v5420_v50 = vsel %vm5412_vm11, %v5399_v18, %v5402_v23  ;;  %v5416_v10 = vsel %vm5412_vm11, %v5396_v37, %v5399_v18  ;;  %v5421_v8 = vsel %vm5415_vm13, %v5408_v39, 920167782  ;;  %3006 = vmatpush.msrb.mxu3 %v9768_v29 }
 0x1ec   :  { %v5424_v27 = vsel %vm5412_vm11, %v5402_v23, %v5405_v36  ;;  %v5425_v32 = vsel %vm5415_vm13, %v5411_v51, 1326507024  ;;  %3165 = vmatpush.msra.mxu2 %v9873_v34  ;;  %v5356_v15 = vmul.f32 %v5355_v48, %v5353_v55  ;;  %v5363_v61 = vmul.f32 %v5362_v38, %v5353_v55  ;;  %3008 = vmatmul.f32.vlgmr.msrb.gmra.mxu3 %v13056_v42 }
 0x1ed   :  { %v5418_v53 = vsel %vm5414_vm14, %v5402_v23, %v5417_v35  ;;  %v5422_v31 = vsel %vm5414_vm14, %v5405_v36, %v5421_v8  ;;  %vm5375_vm1 = vcmp.eq.s32.totalorder %v9969_v43, 2  ;;  %v5426_v51 = vsel %vm5414_vm14, %v5408_v39, %v5425_v32  ;;  %3209 = vmatpush.msra.mxu3 %v9795_v41 }
 0x1ee   :  { %v5423_v37 = vsel %vm5413_vm12, %v5420_v50, %v5422_v31  ;;  %v5429_v0 = vand.u32 65535, %v10050_v7  ;;  %v5430_v56 = vshrl.u32 %v10050_v7, 16  ;;  %3168 = vmatpush.msra.mxu2 %v9895_v44  ;;  %v5357_v35 = vadd.f32 -0.4999988, %v5356_v15 }
 0x1ef   :  { %v5364_v23 = vadd.f32 -0.16666654, %v5363_v61  ;;  %v5427_v36 = vsel %vm5413_vm12, %v5424_v27, %v5426_v51  ;;  %v5453_v29 = vand.u32 65535, %v5423_v37  ;;  %vm5372_vm2 = vcmp.eq.s32.totalorder %v9969_v43, 0  ;;  %3211 = vmatpush.msra.mxu3 %v9812_v12 }
 0x1f0   :  { %v10086_v6 = vsel %vm5413_vm12, %v5416_v10, %v5418_v53  ;;  %v5431_v18 = vand.u32 65535, %v5427_v36  ;;  %v5432_v22 = vshrl.u32 %v5427_v36, 16  ;;  %v5454_v39 = vshrl.u32 %v5423_v37, 16  ;;  %3171 = vmatpush.msra.mxu2 %v9923_v21 }
 0x1f1   :  { %v5358_v48 = vmul.f32 %v5357_v35, %v5353_v55  ;;  %v5365_v38 = vmul.f32 %v5364_v23, %v5353_v55  ;;  %vm5371_vm15 = vcmp.lt.s32.totalorder %v9969_v43, 2  ;;  %v13089_v50 = vperm.slane %v13063_v13, 3  ;;  %3213 = vmatpush.msra.mxu3 %v9830_v14 }
 0x1f2   :  { %v5455_v27 = vmul.u32 %v5453_v29, %v5429_v0  ;;  %v10096_v32 = vmul.u32 %v5453_v29, %v5430_v56  ;;  %vm5368_vm4 = vweird.f32 %v13059_v20  ;;  %v5433_v3 = vmul.u32 %v5431_v18, %v5429_v0  ;;  %3174 = vmatpush.msra.mxu2 %v9935_v46 }
 0x1f3   :  { %vm10092_vm3 = vcmp.eq.s32.totalorder %v13089_v50, 1  ;;  %v5434_v10 = vmul.u32 %v5432_v22, %v5429_v0  ;;  %v5435_v15 = vmul.u32 %v5431_v18, %v5430_v56  ;;  %v5436_v61 = vmul.u32 %v5432_v22, %v5430_v56  ;;  %3215 = vmatpush.msra.mxu3 %v9857_v1 }
 0x1f4   :  { %v5359_v55 = vadd.f32 1.0, %v5358_v48  ;;  %v5366_v53 = vadd.f32 1.0, %v5365_v38  ;;  %v5456_v31 = vmul.u32 %v5454_v39, %v5429_v0  ;;  %v5458_v37 = vmul.u32 %v5454_v39, %v5430_v56  ;;  %3177 = vmatpush.msra.mxu2 %v9952_v40 }
 0x1f5   :  { %v5437_v51 = vshll.u32 %v5434_v10, 16  ;;  %v5438_v35 = vshrl.u32 %v5434_v10, 16  ;;  %v5439_v23 = vshll.u32 %v5435_v15, 16  ;;  %v5440_v36 = vshrl.u32 %v5435_v15, 16  ;;  %3217 = vmatpush.msra.mxu3 %v9865_v49 }
 0x1f6   :  { %v5367_v29 = vmul.f32 %v5366_v53, %v10028_v30  ;;  %v5376_v50 = vxor.u32 2147483648, %v5359_v55  ;;  %v5459_v13 = vshll.u32 %v5456_v31, 16  ;;  %v5460_v42 = vshrl.u32 %v5456_v31, 16  ;;  %3180 = vmatpush.msra.mxu2 %v9966_v33 }
 0x1f7   :  { %vm5441_vm5 = vc.u32 %v5433_v3, %v5437_v51  ;;  %v5443_v18 = vadd.s32 %v5437_v51, %v5433_v3  ;;  %v5461_v0 = vshll.u32 %v10096_v32, 16  ;;  %v5462_v56 = vshrl.u32 %v10096_v32, 16  ;;  %v123_v51 = vld [vmem:[#allocation5 + $0x178] sm:$0xff]  ;;  %3219 = vmatpush.msra.mxu3 %v9905_v11 }
 0x1f8   :  { %v5373_v22 = vxor.u32 2147483648, %v5367_v29  ;;  %v5377_v39 = vsel %vm5375_vm1, %v5376_v50, %v5367_v29  ;;  %v13092_v48 = vmov 0   ;;  %vm5463_vm6 = vc.u32 %v5455_v27, %v5459_v13  ;;  %3183 = vmatpush.msra.mxu2 %v9998_v54 }
 0x1f9   :  { %v5442_v38 = vsel %vm5441_vm5, 1, %v13092_v48  ;;  %vm5445_vm7 = vc.u32 %v5443_v18, %v5439_v23  ;;  %v5464_v10 = vsel %vm5463_vm6, 1, %v13092_v48  ;;  %v5465_v3 = vadd.s32 %v5459_v13, %v5455_v27  ;;  %v110_v13 = vld [vmem:[#allocation5 + $0x110] sm:$0xff]  ;;  %3221 = vmatpush.msra.mxu3 %v9910_v63 }
 0x1fa   :  { %v5444_v30 = vadd.s32 %v5442_v38, %v5436_v61  ;;  %v5374_v32 = vsel %vm5372_vm2, %v5359_v55, %v5373_v22  ;;  %v5446_v15 = vsel %vm5445_vm7, 1, %v13092_v48  ;;  %v5466_v53 = vadd.s32 %v5464_v10, %v5458_v37  ;;  %3186 = vmatpush.msra.mxu2 %v10009_v52  ;;  %v13093_v37 = vld [vmem:[#allocation27_spill] sm:$0xff] }
 0x1fb   :  { %v3105_v31 = vand.u32 4294901760, %v10006_v60  ;;  %v5378_v61 = vsel %vm5371_vm15, %v5374_v32, %v5377_v39  ;;  %vm5467_vm9 = vc.u32 %v5465_v3, %v5461_v0  ;;  %v10120_v29 = vadd.s32 %v5465_v3, %v5461_v0  ;;  %3223 = vmatpush.msra.mxu3 %v9937_v4  ;;  %v97_v32 = vld [vmem:[#allocation5 + $0xa8] sm:$0xff] }
 0x1fc   :  { %v5448_v23 = vadd.s32 %v5446_v15, %v5444_v30  ;;  %v5379_v27 = vsel %vm5368_vm4, nan, %v5378_v61  ;;  %v5468_v55 = vsel %vm5467_vm9, 1, %v13092_v48  ;;  %v12648_v60 = vand.u32 4294901760, %v9998_v54  ;;  %v2027_v30 = vpop.f32.mrf.mxu2  ;;  %v280_v61 = vld [vmem:[#allocation5 + $0x660] sm:$0xff] }
 0x1fd   :  { %3106 = vmatpush.msra.mxu1 %v3105_v31  ;;  %v10130_v43 = vsub.f32 %v10000_v17, %v10023_v16  ;;  %v6810_v50 = vsel %vm10092_vm3, %v13093_v37, %v5379_v27  ;;  %v5470_v0 = vadd.s32 %v5468_v55, %v5466_v53  ;;  %v10136_v20 = vand.u32 4294901760, %v123_v51  ;;  %3225 = vmatpush.msra.mxu3 %v9944_v47 }
 0x1fe   :  { %v5449_v18 = vadd.s32 %v5448_v23, %v5438_v35  ;;  %v6833_v22 = vrot.slane %v6810_v50, 4  ;;  %v3110_v39 = vsub.f32 %v9998_v54, %v12648_v60  ;;  %v12647_v17 = vand.u32 4294901760, %v10009_v52  ;;  %v2128_v23 = vpop.f32.mrf.mxu3  ;;  %v267_v50 = vld [vmem:[#allocation5 + $0x5f8] sm:$0xff] }
 0x1ff   :  { %3189 = vmatpush.msra.mxu2 %v10130_v43  ;;  %v10143_v38 = vand.u32 4294901760, %v110_v13  ;;  %v5471_v35 = vadd.s32 %v5470_v0, %v5460_v42  ;;  %3037 = vmatpush.msra.mxu0 %v10136_v20  ;;  %v10150_v10 = vsub.f32 %v123_v51, %v10136_v20  ;;  %v12645_v3 = vand.u32 4294901760, %v10130_v43  ;;  %v84_v51 = vld [vmem:[#allocation5 + $0x40] sm:$0xff] }
 0x200   :  { %v10145_v8 = vadd.s32 %v5449_v18, %v5440_v36  ;;  %v13094_v15 = vsel %vm9878_vm8, %v13081_v19, %v9876_v58  ;;  %v3111_v36 = vand.u32 4294901760, %v3110_v39  ;;  %v3116_v42 = vsub.f32 %v10009_v52, %v12647_v17  ;;  %3227 = vmatpush.msra.mxu3 %v9975_v25 }
 0x201   :  { %v6840_v53 = vsel %vm6838_vm0, %v13094_v15, %v6833_v22  ;;  %v10163_v31 = vsub.f32 %v110_v13, %v10143_v38  ;;  %v5472_v27 = vadd.s32 %v5471_v35, %v5462_v56  ;;  %v5473_v62 = vmul.u32 %v10050_v7, %v10086_v6  ;;  %3192 = vmatpush.msra.mxu2 %v10150_v10  ;;  %v2182_v35 = vpop.f32.mrf.mxu0 }
 0x202   :  { %6852 = vst [vmem:[#allocation10 + $0x8] sm:$0xff] %v6840_v53  ;;  %vm5475_vm8 = vc.u32 %v10145_v8, %v10120_v29  ;;  %3112 = vmatpush.msra.mxu1 %v3111_v36  ;;  %v3117_v58 = vand.u32 4294901760, %v3116_v42  ;;  %3039 = vmatpush.msra.mxu0 %v10143_v38  ;;  %v3122_v19 = vsub.f32 %v10130_v43, %v12645_v3  ;;  %v10175_v13 = vand.u32 4294901760, %v97_v32 }
 0x203   :  { %v12644_v56 = vand.u32 4294901760, %v10150_v10  ;;  %v5476_v7 = vadd.s32 1, %v5472_v27  ;;  %3195 = vmatpush.msra.mxu2 %v10163_v31  ;;  %v10180_v6 = vand.u32 4294901760, %v84_v51  ;;  %v12643_v55 = vand.u32 4294901760, %v10163_v31  ;;  %3229 = vmatpush.msra.mxu3 %v9985_v5 }
 0x204   :  { %v10183_v37 = vand.u32 4294901760, %v280_v61  ;;  %3118 = vmatpush.msra.mxu1 %v3117_v58  ;;  %v3123_v18 = vand.u32 4294901760, %v3122_v19  ;;  %3041 = vmatpush.msra.mxu0 %v10175_v13  ;;  %v10190_v22 = vsub.f32 %v97_v32, %v10175_v13  ;;  %v2129_v39 = vadd.f32 %v2128_v23, %v2027_v30  ;;  %v254_v32 = vld [vmem:[#allocation5 + $0x590] sm:$0xff]  ;;  %v2221_v19 = vpop.f32.mrf.mxu1  ;;  %v2290_v3 = vpop.f32.mrf.mxu2 }
 0x205   :  { %v3128_v0 = vsub.f32 %v10150_v10, %v12644_v56  ;;  %v5477_v15 = vsel %vm5475_vm8, %v5476_v7, %v5472_v27  ;;  %v3134_v53 = vsub.f32 %v10163_v31, %v12643_v55  ;;  %v10200_v36 = vsub.f32 %v84_v51, %v10180_v6  ;;  %v241_v7 = vld [vmem:[#allocation5 + $0x528] sm:$0xff]  ;;  %3231 = vmatpush.msra.mxu3 %v10023_v16 }
 0x206   :  { %13095 = vst [vmem:[#allocation24_spill] sm:$0xff] %v10183_v37  ;;  %v10203_v42 = vsub.f32 %v280_v61, %v10183_v37  ;;  %v5478_v58 = vadd.s32 %v5477_v15, %v5473_v62  ;;  %3124 = vmatpush.msra.mxu1 %v3123_v18  ;;  %3198 = vmatpush.msra.mxu2 %v10190_v22  ;;  %v12646_v23 = vand.u32 4294901760, %v10190_v22  ;;  %v10207_v27 = vand.u32 4294901760, %v267_v50  ;;  %v2327_v48 = vpop.f32.mrf.mxu3 }
 0x207   :  { %v3129_v30 = vand.u32 4294901760, %v3128_v0  ;;  %3043 = vmatpush.msra.mxu0 %v10180_v6  ;;  %v3135_v51 = vand.u32 4294901760, %v3134_v53  ;;  %v2183_v55 = vadd.f32 %v2182_v35, %v2129_v39  ;;  %v12651_v62 = vand.u32 4294901760, %v10200_v36  ;;  %v228_v53 = vld [vmem:[#allocation5 + $0x4c0] sm:$0xff]  ;;  %3233 = vmatpush.msra.mxu3 %v10136_v20 }
 0x208   :  { %13096 = vst [vmem:[#allocation33_spill] sm:$0xff] %v10207_v27  ;;  %v12650_v61 = vand.u32 4294901760, %v10203_v42  ;;  %v5479_v18 = vadd.s32 536870912, %v5478_v58  ;;  %3201 = vmatpush.msra.mxu2 %v10200_v36  ;;  %v3140_v0 = vsub.f32 %v10190_v22, %v12646_v23  ;;  %v10217_v15 = vand.u32 4294901760, %v254_v32 }
 0x209   :  { %3130 = vmatpush.msra.mxu1 %v3129_v30  ;;  %v10220_v56 = vsub.f32 %v267_v50, %v10207_v27  ;;  %v13097_v39 = vand.u32 4294901760, %v9810_v59  ;;  %v3146_v30 = vsub.f32 %v10200_v36, %v12651_v62  ;;  %v2222_v23 = vadd.f32 %v2221_v19, %v2183_v55  ;;  %3235 = vmatpush.msra.mxu3 %v10143_v38 }
 0x20a   :  { %v3397_v35 = vsub.f32 %v10203_v42, %v12650_v61  ;;  %v10231_v17 = vand.u32 4294901760, %v241_v7  ;;  %v10233_v50 = vshrl.u32 %v5479_v18, 30  ;;  %3354 = vmatpush.msrb.mxu2 %v10183_v37  ;;  %v3141_v60 = vand.u32 4294901760, %v3140_v0  ;;  %v215_v18 = vld [vmem:[#allocation5 + $0x458] sm:$0xff] }
 0x20b   :  { %3250 = vmatpush.msrb.mxu0 %v13097_v39  ;;  %3136 = vmatpush.msra.mxu1 %v3135_v51  ;;  %v12654_v59 = vand.u32 4294901760, %v10220_v56  ;;  %v10238_v39 = vsub.f32 %v254_v32, %v10217_v15  ;;  %v13098_v61 = vand.u32 4294901760, %v9821_v28  ;;  %v3147_v55 = vand.u32 4294901760, %v3146_v30 }
 0x20c   :  { %v2291_v19 = vadd.f32 %v2290_v3, %v2222_v23  ;;  %v10243_v62 = vand.u32 4294901760, %v228_v53  ;;  %v5481_v51 = vshll.u32 %v10233_v50, 30  ;;  %3356 = vmatpush.msrb.mxu2 %v10207_v27  ;;  %v3398_v0 = vand.u32 4294901760, %v3397_v35  ;;  %3237 = vmatpush.msra.mxu3 %v10175_v13 }
 0x20d   :  { %3254 = vmatpush.msrb.mxu0 %v13098_v61  ;;  %3142 = vmatpush.msra.mxu1 %v3141_v60  ;;  %v3403_v32 = vsub.f32 %v10220_v56, %v12654_v59  ;;  %v12661_v37 = vand.u32 4294901760, %v10238_v39  ;;  %v13099_v28 = vand.u32 4294901760, %v9855_v57  ;;  %v10255_v3 = vsub.f32 %v241_v7, %v10231_v17  ;;  %v13101_v60 = vld [vmem:[#allocation18_spill] sm:$0xff]  ;;  %v202_v7 = vld [vmem:[#allocation5 + $0x3f0] sm:$0xff] }
 0x20e   :  { %v10257_v23 = vadd.f32 %v2327_v48, %v2291_v19  ;;  %v4726_v61 = vperm.slane %v13101_v60, 5  ;;  %v10260_v30 = vsub.s32 %v5478_v58, %v5481_v51  ;;  %3358 = vmatpush.msrb.mxu2 %v10217_v15  ;;  %v10266_v27 = vand.u32 4294901760, %v215_v18  ;;  %3239 = vmatpush.msra.mxu3 %v10180_v6 }
 0x20f   :  { %3258 = vmatpush.msrb.mxu0 %v13099_v28  ;;  %3148 = vmatpush.msra.mxu1 %v3147_v55  ;;  %v3404_v35 = vand.u32 4294901760, %v3403_v32  ;;  %v3409_v59 = vsub.f32 %v10238_v39, %v12661_v37  ;;  %v12657_v57 = vand.u32 4294901760, %v10255_v3  ;;  %v10275_v58 = vsub.f32 %v228_v53, %v10243_v62 }
 0x210   :  { %13100 = vst [vmem:[#allocation29_spill] sm:$0xff] %v10257_v23  ;;  %v10272_v48 = vadd.f32 %v4726_v61, %v10257_v23  ;;  %vm5483_vm10 = vcmp.lt.s32.totalorder %v10260_v30, 0  ;;  %v5484_v55 = vsub.s32 0, %v10260_v30  ;;  %3399 = vmatpush.msrb.mxu3 %v3398_v0  ;;  %v13102_v19 = vand.u32 4294901760, %v9873_v34  ;;  %3360 = vmatpush.msrb.mxu2 %v10231_v17 }
 0x211   :  { %3317 = vmatpush.msrb.mxu1 %v9795_v41  ;;  %v3410_v51 = vand.u32 4294901760, %v3409_v59  ;;  %v3415_v41 = vsub.f32 %v10255_v3, %v12657_v57  ;;  %v12659_v28 = vand.u32 4294901760, %v10275_v58  ;;  %v13103_v34 = vand.u32 4294901760, %v9895_v44 }
 0x212   :  { %3262 = vmatpush.msrb.mxu0 %v13102_v19  ;;  %v12660_v53 = vand.u32 2147483647, %v10272_v48  ;;  %v5538_v32 = vand.u32 2139095040, %v10272_v48  ;;  %v5485_v0 = vsel %vm5483_vm10, %v5484_v55, %v10260_v30  ;;  %3405 = vmatpush.msrb.mxu3 %v3404_v35  ;;  %v10292_v59 = vand.u32 4294901760, %v202_v7  ;;  %v189_v35 = vld [vmem:[#allocation5 + $0x388] sm:$0xff] }
 0x213   :  { %3319 = vmatpush.msrb.mxu1 %v9812_v12  ;;  %v10295_v12 = vsub.f32 %v215_v18, %v10266_v27  ;;  %v5486_v60 = vclz %v5485_v0  ;;  %3362 = vmatpush.msrb.mxu2 %v10243_v62  ;;  %v3416_v61 = vand.u32 4294901760, %v3415_v41  ;;  %v13104_v57 = vand.u32 4294901760, %v9923_v21  ;;  %v10314_v41 = vld [vmem:[#allocation5 + $0x320] sm:$0xff]  ;;  %v10320_v0 = vld [vmem:[#allocation5 + $0x2b8] sm:$0xff] }
 0x214   :  { %3266 = vmatpush.msrb.mxu0 %v13103_v34  ;;  %v5539_v19 = vshrl.u32 %v5538_v32, 23  ;;  %3411 = vmatpush.msrb.mxu3 %v3410_v51  ;;  %v3421_v44 = vsub.f32 %v10275_v58, %v12659_v28  ;;  %v5542_v18 = vand.u32 8388607, %v12660_v53  ;;  %v13105_v21 = vand.u32 4294901760, %v9935_v46 }
 0x215   :  { %3321 = vmatpush.msrb.mxu1 %v9830_v14  ;;  %v6890_v55 = vadd.s32 4294967294, %v5486_v60  ;;  %3364 = vmatpush.msrb.mxu2 %v10266_v27  ;;  %v12658_v14 = vand.u32 4294901760, %v10295_v12  ;;  %v5474_v60 = vadd.s32 %v10120_v29, %v10145_v8  ;;  %v13107_v8 = vand.u32 4294901760, %v9966_v33 }
 0x216   :  { %3270 = vmatpush.msrb.mxu0 %v13104_v57  ;;  %v6892_v34 = vadd.s32 4294967169, %v5539_v19  ;;  %3417 = vmatpush.msrb.mxu3 %v3416_v61  ;;  %v3422_v51 = vand.u32 4294901760, %v3421_v44  ;;  %v10312_v57 = vsub.f32 %v202_v7, %v10292_v59  ;;  %v13106_v61 = vand.u32 4294901760, %v9952_v40  ;;  %v13108_v40 = vld [vmem:[#allocation21_spill] sm:$0xff] }
 0x217   :  { %3323 = vmatpush.msrb.mxu1 %v9857_v1  ;;  %vm6891_vm11 = vcmp.lt.s32.totalorder %v6890_v55, 0  ;;  %3366 = vmatpush.msrb.mxu2 %v10292_v59  ;;  %v10318_v1 = vand.u32 4294901760, %v189_v35  ;;  %v3427_v7 = vsub.f32 %v10295_v12, %v12658_v14  ;;  %v5543_v44 = vor.u32 8388608, %v5542_v18 }
 0x218   :  { %3274 = vmatpush.msrb.mxu0 %v13105_v21  ;;  %v5545_v32 = vadd.s32 1, %v6892_v34  ;;  %v5489_v46 = vsel %vm6891_vm11, 0, %v6890_v55  ;;  %3423 = vmatpush.msrb.mxu3 %v3422_v51  ;;  %v10332_v34 = vand.u32 4294901760, %v10314_v41  ;;  %v10338_v55 = vand.u32 4294901760, %v10320_v0 }
 0x219   :  { %3325 = vmatpush.msrb.mxu1 %v9865_v49  ;;  %v5490_v19 = vsub.s32 32, %v5489_v46  ;;  %v5494_v49 = vsub.s32 4294967266, %v5489_v46  ;;  %3368 = vmatpush.msrb.mxu2 %v10318_v1  ;;  %v5491_v18 = vshll.u32 %v10260_v30, %v5489_v46  ;;  %v3428_v28 = vand.u32 4294901760, %v3427_v7 }
 0x21a   :  { %3278 = vmatpush.msrb.mxu0 %v13106_v61  ;;  %vm5546_vm12 = vcmp.gt.s32.totalorder %v5545_v32, 0  ;;  %3204 = vmatmul.f32.vlgmr.msra.gmra.mxu2 %v13108_v40  ;;  %v13109_v33 = vand.u32 4294901760, %v9998_v54  ;;  %v10350_v30 = vshll.u32 %v5543_v44, 8  ;;  %vm5382_vm13 = vcmp.lt.s32.totalorder %v9917_v9, 0 }
 0x21b   :  { %3327 = vmatpush.msrb.mxu1 %v9905_v11  ;;  %v5492_v51 = vshrl.u32 %v5474_v60, %v5490_v19  ;;  %v5495_v11 = vadd.s32 127, %v5494_v49  ;;  %v5547_v21 = vsel %vm5546_vm12, %v5545_v32, 0  ;;  %3370 = vmatpush.msrb.mxu2 %v10332_v34  ;;  %v13111_v46 = vand.u32 4294901760, %v10009_v52  ;;  %v13116_v52 = vld [vmem:[#allocation23_spill] sm:$0xff] }
 0x21c   :  { %3282 = vmatpush.msrb.mxu0 %v13107_v8  ;;  %v5549_v14 = vand.u32 31, %v5547_v21  ;;  %v13110_v8 = vld [vmem:[#allocation22_spill] sm:$0xff]  ;;  %v10348_v29 = vshrl.u32 %v5547_v21, 5  ;;  %3429 = vmatpush.msrb.mxu3 %v3428_v28  ;;  %v13112_v7 = vand.u32 2147483647, %v9917_v9  ;;  %v13115_v44 = vand.u32 4294901760, %v10312_v57 }
 0x21d   :  { %3329 = vmatpush.msrb.mxu1 %v9910_v63  ;;  %3243 = vmatmul.f32.vlgmr.msra.gmra.mxu3 %v13110_v8  ;;  %v5493_v53 = vor.u32 %v5492_v51, %v5491_v18  ;;  %v5496_v37 = vshll.u32 %v5495_v11, 23  ;;  %v10371_v51 = vsub.f32 %v189_v35, %v10318_v1  ;;  %v13119_v61 = vmov 1326507024  }
 0x21e   :  { %3286 = vmatpush.msrb.mxu0 %v13109_v33  ;;  %3372 = vmatpush.msrb.mxu2 %v10338_v55  ;;  %v5550_v63 = vsub.s32 32, %v5549_v14  ;;  %v5552_v32 = vshll.u32 %v13050_v45, %v5549_v14  ;;  %v5555_v54 = vshll.u32 %v13086_v2, %v5549_v14  ;;  %v5558_v60 = vshll.u32 %v13087_v26, %v5549_v14 }
 0x21f   :  { %3331 = vmatpush.msrb.mxu1 %v9937_v4  ;;  %vm10362_vm14 = vcmp.le.f32.partialorder %v13112_v7, 0.7853982  ;;  %v5497_v4 = vor.u32 4788187, %v5496_v37  ;;  %v5561_v49 = vshll.u32 %v13088_v24, %v5549_v14  ;;  %v3433_v18 = vsub.f32 %v10312_v57, %v13115_v44  ;;  %3049 = vmatmul.f32.vlgmr.msra.gmra.mxu0 %v13116_v52 }
 0x220   :  { %3290 = vmatpush.msrb.mxu0 %v13111_v46  ;;  %v5500_v28 = vcvt.s32.f32 %v5493_v53  ;;  %v5553_v11 = vshrl.u32 %v13086_v2, %v5550_v63  ;;  %v5556_v21 = vshrl.u32 %v13087_v26, %v5550_v63  ;;  %v5559_v37 = vshrl.u32 %v13088_v24, %v5550_v63  ;;  %v13121_v24 = vld [vmem:[#allocation20_spill] sm:$0xff] }
 0x221   :  { %3333 = vmatpush.msrb.mxu1 %v9944_v47  ;;  %v13117_v33 = vand.u32 4294901760, %v10130_v43  ;;  %v5498_v46 = vand.u32 2147483647, %v5497_v4  ;;  %v13118_v7 = vmov 920167782   ;;  %v5565_v23 = vshrl.u32 %v13119_v61, %v5550_v63  ;;  %v255_v61 = vld [vmem:[#allocation5 + $0x598] sm:$0xff] }
 0x222   :  { %v5562_v44 = vshrl.u32 %v13118_v7, %v5550_v63  ;;  %v5564_v35 = vshll.u32 %v13118_v7, %v5549_v14  ;;  %v5554_v47 = vor.u32 %v5553_v11, %v5552_v32  ;;  %v5557_v53 = vor.u32 %v5556_v21, %v5555_v54  ;;  %3150 = vmatmul.f32.vlgmr.msra.gmra.mxu1 %v13121_v24 }
 0x223   :  { %3294 = vmatpush.msrb.mxu0 %v13117_v33  ;;  %3335 = vmatpush.msrb.mxu1 %v9975_v25  ;;  %v5560_v8 = vor.u32 %v5559_v37, %v5558_v60  ;;  %vm5567_vm1 = vcmp.lt.s32.totalorder %v10348_v29, 1  ;;  %v13120_v26 = vand.u32 4294901760, %v10150_v10  ;;  %v5501_v43 = vmul.f32 %v5500_v28, %v5498_v46 }
 0x224   :  { %v5563_v4 = vor.u32 %v5562_v44, %v5561_v49  ;;  %v5566_v33 = vor.u32 %v5565_v23, %v5564_v35  ;;  %v5584_v2 = vand.u32 65535, %v10350_v30  ;;  %vm5568_vm2 = vcmp.lt.s32.totalorder %v10348_v29, 2 }
 0x225   :  { %3298 = vmatpush.msrb.mxu0 %v13120_v26  ;;  %3337 = vmatpush.msrb.mxu1 %v9985_v5  ;;  %vm5569_vm15 = vcmp.lt.s32.totalorder %v10348_v29, 3  ;;  %vm5570_vm3 = vcmp.lt.s32.totalorder %v10348_v29, 4  ;;  %v5575_v25 = vsel %vm5567_vm1, %v5554_v47, %v5557_v53  ;;  %v13122_v26 = vand.u32 4294901760, %v10163_v31 }
 0x226   :  { %v5502_v10 = vxor.u32 2147483648, %v5501_v43  ;;  %v5576_v14 = vsel %vm5570_vm3, %v5563_v4, 920167782  ;;  %v5579_v23 = vsel %vm5567_vm1, %v5557_v53, %v5560_v8  ;;  %v5585_v32 = vshrl.u32 %v10350_v30, 16 }
 0x227   :  { %3302 = vmatpush.msrb.mxu0 %v13122_v26  ;;  %3339 = vmatpush.msrb.mxu1 %v10023_v16  ;;  %v5551_v5 = vshrl.u32 %v13050_v45, %v5550_v63  ;;  %v5577_v54 = vsel %vm5569_vm15, %v5560_v8, %v5576_v14  ;;  %v5580_v60 = vsel %vm5570_vm3, %v5566_v33, 1326507024  ;;  %v3434_v49 = vand.u32 4294901760, %v3433_v18 }
 0x228   :  { %v13123_v28 = vand.u32 4294901760, %v10190_v22  ;;  %v5503_v31 = vsel %vm5382_vm13, %v5502_v10, %v5501_v43  ;;  %v5572_v11 = vsel %vm5570_vm3, %v5560_v8, 2102212464  ;;  %v5578_v21 = vsel %vm5568_vm2, %v5575_v25, %v5577_v54 }
 0x229   :  { %v5581_v16 = vsel %vm5569_vm15, %v5563_v4, %v5580_v60  ;;  %3341 = vmatpush.msrb.mxu1 %v10136_v20  ;;  %v10416_v63 = vsel %vm10362_vm14, %v9917_v9, %v5503_v31  ;;  %v5608_v18 = vand.u32 65535, %v5578_v21  ;;  %v5609_v37 = vshrl.u32 %v5578_v21, 16  ;;  %3435 = vmatpush.msrb.mxu3 %v3434_v49 }
 0x22a   :  { %3306 = vmatpush.msrb.mxu0 %v13123_v28  ;;  %v5582_v22 = vsel %vm5568_vm2, %v5579_v23, %v5581_v16  ;;  %v13124_v8 = vand.u32 4294901760, %v10200_v36  ;;  %v10424_v46 = vmul.f32 %v10416_v63, %v10416_v63  ;;  %v13125_v35 = vsub.s32 4, %v10233_v50  ;;  %v13126_v16 = vld [vmem:[#allocation24_spill] sm:$0xff] }
 0x22b   :  { %v5586_v44 = vand.u32 65535, %v5582_v22  ;;  %v5587_v20 = vshrl.u32 %v5582_v22, 16  ;;  %3343 = vmatpush.msrb.mxu1 %v10143_v38  ;;  %v5571_v36 = vsel %vm5567_vm1, %v5551_v5, %v5554_v47  ;;  %v10437_v4 = vmul.u32 %v5609_v37, %v5584_v2 }
 0x22c   :  { %3310 = vmatpush.msrb.mxu0 %v13124_v8  ;;  %v10433_v43 = vsel %vm5382_vm13, %v13125_v35, %v10233_v50  ;;  %v10439_v33 = vmul.u32 %v5608_v18, %v5585_v32  ;;  %v5516_v38 = vmul.f32 -0.00019511016, %v10424_v46  ;;  %v5573_v25 = vsel %vm5569_vm15, %v5557_v53, %v5572_v11 }
 0x22d   :  { %3312 = vmatmul.f32.vlgmr.msrb.gmra.mxu0 %v13121_v24  ;;  %v5588_v26 = vmul.u32 %v5586_v44, %v5584_v2  ;;  %v5589_v10 = vmul.u32 %v5587_v20, %v5584_v2  ;;  %3345 = vmatpush.msrb.mxu1 %v10175_v13  ;;  %v5590_v50 = vmul.u32 %v5586_v44, %v5585_v32  ;;  %v5614_v47 = vshll.u32 %v10437_v4, 16  ;;  %v150_v44 = vld [vmem:[#allocation5 + $0x250] sm:$0xff] }
 0x22e   :  { %3497 = vmatpush.msra.mxu0 %v10203_v42  ;;  %v5610_v14 = vmul.u32 %v5608_v18, %v5584_v2  ;;  %v12673_v23 = vand.u32 4294901760, %v10371_v51  ;;  %v5509_v5 = vmul.f32 -0.001358992, %v10424_v46  ;;  %v5517_v54 = vadd.f32 0.008332121, %v5516_v38 }
 0x22f   :  { %v5591_v60 = vmul.u32 %v5587_v20, %v5585_v32  ;;  %v5592_v49 = vshll.u32 %v5589_v10, 16  ;;  %3347 = vmatpush.msrb.mxu1 %v10180_v6  ;;  %v10454_v13 = vsel %vm5568_vm2, %v5571_v36, %v5573_v25  ;;  %v5594_v53 = vshll.u32 %v5590_v50, 16  ;;  %v13128_v20 = vld [vmem:[#allocation33_spill] sm:$0xff] }
 0x230   :  { %3500 = vmatpush.msra.mxu0 %v10220_v56  ;;  %v5613_v28 = vmul.u32 %v5609_v37, %v5585_v32  ;;  %v5616_v2 = vshll.u32 %v10439_v33, 16  ;;  %3349 = vmatmul.f32.vlgmr.msrb.gmra.mxu1 %v13121_v24  ;;  %v5518_v31 = vmul.f32 %v5517_v54, %v10424_v46  ;;  %v5615_v21 = vshrl.u32 %v10437_v4, 16 }
 0x231   :  { %vm5596_vm4 = vc.u32 %v5588_v26, %v5592_v49  ;;  %v5598_v11 = vadd.s32 %v5592_v49, %v5588_v26  ;;  %3550 = vmatpush.msra.mxu1 %v13126_v16  ;;  %v13127_v6 = vmov 0   ;;  %vm5618_vm5 = vc.u32 %v5610_v14, %v5614_v47 }
 0x232   :  { %3503 = vmatpush.msra.mxu0 %v10238_v39  ;;  %v5597_v22 = vsel %vm5596_vm4, 1, %v13127_v6  ;;  %v5620_v29 = vadd.s32 %v5614_v47, %v5610_v14  ;;  %v3439_v32 = vsub.f32 %v10371_v51, %v12673_v23  ;;  %v5510_v18 = vadd.f32 0.041655596, %v5509_v5  ;;  %v137_v47 = vld [vmem:[#allocation5 + $0x1e8] sm:$0xff] }
 0x233   :  { %v5593_v37 = vshrl.u32 %v5589_v10, 16  ;;  %v5599_v8 = vadd.s32 %v5597_v22, %v5591_v60  ;;  %vm5600_vm6 = vc.u32 %v5598_v11, %v5594_v53  ;;  %3552 = vmatpush.msra.mxu1 %v13128_v20  ;;  %v5595_v35 = vshrl.u32 %v5590_v50, 16 }
 0x234   :  { %3506 = vmatpush.msra.mxu0 %v10255_v3  ;;  %v5601_v36 = vsel %vm5600_vm6, 1, %v13127_v6  ;;  %v5619_v4 = vsel %vm5618_vm5, 1, %v13127_v6  ;;  %vm5622_vm7 = vc.u32 %v5620_v29, %v5616_v2  ;;  %v5519_v38 = vadd.f32 -0.16666654, %v5518_v31 }
 0x235   :  { %v5603_v25 = vadd.s32 %v5601_v36, %v5599_v8  ;;  %v5617_v26 = vshrl.u32 %v10439_v33, 16  ;;  %v5621_v14 = vadd.s32 %v5619_v4, %v5613_v28  ;;  %3554 = vmatpush.msra.mxu1 %v10217_v15  ;;  %v5623_v10 = vsel %vm5622_vm7, 1, %v13127_v6  ;;  %v124_v28 = vld [vmem:[#allocation5 + $0x180] sm:$0xff] }
 0x236   :  { %3509 = vmatpush.msra.mxu0 %v10275_v58  ;;  %v3440_v5 = vand.u32 4294901760, %v3439_v32  ;;  %v10475_v50 = vsub.f32 %v10314_v41, %v10332_v34  ;;  %v10477_v54 = vand.u32 4294901760, %v150_v44  ;;  %v5511_v60 = vmul.f32 %v5510_v18, %v10424_v46 }
 0x237   :  { %v5604_v49 = vadd.s32 %v5603_v25, %v5593_v37  ;;  %v10481_v53 = vadd.s32 %v5620_v29, %v5616_v2  ;;  %v5625_v33 = vadd.s32 %v5623_v10, %v5621_v14  ;;  %3556 = vmatpush.msra.mxu1 %v10231_v17  ;;  %v10488_v41 = vsub.f32 %v10320_v0, %v10338_v55 }
 0x238   :  { %3512 = vmatpush.msra.mxu0 %v10295_v12  ;;  %3441 = vmatpush.msrb.mxu3 %v3440_v5  ;;  %v12672_v31 = vand.u32 4294901760, %v10475_v50  ;;  %v10490_v11 = vand.u32 4294901760, %v137_v47  ;;  %v10493_v22 = vsub.f32 %v150_v44, %v10477_v54  ;;  %v5520_v2 = vmul.f32 %v5519_v38, %v10424_v46  ;;  %v111_v44 = vld [vmem:[#allocation5 + $0x118] sm:$0xff] }
 0x239   :  { %3374 = vmatpush.msrb.mxu2 %v10477_v54  ;;  %v10496_v29 = vadd.s32 %v5604_v49, %v5595_v35  ;;  %v5626_v32 = vadd.s32 %v5625_v33, %v5615_v21  ;;  %3558 = vmatpush.msra.mxu1 %v10243_v62  ;;  %v12671_v0 = vand.u32 4294901760, %v10488_v41  ;;  %v10506_v8 = vand.u32 4294901760, %v124_v28  ;;  %v85_v33 = vld [vmem:[#allocation5 + $0x48] sm:$0xff] }
 0x23a   :  { %3515 = vmatpush.msra.mxu0 %v10312_v57  ;;  %v3445_v18 = vsub.f32 %v10475_v50, %v12672_v31  ;;  %v12670_v37 = vand.u32 4294901760, %v10493_v22  ;;  %v5507_v21 = vsel %vm10362_vm14, 0, %v10433_v43  ;;  %v5512_v35 = vadd.f32 -0.4999988, %v5511_v60  ;;  %v98_v43 = vld [vmem:[#allocation5 + $0xb0] sm:$0xff] }
 0x23b   :  { %3376 = vmatpush.msrb.mxu2 %v10490_v11  ;;  %13129 = vst [vmem:[#allocation30_spill] sm:$0xff] %v10506_v8  ;;  %v5627_v36 = vadd.s32 %v5626_v32, %v5617_v26  ;;  %v5628_v4 = vmul.u32 %v10350_v30, %v10454_v13  ;;  %3560 = vmatpush.msra.mxu1 %v10266_v27  ;;  %v5521_v30 = vadd.f32 1.0, %v5520_v2  ;;  %v10527_v14 = vand.u32 4294901760, %v111_v44 }
 0x23c   :  { %3518 = vmatpush.msra.mxu0 %v10371_v51  ;;  %vm5630_vm9 = vc.u32 %v10496_v29, %v10481_v53  ;;  %v3446_v38 = vand.u32 4294901760, %v3445_v18  ;;  %v3451_v25 = vsub.f32 %v10488_v41, %v12671_v0  ;;  %v3457_v19 = vsub.f32 %v10493_v22, %v12670_v37 }
 0x23d   :  { %3378 = vmatpush.msrb.mxu2 %v10506_v8  ;;  %v5631_v13 = vadd.s32 1, %v5627_v36  ;;  %v10525_v26 = vsub.f32 %v137_v47, %v10490_v11  ;;  %3562 = vmatpush.msra.mxu1 %v10292_v59  ;;  %v5524_v10 = vadd.s32 3, %v5507_v21  ;;  %v10532_v49 = vsub.f32 %v124_v28, %v10506_v8 }
 0x23e   :  { %3521 = vmatpush.msra.mxu0 %v10475_v50  ;;  %3447 = vmatpush.msrb.mxu3 %v3446_v38  ;;  %v3452_v5 = vand.u32 4294901760, %v3451_v25  ;;  %v3458_v60 = vand.u32 4294901760, %v3457_v19  ;;  %v10539_v32 = vand.u32 4294901760, %v98_v43  ;;  %v5513_v18 = vmul.f32 %v5512_v35, %v10424_v46 }
 0x23f   :  { %v5632_v2 = vsel %vm5630_vm9, %v5631_v13, %v5627_v36  ;;  %v12667_v47 = vand.u32 4294901760, %v10525_v26  ;;  %3380 = vmatpush.msrb.mxu2 %v10527_v14  ;;  %v12666_v28 = vand.u32 4294901760, %v10532_v49  ;;  %v10545_v38 = vsub.f32 %v111_v44, %v10527_v14  ;;  %3564 = vmatpush.msra.mxu1 %v10318_v1 }
 0x240   :  { %3524 = vmatpush.msra.mxu0 %v10488_v41  ;;  %v5633_v21 = vadd.s32 %v5632_v2, %v5628_v4  ;;  %3453 = vmatpush.msrb.mxu3 %v3452_v5  ;;  %v10549_v36 = vmul.f32 %v5521_v30, %v10416_v63  ;;  %v10555_v19 = vand.u32 4294901760, %v85_v33  ;;  %v10558_v46 = vsub.f32 %v98_v43, %v10539_v32 }
 0x241   :  { %v3463_v25 = vsub.f32 %v10525_v26, %v12667_v47  ;;  %3382 = vmatpush.msrb.mxu2 %v10539_v32  ;;  %v10561_v44 = vand.u32 3, %v5524_v10  ;;  %v3469_v63 = vsub.f32 %v10532_v49, %v12666_v28  ;;  %v12669_v4 = vand.u32 4294901760, %v10545_v38  ;;  %3566 = vmatpush.msra.mxu1 %v10332_v34 }
 0x242   :  { %3527 = vmatpush.msra.mxu0 %v10493_v22  ;;  %v5634_v35 = vadd.s32 536870912, %v5633_v21  ;;  %3459 = vmatpush.msrb.mxu3 %v3458_v60  ;;  %v12668_v43 = vand.u32 4294901760, %v10558_v46  ;;  %v10571_v13 = vsub.f32 %v85_v33, %v10555_v19  ;;  %v5514_v10 = vadd.f32 1.0, %v5513_v18 }
 0x243   :  { %v3464_v30 = vand.u32 4294901760, %v3463_v25  ;;  %3384 = vmatpush.msrb.mxu2 %v10555_v19  ;;  %v3470_v60 = vand.u32 4294901760, %v3469_v63  ;;  %v3475_v2 = vsub.f32 %v10545_v38, %v12669_v4  ;;  %v13130_v28 = vand.u32 4294901760, %v10203_v42  ;;  %3568 = vmatpush.msra.mxu1 %v10338_v55  ;;  %v281_v25 = vld [vmem:[#allocation5 + $0x668] sm:$0xff] }
 0x244   :  { %3530 = vmatpush.msra.mxu0 %v10525_v26  ;;  %v10574_v5 = vshrl.u32 %v5634_v35, 30  ;;  %v5528_v47 = vxor.u32 2147483648, %v10549_v36  ;;  %v3481_v33 = vsub.f32 %v10558_v46, %v12668_v43  ;;  %v12674_v18 = vand.u32 4294901760, %v10571_v13  ;;  %3390 = vmatmul.f32.vlgmr.msrb.gmra.mxu2 %v13116_v52  ;;  %v268_v43 = vld [vmem:[#allocation5 + $0x600] sm:$0xff] }
 0x245   :  { %3591 = vmatpush.msra.mxu2 %v13130_v28  ;;  %3465 = vmatpush.msrb.mxu3 %v3464_v30  ;;  %v10588_v35 = vand.u32 4294901760, %v281_v25  ;;  %vm5526_vm8 = vcmp.lt.s32.totalorder %v10561_v44, 2  ;;  %vm5527_vm10 = vcmp.eq.s32.totalorder %v10561_v44, 0  ;;  %v3476_v28 = vand.u32 4294901760, %v3475_v2  ;;  %v2368_v30 = vpop.f32.mrf.mxu0 }
 0x246   :  { %v5636_v42 = vshll.u32 %v10574_v5, 30  ;;  %v13131_v63 = vand.u32 4294901760, %v10220_v56  ;;  %3533 = vmatpush.msra.mxu0 %v10532_v49  ;;  %vm5523_vm11 = vweird.f32 %v9917_v9  ;;  %v3482_v4 = vand.u32 4294901760, %v3481_v33  ;;  %3570 = vmatpush.msra.mxu1 %v10477_v54  ;;  %v2469_v33 = vpop.f32.mrf.mxu1 }
 0x247   :  { %3471 = vmatpush.msrb.mxu3 %v3470_v60  ;;  %v3487_v37 = vsub.f32 %v10571_v13, %v12674_v18  ;;  %v10602_v0 = vsub.f32 %v281_v25, %v10588_v35  ;;  %v10604_v2 = vand.u32 4294901760, %v268_v43  ;;  %vm5530_vm12 = vcmp.eq.s32.totalorder %v10561_v44, 2 }
 0x248   :  { %3595 = vmatpush.msra.mxu2 %v13131_v63  ;;  %v5531_v56 = vxor.u32 2147483648, %v5514_v10  ;;  %v13133_v63 = vld [vmem:[#allocation25_spill] sm:$0xff]  ;;  %v10608_v23 = vsub.s32 %v5633_v21, %v5636_v42  ;;  %v13134_v60 = vand.u32 4294901760, %v10238_v39  ;;  %3536 = vmatpush.msra.mxu0 %v10545_v38  ;;  %v5529_v18 = vsel %vm5527_vm10, %v5514_v10, %v5528_v47  ;;  %v2523_v47 = vpop.f32.mrf.mxu2 }
 0x249   :  { %13132 = vst [vmem:[#allocation31_spill] sm:$0xff] %v10602_v0  ;;  %v6785_v31 = vperm.slane %v13133_v63, 4  ;;  %3477 = vmatpush.msrb.mxu3 %v3476_v28  ;;  %v3488_v25 = vand.u32 4294901760, %v3487_v37  ;;  %3572 = vmatpush.msra.mxu1 %v10490_v11  ;;  %v2470_v52 = vadd.f32 %v2469_v33, %v2368_v30  ;;  %v10617_v6 = vsub.f32 %v268_v43, %v10604_v2  ;;  %v242_v30 = vld [vmem:[#allocation5 + $0x530] sm:$0xff] }
 0x24a   :  { %3599 = vmatpush.msra.mxu2 %v13134_v60  ;;  %vm5638_vm13 = vcmp.lt.s32.totalorder %v10608_v23, 0  ;;  %v5639_v39 = vsub.s32 0, %v10608_v23  ;;  %v5659_v21 = vsub.s32 4, %v10574_v5  ;;  %v13135_v42 = vand.u32 4294901760, %v10255_v3  ;;  %3539 = vmatpush.msra.mxu0 %v10558_v46 }
 0x24b   :  { %v10625_v37 = vand.u32 4294901760, %v255_v61  ;;  %v13136_v10 = vand.u32 2147483647, %v10272_v48  ;;  %vm5537_vm1 = vcmp.lt.s32.totalorder %v10272_v48, 0  ;;  %3483 = vmatpush.msrb.mxu3 %v3482_v4  ;;  %3574 = vmatpush.msra.mxu1 %v10506_v8  ;;  %v2524_v28 = vadd.f32 %v2523_v47, %v2470_v52 }
 0x24c   :  { %3603 = vmatpush.msra.mxu2 %v13135_v42  ;;  %v12679_v3 = vand.u32 4294901760, %v10602_v0  ;;  %v5532_v60 = vsel %vm5530_vm12, %v5531_v56, %v10549_v36  ;;  %v5640_v33 = vsel %vm5638_vm13, %v5639_v39, %v10608_v23  ;;  %v13139_v42 = vand.u32 4294901760, %v10275_v58  ;;  %3542 = vmatpush.msra.mxu0 %v10571_v13  ;;  %v229_v58 = vld [vmem:[#allocation5 + $0x4c8] sm:$0xff] }
 0x24d   :  { %vm10629_vm14 = vcmp.le.f32.partialorder %v13136_v10, 0.7853982  ;;  %v2562_v10 = vpop.f32.mrf.mxu3  ;;  %v10644_v4 = vsub.f32 %v255_v61, %v10625_v37  ;;  %v10646_v8 = vand.u32 4294901760, %v242_v30  ;;  %v5533_v52 = vsel %vm5526_vm8, %v5529_v18, %v5532_v60  ;;  %3489 = vmatpush.msrb.mxu3 %v3488_v25  ;;  %3576 = vmatpush.msra.mxu1 %v10527_v14 }
 0x24e   :  { %3607 = vmatpush.msra.mxu2 %v13139_v42  ;;  %v5641_v47 = vclz %v5640_v33  ;;  %v2563_v36 = vadd.f32 %v2562_v10, %v2524_v28  ;;  %v12678_v56 = vand.u32 4294901760, %v10617_v6  ;;  %vm10652_vm2 = vcmp.eq.s32.totalorder %v6785_v31, 1  ;;  %3491 = vmatmul.f32.vlgmr.msrb.gmra.mxu3 %v13121_v24  ;;  %v2668_v9 = vpop.f32.mrf.mxu1  ;;  %v203_v10 = vld [vmem:[#allocation5 + $0x3f8] sm:$0xff] }
 0x24f   :  { %v10659_v61 = vsel %vm5537_vm1, %v5659_v21, %v10574_v5  ;;  %3658 = vmatpush.msra.mxu3 %v13126_v16  ;;  %v13142_v44 = vand.u32 4294901760, %v10295_v12  ;;  %v3738_v18 = vsub.f32 %v10602_v0, %v12679_v3  ;;  %v10668_v25 = vsub.f32 %v242_v30, %v10646_v8  ;;  %3695 = vmatpush.msrb.mxu0 %v10588_v35  ;;  %v2631_v5 = vpop.f32.mrf.mxu0  ;;  %v216_v21 = vld [vmem:[#allocation5 + $0x460] sm:$0xff] }
 0x250   :  { %v5629_v31 = vadd.s32 %v10481_v53, %v10496_v29  ;;  %v6893_v28 = vadd.s32 4294967294, %v5641_v47  ;;  %v10677_v12 = vsub.f32 %v10617_v6, %v12678_v56  ;;  %v10679_v16 = vand.u32 4294901760, %v229_v58  ;;  %3578 = vmatpush.msra.mxu1 %v10539_v32  ;;  %3545 = vmatmul.f32.vlgmr.msra.gmra.mxu0 %v13108_v40 }
 0x251   :  { %3611 = vmatpush.msra.mxu2 %v13142_v44  ;;  %v10683_v30 = vsel %vm5523_vm11, nan, %v5533_v52  ;;  %3660 = vmatpush.msra.mxu3 %v13128_v20  ;;  %v13143_v53 = vand.u32 4294901760, %v10312_v57  ;;  %v2632_v29 = vadd.f32 %v2631_v5, %v2563_v36  ;;  %v12680_v60 = vand.u32 4294901760, %v10644_v4  ;;  %v13149_v57 = vld [vmem:[#allocation22_spill] sm:$0xff] }
 0x252   :  { %v10689_v33 = vand.u32 4294901760, %v216_v21  ;;  %vm6894_vm15 = vcmp.lt.s32.totalorder %v6893_v28, 0  ;;  %v5662_v42 = vsel %vm10629_vm14, 0, %v10659_v61  ;;  %v10697_v20 = vsub.f32 %v229_v58, %v10679_v16  ;;  %v10705_v61 = vld [vmem:[#allocation7] sm:$0xff]  ;;  %3697 = vmatpush.msrb.mxu0 %v10604_v2  ;;  %3580 = vmatpush.msra.mxu1 %v10555_v19 }
 0x253   :  { %3615 = vmatpush.msra.mxu2 %v13143_v53  ;;  %v5644_v52 = vsel %vm6894_vm15, 0, %v6893_v28  ;;  %3662 = vmatpush.msra.mxu3 %v10217_v15  ;;  %v13144_v47 = vand.u32 4294901760, %v10371_v51  ;;  %v3739_v36 = vand.u32 4294901760, %v3738_v18  ;;  %v10703_v44 = vadd.f32 %v2668_v9, %v2632_v29  ;;  %13146 = vst [vmem:[#allocation36_spill] sm:$0xff] %v10705_v61  ;;  %v190_v51 = vld [vmem:[#allocation5 + $0x390] sm:$0xff] }
 0x254   :  { %v4727_v5 = vperm.slane %v10705_v61, 6  ;;  %v5645_v53 = vsub.s32 32, %v5644_v52  ;;  %v5649_v56 = vsub.s32 4294967266, %v5644_v52  ;;  %v3745_v58 = vand.u32 4294901760, %v10677_v12  ;;  %3584 = vmatmul.f32.vlgmr.msra.gmra.mxu1 %v13149_v57  ;;  %3699 = vmatpush.msrb.mxu0 %v10625_v37 }
 0x255   :  { %3619 = vmatpush.msra.mxu2 %v13144_v47  ;;  %13145 = vst [vmem:[#allocation34_spill] sm:$0xff] %v10703_v44  ;;  %v3750_v15 = vsub.f32 %v10644_v4, %v12680_v60  ;;  %v5646_v18 = vshll.u32 %v10608_v23, %v5644_v52  ;;  %3664 = vmatpush.msra.mxu3 %v10231_v17  ;;  %v13147_v28 = vand.u32 4294901760, %v10475_v50  ;;  %v10724_v47 = vand.u32 4294901760, %v203_v10  ;;  %v177_v52 = vld [vmem:[#allocation5 + $0x328] sm:$0xff] }
 0x256   :  { %v10719_v29 = vadd.f32 %v4727_v5, %v10703_v44  ;;  %v10722_v9 = vsub.f32 %v216_v21, %v10689_v33  ;;  %v5647_v12 = vshrl.u32 %v5629_v31, %v5645_v53  ;;  %v5650_v3 = vadd.s32 127, %v5649_v56  ;;  %3740 = vmatpush.msrb.mxu1 %v3739_v36  ;;  %3701 = vmatpush.msrb.mxu0 %v10646_v8 }
 0x257   :  { %3623 = vmatpush.msra.mxu2 %v13147_v28  ;;  %v13150_v23 = vand.u32 4294901760, %v10668_v25  ;;  %v12681_v50 = vand.u32 4294901760, %v10697_v20  ;;  %3666 = vmatpush.msra.mxu3 %v10243_v62  ;;  %v13151_v21 = vand.u32 4294901760, %v10488_v41  ;;  %v10737_v56 = vsub.f32 %v203_v10, %v10724_v47 }
 0x258   :  { %13148 = vst [vmem:[#allocation40_spill] sm:$0xff] %v10719_v29  ;;  %v5693_v5 = vand.u32 2139095040, %v10719_v29  ;;  %v10739_v31 = vand.u32 4294901760, %v190_v51  ;;  %v12682_v53 = vand.u32 4294901760, %v10722_v9  ;;  %v5648_v28 = vor.u32 %v5647_v12, %v5646_v18  ;;  %v13153_v18 = vld [vmem:[#allocation28_spill] sm:$0xff]  ;;  %3746 = vmatpush.msrb.mxu1 %v3745_v58  ;;  %3703 = vmatpush.msrb.mxu0 %v10679_v16 }
 0x259   :  { %v3756_v17 = vsub.f32 %v10668_v25, %v13150_v23  ;;  %3627 = vmatpush.msra.mxu2 %v13151_v21  ;;  %v5651_v60 = vshll.u32 %v5650_v3, 23  ;;  %v3751_v23 = vand.u32 4294901760, %v3750_v15  ;;  %v3762_v62 = vsub.f32 %v10697_v20, %v12681_v50  ;;  %3668 = vmatpush.msra.mxu3 %v10266_v27  ;;  %v164_v15 = vld [vmem:[#allocation5 + $0x2c0] sm:$0xff] }
 0x25a   :  { %v13152_v41 = vand.u32 4294901760, %v10493_v22  ;;  %v5694_v10 = vshrl.u32 %v5693_v5, 23  ;;  %v3768_v21 = vsub.f32 %v10722_v9, %v12682_v53  ;;  %v10753_v3 = vsub.f32 %v190_v51, %v10739_v31  ;;  %v151_v5 = vld [vmem:[#allocation5 + $0x258] sm:$0xff]  ;;  %3705 = vmatpush.msrb.mxu0 %v10689_v33 }
 0x25b   :  { %v10755_v36 = vand.u32 4294901760, %v177_v52  ;;  %v5652_v27 = vor.u32 4788187, %v5651_v60  ;;  %v5679_v50 = vadd.s32 3, %v5662_v42  ;;  %v3757_v22 = vand.u32 4294901760, %v3756_v17  ;;  %3670 = vmatpush.msra.mxu3 %v10292_v59  ;;  %3752 = vmatpush.msrb.mxu1 %v3751_v23 }
 0x25c   :  { %3631 = vmatpush.msra.mxu2 %v13152_v41  ;;  %v5655_v41 = vcvt.s32.f32 %v5648_v28  ;;  %v13154_v51 = vand.u32 4294901760, %v10525_v26  ;;  %v6895_v53 = vadd.s32 4294967169, %v5694_v10  ;;  %v12689_v44 = vand.u32 4294901760, %v10737_v56  ;;  %3707 = vmatpush.msrb.mxu0 %v10724_v47 }
 0x25d   :  { %v10767_v40 = vsub.f32 %v177_v52, %v10755_v36  ;;  %v5653_v12 = vand.u32 2147483647, %v5652_v27  ;;  %v3763_v60 = vand.u32 4294901760, %v3762_v62  ;;  %v10770_v42 = vand.u32 4294901760, %v164_v15  ;;  %3672 = vmatpush.msra.mxu3 %v10318_v1  ;;  %3758 = vmatpush.msrb.mxu1 %v3757_v22  ;;  %v10797_v27 = vld [vmem:[#allocation5 + $0x1f0] sm:$0xff] }
 0x25e   :  { %3635 = vmatpush.msra.mxu2 %v13154_v51  ;;  %v12686_v58 = vand.u32 4294901760, %v10753_v3  ;;  %v13155_v59 = vand.u32 4294901760, %v10532_v49  ;;  %v12688_v26 = vand.u32 2147483647, %v10719_v29  ;;  %v5700_v17 = vadd.s32 1, %v6895_v53  ;;  %3709 = vmatpush.msrb.mxu0 %v10739_v31 }
 0x25f   :  { %v3769_v28 = vand.u32 4294901760, %v3768_v21  ;;  %v10777_v52 = vand.u32 4294901760, %v151_v5  ;;  %v5656_v10 = vmul.f32 %v5655_v41, %v5653_v12  ;;  %v3774_v23 = vsub.f32 %v10737_v56, %v12689_v44  ;;  %3674 = vmatpush.msra.mxu3 %v10332_v34  ;;  %3764 = vmatpush.msrb.mxu1 %v3763_v60 }
 0x260   :  { %3639 = vmatpush.msra.mxu2 %v13155_v59  ;;  %v3780_v1 = vsub.f32 %v10753_v3, %v12686_v58  ;;  %v12687_v49 = vand.u32 4294901760, %v10767_v40  ;;  %v10787_v62 = vand.u32 3, %v5679_v50  ;;  %v13156_v21 = vand.u32 4294901760, %v10545_v38  ;;  %3711 = vmatpush.msrb.mxu0 %v10755_v36 }
 0x261   :  { %v10795_v12 = vand.u32 8388607, %v12688_v26  ;;  %vm5701_vm3 = vcmp.gt.s32.totalorder %v5700_v17, 0  ;;  %v5657_v22 = vxor.u32 2147483648, %v5656_v10  ;;  %v3775_v50 = vand.u32 4294901760, %v3774_v23  ;;  %3676 = vmatpush.msra.mxu3 %v10338_v55  ;;  %3770 = vmatpush.msrb.mxu1 %v3769_v28 }
 0x262   :  { %3643 = vmatpush.msra.mxu2 %v13156_v21  ;;  %v5702_v41 = vsel %vm5701_vm3, %v5700_v17, 0  ;;  %v10801_v51 = vsub.f32 %v164_v15, %v10770_v42  ;;  %v13157_v34 = vand.u32 4294901760, %v10558_v46  ;;  %v3781_v58 = vand.u32 4294901760, %v3780_v1  ;;  %3713 = vmatpush.msrb.mxu0 %v10770_v42 }
 0x263   :  { %v10807_v59 = vshrl.u32 %v5702_v41, 5  ;;  %v5704_v21 = vand.u32 31, %v5702_v41  ;;  %v5658_v60 = vsel %vm5537_vm1, %v5657_v22, %v5656_v10  ;;  %v10815_v15 = vsub.f32 %v10767_v40, %v12687_v49  ;;  %3678 = vmatpush.msra.mxu3 %v10477_v54  ;;  %3776 = vmatpush.msrb.mxu1 %v3775_v50 }
 0x264   :  { %3647 = vmatpush.msra.mxu2 %v13157_v34  ;;  %v10818_v55 = vsub.f32 %v151_v5, %v10777_v52  ;;  %v10821_v46 = vand.u32 4294901760, %v10797_v27  ;;  %v10826_v17 = vsel %vm10629_vm14, %v10272_v48, %v5658_v60  ;;  %v13158_v28 = vand.u32 4294901760, %v10571_v13  ;;  %3715 = vmatpush.msrb.mxu0 %v10777_v52 }
 0x265   :  { %v5705_v10 = vsub.s32 32, %v5704_v21  ;;  %v5707_v23 = vshll.u32 %v13050_v45, %v5704_v21  ;;  %v13159_v1 = vmov 2475754826   ;;  %v5663_v5 = vmul.f32 %v10826_v17, %v10826_v17  ;;  %3680 = vmatpush.msra.mxu3 %v10490_v11  ;;  %v13162_v11 = vld [vmem:[#allocation30_spill] sm:$0xff]  ;;  %3782 = vmatpush.msrb.mxu1 %v3781_v58 }
 0x266   :  { %3651 = vmatpush.msra.mxu2 %v13158_v28  ;;  %v5710_v22 = vshll.u32 %v13159_v1, %v5704_v21  ;;  %v13160_v41 = vmov 2131351028   ;;  %v13161_v43 = vmov 2102212464   ;;  %v5719_v49 = vshll.u32 %v13118_v7, %v5704_v21  ;;  %3717 = vmatpush.msrb.mxu0 %v10821_v46 }
 0x267   :  { %3653 = vmatmul.f32.vlgmr.msra.gmra.mxu2 %v13121_v24  ;;  %v5713_v34 = vshll.u32 %v13160_v41, %v5704_v21  ;;  %v5716_v60 = vshll.u32 %v13161_v43, %v5704_v21  ;;  %v5706_v54 = vshrl.u32 %v13050_v45, %v5705_v10  ;;  %v5708_v13 = vshrl.u32 %v13159_v1, %v5705_v10 }
 0x268   :  { %3838 = vmatpush.msrb.mxu2 %v10602_v0  ;;  %v5711_v28 = vshrl.u32 %v13160_v41, %v5705_v10  ;;  %v5664_v44 = vmul.f32 -0.001358992, %v5663_v5  ;;  %v5671_v53 = vmul.f32 -0.00019511016, %v5663_v5  ;;  %v5714_v38 = vshrl.u32 %v13161_v43, %v5705_v10  ;;  %3682 = vmatpush.msra.mxu3 %v13162_v11 }
 0x269   :  { %v5717_v57 = vshrl.u32 %v13118_v7, %v5705_v10  ;;  %v5709_v21 = vor.u32 %v5708_v13, %v5707_v23  ;;  %v13163_v1 = vmov 1326507024   ;;  %vm5722_vm4 = vcmp.lt.s32.totalorder %v10807_v59, 1  ;;  %v99_v13 = vld [vmem:[#allocation5 + $0xb8] sm:$0xff] }
 0x26a   :  { %3841 = vmatpush.msrb.mxu2 %v10617_v6  ;;  %v5712_v45 = vor.u32 %v5711_v28, %v5710_v22  ;;  %v5720_v29 = vshrl.u32 %v13163_v1, %v5705_v10  ;;  %v5665_v26 = vadd.f32 0.041655596, %v5664_v44  ;;  %v5672_v41 = vadd.f32 0.008332121, %v5671_v53  ;;  %3684 = vmatpush.msra.mxu3 %v10527_v14 }
 0x26b   :  { %v5715_v61 = vor.u32 %v5714_v38, %v5713_v34  ;;  %v5718_v0 = vor.u32 %v5717_v57, %v5716_v60  ;;  %vm5723_vm5 = vcmp.lt.s32.totalorder %v10807_v59, 2  ;;  %vm5724_vm6 = vcmp.lt.s32.totalorder %v10807_v59, 3 }
 0x26c   :  { %3844 = vmatpush.msrb.mxu2 %v10644_v4  ;;  %v5721_v50 = vor.u32 %v5720_v29, %v5719_v49  ;;  %vm5725_vm7 = vcmp.lt.s32.totalorder %v10807_v59, 4  ;;  %v5666_v10 = vmul.f32 %v5665_v26, %v5663_v5  ;;  %v5673_v23 = vmul.f32 %v5672_v41, %v5663_v5  ;;  %3686 = vmatpush.msra.mxu3 %v10539_v32 }
 0x26d   :  { %v5727_v44 = vsel %vm5725_vm7, %v5715_v61, 2102212464  ;;  %v5730_v57 = vsel %vm5722_vm4, %v5709_v21, %v5712_v45  ;;  %vm5685_vm9 = vcmp.eq.s32.totalorder %v10787_v62, 2  ;;  %v5726_v14 = vsel %vm5722_vm4, %v5706_v54, %v5709_v21 }
 0x26e   :  { %v5731_v29 = vsel %vm5725_vm7, %v5718_v0, 920167782  ;;  %v5734_v58 = vsel %vm5722_vm4, %v5712_v45, %v5715_v61  ;;  %v5735_v49 = vsel %vm5725_vm7, %v5721_v50, 1326507024  ;;  %3847 = vmatpush.msrb.mxu2 %v10668_v25  ;;  %v5667_v26 = vadd.f32 -0.4999988, %v5666_v10  ;;  %3688 = vmatpush.msra.mxu3 %v10555_v19 }
 0x26f   :  { %v5674_v53 = vadd.f32 -0.16666654, %v5673_v23  ;;  %v5728_v38 = vsel %vm5724_vm6, %v5712_v45, %v5727_v44  ;;  %v5732_v22 = vsel %vm5724_vm6, %v5715_v61, %v5731_v29  ;;  %vm5682_vm8 = vcmp.eq.s32.totalorder %v10787_v62, 0  ;;  %3690 = vmatmul.f32.vlgmr.msra.gmra.mxu3 %v13121_v24 }
 0x270   :  { %v5733_v32 = vsel %vm5723_vm5, %v5730_v57, %v5732_v22  ;;  %v5736_v41 = vsel %vm5724_vm6, %v5718_v0, %v5735_v49  ;;  %v13164_v34 = vor.u32 8388608, %v10795_v12  ;;  %3850 = vmatpush.msrb.mxu2 %v10697_v20  ;;  %v3787_v45 = vand.u32 4294901760, %v10815_v15  ;;  %3891 = vmatpush.msrb.mxu3 %v10588_v35 }
 0x271   :  { %v5668_v54 = vmul.f32 %v5667_v26, %v5663_v5  ;;  %v5675_v61 = vmul.f32 %v5674_v53, %v5663_v5  ;;  %vm5681_vm10 = vcmp.lt.s32.totalorder %v10787_v62, 2  ;;  %v13165_v19 = vperm.slane %v13133_v63, 5 }
 0x272   :  { %v10880_v60 = vshll.u32 %v13164_v34, 8  ;;  %v5737_v0 = vsel %vm5723_vm5, %v5734_v58, %v5736_v41  ;;  %v5763_v12 = vand.u32 65535, %v5733_v32  ;;  %vm5678_vm12 = vweird.f32 %v10272_v48  ;;  %3853 = vmatpush.msrb.mxu2 %v10722_v9  ;;  %3788 = vmatpush.msrb.mxu1 %v3787_v45 }
 0x273   :  { %vm10887_vm11 = vcmp.eq.s32.totalorder %v13165_v19, 1  ;;  %v5741_v28 = vand.u32 65535, %v5737_v0  ;;  %v5742_v11 = vshrl.u32 %v5737_v0, 16  ;;  %v5669_v21 = vadd.f32 1.0, %v5668_v54  ;;  %3893 = vmatpush.msrb.mxu3 %v10604_v2 }
 0x274   :  { %v5739_v15 = vand.u32 65535, %v10880_v60  ;;  %v5740_v5 = vshrl.u32 %v10880_v60, 16  ;;  %v5676_v50 = vadd.f32 1.0, %v5675_v61  ;;  %v10901_v10 = vsel %vm5723_vm5, %v5726_v14, %v5728_v38  ;;  %3856 = vmatpush.msrb.mxu2 %v10737_v56 }
 0x275   :  { %v5764_v23 = vshrl.u32 %v5733_v32, 16  ;;  %v5686_v26 = vxor.u32 2147483648, %v5669_v21  ;;  %3895 = vmatpush.msrb.mxu3 %v10625_v37 }
 0x276   :  { %v5743_v44 = vmul.u32 %v5741_v28, %v5739_v15  ;;  %v5744_v57 = vmul.u32 %v5742_v11, %v5739_v15  ;;  %v10904_v29 = vmul.u32 %v5741_v28, %v5740_v5  ;;  %v5746_v58 = vmul.u32 %v5742_v11, %v5740_v5  ;;  %3859 = vmatpush.msrb.mxu2 %v10753_v3 }
 0x277   :  { %v5677_v49 = vmul.f32 %v5676_v50, %v10826_v17  ;;  %v5765_v53 = vmul.u32 %v5763_v12, %v5739_v15  ;;  %v10907_v22 = vmul.u32 %v5764_v23, %v5739_v15  ;;  %v10915_v45 = vmul.u32 %v5763_v12, %v5740_v5  ;;  %3897 = vmatpush.msrb.mxu3 %v10646_v8 }
 0x278   :  { %v5747_v59 = vshll.u32 %v5744_v57, 16  ;;  %v5748_v14 = vshrl.u32 %v5744_v57, 16  ;;  %v5749_v38 = vshll.u32 %v10904_v29, 16  ;;  %v5750_v32 = vshrl.u32 %v10904_v29, 16  ;;  %3862 = vmatpush.msrb.mxu2 %v10767_v40  ;;  %v125_v29 = vld [vmem:[#allocation5 + $0x188] sm:$0xff] }
 0x279   :  { %v5683_v41 = vxor.u32 2147483648, %v5677_v49  ;;  %v5687_v34 = vsel %vm5685_vm9, %v5686_v26, %v5677_v49  ;;  %v5768_v17 = vmul.u32 %v5764_v23, %v5740_v5  ;;  %v5769_v61 = vshll.u32 %v10907_v22, 16  ;;  %3899 = vmatpush.msrb.mxu3 %v10679_v16  ;;  %v13169_v49 = vld [vmem:[#allocation29_spill] sm:$0xff] }
 0x27a   :  { %vm5751_vm13 = vc.u32 %v5743_v44, %v5747_v59  ;;  %v5753_v54 = vadd.s32 %v5747_v59, %v5743_v44  ;;  %v5770_v19 = vshrl.u32 %v10907_v22, 16  ;;  %v13168_v15 = vmov 0   ;;  %3865 = vmatpush.msrb.mxu2 %v10801_v51  ;;  %v112_v59 = vld [vmem:[#allocation5 + $0x120] sm:$0xff] }
 0x27b   :  { %v5684_v0 = vsel %vm5682_vm8, %v5669_v21, %v5683_v41  ;;  %v5752_v28 = vsel %vm5751_vm13, 1, %v13168_v15  ;;  %v5771_v11 = vshll.u32 %v10915_v45, 16  ;;  %v5772_v12 = vshrl.u32 %v10915_v45, 16  ;;  %3901 = vmatpush.msrb.mxu3 %v10689_v33 }
 0x27c   :  { %v5688_v5 = vsel %vm5681_vm10, %v5684_v0, %v5687_v34  ;;  %v5754_v50 = vadd.s32 %v5752_v28, %v5746_v58  ;;  %vm5755_vm14 = vc.u32 %v5753_v54, %v5749_v38  ;;  %vm5773_vm1 = vc.u32 %v5765_v53, %v5769_v61  ;;  %3868 = vmatpush.msrb.mxu2 %v10818_v55  ;;  %v86_v0 = vld [vmem:[#allocation5 + $0x50] sm:$0xff] }
 0x27d   :  { %v5689_v23 = vsel %vm5678_vm12, nan, %v5688_v5  ;;  %v5756_v21 = vsel %vm5755_vm14, 1, %v13168_v15  ;;  %v5774_v44 = vsel %vm5773_vm1, 1, %v13168_v15  ;;  %v5775_v57 = vadd.s32 %v5769_v61, %v5765_v53  ;;  %3903 = vmatpush.msrb.mxu3 %v10724_v47  ;;  %v2709_v61 = vpop.f32.mrf.mxu2 }
 0x27e   :  { %v6812_v62 = vsel %vm10887_vm11, %v13169_v49, %v5689_v23  ;;  %v5758_v58 = vadd.s32 %v5756_v21, %v5754_v50  ;;  %v5776_v26 = vadd.s32 %v5774_v44, %v5768_v17  ;;  %v13170_v22 = vand.u32 4294901760, %v10801_v51  ;;  %v2810_v23 = vpop.f32.mrf.mxu3  ;;  %v282_v49 = vld [vmem:[#allocation5 + $0x670] sm:$0xff] }
 0x27f   :  { %v6834_v38 = vrot.slane %v6812_v62, 4  ;;  %vm5777_vm15 = vc.u32 %v5775_v57, %v5771_v11  ;;  %v10942_v41 = vadd.s32 %v5775_v57, %v5771_v11  ;;  %v10947_v53 = vsub.f32 %v10797_v27, %v10821_v46  ;;  %3905 = vmatpush.msrb.mxu3 %v10739_v31 }
 0x280   :  { %v3792_v48 = vsub.f32 %v10801_v51, %v13170_v22  ;;  %v5759_v34 = vadd.s32 %v5758_v58, %v5748_v14  ;;  %v5778_v45 = vsel %vm5777_vm15, 1, %v13168_v15  ;;  %v10951_v54 = vand.u32 4294901760, %v125_v29 }
 0x281   :  { %v13171_v28 = vsel %vm10652_vm2, %v13153_v18, %v10683_v30  ;;  %v5780_v27 = vadd.s32 %v5778_v45, %v5776_v26  ;;  %3871 = vmatpush.msrb.mxu2 %v10947_v53  ;;  %v12700_v14 = vand.u32 4294901760, %v10818_v55  ;;  %v10961_v5 = vand.u32 4294901760, %v112_v59  ;;  %3907 = vmatpush.msrb.mxu3 %v10755_v36 }
 0x282   :  { %v3793_v17 = vand.u32 4294901760, %v3792_v48  ;;  %v6841_v11 = vsel %vm6838_vm0, %v13171_v28, %v6834_v38  ;;  %v10963_v50 = vadd.s32 %v5759_v34, %v5750_v32  ;;  %v10967_v39 = vsub.f32 %v125_v29, %v10951_v54  ;;  %3719 = vmatpush.msrb.mxu0 %v10951_v54  ;;  %v2864_v34 = vpop.f32.mrf.mxu0 }
 0x283   :  { %6853 = vst [vmem:[#allocation10 + $0x10] sm:$0xff] %v6841_v11  ;;  %v12699_v30 = vand.u32 4294901760, %v10947_v53  ;;  %v10970_v18 = vand.u32 4294901760, %v99_v13  ;;  %v5781_v21 = vadd.s32 %v5780_v27, %v5770_v19  ;;  %v3798_v44 = vsub.f32 %v10818_v55, %v12700_v14  ;;  %3909 = vmatpush.msrb.mxu3 %v10770_v42  ;;  %v256_v11 = vld [vmem:[#allocation5 + $0x5a0] sm:$0xff] }
 0x284   :  { %3794 = vmatpush.msrb.mxu1 %v3793_v17  ;;  %v10977_v32 = vsub.f32 %v112_v59, %v10961_v5  ;;  %v10979_v57 = vand.u32 4294901760, %v86_v0  ;;  %v5783_v29 = vmul.u32 %v10880_v60, %v10901_v10  ;;  %vm5785_vm2 = vc.u32 %v10963_v50, %v10942_v41  ;;  %3874 = vmatpush.msrb.mxu2 %v10967_v39  ;;  %v269_v10 = vld [vmem:[#allocation5 + $0x608] sm:$0xff] }
 0x285   :  { %v3804_v19 = vsub.f32 %v10947_v53, %v12699_v30  ;;  %v12698_v62 = vand.u32 4294901760, %v10967_v39  ;;  %v5782_v58 = vadd.s32 %v5781_v21, %v5772_v12  ;;  %v3799_v26 = vand.u32 4294901760, %v3798_v44  ;;  %3721 = vmatpush.msrb.mxu0 %v10961_v5  ;;  %3911 = vmatpush.msrb.mxu3 %v10777_v52  ;;  %v13174_v30 = vld [vmem:[#allocation31_spill] sm:$0xff] }
 0x286   :  { %v10993_v22 = vsub.f32 %v99_v13, %v10970_v18  ;;  %v12697_v60 = vand.u32 4294901760, %v10977_v32  ;;  %3877 = vmatpush.msrb.mxu2 %v10977_v32  ;;  %v11002_v12 = vsub.f32 %v86_v0, %v10979_v57  ;;  %v11004_v38 = vand.u32 4294901760, %v282_v49 }
 0x287   :  { %v3805_v48 = vand.u32 4294901760, %v3804_v19  ;;  %v3810_v59 = vsub.f32 %v10967_v39, %v12698_v62  ;;  %v5786_v13 = vadd.s32 1, %v5782_v58  ;;  %3800 = vmatpush.msrb.mxu1 %v3799_v26  ;;  %3723 = vmatpush.msrb.mxu0 %v10970_v18  ;;  %v2811_v17 = vadd.f32 %v2810_v23, %v2709_v61  ;;  %v2903_v19 = vpop.f32.mrf.mxu1  ;;  %v243_v26 = vld [vmem:[#allocation5 + $0x538] sm:$0xff] }
 0x288   :  { %13172 = vst [vmem:[#allocation42_spill] sm:$0xff] %v11004_v38  ;;  %v3816_v45 = vsub.f32 %v10977_v32, %v12697_v60  ;;  %v12701_v28 = vand.u32 4294901760, %v10993_v22  ;;  %3880 = vmatpush.msrb.mxu2 %v10993_v22  ;;  %v11014_v0 = vsub.f32 %v282_v49, %v11004_v38  ;;  %v11016_v21 = vand.u32 4294901760, %v269_v10  ;;  %3913 = vmatpush.msrb.mxu3 %v10821_v46 }
 0x289   :  { %v3811_v27 = vand.u32 4294901760, %v3810_v59  ;;  %v12702_v44 = vand.u32 4294901760, %v11002_v12  ;;  %v5787_v61 = vsel %vm5785_vm2, %v5786_v13, %v5782_v58  ;;  %3806 = vmatpush.msrb.mxu1 %v3805_v48  ;;  %3725 = vmatpush.msrb.mxu0 %v10979_v57  ;;  %v2865_v49 = vadd.f32 %v2864_v34, %v2811_v17  ;;  %v2972_v13 = vpop.f32.mrf.mxu2 }
 0x28a   :  { %13173 = vst [vmem:[#allocation41_spill] sm:$0xff] %v11016_v21  ;;  %v3817_v23 = vand.u32 4294901760, %v3816_v45  ;;  %v3822_v59 = vsub.f32 %v10993_v22, %v12701_v28  ;;  %v5788_v60 = vadd.s32 %v5787_v61, %v5783_v29  ;;  %3883 = vmatpush.msrb.mxu2 %v11002_v12  ;;  %v12706_v62 = vand.u32 4294901760, %v11014_v0  ;;  %v230_v45 = vld [vmem:[#allocation5 + $0x4d0] sm:$0xff]  ;;  %3915 = vmatpush.msrb.mxu3 %v10951_v54 }
 0x28b   :  { %v3828_v58 = vsub.f32 %v11002_v12, %v12702_v44  ;;  %v11032_v48 = vand.u32 4294901760, %v256_v11  ;;  %3812 = vmatpush.msrb.mxu1 %v3811_v27  ;;  %v13175_v14 = vand.u32 4294901760, %v13174_v30  ;;  %v11037_v29 = vsub.f32 %v269_v10, %v11016_v21 }
 0x28c   :  { %v3823_v34 = vand.u32 4294901760, %v3822_v59  ;;  %v2904_v17 = vadd.f32 %v2903_v19, %v2865_v49  ;;  %v11039_v61 = vand.u32 4294901760, %v243_v26  ;;  %v5789_v28 = vadd.s32 536870912, %v5788_v60  ;;  %4036 = vmatpush.msra.mxu2 %v11004_v38  ;;  %3917 = vmatpush.msrb.mxu3 %v10961_v5 }
 0x28d   :  { %3932 = vmatpush.msra.mxu0 %v13175_v14  ;;  %v4079_v44 = vsub.f32 %v11014_v0, %v12706_v62  ;;  %v3829_v27 = vand.u32 4294901760, %v3828_v58  ;;  %v11047_v30 = vsub.f32 %v256_v11, %v11032_v48  ;;  %v3009_v14 = vpop.f32.mrf.mxu3  ;;  %3818 = vmatpush.msrb.mxu1 %v3817_v23  ;;  %v13176_v10 = vand.u32 4294901760, %v10617_v6  ;;  %v13177_v23 = vld [vmem:[#allocation36_spill] sm:$0xff]  ;;  %v217_v6 = vld [vmem:[#allocation5 + $0x468] sm:$0xff]  ;;  %v204_v62 = vld [vmem:[#allocation5 + $0x400] sm:$0xff] }
 0x28e   :  { %v12709_v19 = vand.u32 4294901760, %v11037_v29  ;;  %v2973_v59 = vadd.f32 %v2972_v13, %v2904_v17  ;;  %v11052_v49 = vand.u32 4294901760, %v230_v45  ;;  %v11055_v63 = vsub.f32 %v243_v26, %v11039_v61  ;;  %4038 = vmatpush.msra.mxu2 %v11016_v21  ;;  %3919 = vmatpush.msrb.mxu3 %v10970_v18 }
 0x28f   :  { %3936 = vmatpush.msra.mxu0 %v13176_v10  ;;  %v11057_v38 = vshrl.u32 %v5789_v28, 30  ;;  %v12711_v11 = vand.u32 4294901760, %v11047_v30  ;;  %v4728_v58 = vperm.slane %v13177_v23, 7  ;;  %3824 = vmatpush.msrb.mxu1 %v3823_v34  ;;  %v4080_v10 = vand.u32 4294901760, %v4079_v44 }
 0x290   :  { %v13178_v13 = vand.u32 4294901760, %v10644_v4  ;;  %v4085_v26 = vsub.f32 %v11037_v29, %v12709_v19  ;;  %v12710_v28 = vand.u32 4294901760, %v11055_v63  ;;  %v11069_v17 = vadd.f32 %v3009_v14, %v2973_v59  ;;  %4040 = vmatpush.msra.mxu2 %v11032_v48  ;;  %3921 = vmatpush.msrb.mxu3 %v10979_v57 }
 0x291   :  { %v5791_v21 = vshll.u32 %v11057_v38, 30  ;;  %v4091_v4 = vsub.f32 %v11047_v30, %v12711_v11  ;;  %v11078_v44 = vsub.f32 %v230_v45, %v11052_v49  ;;  %3830 = vmatpush.msrb.mxu1 %v3829_v27  ;;  %v13180_v23 = vand.u32 4294901760, %v10668_v25 }
 0x292   :  { %3940 = vmatpush.msra.mxu0 %v13178_v13  ;;  %13179 = vst [vmem:[#allocation19_spill] sm:$0xff] %v11069_v17  ;;  %v4086_v34 = vand.u32 4294901760, %v4085_v26  ;;  %v4097_v14 = vsub.f32 %v11055_v63, %v12710_v28  ;;  %v11086_v59 = vadd.f32 %v4728_v58, %v11069_v17  ;;  %v11088_v13 = vand.u32 4294901760, %v217_v6  ;;  %4081 = vmatpush.msra.mxu3 %v4080_v10 }
 0x293   :  { %v11090_v19 = vsub.s32 %v5788_v60, %v5791_v21  ;;  %3999 = vmatpush.msra.mxu1 %v10588_v35  ;;  %v12712_v45 = vand.u32 4294901760, %v11078_v44  ;;  %v11095_v27 = vand.u32 4294901760, %v204_v62  ;;  %4042 = vmatpush.msra.mxu2 %v11039_v61  ;;  %v4092_v25 = vand.u32 4294901760, %v4091_v4 }
 0x294   :  { %3944 = vmatpush.msra.mxu0 %v13180_v23  ;;  %13181 = vst [vmem:[#allocation43_spill] sm:$0xff] %v11086_v59  ;;  %v12714_v26 = vand.u32 2147483647, %v11086_v59  ;;  %v5848_v58 = vand.u32 2139095040, %v11086_v59  ;;  %v5814_v21 = vsub.s32 4, %v11057_v38  ;;  %v13182_v35 = vand.u32 4294901760, %v10697_v20  ;;  %4087 = vmatpush.msra.mxu3 %v4086_v34 }
 0x295   :  { %vm5793_vm3 = vcmp.lt.s32.totalorder %v11090_v19, 0  ;;  %v5794_v60 = vsub.s32 0, %v11090_v19  ;;  %4001 = vmatpush.msra.mxu1 %v10604_v2  ;;  %v4103_v10 = vsub.f32 %v11078_v44, %v12712_v45  ;;  %4044 = vmatpush.msra.mxu2 %v11052_v49  ;;  %v4098_v4 = vand.u32 4294901760, %v4097_v14  ;;  %v191_v45 = vld [vmem:[#allocation5 + $0x398] sm:$0xff] }
 0x296   :  { %3948 = vmatpush.msra.mxu0 %v13182_v35  ;;  %v5849_v23 = vshrl.u32 %v5848_v58, 23  ;;  %v5852_v28 = vand.u32 8388607, %v12714_v26  ;;  %v11113_v11 = vsub.f32 %v217_v6, %v11088_v13  ;;  %v13183_v20 = vand.u32 4294901760, %v10722_v9  ;;  %4093 = vmatpush.msra.mxu3 %v4092_v25  ;;  %v13184_v26 = vld [vmem:[#allocation40_spill] sm:$0xff] }
 0x297   :  { %v5795_v2 = vsel %vm5793_vm3, %v5794_v60, %v11090_v19  ;;  %4003 = vmatpush.msra.mxu1 %v10625_v37  ;;  %v4104_v35 = vand.u32 4294901760, %v4103_v10  ;;  %v11120_v34 = vsub.f32 %v204_v62, %v11095_v27  ;;  %4046 = vmatpush.msra.mxu2 %v11088_v13  ;;  %vm5692_vm4 = vcmp.lt.s32.totalorder %v13184_v26, 0  ;;  %v11129_v60 = vld [vmem:[#allocation5 + $0x330] sm:$0xff] }
 0x298   :  { %3952 = vmatpush.msra.mxu0 %v13183_v20  ;;  %v5796_v14 = vclz %v5795_v2  ;;  %v6898_v58 = vadd.s32 4294967169, %v5849_v23  ;;  %v5853_v17 = vor.u32 8388608, %v5852_v28  ;;  %v12716_v6 = vand.u32 4294901760, %v11113_v11  ;;  %4099 = vmatpush.msra.mxu3 %v4098_v4  ;;  %v11154_v4 = vld [vmem:[#allocation5 + $0x2c8] sm:$0xff] }
 0x299   :  { %4005 = vmatpush.msra.mxu1 %v10646_v8  ;;  %v13185_v37 = vand.u32 4294901760, %v10737_v56  ;;  %v12715_v9 = vand.u32 4294901760, %v11120_v34  ;;  %v11134_v28 = vsel %vm5692_vm4, %v5814_v21, %v11057_v38  ;;  %4048 = vmatpush.msra.mxu2 %v11095_v27  ;;  %v11137_v10 = vand.u32 4294901760, %v191_v45 }
 0x29a   :  { %v6896_v62 = vadd.s32 4294967294, %v5796_v14  ;;  %v5855_v25 = vadd.s32 1, %v6898_v58  ;;  %v13187_v8 = vand.u32 2147483647, %v13184_v26  ;;  %v4109_v23 = vsub.f32 %v11113_v11, %v12716_v6  ;;  %4105 = vmatpush.msra.mxu3 %v4104_v35  ;;  %3832 = vmatmul.f32.vlgmr.msrb.gmra.mxu1 %v13121_v24 }
 0x29b   :  { %3956 = vmatpush.msra.mxu0 %v13185_v37  ;;  %13186 = vst [vmem:[#allocation49_spill] sm:$0xff] %v11137_v10  ;;  %4007 = vmatpush.msra.mxu1 %v10679_v16  ;;  %v13190_v38 = vand.u32 4294901760, %v10753_v3  ;;  %v4115_v21 = vsub.f32 %v11120_v34, %v12715_v9  ;;  %v11156_v2 = vshll.u32 %v5853_v17, 8  ;;  %v11160_v16 = vand.u32 4294901760, %v11129_v60 }
 0x29c   :  { %vm11141_vm5 = vcmp.le.f32.partialorder %v13187_v8, 0.7853982  ;;  %vm6897_vm6 = vcmp.lt.s32.totalorder %v6896_v62, 0  ;;  %vm5856_vm7 = vcmp.gt.s32.totalorder %v5855_v25, 0  ;;  %4050 = vmatpush.msra.mxu2 %v11137_v10  ;;  %v5784_v3 = vadd.s32 %v10942_v41, %v10963_v50  ;;  %v13192_v41 = vld [vmem:[#allocation23_spill] sm:$0xff] }
 0x29d   :  { %3960 = vmatpush.msra.mxu0 %v13190_v38  ;;  %v5799_v20 = vsel %vm6897_vm6, 0, %v6896_v62  ;;  %v5857_v58 = vsel %vm5856_vm7, %v5855_v25, 0  ;;  %4009 = vmatpush.msra.mxu1 %v10689_v33  ;;  %v13191_v17 = vand.u32 4294901760, %v10767_v40  ;;  %v11174_v38 = vand.u32 4294901760, %v11154_v4 }
 0x29e   :  { %v5800_v35 = vsub.s32 32, %v5799_v20  ;;  %v5804_v37 = vsub.s32 4294967266, %v5799_v20  ;;  %v11170_v8 = vshrl.u32 %v5857_v58, 5  ;;  %4052 = vmatpush.msra.mxu2 %v11160_v16  ;;  %3731 = vmatmul.f32.vlgmr.msrb.gmra.mxu0 %v13192_v41  ;;  %v5859_v50 = vand.u32 31, %v5857_v58  ;;  %v13194_v58 = vld [vmem:[#allocation22_spill] sm:$0xff] }
 0x29f   :  { %3964 = vmatpush.msra.mxu0 %v13191_v17  ;;  %v4110_v62 = vand.u32 4294901760, %v4109_v23  ;;  %v4116_v9 = vand.u32 4294901760, %v4115_v21  ;;  %4011 = vmatpush.msra.mxu1 %v10724_v47  ;;  %v11179_v33 = vsub.f32 %v191_v45, %v11137_v10  ;;  %v13193_v40 = vand.u32 4294901760, %v10801_v51 }
 0x2a0   :  { %v5801_v25 = vshll.u32 %v11090_v19, %v5799_v20  ;;  %v5802_v17 = vshrl.u32 %v5784_v3, %v5800_v35  ;;  %v5805_v6 = vadd.s32 127, %v5804_v37  ;;  %v11185_v14 = vand.u32 65535, %v11156_v2  ;;  %4054 = vmatpush.msra.mxu2 %v11174_v38  ;;  %3925 = vmatmul.f32.vlgmr.msrb.gmra.mxu3 %v13194_v58  ;;  %v13199_v35 = vld [vmem:[#allocation21_spill] sm:$0xff] }
 0x2a1   :  { %3968 = vmatpush.msra.mxu0 %v13193_v40  ;;  %v5860_v23 = vsub.s32 32, %v5859_v50  ;;  %v13195_v21 = vmov 683565275   ;;  %v13196_v41 = vmov 2475754826   ;;  %4111 = vmatpush.msra.mxu3 %v4110_v62  ;;  %v5871_v3 = vshll.u32 %v13161_v43, %v5859_v50 }
 0x2a2   :  { %v5862_v47 = vshll.u32 %v13195_v21, %v5859_v50  ;;  %v5865_v45 = vshll.u32 %v13196_v41, %v5859_v50  ;;  %v13197_v10 = vmov 2131351028   ;;  %4013 = vmatpush.msra.mxu1 %v10739_v31  ;;  %v5803_v51 = vor.u32 %v5802_v17, %v5801_v25  ;;  %3886 = vmatmul.f32.vlgmr.msrb.gmra.mxu2 %v13199_v35 }
 0x2a3   :  { %v5868_v59 = vshll.u32 %v13197_v10, %v5859_v50  ;;  %v5806_v19 = vshll.u32 %v5805_v6, 23  ;;  %vm5877_vm9 = vcmp.lt.s32.totalorder %v11170_v8, 1  ;;  %v13198_v20 = vand.u32 4294901760, %v10818_v55  ;;  %4117 = vmatpush.msra.mxu3 %v4116_v9 }
 0x2a4   :  { %v5861_v37 = vshrl.u32 %v13195_v21, %v5860_v23  ;;  %v5863_v40 = vshrl.u32 %v13196_v41, %v5860_v23  ;;  %v5866_v58 = vshrl.u32 %v13197_v10, %v5860_v23  ;;  %v5869_v62 = vshrl.u32 %v13161_v43, %v5860_v23  ;;  %4015 = vmatpush.msra.mxu1 %v10755_v36 }
 0x2a5   :  { %3972 = vmatpush.msra.mxu0 %v13198_v20  ;;  %v5807_v31 = vor.u32 4788187, %v5806_v19  ;;  %v5810_v6 = vcvt.s32.f32 %v5803_v51  ;;  %v5872_v25 = vshrl.u32 %v13118_v7, %v5860_v23  ;;  %vm5878_vm8 = vcmp.lt.s32.totalorder %v11170_v8, 2 }
 0x2a6   :  { %v13200_v55 = vand.u32 4294901760, %v10947_v53  ;;  %v5864_v17 = vor.u32 %v5863_v40, %v5862_v47  ;;  %v5867_v20 = vor.u32 %v5866_v58, %v5865_v45  ;;  %v5870_v21 = vor.u32 %v5869_v62, %v5868_v59  ;;  %4017 = vmatpush.msra.mxu1 %v10770_v42 }
 0x2a7   :  { %v5874_v41 = vshll.u32 %v13118_v7, %v5859_v50  ;;  %v5808_v43 = vand.u32 2147483647, %v5807_v31  ;;  %v5873_v9 = vor.u32 %v5872_v25, %v5871_v3  ;;  %v5875_v51 = vshrl.u32 %v13163_v1, %v5860_v23 }
 0x2a8   :  { %3976 = vmatpush.msra.mxu0 %v13200_v55  ;;  %vm5879_vm10 = vcmp.lt.s32.totalorder %v11170_v8, 3  ;;  %v13201_v36 = vand.u32 4294901760, %v10967_v39  ;;  %vm5880_vm11 = vcmp.lt.s32.totalorder %v11170_v8, 4  ;;  %v5881_v53 = vsel %vm5877_vm9, %v5861_v37, %v5864_v17  ;;  %4019 = vmatpush.msra.mxu1 %v10777_v52 }
 0x2a9   :  { %v5885_v59 = vsel %vm5877_vm9, %v5864_v17, %v5867_v20  ;;  %v5889_v50 = vsel %vm5877_vm9, %v5867_v20, %v5870_v21  ;;  %v5811_v58 = vmul.f32 %v5810_v6, %v5808_v43  ;;  %v5876_v23 = vor.u32 %v5875_v51, %v5874_v41 }
 0x2aa   :  { %3980 = vmatpush.msra.mxu0 %v13201_v36  ;;  %v5882_v47 = vsel %vm5880_vm11, %v5870_v21, 2102212464  ;;  %v5886_v42 = vsel %vm5880_vm11, %v5873_v9, 920167782  ;;  %v13202_v39 = vand.u32 4294901760, %v10977_v32  ;;  %v12730_v43 = vand.u32 4294901760, %v11179_v33  ;;  %4021 = vmatpush.msra.mxu1 %v10821_v46 }
 0x2ab   :  { %v5883_v45 = vsel %vm5879_vm10, %v5867_v20, %v5882_v47  ;;  %v5887_v19 = vsel %vm5879_vm10, %v5870_v21, %v5886_v42  ;;  %v11235_v41 = vsub.f32 %v11129_v60, %v11160_v16  ;;  %v5812_v3 = vxor.u32 2147483648, %v5811_v58 }
 0x2ac   :  { %3984 = vmatpush.msra.mxu0 %v13202_v39  ;;  %v5888_v37 = vsel %vm5878_vm8, %v5885_v59, %v5887_v19  ;;  %v5890_v52 = vsel %vm5880_vm11, %v5876_v23, 1326507024  ;;  %v5895_v32 = vshrl.u32 %v11156_v2, 16  ;;  %v13203_v40 = vand.u32 4294901760, %v10993_v22  ;;  %4023 = vmatpush.msra.mxu1 %v10951_v54 }
 0x2ad   :  { %v11247_v21 = vsel %vm5878_vm8, %v5881_v53, %v5883_v45  ;;  %v5891_v60 = vsel %vm5879_vm10, %v5873_v9, %v5890_v52  ;;  %v5918_v62 = vand.u32 65535, %v5888_v37  ;;  %v5919_v31 = vshrl.u32 %v5888_v37, 16 }
 0x2ae   :  { %3988 = vmatpush.msra.mxu0 %v13203_v40  ;;  %v5813_v6 = vsel %vm5692_vm4, %v5812_v3, %v5811_v58  ;;  %v13204_v25 = vsel %vm11141_vm5, 0, %v11134_v28  ;;  %v5892_v22 = vsel %vm5878_vm8, %v5889_v50, %v5891_v60  ;;  %v11264_v55 = vsub.f32 %v11179_v33, %v12730_v43  ;;  %4025 = vmatpush.msra.mxu1 %v10961_v5 }
 0x2af   :  { %v11257_v46 = vadd.s32 3, %v13204_v25  ;;  %v13205_v17 = vand.u32 4294901760, %v11002_v12  ;;  %v11272_v20 = vsel %vm11141_vm5, %v13184_v26, %v5813_v6  ;;  %v5896_v28 = vand.u32 65535, %v5892_v22  ;;  %v13206_v6 = vld [vmem:[#allocation42_spill] sm:$0xff] }
 0x2b0   :  { %v5897_v9 = vshrl.u32 %v5892_v22, 16  ;;  %v12729_v8 = vand.u32 4294901760, %v11235_v41  ;;  %v11278_v51 = vmul.f32 %v11272_v20, %v11272_v20  ;;  %v5920_v54 = vmul.u32 %v5918_v62, %v11185_v14  ;;  %4027 = vmatpush.msra.mxu1 %v10970_v18  ;;  %v152_v22 = vld [vmem:[#allocation5 + $0x260] sm:$0xff] }
 0x2b1   :  { %3992 = vmatpush.msra.mxu0 %v13205_v17  ;;  %v5921_v12 = vmul.u32 %v5919_v31, %v11185_v14  ;;  %v11282_v36 = vmul.u32 %v5918_v62, %v5895_v32  ;;  %v5898_v56 = vmul.u32 %v5896_v28, %v11185_v14  ;;  %v11287_v59 = vmul.u32 %v5896_v28, %v5895_v32 }
 0x2b2   :  { %v5899_v53 = vmul.u32 %v5897_v9, %v11185_v14  ;;  %v5923_v50 = vmul.u32 %v5919_v31, %v5895_v32  ;;  %3994 = vmatmul.f32.vlgmr.msra.gmra.mxu0 %v13121_v24  ;;  %v5819_v58 = vmul.f32 -0.001358992, %v11278_v51  ;;  %v5826_v23 = vmul.f32 -0.00019511016, %v11278_v51  ;;  %4029 = vmatpush.msra.mxu1 %v10979_v57 }
 0x2b3   :  { %4179 = vmatpush.msrb.mxu0 %v11014_v0  ;;  %v5901_v47 = vmul.u32 %v5897_v9, %v5895_v32  ;;  %v5924_v42 = vshll.u32 %v5921_v12, 16  ;;  %v5904_v45 = vshll.u32 %v11287_v59, 16  ;;  %v5925_v14 = vshrl.u32 %v5921_v12, 16  ;;  %4031 = vmatmul.f32.vlgmr.msra.gmra.mxu1 %v13121_v24  ;;  %v139_v12 = vld [vmem:[#allocation5 + $0x1f8] sm:$0xff] }
 0x2b4   :  { %v5902_v5 = vshll.u32 %v5899_v53, 16  ;;  %v5903_v39 = vshrl.u32 %v5899_v53, 16  ;;  %v5820_v19 = vadd.f32 0.041655596, %v5819_v58  ;;  %v5827_v3 = vadd.f32 0.008332121, %v5826_v23  ;;  %4232 = vmatpush.msrb.mxu1 %v13206_v6 }
 0x2b5   :  { %4182 = vmatpush.msrb.mxu0 %v11037_v29  ;;  %v5905_v37 = vshrl.u32 %v11287_v59, 16  ;;  %v5926_v52 = vshll.u32 %v11282_v36, 16  ;;  %vm5928_vm13 = vc.u32 %v5920_v54, %v5924_v42  ;;  %v5930_v18 = vadd.s32 %v5924_v42, %v5920_v54 }
 0x2b6   :  { %vm5906_vm12 = vc.u32 %v5898_v56, %v5902_v5  ;;  %v5908_v32 = vadd.s32 %v5902_v5, %v5898_v56  ;;  %v5821_v40 = vmul.f32 %v5820_v19, %v11278_v51  ;;  %v5828_v60 = vmul.f32 %v5827_v3, %v11278_v51  ;;  %v13207_v56 = vld [vmem:[#allocation41_spill] sm:$0xff]  ;;  %v126_v5 = vld [vmem:[#allocation5 + $0x190] sm:$0xff] }
 0x2b7   :  { %4185 = vmatpush.msrb.mxu0 %v11047_v30  ;;  %v5907_v62 = vsel %vm5906_vm12, 1, %v13168_v15  ;;  %v5929_v31 = vsel %vm5928_vm13, 1, %v13168_v15  ;;  %vm5932_vm1 = vc.u32 %v5930_v18, %v5926_v52  ;;  %v5927_v9 = vshrl.u32 %v11282_v36, 16  ;;  %4234 = vmatpush.msrb.mxu1 %v13207_v56 }
 0x2b8   :  { %v5909_v57 = vadd.s32 %v5907_v62, %v5901_v47  ;;  %vm5910_vm14 = vc.u32 %v5908_v32, %v5904_v45  ;;  %v5931_v25 = vadd.s32 %v5929_v31, %v5923_v50  ;;  %v5829_v17 = vadd.f32 -0.16666654, %v5828_v60 }
 0x2b9   :  { %4188 = vmatpush.msrb.mxu0 %v11055_v63  ;;  %v5911_v28 = vsel %vm5910_vm14, 1, %v13168_v15  ;;  %v5933_v54 = vsel %vm5932_vm1, 1, %v13168_v15  ;;  %v5822_v53 = vadd.f32 -0.4999988, %v5821_v40  ;;  %v4122_v23 = vand.u32 4294901760, %v11264_v55  ;;  %4236 = vmatpush.msrb.mxu1 %v11032_v48  ;;  %v257_v15 = vld [vmem:[#allocation5 + $0x5a8] sm:$0xff] }
 0x2ba   :  { %v5913_v59 = vadd.s32 %v5911_v28, %v5909_v57  ;;  %v5935_v58 = vadd.s32 %v5933_v54, %v5931_v25  ;;  %v5830_v50 = vmul.f32 %v5829_v17, %v11278_v51  ;;  %v11313_v47 = vadd.s32 %v5930_v18, %v5926_v52  ;;  %v113_v57 = vld [vmem:[#allocation5 + $0x128] sm:$0xff]  ;;  %v100_v17 = vld [vmem:[#allocation5 + $0xc0] sm:$0xff] }
 0x2bb   :  { %4191 = vmatpush.msrb.mxu0 %v11078_v44  ;;  %v4127_v36 = vsub.f32 %v11235_v41, %v12729_v8  ;;  %v11318_v42 = vand.u32 4294901760, %v152_v22  ;;  %4123 = vmatpush.msra.mxu3 %v4122_v23  ;;  %v11324_v55 = vsub.f32 %v11154_v4, %v11174_v38  ;;  %v11326_v3 = vand.u32 4294901760, %v139_v12 }
 0x2bc   :  { %v5914_v45 = vadd.s32 %v5913_v59, %v5903_v39  ;;  %v5936_v19 = vadd.s32 %v5935_v58, %v5925_v14  ;;  %v5831_v52 = vadd.f32 1.0, %v5830_v50  ;;  %4238 = vmatpush.msrb.mxu1 %v11039_v61  ;;  %v11336_v60 = vand.u32 4294901760, %v126_v5 }
 0x2bd   :  { %4194 = vmatpush.msrb.mxu0 %v11113_v11  ;;  %v4128_v32 = vand.u32 4294901760, %v4127_v36  ;;  %4056 = vmatpush.msra.mxu2 %v11318_v42  ;;  %v11330_v18 = vsub.f32 %v152_v22, %v11318_v42  ;;  %v12728_v14 = vand.u32 4294901760, %v11324_v55  ;;  %v5823_v4 = vmul.f32 %v5822_v53, %v11278_v51  ;;  %v87_v53 = vld [vmem:[#allocation5 + $0x58] sm:$0xff] }
 0x2be   :  { %v11333_v40 = vadd.s32 %v5914_v45, %v5905_v37  ;;  %v5937_v39 = vadd.s32 %v5936_v19, %v5927_v9  ;;  %v5938_v62 = vmul.u32 %v11156_v2, %v11247_v21  ;;  %v11345_v37 = vsub.f32 %v139_v12, %v11326_v3  ;;  %4240 = vmatpush.msrb.mxu1 %v11052_v49 }
 0x2bf   :  { %4197 = vmatpush.msrb.mxu0 %v11120_v34  ;;  %4129 = vmatpush.msra.mxu3 %v4128_v32  ;;  %v12726_v31 = vand.u32 4294901760, %v11330_v18  ;;  %v11348_v25 = vand.u32 3, %v11257_v46  ;;  %v4133_v2 = vsub.f32 %v11324_v55, %v12728_v14  ;;  %v11358_v21 = vmul.f32 %v5831_v52, %v11272_v20 }
 0x2c0   :  { %4058 = vmatpush.msra.mxu2 %v11326_v3  ;;  %vm5940_vm15 = vc.u32 %v11333_v40, %v11313_v47  ;;  %v5941_v22 = vadd.s32 1, %v5937_v39  ;;  %v12725_v51 = vand.u32 4294901760, %v11345_v37  ;;  %v11365_v54 = vand.u32 4294901760, %v113_v57  ;;  %4242 = vmatpush.msrb.mxu1 %v11088_v13 }
 0x2c1   :  { %4200 = vmatpush.msrb.mxu0 %v11179_v33  ;;  %v4139_v46 = vsub.f32 %v11330_v18, %v12726_v31  ;;  %v4134_v9 = vand.u32 4294901760, %v4133_v2  ;;  %v11368_v12 = vsub.f32 %v126_v5, %v11336_v60  ;;  %v11372_v20 = vadd.f32 1.0, %v5823_v4 }
 0x2c2   :  { %4060 = vmatpush.msra.mxu2 %v11336_v60  ;;  %v5942_v28 = vsel %vm5940_vm15, %v5941_v22, %v5937_v39  ;;  %v4145_v23 = vsub.f32 %v11345_v37, %v12725_v51  ;;  %vm5837_vm2 = vcmp.eq.s32.totalorder %v11348_v25, 0  ;;  %v11380_v36 = vand.u32 4294901760, %v100_v17  ;;  %4244 = vmatpush.msrb.mxu1 %v11095_v27  ;;  %v13208_v22 = vld [vmem:[#allocation43_spill] sm:$0xff] }
 0x2c3   :  { %4203 = vmatpush.msrb.mxu0 %v11235_v41  ;;  %v5943_v59 = vadd.s32 %v5942_v28, %v5938_v62  ;;  %v4140_v58 = vand.u32 4294901760, %v4139_v46  ;;  %4135 = vmatpush.msra.mxu3 %v4134_v9  ;;  %v12724_v50 = vand.u32 4294901760, %v11368_v12  ;;  %v11383_v5 = vsub.f32 %v113_v57, %v11365_v54  ;;  %v13209_v28 = vld [vmem:[#allocation49_spill] sm:$0xff]  ;;  %v283_v9 = vld [vmem:[#allocation5 + $0x678] sm:$0xff] }
 0x2c4   :  { %4062 = vmatpush.msra.mxu2 %v11365_v54  ;;  %vm5836_vm3 = vcmp.lt.s32.totalorder %v11348_v25, 2  ;;  %v5838_v45 = vxor.u32 2147483648, %v11358_v21  ;;  %v4146_v52 = vand.u32 4294901760, %v4145_v23  ;;  %v11387_v32 = vand.u32 4294901760, %v87_v53  ;;  %4246 = vmatpush.msrb.mxu1 %v13209_v28 }
 0x2c5   :  { %v5944_v19 = vadd.s32 536870912, %v5943_v59  ;;  %4206 = vmatpush.msrb.mxu0 %v11324_v55  ;;  %vm5840_vm4 = vcmp.eq.s32.totalorder %v11348_v25, 2  ;;  %4141 = vmatpush.msra.mxu3 %v4140_v58  ;;  %v4151_v39 = vsub.f32 %v11368_v12, %v12724_v50  ;;  %v12727_v4 = vand.u32 4294901760, %v11383_v5 }
 0x2c6   :  { %4064 = vmatpush.msra.mxu2 %v11380_v36  ;;  %v11398_v62 = vsub.f32 %v100_v17, %v11380_v36  ;;  %v5841_v57 = vxor.u32 2147483648, %v11372_v20  ;;  %vm5847_vm5 = vcmp.lt.s32.totalorder %v13208_v22, 0  ;;  %v11403_v46 = vsub.f32 %v87_v53, %v11387_v32  ;;  %4248 = vmatpush.msrb.mxu1 %v11160_v16 }
 0x2c7   :  { %v5945_v2 = vshrl.u32 %v5944_v19, 30  ;;  %4209 = vmatpush.msrb.mxu0 %v11330_v18  ;;  %4147 = vmatpush.msra.mxu3 %v4146_v52  ;;  %v4152_v58 = vand.u32 4294901760, %v4151_v39  ;;  %v4157_v17 = vsub.f32 %v11383_v5, %v12727_v4  ;;  %v11412_v50 = vand.u32 4294901760, %v283_v9  ;;  %v3050_v39 = vpop.f32.mrf.mxu0  ;;  %v270_v4 = vld [vmem:[#allocation5 + $0x610] sm:$0xff] }
 0x2c8   :  { %4066 = vmatpush.msra.mxu2 %v11387_v32  ;;  %v12731_v23 = vand.u32 4294901760, %v11398_v62  ;;  %v5839_v53 = vsel %vm5837_vm2, %v11372_v20, %v5838_v45  ;;  %v13210_v31 = vand.u32 4294901760, %v11014_v0  ;;  %v12738_v52 = vand.u32 4294901760, %v11403_v46  ;;  %4250 = vmatpush.msrb.mxu1 %v11174_v38 }
 0x2c9   :  { %v5946_v19 = vshll.u32 %v5945_v2, 30  ;;  %v5969_v51 = vsub.s32 4, %v5945_v2  ;;  %4153 = vmatpush.msra.mxu3 %v4152_v58  ;;  %v4158_v14 = vand.u32 4294901760, %v4157_v17  ;;  %4212 = vmatpush.msrb.mxu0 %v11345_v37  ;;  %v11426_v20 = vsub.f32 %v283_v9, %v11412_v50 }
 0x2ca   :  { %4273 = vmatpush.msrb.mxu2 %v13210_v31  ;;  %v4163_v8 = vsub.f32 %v11398_v62, %v12731_v23  ;;  %v11428_v45 = vand.u32 4294901760, %v270_v4  ;;  %v13211_v0 = vand.u32 2147483647, %v13208_v22  ;;  %v4169_v17 = vsub.f32 %v11403_v46, %v12738_v52  ;;  %v3151_v23 = vpop.f32.mrf.mxu1  ;;  %4252 = vmatpush.msrb.mxu1 %v11318_v42 }
 0x2cb   :  { %v11436_v43 = vsub.s32 %v5943_v59, %v5946_v19  ;;  %v5970_v58 = vsel %vm5847_vm5, %v5969_v51, %v5945_v2  ;;  %v13214_v9 = vand.u32 4294901760, %v11037_v29  ;;  %4159 = vmatpush.msra.mxu3 %v4158_v14  ;;  %v13216_v59 = vld [vmem:[#allocation23_spill] sm:$0xff]  ;;  %v3152_v19 = vadd.f32 %v3151_v23, %v3050_v39  ;;  %4215 = vmatpush.msrb.mxu0 %v11368_v12  ;;  %v244_v14 = vld [vmem:[#allocation5 + $0x540] sm:$0xff] }
 0x2cc   :  { %vm11432_vm6 = vcmp.le.f32.partialorder %v13211_v0, 0.7853982  ;;  %v13215_v0 = vld [vmem:[#allocation25_spill] sm:$0xff]  ;;  %v4164_v7 = vand.u32 4294901760, %v4163_v8  ;;  %4072 = vmatmul.f32.vlgmr.msra.gmra.mxu2 %v13216_v59  ;;  %v11448_v10 = vand.u32 4294901760, %v257_v15  ;;  %v5842_v51 = vsel %vm5840_vm4, %v5841_v57, %v11358_v21  ;;  %v3205_v8 = vpop.f32.mrf.mxu2  ;;  %4254 = vmatpush.msrb.mxu1 %v11326_v3 }
 0x2cd   :  { %4277 = vmatpush.msrb.mxu2 %v13214_v9  ;;  %v6787_v1 = vperm.slane %v13215_v0, 6  ;;  %vm5948_vm7 = vcmp.lt.s32.totalorder %v11436_v43, 0  ;;  %v5949_v29 = vsub.s32 0, %v11436_v43  ;;  %v4170_v2 = vand.u32 4294901760, %v4169_v17  ;;  %4218 = vmatpush.msrb.mxu0 %v11383_v5 }
 0x2ce   :  { %v13217_v9 = vand.u32 4294901760, %v11047_v30  ;;  %v5843_v23 = vsel %vm5836_vm3, %v5839_v53, %v5842_v51  ;;  %v5972_v39 = vsel %vm11432_vm6, 0, %v5970_v58  ;;  %4165 = vmatpush.msra.mxu3 %v4164_v7  ;;  %v3206_v21 = vadd.f32 %v3205_v8, %v3152_v19  ;;  %v231_v58 = vld [vmem:[#allocation5 + $0x4d8] sm:$0xff]  ;;  %4256 = vmatpush.msrb.mxu1 %v11336_v60 }
 0x2cf   :  { %v11464_v57 = vsub.f32 %v270_v4, %v11428_v45  ;;  %v5950_v30 = vsel %vm5948_vm7, %v5949_v29, %v11436_v43  ;;  %v13218_v17 = vand.u32 4294901760, %v11055_v63  ;;  %v12737_v25 = vand.u32 4294901760, %v11426_v20  ;;  %4221 = vmatpush.msrb.mxu0 %v11398_v62 }
 0x2d0   :  { %4281 = vmatpush.msrb.mxu2 %v13217_v9  ;;  %v3244_v9 = vpop.f32.mrf.mxu3  ;;  %v11471_v53 = vand.u32 4294901760, %v244_v14  ;;  %v11474_v7 = vsub.f32 %v257_v15, %v11448_v10  ;;  %vm5833_vm9 = vweird.f32 %v13184_v26  ;;  %v5951_v4 = vclz %v5950_v30  ;;  %4171 = vmatpush.msra.mxu3 %v4170_v2  ;;  %v3313_v15 = vpop.f32.mrf.mxu0  ;;  %v218_v2 = vld [vmem:[#allocation5 + $0x470] sm:$0xff] }
 0x2d1   :  { %v3245_v19 = vadd.f32 %v3244_v9, %v3206_v21  ;;  %vm11478_vm8 = vcmp.eq.s32.totalorder %v6787_v1, 1  ;;  %v5939_v51 = vadd.s32 %v11313_v47, %v11333_v40  ;;  %v13221_v29 = vand.u32 4294901760, %v11078_v44  ;;  %4173 = vmatmul.f32.vlgmr.msra.gmra.mxu3 %v13121_v24  ;;  %v205_v9 = vld [vmem:[#allocation5 + $0x408] sm:$0xff]  ;;  %4224 = vmatpush.msrb.mxu0 %v11403_v46 }
 0x2d2   :  { %4285 = vmatpush.msrb.mxu2 %v13218_v17  ;;  %4340 = vmatpush.msrb.mxu3 %v13206_v6  ;;  %v12736_v26 = vand.u32 4294901760, %v11464_v57  ;;  %v11488_v8 = vand.u32 4294901760, %v231_v58  ;;  %v11490_v30 = vsel %vm5833_vm9, nan, %v5843_v23  ;;  %v6899_v1 = vadd.s32 4294967294, %v5951_v4  ;;  %v3350_v40 = vpop.f32.mrf.mxu1  ;;  %v11502_v23 = vld [vmem:[#allocation7 + $0x8] sm:$0x1f] }
 0x2d3   :  { %v5989_v21 = vadd.s32 3, %v5972_v39  ;;  %v3314_v47 = vadd.f32 %v3313_v15, %v3245_v19  ;;  %v13222_v44 = vand.u32 4294901760, %v11113_v11  ;;  %v11500_v6 = vsub.f32 %v11426_v20, %v12737_v25  ;;  %13223 = vst [vmem:[#allocation44_spill] sm:$0xff] %v11502_v23  ;;  %4258 = vmatpush.msrb.mxu1 %v11365_v54  ;;  %4377 = vmatpush.msra.mxu0 %v11412_v50 }
 0x2d4   :  { %4289 = vmatpush.msrb.mxu2 %v13221_v29  ;;  %4342 = vmatpush.msrb.mxu3 %v13207_v56  ;;  %v12740_v39 = vand.u32 4294901760, %v11474_v7  ;;  %v11506_v17 = vsub.f32 %v244_v14, %v11471_v53  ;;  %v11509_v4 = vsub.f32 %v231_v58, %v11488_v8  ;;  %vm6900_vm10 = vcmp.lt.s32.totalorder %v6899_v1, 0 }
 0x2d5   :  { %v11513_v11 = vadd.f32 %v3350_v40, %v3314_v47  ;;  %v4729_v56 = vperm.slane %v11502_v23, 0  ;;  %v11516_v19 = vand.u32 4294901760, %v218_v2  ;;  %v5954_v29 = vsel %vm6900_vm10, 0, %v6899_v1  ;;  %v192_v1 = vld [vmem:[#allocation5 + $0x3a0] sm:$0xff]  ;;  %4260 = vmatpush.msrb.mxu1 %v11380_v36  ;;  %4227 = vmatmul.f32.vlgmr.msrb.gmra.mxu0 %v13199_v35 }
 0x2d6   :  { %4293 = vmatpush.msrb.mxu2 %v13222_v44  ;;  %4344 = vmatpush.msrb.mxu3 %v11032_v48  ;;  %v13225_v14 = vand.u32 4294901760, %v11120_v34  ;;  %v11524_v58 = vsub.f32 %v11464_v57, %v12736_v26  ;;  %v12741_v15 = vand.u32 4294901760, %v11506_v17  ;;  %v11527_v44 = vand.u32 4294901760, %v205_v9 }
 0x2d7   :  { %13224 = vst [vmem:[#allocation50_spill] sm:$0xff] %v11513_v11  ;;  %v5955_v47 = vsub.s32 32, %v5954_v29  ;;  %v5959_v40 = vsub.s32 4294967266, %v5954_v29  ;;  %v11532_v48 = vadd.f32 %v4729_v56, %v11513_v11  ;;  %v11537_v34 = vsub.f32 %v11474_v7, %v12740_v39  ;;  %4379 = vmatpush.msra.mxu0 %v11428_v45  ;;  %4262 = vmatpush.msrb.mxu1 %v11387_v32 }
 0x2d8   :  { %4297 = vmatpush.msrb.mxu2 %v13225_v14  ;;  %13226 = vst [vmem:[#allocation45_spill] sm:$0xff] %v11527_v44  ;;  %v5956_v14 = vshll.u32 %v11436_v43, %v5954_v29  ;;  %v11540_v26 = vand.u32 3, %v5989_v21  ;;  %4346 = vmatpush.msrb.mxu3 %v11039_v61  ;;  %v13228_v25 = vand.u32 4294901760, %v11179_v33  ;;  %v11548_v56 = vsub.f32 %v11506_v17, %v12741_v15  ;;  %v179_v29 = vld [vmem:[#allocation5 + $0x338] sm:$0xff] }
 0x2d9   :  { %13227 = vst [vmem:[#allocation35_spill] sm:$0xff] %v11532_v48  ;;  %v12742_v52 = vand.u32 4294901760, %v11509_v4  ;;  %v5957_v11 = vshrl.u32 %v5939_v51, %v5955_v47  ;;  %v5960_v39 = vadd.s32 127, %v5959_v40  ;;  %v6003_v43 = vand.u32 2139095040, %v11532_v48  ;;  %4381 = vmatpush.msra.mxu0 %v11448_v10 }
 0x2da   :  { %4301 = vmatpush.msrb.mxu2 %v13228_v25  ;;  %v11555_v61 = vsub.f32 %v218_v2, %v11516_v19  ;;  %4348 = vmatpush.msrb.mxu3 %v11052_v49  ;;  %v13229_v33 = vand.u32 4294901760, %v11235_v41  ;;  %v4421_v25 = vand.u32 4294901760, %v11500_v6  ;;  %v4427_v21 = vand.u32 4294901760, %v11524_v58  ;;  %v13231_v58 = vld [vmem:[#allocation34_spill] sm:$0xff] }
 0x2db   :  { %v11562_v51 = vand.u32 4294901760, %v192_v1  ;;  %v11565_v47 = vsub.f32 %v205_v9, %v11527_v44  ;;  %v5958_v40 = vor.u32 %v5957_v11, %v5956_v14  ;;  %v5961_v15 = vshll.u32 %v5960_v39, 23  ;;  %v13232_v14 = vld [vmem:[#allocation22_spill] sm:$0xff]  ;;  %4383 = vmatpush.msra.mxu0 %v11471_v53 }
 0x2dc   :  { %4305 = vmatpush.msrb.mxu2 %v13229_v33  ;;  %v6004_v49 = vshrl.u32 %v6003_v43, 23  ;;  %v4433_v41 = vand.u32 4294901760, %v11537_v34  ;;  %4350 = vmatpush.msrb.mxu3 %v11088_v13  ;;  %v13230_v2 = vand.u32 4294901760, %v11324_v55  ;;  %v4439_v6 = vand.u32 4294901760, %v11548_v56  ;;  %v166_v43 = vld [vmem:[#allocation5 + $0x2d0] sm:$0xff]  ;;  %v11589_v33 = vld [vmem:[#allocation5 + $0x268] sm:$0xff] }
 0x2dd   :  { %v11577_v9 = vsub.f32 %v11509_v4, %v12742_v52  ;;  %v12743_v39 = vand.u32 4294901760, %v11555_v61  ;;  %v12744_v11 = vand.u32 4294901760, %v11565_v47  ;;  %v5962_v13 = vor.u32 4788187, %v5961_v15  ;;  %4266 = vmatmul.f32.vlgmr.msrb.gmra.mxu1 %v13232_v14  ;;  %4385 = vmatpush.msra.mxu0 %v11488_v8 }
 0x2de   :  { %4309 = vmatpush.msrb.mxu2 %v13230_v2  ;;  %v6901_v55 = vadd.s32 4294967169, %v6004_v49  ;;  %v11587_v56 = vand.u32 4294901760, %v179_v29  ;;  %4352 = vmatpush.msrb.mxu3 %v11095_v27  ;;  %v13233_v52 = vand.u32 4294901760, %v11330_v18  ;;  %v11606_v34 = vsub.f32 %v192_v1, %v11562_v51 }
 0x2df   :  { %v11598_v15 = vsub.f32 %v11555_v61, %v12743_v39  ;;  %v11603_v49 = vsub.f32 %v11565_v47, %v12744_v11  ;;  %v5963_v59 = vand.u32 2147483647, %v5962_v13  ;;  %v5965_v2 = vcvt.s32.f32 %v5958_v40  ;;  %4422 = vmatpush.msra.mxu1 %v4421_v25  ;;  %v11620_v25 = vld [vmem:[#allocation5 + $0x200] sm:$0xff]  ;;  %4387 = vmatpush.msra.mxu0 %v11516_v19 }
 0x2e0   :  { %4313 = vmatpush.msrb.mxu2 %v13233_v52  ;;  %v12745_v27 = vand.u32 2147483647, %v11532_v48  ;;  %v6010_v18 = vadd.s32 1, %v6901_v55  ;;  %4354 = vmatpush.msrb.mxu3 %v13209_v28  ;;  %v13234_v52 = vand.u32 4294901760, %v11345_v37  ;;  %v4445_v39 = vand.u32 4294901760, %v11577_v9 }
 0x2e1   :  { %v11614_v11 = vand.u32 4294901760, %v166_v43  ;;  %v12746_v1 = vand.u32 4294901760, %v11606_v34  ;;  %v11618_v13 = vand.u32 4294901760, %v11589_v33  ;;  %v5966_v40 = vmul.f32 %v5965_v2, %v5963_v59  ;;  %4428 = vmatpush.msra.mxu1 %v4427_v21  ;;  %4389 = vmatpush.msra.mxu0 %v11527_v44 }
 0x2e2   :  { %4317 = vmatpush.msrb.mxu2 %v13234_v52  ;;  %v11624_v55 = vand.u32 8388607, %v12745_v27  ;;  %vm6011_vm11 = vcmp.gt.s32.totalorder %v6010_v18, 0  ;;  %v4451_v37 = vand.u32 4294901760, %v11598_v15  ;;  %4356 = vmatpush.msrb.mxu3 %v11160_v16  ;;  %v13235_v28 = vand.u32 4294901760, %v11368_v12  ;;  %v11645_v12 = vld [vmem:[#allocation5 + $0x198] sm:$0xff] }
 0x2e3   :  { %v6012_v9 = vsel %vm6011_vm11, %v6010_v18, 0  ;;  %v4457_v52 = vand.u32 4294901760, %v11603_v49  ;;  %v11635_v59 = vsub.f32 %v11606_v34, %v12746_v1  ;;  %v11638_v2 = vsub.f32 %v179_v29, %v11587_v56  ;;  %4434 = vmatpush.msra.mxu1 %v4433_v41  ;;  %13236 = vst [vmem:[#allocation46_spill] sm:$0xff] %v11645_v12  ;;  %4391 = vmatpush.msra.mxu0 %v11562_v51 }
 0x2e4   :  { %4321 = vmatpush.msrb.mxu2 %v13235_v28  ;;  %v5967_v21 = vxor.u32 2147483648, %v5966_v40  ;;  %v6014_v15 = vand.u32 31, %v6012_v9  ;;  %v11643_v16 = vand.u32 4294901760, %v11620_v25  ;;  %4358 = vmatpush.msrb.mxu3 %v11174_v38  ;;  %v13237_v49 = vand.u32 4294901760, %v11383_v5 }
 0x2e5   :  { %v11650_v18 = vshrl.u32 %v6012_v9, 5  ;;  %v4463_v29 = vand.u32 4294901760, %v11635_v59  ;;  %v11655_v41 = vsub.f32 %v166_v43, %v11614_v11  ;;  %v13238_v48 = vmov 683565275   ;;  %4440 = vmatpush.msra.mxu1 %v4439_v6  ;;  %4393 = vmatpush.msra.mxu0 %v11587_v56 }
 0x2e6   :  { %4325 = vmatpush.msrb.mxu2 %v13237_v49  ;;  %v5968_v1 = vsel %vm5847_vm5, %v5967_v21, %v5966_v40  ;;  %v6015_v27 = vsub.s32 32, %v6014_v15  ;;  %v6017_v14 = vshll.u32 %v13238_v48, %v6014_v15  ;;  %v13239_v35 = vmov 2475754826   ;;  %4360 = vmatpush.msrb.mxu3 %v11318_v42 }
 0x2e7   :  { %v6020_v38 = vshll.u32 %v13239_v35, %v6014_v15  ;;  %v11665_v5 = vsel %vm11432_vm6, %v13208_v22, %v5968_v1  ;;  %v13240_v43 = vand.u32 4294901760, %v11398_v62  ;;  %v13241_v9 = vmov 2131351028   ;;  %4446 = vmatpush.msra.mxu1 %v4445_v39  ;;  %4395 = vmatpush.msra.mxu0 %v11614_v11 }
 0x2e8   :  { %v6023_v40 = vshll.u32 %v13241_v9, %v6014_v15  ;;  %v13242_v59 = vmov 2102212464   ;;  %v11673_v49 = vand.u32 4294901760, %v11645_v12  ;;  %v5973_v6 = vmul.f32 %v11665_v5, %v11665_v5  ;;  %4362 = vmatpush.msrb.mxu3 %v11326_v3 }
 0x2e9   :  { %4329 = vmatpush.msrb.mxu2 %v13240_v43  ;;  %v6026_v21 = vshll.u32 %v13242_v59, %v6014_v15  ;;  %v6016_v28 = vshrl.u32 %v13238_v48, %v6015_v27  ;;  %v6018_v31 = vshrl.u32 %v13239_v35, %v6015_v27  ;;  %v6021_v1 = vshrl.u32 %v13241_v9, %v6015_v27 }
 0x2ea   :  { %v13243_v42 = vand.u32 4294901760, %v11403_v46  ;;  %v6024_v62 = vshrl.u32 %v13242_v59, %v6015_v27  ;;  %v13244_v43 = vmov 920167782   ;;  %vm6032_vm12 = vcmp.lt.s32.totalorder %v11650_v18, 1  ;;  %4364 = vmatpush.msrb.mxu3 %v11336_v60  ;;  %4452 = vmatpush.msra.mxu1 %v4451_v37 }
 0x2eb   :  { %v6027_v23 = vshrl.u32 %v13244_v43, %v6015_v27  ;;  %v6029_v12 = vshll.u32 %v13244_v43, %v6014_v15  ;;  %v5974_v44 = vmul.f32 -0.001358992, %v5973_v6  ;;  %v5981_v48 = vmul.f32 -0.00019511016, %v5973_v6  ;;  %4397 = vmatpush.msra.mxu0 %v11618_v13 }
 0x2ec   :  { %4333 = vmatpush.msrb.mxu2 %v13243_v42  ;;  %v6019_v35 = vor.u32 %v6018_v31, %v6017_v14  ;;  %v6022_v9 = vor.u32 %v6021_v1, %v6020_v38  ;;  %v6025_v3 = vor.u32 %v6024_v62, %v6023_v40  ;;  %v13245_v39 = vmov 1326507024   ;;  %4366 = vmatpush.msrb.mxu3 %v11365_v54 }
 0x2ed   :  { %4335 = vmatmul.f32.vlgmr.msrb.gmra.mxu2 %v13121_v24  ;;  %v6028_v46 = vor.u32 %v6027_v23, %v6026_v21  ;;  %v6030_v42 = vshrl.u32 %v13245_v39, %v6015_v27  ;;  %vm6034_vm13 = vcmp.lt.s32.totalorder %v11650_v18, 3  ;;  %v5975_v15 = vadd.f32 0.041655596, %v5974_v44  ;;  %4458 = vmatpush.msra.mxu1 %v4457_v52 }
 0x2ee   :  { %v5982_v43 = vadd.f32 0.008332121, %v5981_v48  ;;  %vm6033_vm14 = vcmp.lt.s32.totalorder %v11650_v18, 2  ;;  %vm6035_vm1 = vcmp.lt.s32.totalorder %v11650_v18, 4  ;;  %4520 = vmatpush.msra.mxu2 %v11426_v20  ;;  %v6040_v14 = vsel %vm6032_vm12, %v6019_v35, %v6022_v9  ;;  %4368 = vmatpush.msrb.mxu3 %v11380_v36 }
 0x2ef   :  { %v6031_v60 = vor.u32 %v6030_v42, %v6029_v12  ;;  %v6037_v23 = vsel %vm6035_vm1, %v6025_v3, 2102212464  ;;  %v6041_v44 = vsel %vm6035_vm1, %v6028_v46, 920167782  ;;  %v5976_v48 = vmul.f32 %v5975_v15, %v5973_v6  ;;  %4464 = vmatpush.msra.mxu1 %v4463_v29  ;;  %4399 = vmatpush.msra.mxu0 %v11643_v16 }
 0x2f0   :  { %v5983_v27 = vmul.f32 %v5982_v43, %v5973_v6  ;;  %v6036_v37 = vsel %vm6032_vm12, %v6016_v28, %v6019_v35  ;;  %v6042_v38 = vsel %vm6034_vm13, %v6025_v3, %v6041_v44  ;;  %vm5995_vm15 = vcmp.eq.s32.totalorder %v11540_v26, 2  ;;  %4523 = vmatpush.msra.mxu2 %v11464_v57  ;;  %4370 = vmatpush.msrb.mxu3 %v11387_v32 }
 0x2f1   :  { %v6038_v54 = vsel %vm6034_vm13, %v6022_v9, %v6037_v23  ;;  %v6043_v52 = vsel %vm6033_vm14, %v6040_v14, %v6042_v38  ;;  %v6044_v12 = vsel %vm6032_vm12, %v6022_v9, %v6025_v3  ;;  %v6045_v35 = vsel %vm6035_vm1, %v6031_v60, 1326507024  ;;  %4372 = vmatmul.f32.vlgmr.msrb.gmra.mxu3 %v13121_v24  ;;  %4401 = vmatpush.msra.mxu0 %v11673_v49 }
 0x2f2   :  { %v5977_v28 = vadd.f32 -0.4999988, %v5976_v48  ;;  %v5984_v40 = vadd.f32 -0.16666654, %v5983_v27  ;;  %v6046_v21 = vsel %vm6034_vm13, %v6028_v46, %v6045_v35  ;;  %v13246_v36 = vor.u32 8388608, %v11624_v55  ;;  %4573 = vmatpush.msra.mxu3 %v11412_v50  ;;  %4526 = vmatpush.msra.mxu2 %v11474_v7 }
 0x2f3   :  { %vm5992_vm2 = vcmp.eq.s32.totalorder %v11540_v26, 0  ;;  %v6047_v29 = vsel %vm6033_vm14, %v6044_v12, %v6046_v21  ;;  %v6073_v9 = vand.u32 65535, %v6043_v52  ;;  %v6074_v1 = vshrl.u32 %v6043_v52, 16 }
 0x2f4   :  { %v11722_v31 = vshll.u32 %v13246_v36, 8  ;;  %v13247_v62 = vand.u32 4294901760, %v11638_v2  ;;  %v5978_v55 = vmul.f32 %v5977_v28, %v5973_v6  ;;  %v5985_v3 = vmul.f32 %v5984_v40, %v5973_v6  ;;  %4575 = vmatpush.msra.mxu3 %v11428_v45  ;;  %4529 = vmatpush.msra.mxu2 %v11506_v17 }
 0x2f5   :  { %vm5991_vm3 = vcmp.lt.s32.totalorder %v11540_v26, 2  ;;  %v13248_v46 = vperm.slane %v13215_v0, 7  ;;  %v11743_v32 = vsel %vm6033_vm14, %v6036_v37, %v6038_v54  ;;  %vm5988_vm5 = vweird.f32 %v13208_v22  ;;  %v3391_v22 = vpop.f32.mrf.mxu2 }
 0x2f6   :  { %v4468_v43 = vsub.f32 %v11638_v2, %v13247_v62  ;;  %v6049_v15 = vand.u32 65535, %v11722_v31  ;;  %v6050_v6 = vshrl.u32 %v11722_v31, 16  ;;  %v6051_v60 = vand.u32 65535, %v6047_v29  ;;  %4577 = vmatpush.msra.mxu3 %v11448_v10  ;;  %4532 = vmatpush.msra.mxu2 %v11509_v4 }
 0x2f7   :  { %vm11736_vm4 = vcmp.eq.s32.totalorder %v13248_v46, 1  ;;  %v6052_v0 = vshrl.u32 %v6047_v29, 16  ;;  %v5979_v14 = vadd.f32 1.0, %v5978_v55  ;;  %v5986_v44 = vadd.f32 1.0, %v5985_v3 }
 0x2f8   :  { %v4469_v23 = vand.u32 4294901760, %v4468_v43  ;;  %v6075_v18 = vmul.u32 %v6073_v9, %v6049_v15  ;;  %v11751_v48 = vmul.u32 %v6074_v1, %v6049_v15  ;;  %v6053_v27 = vmul.u32 %v6051_v60, %v6049_v15  ;;  %4579 = vmatpush.msra.mxu3 %v11471_v53  ;;  %4535 = vmatpush.msra.mxu2 %v11555_v61 }
 0x2f9   :  { %v6054_v37 = vmul.u32 %v6052_v0, %v6049_v15  ;;  %v11754_v38 = vmul.u32 %v6051_v60, %v6050_v6  ;;  %v6056_v54 = vmul.u32 %v6052_v0, %v6050_v6  ;;  %v5987_v52 = vmul.f32 %v5986_v44, %v11665_v5 }
 0x2fa   :  { %4470 = vmatpush.msra.mxu1 %v4469_v23  ;;  %v5996_v12 = vxor.u32 2147483648, %v5979_v14  ;;  %v11757_v35 = vmul.u32 %v6073_v9, %v6050_v6  ;;  %v6078_v28 = vmul.u32 %v6074_v1, %v6050_v6  ;;  %v6079_v5 = vshll.u32 %v11751_v48, 16  ;;  %4581 = vmatpush.msra.mxu3 %v11488_v8 }
 0x2fb   :  { %v6057_v40 = vshll.u32 %v6054_v37, 16  ;;  %v6058_v21 = vshrl.u32 %v6054_v37, 16  ;;  %v6059_v36 = vshll.u32 %v11754_v38, 16  ;;  %v6060_v29 = vshrl.u32 %v11754_v38, 16  ;;  %v114_v37 = vld [vmem:[#allocation5 + $0x130] sm:$0xff]  ;;  %4538 = vmatpush.msra.mxu2 %v11565_v47 }
 0x2fc   :  { %v5993_v62 = vxor.u32 2147483648, %v5987_v52  ;;  %v5997_v43 = vsel %vm5995_vm15, %v5996_v12, %v5987_v52  ;;  %v6080_v9 = vshrl.u32 %v11751_v48, 16  ;;  %v6081_v55 = vshll.u32 %v11757_v35, 16  ;;  %v13252_v38 = vld [vmem:[#allocation19_spill] sm:$0xff]  ;;  %4583 = vmatpush.msra.mxu3 %v11516_v19 }
 0x2fd   :  { %vm6061_vm6 = vc.u32 %v6053_v27, %v6057_v40  ;;  %v6063_v1 = vadd.s32 %v6057_v40, %v6053_v27  ;;  %v6082_v3 = vshrl.u32 %v11757_v35, 16  ;;  %v13251_v15 = vmov 0   ;;  %4541 = vmatpush.msra.mxu2 %v11606_v34 }
 0x2fe   :  { %v5994_v46 = vsel %vm5992_vm2, %v5979_v14, %v5993_v62  ;;  %v6062_v6 = vsel %vm6061_vm6, 1, %v13251_v15  ;;  %vm6083_vm7 = vc.u32 %v6075_v18, %v6079_v5  ;;  %v6085_v60 = vadd.s32 %v6079_v5, %v6075_v18  ;;  %v101_v18 = vld [vmem:[#allocation5 + $0xc8] sm:$0xff]  ;;  %v88_v62 = vld [vmem:[#allocation5 + $0x60] sm:$0xff] }
 0x2ff   :  { %v5998_v0 = vsel %vm5991_vm3, %v5994_v46, %v5997_v43  ;;  %v6064_v23 = vadd.s32 %v6062_v6, %v6056_v54  ;;  %vm6065_vm9 = vc.u32 %v6063_v1, %v6059_v36  ;;  %v6084_v44 = vsel %vm6083_vm7, 1, %v13251_v15  ;;  %4544 = vmatpush.msra.mxu2 %v11638_v2 }
 0x300   :  { %v5999_v48 = vsel %vm5988_vm5, nan, %v5998_v0  ;;  %v6066_v14 = vsel %vm6065_vm9, 1, %v13251_v15  ;;  %v6086_v27 = vadd.s32 %v6084_v44, %v6078_v28  ;;  %vm6087_vm10 = vc.u32 %v6085_v60, %v6081_v55  ;;  %v13254_v0 = vld [vmem:[#allocation45_spill] sm:$0xff] }
 0x301   :  { %v6814_v26 = vsel %vm11736_vm4, %v13252_v38, %v5999_v48  ;;  %v6068_v54 = vadd.s32 %v6066_v14, %v6064_v23  ;;  %v6088_v52 = vsel %vm6087_vm10, 1, %v13251_v15  ;;  %v11788_v12 = vadd.s32 %v6085_v60, %v6081_v55  ;;  %v3492_v55 = vpop.f32.mrf.mxu3  ;;  %4585 = vmatpush.msra.mxu3 %v13254_v0  ;;  %4547 = vmatpush.msra.mxu2 %v11655_v41 }
 0x302   :  { %v6835_v35 = vrot.slane %v6814_v26, 4  ;;  %v6090_v40 = vadd.s32 %v6088_v52, %v6086_v27  ;;  %v4473_v28 = vand.u32 4294901760, %v11655_v41  ;;  %v11793_v36 = vsub.f32 %v11589_v33, %v11618_v13 }
 0x303   :  { %v6069_v42 = vadd.s32 %v6068_v54, %v6058_v21  ;;  %v11797_v43 = vand.u32 4294901760, %v114_v37  ;;  %v11801_v5 = vsub.f32 %v11620_v25, %v11643_v16  ;;  %v11803_v1 = vand.u32 4294901760, %v101_v18  ;;  %4587 = vmatpush.msra.mxu3 %v11562_v51 }
 0x304   :  { %v13253_v33 = vsel %vm11478_vm8, %v13231_v58, %v11490_v30  ;;  %v6091_v6 = vadd.s32 %v6090_v40, %v6080_v9  ;;  %v4474_v21 = vsub.f32 %v11655_v41, %v4473_v28  ;;  %v4479_v60 = vand.u32 4294901760, %v11793_v36  ;;  %v13255_v30 = vld [vmem:[#allocation46_spill] sm:$0xff]  ;;  %4550 = vmatpush.msra.mxu2 %v11793_v36 }
 0x305   :  { %v6842_v46 = vsel %vm6838_vm0, %v13253_v33, %v6835_v35  ;;  %v11817_v25 = vadd.s32 %v6069_v42, %v6060_v29  ;;  %4403 = vmatpush.msra.mxu0 %v11797_v43  ;;  %v4485_v63 = vand.u32 4294901760, %v11801_v5  ;;  %v11823_v58 = vsub.f32 %v13255_v30, %v11673_v49  ;;  %4589 = vmatpush.msra.mxu3 %v11587_v56  ;;  %v3585_v42 = vpop.f32.mrf.mxu1  ;;  %v3654_v30 = vpop.f32.mrf.mxu2 }
 0x306   :  { %6854 = vst [vmem:[#allocation10 + $0x18] sm:$0xff] %v6842_v46  ;;  %v11825_v9 = vand.u32 4294901760, %v88_v62  ;;  %v6092_v23 = vadd.s32 %v6091_v6, %v6082_v3  ;;  %v4475_v44 = vand.u32 4294901760, %v4474_v21  ;;  %v4480_v48 = vsub.f32 %v11793_v36, %v4479_v60  ;;  %4553 = vmatpush.msra.mxu2 %v11801_v5 }
 0x307   :  { %v11831_v14 = vsub.f32 %v114_v37, %v11797_v43  ;;  %v6093_v29 = vmul.u32 %v11722_v31, %v11743_v32  ;;  %vm6095_vm8 = vc.u32 %v11817_v25, %v11788_v12  ;;  %v4486_v3 = vsub.f32 %v11801_v5, %v4485_v63  ;;  %4405 = vmatpush.msra.mxu0 %v11803_v1  ;;  %v3546_v37 = vpop.f32.mrf.mxu0 }
 0x308   :  { %v4491_v27 = vand.u32 4294901760, %v11823_v58  ;;  %v6096_v38 = vadd.s32 1, %v6092_v23  ;;  %4476 = vmatpush.msra.mxu1 %v4475_v44  ;;  %v4481_v26 = vand.u32 4294901760, %v4480_v48  ;;  %v3493_v52 = vadd.f32 %v3492_v55, %v3391_v22  ;;  %4591 = vmatpush.msra.mxu3 %v11614_v11 }
 0x309   :  { %v4497_v54 = vand.u32 4294901760, %v11831_v14  ;;  %v4487_v31 = vand.u32 4294901760, %v4486_v3  ;;  %4407 = vmatpush.msra.mxu0 %v11825_v9  ;;  %v11851_v35 = vsub.f32 %v101_v18, %v11803_v1  ;;  %v11854_v40 = vsub.f32 %v88_v62, %v11825_v9  ;;  %4556 = vmatpush.msra.mxu2 %v11823_v58 }
 0x30a   :  { %v4492_v32 = vsub.f32 %v11823_v58, %v4491_v27  ;;  %v6097_v22 = vsel %vm6095_vm8, %v6096_v38, %v6092_v23  ;;  %4482 = vmatpush.msra.mxu1 %v4481_v26  ;;  %v13256_v33 = vand.u32 4294901760, %v11426_v20  ;;  %v3547_v18 = vadd.f32 %v3546_v37, %v3493_v52  ;;  %v3691_v37 = vpop.f32.mrf.mxu3  ;;  %4593 = vmatpush.msra.mxu3 %v11618_v13  ;;  %v13259_v26 = vld [vmem:[#allocation44_spill] sm:$0xff] }
 0x30b   :  { %v4498_v55 = vsub.f32 %v11831_v14, %v4497_v54  ;;  %v6098_v46 = vadd.s32 %v6097_v22, %v6093_v29  ;;  %v4503_v62 = vand.u32 4294901760, %v11851_v35  ;;  %v4509_v21 = vand.u32 4294901760, %v11854_v40  ;;  %4559 = vmatpush.msra.mxu2 %v11831_v14 }
 0x30c   :  { %4614 = vmatpush.msrb.mxu0 %v13256_v33  ;;  %v4493_v6 = vand.u32 4294901760, %v4492_v32  ;;  %4488 = vmatpush.msra.mxu1 %v4487_v31  ;;  %v13257_v44 = vand.u32 4294901760, %v11464_v57  ;;  %v3586_v48 = vadd.f32 %v3585_v42, %v3547_v18  ;;  %v13258_v38 = vand.u32 4294901760, %v11474_v7 }
 0x30d   :  { %v4499_v23 = vand.u32 4294901760, %v4498_v55  ;;  %v6099_v20 = vadd.s32 536870912, %v6098_v46  ;;  %v4504_v29 = vsub.f32 %v11851_v35, %v4503_v62  ;;  %v4510_v3 = vsub.f32 %v11854_v40, %v4509_v21  ;;  %4595 = vmatpush.msra.mxu3 %v11643_v16  ;;  %4562 = vmatpush.msra.mxu2 %v11851_v35 }
 0x30e   :  { %4618 = vmatpush.msrb.mxu0 %v13257_v44  ;;  %4494 = vmatpush.msra.mxu1 %v4493_v6  ;;  %v3655_v57 = vadd.f32 %v3654_v30, %v3586_v48  ;;  %v4730_v52 = vperm.slane %v13259_v26, 1  ;;  %v13260_v22 = vand.u32 4294901760, %v11506_v17  ;;  %v13261_v33 = vand.u32 4294901760, %v11509_v4  ;;  %v13264_v44 = vld [vmem:[#allocation21_spill] sm:$0xff] }
 0x30f   :  { %v11882_v31 = vshrl.u32 %v6099_v20, 30  ;;  %v4505_v32 = vand.u32 4294901760, %v4504_v29  ;;  %v4511_v42 = vand.u32 4294901760, %v4510_v3  ;;  %4597 = vmatpush.msra.mxu3 %v11673_v49  ;;  %4565 = vmatpush.msra.mxu2 %v11854_v40  ;;  %v13262_v30 = vand.u32 4294901760, %v11555_v61  ;;  %v13267_v3 = vld [vmem:[#allocation23_spill] sm:$0xff] }
 0x310   :  { %4622 = vmatpush.msrb.mxu0 %v13258_v38  ;;  %4500 = vmatpush.msra.mxu1 %v4499_v23  ;;  %v11888_v55 = vadd.f32 %v3691_v37, %v3655_v57  ;;  %v13263_v23 = vand.u32 4294901760, %v11565_v47  ;;  %v13265_v29 = vand.u32 4294901760, %v11606_v34  ;;  %v13268_v57 = vand.u32 4294901760, %v11638_v2 }
 0x311   :  { %v6101_v7 = vshll.u32 %v11882_v31, 30  ;;  %4599 = vmatpush.msra.mxu3 %v11797_v43  ;;  %4568 = vmatmul.f32.vlgmr.msra.gmra.mxu2 %v13264_v44  ;;  %v13271_v36 = vmov 2131351028  }
 0x312   :  { %4626 = vmatpush.msrb.mxu0 %v13260_v22  ;;  %4506 = vmatpush.msra.mxu1 %v4505_v32  ;;  %v11896_v18 = vadd.f32 %v4730_v52, %v11888_v55  ;;  %v13269_v32 = vmov 683565275   ;;  %v13270_v22 = vmov 2475754826  }
 0x313   :  { %v11898_v6 = vsub.s32 %v6098_v46, %v6101_v7  ;;  %4601 = vmatpush.msra.mxu3 %v11803_v1  ;;  %4413 = vmatmul.f32.vlgmr.msra.gmra.mxu0 %v13267_v3 }
 0x314   :  { %4630 = vmatpush.msrb.mxu0 %v13261_v33  ;;  %4512 = vmatpush.msra.mxu1 %v4511_v42  ;;  %v6158_v17 = vand.u32 2139095040, %v11896_v18  ;;  %v6155_v47 = vand.u32 2147483647, %v11896_v18 }
 0x315   :  { %vm6103_vm11 = vcmp.lt.s32.totalorder %v11898_v6, 0  ;;  %v6104_v4 = vsub.s32 0, %v11898_v6  ;;  %4603 = vmatpush.msra.mxu3 %v11825_v9  ;;  %4514 = vmatmul.f32.vlgmr.msra.gmra.mxu1 %v13121_v24 }
 0x316   :  { %4634 = vmatpush.msrb.mxu0 %v13262_v30  ;;  %4681 = vmatpush.msrb.mxu1 %v11412_v50  ;;  %v6159_v46 = vshrl.u32 %v6158_v17, 23  ;;  %v13266_v50 = vld [vmem:[#allocation22_spill] sm:$0xff] }
 0x317   :  { %v6105_v48 = vsel %vm6103_vm11, %v6104_v4, %v11898_v6  ;;  %4607 = vmatmul.f32.vlgmr.msra.gmra.mxu3 %v13266_v50  ;;  %v13272_v4 = vmov 920167782  }
 0x318   :  { %4638 = vmatpush.msrb.mxu0 %v13263_v23  ;;  %4683 = vmatpush.msrb.mxu1 %v11428_v45  ;;  %v6106_v61 = vclz %v6105_v48  ;;  %v6904_v20 = vadd.s32 4294967169, %v6159_v46 }
 0x31a   :  { %4642 = vmatpush.msrb.mxu0 %v13265_v29  ;;  %4685 = vmatpush.msrb.mxu1 %v11448_v10  ;;  %v6902_v37 = vadd.s32 4294967294, %v6106_v61  ;;  %v6165_v38 = vadd.s32 1, %v6904_v20  ;;  %v6162_v10 = vand.u32 8388607, %v6155_v47 }
 0x31c   :  { %4646 = vmatpush.msrb.mxu0 %v13268_v57  ;;  %4687 = vmatpush.msrb.mxu1 %v11471_v53  ;;  %vm6903_vm12 = vcmp.lt.s32.totalorder %v6902_v37, 0  ;;  %vm6166_vm13 = vcmp.gt.s32.totalorder %v6165_v38, 0  ;;  %v6163_v41 = vor.u32 8388608, %v6162_v10 }
 0x31d   :  { %v6109_v45 = vsel %vm6903_vm12, 0, %v6902_v37  ;;  %v6167_v34 = vsel %vm6166_vm13, %v6165_v38, 0 }
 0x31e   :  { %4650 = vmatpush.msrb.mxu0 %v4473_v28  ;;  %4689 = vmatpush.msrb.mxu1 %v11488_v8  ;;  %v6114_v52 = vsub.s32 4294967266, %v6109_v45  ;;  %v6169_v2 = vand.u32 31, %v6167_v34  ;;  %v6110_v8 = vsub.s32 32, %v6109_v45  ;;  %v11940_v33 = vshrl.u32 %v6167_v34, 5 }
 0x31f   :  { %v6111_v14 = vshll.u32 %v11898_v6, %v6109_v45 }
 0x320   :  { %4654 = vmatpush.msrb.mxu0 %v4479_v60  ;;  %4691 = vmatpush.msrb.mxu1 %v11516_v19  ;;  %v6115_v53 = vadd.s32 127, %v6114_v52  ;;  %v11935_v28 = vsub.s32 32, %v6169_v2  ;;  %v6172_v42 = vshll.u32 %v13269_v32, %v6169_v2  ;;  %v6175_v7 = vshll.u32 %v13270_v22, %v6169_v2 }
 0x321   :  { %v6178_v60 = vshll.u32 %v13271_v36, %v6169_v2  ;;  %v6184_v58 = vshll.u32 %v13272_v4, %v6169_v2  ;;  %vm6187_vm14 = vcmp.lt.s32.totalorder %v11940_v33, 1  ;;  %vm6189_vm1 = vcmp.lt.s32.totalorder %v11940_v33, 3 }
 0x322   :  { %4658 = vmatpush.msrb.mxu0 %v4485_v63  ;;  %4693 = vmatpush.msrb.mxu1 %v13254_v0  ;;  %v6173_v19 = vshrl.u32 %v13270_v22, %v11935_v28  ;;  %v6176_v5 = vshrl.u32 %v13271_v36, %v11935_v28  ;;  %v6181_v63 = vshll.u32 %v13242_v59, %v6169_v2  ;;  %v6116_v17 = vshll.u32 %v6115_v53, 23 }
 0x323   :  { %v6094_v0 = vadd.s32 %v11788_v12, %v11817_v25  ;;  %v6179_v30 = vshrl.u32 %v13242_v59, %v11935_v28  ;;  %v6182_v23 = vshrl.u32 %v13272_v4, %v11935_v28  ;;  %v6185_v44 = vshrl.u32 %v13245_v39, %v11935_v28 }
 0x324   :  { %4662 = vmatpush.msrb.mxu0 %v4491_v27  ;;  %4695 = vmatpush.msrb.mxu1 %v11562_v51  ;;  %v11958_v27 = vor.u32 %v6173_v19, %v6172_v42  ;;  %v11960_v46 = vor.u32 %v6176_v5, %v6175_v7  ;;  %v11964_v51 = vshll.u32 %v6163_v41, 8  ;;  %v6117_v48 = vor.u32 4788187, %v6116_v17 }
 0x325   :  { %v6112_v12 = vshrl.u32 %v6094_v0, %v6110_v8  ;;  %v6180_v25 = vor.u32 %v6179_v30, %v6178_v60  ;;  %v6186_v61 = vor.u32 %v6185_v44, %v6184_v58  ;;  %vm6188_vm15 = vcmp.lt.s32.totalorder %v11940_v33, 2  ;;  %v3833_v0 = vpop.f32.mrf.mxu1 }
 0x326   :  { %4666 = vmatpush.msrb.mxu0 %v4497_v54  ;;  %4697 = vmatpush.msrb.mxu1 %v11587_v56  ;;  %v6183_v54 = vor.u32 %v6182_v23, %v6181_v63  ;;  %vm6190_vm2 = vcmp.lt.s32.totalorder %v11940_v33, 4  ;;  %v6195_v56 = vsel %vm6187_vm14, %v11958_v27, %v11960_v46  ;;  %v6204_v6 = vand.u32 65535, %v11964_v51 }
 0x327   :  { %v6205_v50 = vshrl.u32 %v11964_v51, 16  ;;  %v6192_v17 = vsel %vm6190_vm2, %v6180_v25, 2102212464 }
 0x328   :  { %4670 = vmatpush.msrb.mxu0 %v4503_v62  ;;  %4699 = vmatpush.msrb.mxu1 %v11614_v11  ;;  %v6196_v35 = vsel %vm6190_vm2, %v6183_v54, 920167782  ;;  %v6199_v11 = vsel %vm6187_vm14, %v11960_v46, %v6180_v25  ;;  %v6113_v62 = vor.u32 %v6112_v12, %v6111_v14 }
 0x329   :  { %v6197_v40 = vsel %vm6189_vm1, %v6180_v25, %v6196_v35  ;;  %v13273_v25 = vld [vmem:[#allocation35_spill] sm:$0xff] }
 0x32a   :  { %4674 = vmatpush.msrb.mxu0 %v4509_v21  ;;  %4701 = vmatpush.msrb.mxu1 %v11618_v13  ;;  %v6200_v21 = vsel %vm6190_vm2, %v6186_v61, 1326507024  ;;  %v6198_v20 = vsel %vm6188_vm15, %v6195_v56, %v6197_v40  ;;  %v6118_v13 = vand.u32 2147483647, %v6117_v48  ;;  %v6120_v10 = vcvt.s32.f32 %v6113_v62 }
 0x32b   :  { %4676 = vmatmul.f32.vlgmr.msrb.gmra.mxu0 %v13121_v24  ;;  %v6201_v29 = vsel %vm6189_vm1, %v6183_v54, %v6200_v21  ;;  %v6228_v37 = vand.u32 65535, %v6198_v20  ;;  %v6229_v38 = vshrl.u32 %v6198_v20, 16  ;;  %v3887_v54 = vpop.f32.mrf.mxu2  ;;  %vm6002_vm6 = vcmp.lt.s32.totalorder %v13273_v25, 0 }
 0x32c   :  { %4703 = vmatpush.msrb.mxu1 %v11643_v16  ;;  %v6202_v3 = vsel %vm6188_vm15, %v6199_v11, %v6201_v29  ;;  %v3732_v16 = vpop.f32.mrf.mxu0  ;;  %v6121_v7 = vmul.f32 %v6120_v10, %v6118_v13  ;;  %v3926_v11 = vpop.f32.mrf.mxu3 }
 0x32d   :  { %v6206_v57 = vand.u32 65535, %v6202_v3  ;;  %v6207_v45 = vshrl.u32 %v6202_v3, 16  ;;  %v6230_v34 = vmul.u32 %v6228_v37, %v6204_v6  ;;  %v6231_v52 = vmul.u32 %v6229_v38, %v6204_v6 }
 0x32e   :  { %4705 = vmatpush.msrb.mxu1 %v11673_v49  ;;  %v6232_v42 = vmul.u32 %v6228_v37, %v6205_v50  ;;  %v6233_v63 = vmul.u32 %v6229_v38, %v6205_v50  ;;  %v6171_v49 = vshrl.u32 %v13269_v32, %v11935_v28  ;;  %v3834_v61 = vadd.f32 %v3833_v0, %v3732_v16 }
 0x32f   :  { %v6208_v2 = vmul.u32 %v6206_v57, %v6204_v6  ;;  %v6209_v53 = vmul.u32 %v6207_v45, %v6204_v6  ;;  %v6210_v41 = vmul.u32 %v6206_v57, %v6205_v50  ;;  %v6234_v8 = vshll.u32 %v6231_v52, 16 }
 0x330   :  { %4707 = vmatpush.msrb.mxu1 %v11797_v43  ;;  %v6211_v60 = vmul.u32 %v6207_v45, %v6205_v50  ;;  %v6236_v58 = vshll.u32 %v6232_v42, 16  ;;  %v6122_v43 = vxor.u32 2147483648, %v6121_v7  ;;  %v6235_v35 = vshrl.u32 %v6231_v52, 16  ;;  %v4032_v10 = vpop.f32.mrf.mxu1 }
 0x331   :  { %v6212_v19 = vshll.u32 %v6209_v53, 16  ;;  %v6214_v5 = vshll.u32 %v6210_v41, 16  ;;  %vm6238_vm4 = vc.u32 %v6230_v34, %v6234_v8  ;;  %v6213_v23 = vshrl.u32 %v6209_v53, 16 }
 0x332   :  { %4709 = vmatpush.msrb.mxu1 %v11803_v1  ;;  %v6239_v44 = vsel %vm6238_vm4, 1, %v13251_v15  ;;  %v6240_v28 = vadd.s32 %v6234_v8, %v6230_v34  ;;  %v6215_v56 = vshrl.u32 %v6210_v41, 16  ;;  %v6191_v62 = vsel %vm6187_vm14, %v6171_v49, %v11958_v27 }
 0x333   :  { %vm6216_vm3 = vc.u32 %v6208_v2, %v6212_v19  ;;  %v6218_v30 = vadd.s32 %v6212_v19, %v6208_v2  ;;  %v6241_v14 = vadd.s32 %v6239_v44, %v6233_v63  ;;  %v3888_v21 = vadd.f32 %v3887_v54, %v3834_v61 }
 0x334   :  { %4711 = vmatpush.msrb.mxu1 %v11825_v9  ;;  %v6217_v12 = vsel %vm6216_vm3, 1, %v13251_v15  ;;  %vm6242_vm7 = vc.u32 %v6240_v28, %v6236_v58  ;;  %v6123_v6 = vsel %vm6002_vm6, %v6122_v43, %v6121_v7  ;;  %v6237_v29 = vshrl.u32 %v6232_v42, 16  ;;  %v3995_v13 = vpop.f32.mrf.mxu0 }
 0x335   :  { %4713 = vmatmul.f32.vlgmr.msrb.gmra.mxu1 %v13121_v24  ;;  %v6219_v1 = vadd.s32 %v6217_v12, %v6211_v60  ;;  %vm6220_vm5 = vc.u32 %v6218_v30, %v6214_v5  ;;  %v6193_v24 = vsel %vm6189_vm1, %v11960_v46, %v6192_v17  ;;  %v6243_v40 = vsel %vm6242_vm7, 1, %v13251_v15 }
 0x336   :  { %v6221_v48 = vsel %vm6220_vm5, 1, %v13251_v15  ;;  %v6245_v50 = vadd.s32 %v6243_v40, %v6241_v14  ;;  %v6244_v3 = vadd.s32 %v6240_v28, %v6236_v58  ;;  %v3927_v37 = vadd.f32 %v3926_v11, %v3888_v21 }
 0x337   :  { %v6223_v9 = vadd.s32 %v6221_v48, %v6219_v1  ;;  %v13274_v38 = vand.u32 2147483647, %v13273_v25  ;;  %v6194_v46 = vsel %vm6188_vm15, %v6191_v62, %v6193_v24  ;;  %v4731_v2 = vperm.slane %v13259_v26, 2 }
 0x338   :  { %v6246_v45 = vadd.s32 %v6245_v50, %v6235_v35  ;;  %v3996_v52 = vadd.f32 %v3995_v13, %v3927_v37  ;;  %v6248_v41 = vmul.u32 %v11964_v51, %v6194_v46  ;;  %v6124_v0 = vsub.s32 4, %v11882_v31 }
 0x339   :  { %v6224_v20 = vadd.s32 %v6223_v9, %v6213_v23  ;;  %vm12027_vm9 = vcmp.le.f32.partialorder %v13274_v38, 0.7853982  ;;  %vm6157_vm14 = vcmp.lt.s32.totalorder %v11896_v18, 0  ;;  %vm12109_vm3 = vcmp.le.f32.partialorder %v6155_v47, 0.7853982 }
 0x33a   :  { %v12036_v34 = vsel %vm12027_vm9, %v13273_v25, %v6123_v6  ;;  %v6247_v53 = vadd.s32 %v6246_v45, %v6237_v29  ;;  %v12040_v42 = vadd.f32 %v4032_v10, %v3996_v52  ;;  %v6125_v44 = vsel %vm6002_vm6, %v6124_v0, %v11882_v31 }
 0x33b   :  { %v6225_v57 = vadd.s32 %v6224_v20, %v6215_v56  ;;  %v12044_v33 = vmul.f32 %v12036_v34, %v12036_v34  ;;  %v6127_v56 = vsel %vm12027_vm9, 0, %v6125_v44 }
 0x33c   :  { %v6251_v16 = vadd.s32 1, %v6247_v53  ;;  %v12047_v7 = vadd.f32 %v4731_v2, %v12040_v42 }
 0x33d   :  { %vm6250_vm10 = vc.u32 %v6225_v57, %v6244_v3  ;;  %v6136_v19 = vmul.f32 -0.00019511016, %v12044_v33  ;;  %v6129_v49 = vmul.f32 -0.001358992, %v12044_v33  ;;  %v6249_v45 = vadd.s32 %v6244_v3, %v6225_v57 }
 0x33e   :  { %v6252_v8 = vsel %vm6250_vm10, %v6251_v16, %v6247_v53  ;;  %v6313_v26 = vand.u32 2139095040, %v12047_v7  ;;  %v6310_v43 = vand.u32 2147483647, %v12047_v7 }
 0x33f   :  { %v6253_v60 = vadd.s32 %v6252_v8, %v6248_v41  ;;  %v6137_v17 = vadd.f32 0.008332121, %v6136_v19  ;;  %v6130_v1 = vadd.f32 0.041655596, %v6129_v49 }
 0x340   :  { %v6314_v63 = vshrl.u32 %v6313_v26, 23  ;;  %v6317_v54 = vand.u32 8388607, %v6310_v43  ;;  %v12081_v26 = vadd.s32 3, %v6127_v56 }
 0x341   :  { %v6254_v5 = vadd.s32 536870912, %v6253_v60  ;;  %v6138_v28 = vmul.f32 %v6137_v17, %v12044_v33  ;;  %v6131_v35 = vmul.f32 %v6130_v1, %v12044_v33 }
 0x342   :  { %v6907_v30 = vadd.s32 4294967169, %v6314_v63  ;;  %v6318_v40 = vor.u32 8388608, %v6317_v54 }
 0x343   :  { %v12051_v51 = vshrl.u32 %v6254_v5, 30  ;;  %v6139_v24 = vadd.f32 -0.16666654, %v6138_v28  ;;  %v12088_v0 = vadd.f32 -0.4999988, %v6131_v35 }
 0x344   :  { %v6320_v23 = vadd.s32 1, %v6907_v30  ;;  %v12085_v3 = vshll.u32 %v6318_v40, 8 }
 0x345   :  { %v6256_v58 = vshll.u32 %v12051_v51, 30  ;;  %v6279_v1 = vsub.s32 4, %v12051_v51 }
 0x346   :  { %vm6321_vm8 = vcmp.gt.s32.totalorder %v6320_v23, 0 }
 0x347   :  { %v6257_v12 = vsub.s32 %v6253_v60, %v6256_v58  ;;  %v6322_v48 = vsel %vm6321_vm8, %v6320_v23, 0  ;;  %v6140_v58 = vmul.f32 %v6139_v24, %v12044_v33 }
 0x348   :  { %v6324_v61 = vand.u32 31, %v6322_v48  ;;  %v12069_v29 = vshrl.u32 %v6322_v48, 5 }
 0x349   :  { %vm6258_vm11 = vcmp.lt.s32.totalorder %v6257_v12, 0  ;;  %v6259_v14 = vsub.s32 0, %v6257_v12 }
 0x34a   :  { %v6325_v62 = vsub.s32 32, %v6324_v61  ;;  %v6327_v31 = vshll.u32 %v13269_v32, %v6324_v61  ;;  %v6330_v21 = vshll.u32 %v13270_v22, %v6324_v61  ;;  %v6333_v6 = vshll.u32 %v13271_v36, %v6324_v61 }
 0x34b   :  { %v6260_v9 = vsel %vm6258_vm11, %v6259_v14, %v6257_v12  ;;  %v6336_v38 = vshll.u32 %v13242_v59, %v6324_v61  ;;  %v6339_v46 = vshll.u32 %v13272_v4, %v6324_v61  ;;  %vm6342_vm13 = vcmp.lt.s32.totalorder %v12069_v29, 1 }
 0x34c   :  { %v6261_v11 = vclz %v6260_v9  ;;  %v6328_v50 = vshrl.u32 %v13270_v22, %v6325_v62  ;;  %v6331_v13 = vshrl.u32 %v13271_v36, %v6325_v62  ;;  %v6334_v37 = vshrl.u32 %v13242_v59, %v6325_v62 }
 0x34d   :  { %v6337_v27 = vshrl.u32 %v13272_v4, %v6325_v62  ;;  %v6340_v52 = vshrl.u32 %v13245_v39, %v6325_v62  ;;  %vm6345_vm1 = vcmp.lt.s32.totalorder %v12069_v29, 4  ;;  %vm6344_vm15 = vcmp.lt.s32.totalorder %v12069_v29, 3 }
 0x34e   :  { %v6905_v20 = vadd.s32 4294967294, %v6261_v11  ;;  %v6329_v10 = vor.u32 %v6328_v50, %v6327_v31  ;;  %v12078_v53 = vor.u32 %v6331_v13, %v6330_v21  ;;  %v6335_v41 = vor.u32 %v6334_v37, %v6333_v6 }
 0x34f   :  { %v6338_v16 = vor.u32 %v6337_v27, %v6336_v38  ;;  %v6341_v19 = vor.u32 %v6340_v52, %v6339_v46  ;;  %vm6343_vm2 = vcmp.lt.s32.totalorder %v12069_v29, 2  ;;  %v6326_v61 = vshrl.u32 %v13269_v32, %v6325_v62 }
 0x350   :  { %vm6906_vm12 = vcmp.lt.s32.totalorder %v6905_v20, 0  ;;  %v6350_v49 = vsel %vm6342_vm13, %v6329_v10, %v12078_v53  ;;  %v6354_v44 = vsel %vm6342_vm13, %v12078_v53, %v6335_v41  ;;  %v6359_v9 = vand.u32 65535, %v12085_v3 }
 0x351   :  { %v6264_v2 = vsel %vm6906_vm12, 0, %v6905_v20  ;;  %v6351_v17 = vsel %vm6345_vm1, %v6338_v16, 920167782  ;;  %v6355_v30 = vsel %vm6345_vm1, %v6341_v19, 1326507024  ;;  %v6360_v11 = vshrl.u32 %v12085_v3, 16 }
 0x352   :  { %v6265_v8 = vsub.s32 32, %v6264_v2  ;;  %v6269_v60 = vsub.s32 4294967266, %v6264_v2  ;;  %v6266_v57 = vshll.u32 %v6257_v12, %v6264_v2  ;;  %v6352_v28 = vsel %vm6344_vm15, %v6335_v41, %v6351_v17 }
 0x353   :  { %v6356_v14 = vsel %vm6344_vm15, %v6338_v16, %v6355_v30  ;;  %v6353_v56 = vsel %vm6343_vm2, %v6350_v49, %v6352_v28  ;;  %v6141_v20 = vadd.f32 1.0, %v6140_v58  ;;  %v12123_v62 = vsel %vm6157_vm14, %v6279_v1, %v12051_v51 }
 0x354   :  { %v6267_v5 = vshrl.u32 %v6249_v45, %v6265_v8  ;;  %v6270_v63 = vadd.s32 127, %v6269_v60  ;;  %v6357_v35 = vsel %vm6343_vm2, %v6354_v44, %v6356_v14  ;;  %v6383_v31 = vand.u32 65535, %v6353_v56 }
 0x355   :  { %v6384_v24 = vshrl.u32 %v6353_v56, 16  ;;  %v6361_v21 = vand.u32 65535, %v6357_v35  ;;  %v6362_v6 = vshrl.u32 %v6357_v35, 16  ;;  %v6346_v38 = vsel %vm6342_vm13, %v6326_v61, %v6329_v10 }
 0x356   :  { %v6268_v23 = vor.u32 %v6267_v5, %v6266_v57  ;;  %v6271_v12 = vshll.u32 %v6270_v63, 23  ;;  %v6387_v13 = vmul.u32 %v6383_v31, %v6360_v11  ;;  %v6347_v45 = vsel %vm6345_vm1, %v6335_v41, 2102212464 }
 0x357   :  { %v6386_v50 = vmul.u32 %v6384_v24, %v6359_v9  ;;  %v6364_v27 = vmul.u32 %v6362_v6, %v6359_v9  ;;  %v6365_v46 = vmul.u32 %v6361_v21, %v6360_v11  ;;  %v6385_v52 = vmul.u32 %v6383_v31, %v6359_v9 }
 0x358   :  { %v6272_v48 = vor.u32 4788187, %v6271_v12  ;;  %v6275_v47 = vcvt.s32.f32 %v6268_v23  ;;  %v6388_v2 = vmul.u32 %v6384_v24, %v6360_v11  ;;  %v6363_v60 = vmul.u32 %v6361_v21, %v6359_v9 }
 0x359   :  { %v6389_v16 = vshll.u32 %v6386_v50, 16  ;;  %v6366_v19 = vmul.u32 %v6362_v6, %v6360_v11  ;;  %v6367_v57 = vshll.u32 %v6364_v27, 16  ;;  %v6369_v51 = vshll.u32 %v6365_v46, 16  ;;  %v4174_v11 = vpop.f32.mrf.mxu3 }
 0x35a   :  { %v6273_v40 = vand.u32 2147483647, %v6272_v48  ;;  %v6391_v5 = vshll.u32 %v6387_v13, 16  ;;  %v6348_v1 = vsel %vm6344_vm15, %v12078_v53, %v6347_v45  ;;  %v6390_v14 = vshrl.u32 %v6386_v50, 16 }
 0x35b   :  { %vm6393_vm4 = vc.u32 %v6385_v52, %v6389_v16  ;;  %v6395_v63 = vadd.s32 %v6389_v16, %v6385_v52  ;;  %vm6371_vm5 = vc.u32 %v6363_v60, %v6367_v57  ;;  %v6373_v10 = vadd.s32 %v6367_v57, %v6363_v60  ;;  %v4073_v52 = vpop.f32.mrf.mxu2 }
 0x35c   :  { %v6276_v37 = vmul.f32 %v6275_v47, %v6273_v40  ;;  %v6394_v17 = vsel %vm6393_vm4, 1, %v13251_v15  ;;  %v6372_v30 = vsel %vm6371_vm5, 1, %v13251_v15  ;;  %v6368_v9 = vshrl.u32 %v6364_v27, 16  ;;  %v6776_v40 = vld [vmem:[#allocation8 + $0x8] sm:$0x1f] }
 0x35d   :  { %v6396_v58 = vadd.s32 %v6394_v17, %v6388_v2  ;;  %vm6397_vm6 = vc.u32 %v6395_v63, %v6391_v5  ;;  %v6374_v12 = vadd.s32 %v6372_v30, %v6366_v19  ;;  %vm6375_vm7 = vc.u32 %v6373_v10, %v6369_v51  ;;  %v4267_v10 = vpop.f32.mrf.mxu1 }
 0x35e   :  { %v6277_v8 = vxor.u32 2147483648, %v6276_v37  ;;  %v6398_v44 = vsel %vm6397_vm6, 1, %v13251_v15  ;;  %v6376_v28 = vsel %vm6375_vm7, 1, %v13251_v15  ;;  %v6133_v31 = vmul.f32 %v12088_v0, %v12044_v33 }
 0x35f   :  { %v6400_v48 = vadd.s32 %v6398_v44, %v6396_v58  ;;  %v6378_v35 = vadd.s32 %v6376_v28, %v6374_v12  ;;  %v6142_v24 = vmul.f32 %v6141_v20, %v12036_v34  ;;  %v6392_v47 = vshrl.u32 %v6387_v13, 16  ;;  %v4228_v13 = vpop.f32.mrf.mxu0 }
 0x360   :  { %v6278_v49 = vsel %vm6157_vm14, %v6277_v8, %v6276_v37  ;;  %v6370_v53 = vshrl.u32 %v6365_v46, 16  ;;  %v6282_v50 = vsel %vm12109_vm3, 0, %v12123_v62  ;;  %v6349_v27 = vsel %vm6343_vm2, %v6346_v38, %v6348_v1 }
 0x361   :  { %v6281_v41 = vsel %vm12109_vm3, %v11896_v18, %v6278_v49  ;;  %v6401_v21 = vadd.s32 %v6400_v48, %v6390_v14  ;;  %v6379_v45 = vadd.s32 %v6378_v35, %v6368_v9  ;;  %v4175_v16 = vadd.f32 %v4174_v11, %v4073_v52 }
 0x362   :  { %v6283_v23 = vmul.f32 %v6281_v41, %v6281_v41  ;;  %v12151_v20 = vadd.s32 %v6395_v63, %v6391_v5  ;;  %v6134_v8 = vadd.f32 1.0, %v6133_v31  ;;  %v6145_v46 = vand.u32 3, %v12081_v26 }
 0x363   :  { %v6402_v2 = vadd.s32 %v6401_v21, %v6392_v47  ;;  %v12149_v34 = vadd.s32 %v6379_v45, %v6370_v53  ;;  %vm6778_vm9 = vcmp.ne.f32.partialorder %v6776_v40, 0.0  ;;  %v6403_v62 = vmul.u32 %v12085_v3, %v6349_v27 }
 0x364   :  { %v6284_v61 = vmul.f32 -0.001358992, %v6283_v23  ;;  %v6291_v56 = vmul.f32 -0.00019511016, %v6283_v23  ;;  %v6148_v29 = vxor.u32 2147483648, %v6142_v24  ;;  %v6299_v38 = vadd.s32 3, %v6282_v50 }
 0x365   :  { %v6406_v60 = vadd.s32 1, %v6402_v2  ;;  %vm6405_vm10 = vc.u32 %v12149_v34, %v12151_v20  ;;  %v4229_v51 = vadd.f32 %v4228_v13, %v4175_v16  ;;  %vm6147_vm8 = vcmp.eq.s32.totalorder %v6145_v46, 0 }
 0x366   :  { %v6285_v6 = vadd.f32 0.041655596, %v6284_v61  ;;  %v6292_v37 = vadd.f32 0.008332121, %v6291_v56  ;;  %v6151_v17 = vxor.u32 2147483648, %v6134_v8  ;;  %v12159_v26 = vsel %vm6778_vm9, 1, %v13251_v15 }
 0x367   :  { %v6407_v57 = vsel %vm6405_vm10, %v6406_v60, %v6402_v2  ;;  %v6149_v12 = vsel %vm6147_vm8, %v6134_v8, %v6148_v29  ;;  %vm6150_vm11 = vcmp.eq.s32.totalorder %v6145_v46, 2  ;;  %v6300_v44 = vand.u32 3, %v6299_v38 }
 0x368   :  { %v6286_v33 = vmul.f32 %v6285_v6, %v6283_v23  ;;  %v6293_v0 = vmul.f32 %v6292_v37, %v6283_v23  ;;  %v6408_v63 = vadd.s32 %v6407_v57, %v6403_v62  ;;  %v4268_v1 = vadd.f32 %v4267_v10, %v4229_v51  ;;  %v12174_v37 = vld [vmem:[#allocation7 + $0x8] sm:$0x1f] }
 0x369   :  { %v6790_v48 = vperm.slane %v12159_v26, 1  ;;  %vm6146_vm12 = vcmp.lt.s32.totalorder %v6145_v46, 2  ;;  %v6152_v56 = vsel %vm6150_vm11, %v6151_v17, %v6142_v24  ;;  %v6789_v9 = vperm.slane %v12159_v26, 0 }
 0x36a   :  { %v6287_v19 = vadd.f32 -0.4999988, %v6286_v33  ;;  %v6294_v54 = vadd.f32 -0.16666654, %v6293_v0  ;;  %v6409_v3 = vadd.s32 536870912, %v6408_v63  ;;  %vm6143_vm13 = vweird.f32 %v13273_v25  ;;  %v13281_v0 = vld [vmem:[#allocation50_spill] sm:$0xff] }
 0x36b   :  { %v6153_v35 = vsel %vm6146_vm12, %v6149_v12, %v6152_v56  ;;  %vm6301_vm14 = vcmp.lt.s32.totalorder %v6300_v44, 2  ;;  %vm6302_vm1 = vcmp.eq.s32.totalorder %v6300_v44, 0  ;;  %vm6305_vm15 = vcmp.eq.s32.totalorder %v6300_v44, 2 }
 0x36c   :  { %v6288_v49 = vmul.f32 %v6287_v19, %v6283_v23  ;;  %v6295_v5 = vmul.f32 %v6294_v54, %v6283_v23  ;;  %v12162_v23 = vshrl.u32 %v6409_v3, 30  ;;  %vm6803_vm2 = vcmp.eq.s32.totalorder %v6790_v48, 1 }
 0x36d   :  { %vm12169_vm3 = vcmp.eq.s32.totalorder %v6789_v9, 1  ;;  %vm6298_vm4 = vweird.f32 %v11896_v18  ;;  %v4732_v53 = vperm.slane %v12174_v37, 3  ;;  %v6154_v45 = vsel %vm6143_vm13, nan, %v6153_v35 }
 0x36e   :  { %v6289_v30 = vadd.f32 1.0, %v6288_v49  ;;  %v6296_v58 = vadd.f32 1.0, %v6295_v5  ;;  %v6411_v31 = vshll.u32 %v12162_v23, 30  ;;  %v6815_v13 = vsel %vm12169_vm3, %v13281_v0, %v6154_v45 }
 0x36f   :  { %v6404_v44 = vadd.s32 %v12151_v20, %v12149_v34 }
 0x370   :  { %v6297_v28 = vmul.f32 %v6296_v58, %v6281_v41  ;;  %v6306_v14 = vxor.u32 2147483648, %v6289_v30  ;;  %v4336_v61 = vpop.f32.mrf.mxu2  ;;  %v12167_v21 = vsub.s32 %v6408_v63, %v6411_v31 }
 0x371   :  { %v4337_v41 = vadd.f32 %v4336_v61, %v4268_v1 }
 0x372   :  { %v6303_v11 = vxor.u32 2147483648, %v6297_v28  ;;  %v6307_v47 = vsel %vm6305_vm15, %v6306_v14, %v6297_v28  ;;  %vm6413_vm5 = vcmp.lt.s32.totalorder %v12167_v21, 0  ;;  %v6414_v50 = vsub.s32 0, %v12167_v21 }
 0x373   :  { %vm6312_vm15 = vcmp.lt.s32.totalorder %v12047_v7, 0 }
 0x374   :  { %v6304_v40 = vsel %vm6302_vm1, %v6289_v30, %v6303_v11  ;;  %v4373_v27 = vpop.f32.mrf.mxu3  ;;  %v6415_v18 = vsel %vm6413_vm5, %v6414_v50, %v12167_v21 }
 0x375   :  { %v6308_v24 = vsel %vm6301_vm14, %v6304_v40, %v6307_v47  ;;  %v12182_v16 = vadd.f32 %v4373_v27, %v4337_v41  ;;  %v6416_v8 = vclz %v6415_v18 }
 0x376   :  { %v6309_v52 = vsel %vm6298_vm4, nan, %v6308_v24 }
 0x377   :  { %v6816_v2 = vsel %vm6803_vm2, %v11888_v55, %v6309_v52  ;;  %v12189_v25 = vadd.f32 %v4732_v53, %v12182_v16  ;;  %v6908_v60 = vadd.s32 4294967294, %v6416_v8  ;;  %vm12253_vm2 = vcmp.le.f32.partialorder %v6310_v43, 0.7853982 }
 0x378   :  { %v6836_v33 = vrot.slane %v6816_v2, 4 }
 0x379   :  { %v6468_v19 = vand.u32 2139095040, %v12189_v25  ;;  %vm6909_vm6 = vcmp.lt.s32.totalorder %v6908_v60, 0  ;;  %v6465_v54 = vand.u32 2147483647, %v12189_v25 }
 0x37a   :  { %v6843_v46 = vsel %vm6838_vm0, %v6815_v13, %v6836_v33  ;;  %v6419_v29 = vsel %vm6909_vm6, 0, %v6908_v60 }
 0x37b   :  { %6855 = vst [vmem:[#allocation10 + $0x20] sm:$0xff] %v6843_v46  ;;  %v6469_v55 = vshrl.u32 %v6468_v19, 23  ;;  %v6472_v57 = vand.u32 8388607, %v6465_v54  ;;  %v6424_v51 = vsub.s32 4294967266, %v6419_v29  ;;  %v6420_v1 = vsub.s32 32, %v6419_v29 }
 0x37c   :  { %v6421_v53 = vshll.u32 %v12167_v21, %v6419_v29 }
 0x37d   :  { %v6910_v62 = vadd.s32 4294967169, %v6469_v55  ;;  %v6473_v5 = vor.u32 8388608, %v6472_v57  ;;  %v6425_v10 = vadd.s32 127, %v6424_v51  ;;  %v6422_v6 = vshrl.u32 %v6404_v44, %v6420_v1 }
 0x37f   :  { %v6475_v38 = vadd.s32 1, %v6910_v62  ;;  %v12208_v9 = vshll.u32 %v6473_v5, 8  ;;  %v6426_v35 = vshll.u32 %v6425_v10, 23  ;;  %v6423_v13 = vor.u32 %v6422_v6, %v6421_v53 }
 0x381   :  { %vm6476_vm7 = vcmp.gt.s32.totalorder %v6475_v38, 0  ;;  %v6514_v50 = vand.u32 65535, %v12208_v9  ;;  %v6427_v27 = vor.u32 4788187, %v6426_v35  ;;  %v6515_v18 = vshrl.u32 %v12208_v9, 16 }
 0x382   :  { %v6477_v49 = vsel %vm6476_vm7, %v6475_v38, 0  ;;  %vm6467_vm7 = vcmp.lt.s32.totalorder %v12189_v25, 0 }
 0x383   :  { %v6479_v63 = vand.u32 31, %v6477_v49  ;;  %v12196_v17 = vshrl.u32 %v6477_v49, 5  ;;  %v6428_v62 = vand.u32 2147483647, %v6427_v27  ;;  %v6430_v49 = vcvt.s32.f32 %v6423_v13 }
 0x385   :  { %v6480_v30 = vsub.s32 32, %v6479_v63  ;;  %v6482_v58 = vshll.u32 %v13269_v32, %v6479_v63  ;;  %v6485_v3 = vshll.u32 %v13270_v22, %v6479_v63  ;;  %v6488_v12 = vshll.u32 %v13271_v36, %v6479_v63 }
 0x386   :  { %v6491_v28 = vshll.u32 %v13242_v59, %v6479_v63  ;;  %v6494_v14 = vshll.u32 %v13272_v4, %v6479_v63  ;;  %vm6497_vm9 = vcmp.lt.s32.totalorder %v12196_v17, 1  ;;  %vm6500_vm10 = vcmp.lt.s32.totalorder %v12196_v17, 4 }
 0x387   :  { %v6483_v48 = vshrl.u32 %v13270_v22, %v6480_v30  ;;  %v6486_v61 = vshrl.u32 %v13271_v36, %v6480_v30  ;;  %v6489_v56 = vshrl.u32 %v13242_v59, %v6480_v30  ;;  %v6492_v11 = vshrl.u32 %v13272_v4, %v6480_v30 }
 0x388   :  { %v6495_v31 = vshrl.u32 %v13245_v39, %v6480_v30  ;;  %vm6499_vm8 = vcmp.lt.s32.totalorder %v12196_v17, 3  ;;  %vm6498_vm11 = vcmp.lt.s32.totalorder %v12196_v17, 2 }
 0x389   :  { %v6484_v34 = vor.u32 %v6483_v48, %v6482_v58  ;;  %v6487_v20 = vor.u32 %v6486_v61, %v6485_v3  ;;  %v6490_v41 = vor.u32 %v6489_v56, %v6488_v12  ;;  %v6493_v40 = vor.u32 %v6492_v11, %v6491_v28 }
 0x38a   :  { %v6496_v47 = vor.u32 %v6495_v31, %v6494_v14  ;;  %v6431_v12 = vmul.f32 %v6430_v49, %v6428_v62  ;;  %v6481_v48 = vshrl.u32 %v13269_v32, %v6480_v30 }
 0x38b   :  { %v6505_v24 = vsel %vm6497_vm9, %v6484_v34, %v6487_v20  ;;  %v6506_v45 = vsel %vm6500_vm10, %v6493_v40, 920167782  ;;  %v6509_v52 = vsel %vm6497_vm9, %v6487_v20, %v6490_v41  ;;  %v6502_v35 = vsel %vm6500_vm10, %v6490_v41, 2102212464 }
 0x38c   :  { %v6507_v2 = vsel %vm6499_vm8, %v6490_v41, %v6506_v45  ;;  %v6510_v33 = vsel %vm6500_vm10, %v6496_v47, 1326507024 }
 0x38d   :  { %v6508_v21 = vsel %vm6498_vm11, %v6505_v24, %v6507_v2  ;;  %v6511_v0 = vsel %vm6499_vm8, %v6493_v40, %v6510_v33  ;;  %v6432_v40 = vxor.u32 2147483648, %v6431_v12 }
 0x38e   :  { %v6512_v8 = vsel %vm6498_vm11, %v6509_v52, %v6511_v0  ;;  %v6538_v46 = vand.u32 65535, %v6508_v21  ;;  %v6539_v60 = vshrl.u32 %v6508_v21, 16  ;;  %v6501_v52 = vsel %vm6497_vm9, %v6481_v48, %v6484_v34 }
 0x38f   :  { %v6516_v19 = vand.u32 65535, %v6512_v8  ;;  %v6517_v55 = vshrl.u32 %v6512_v8, 16  ;;  %v6433_v21 = vsel %vm6312_vm15, %v6432_v40, %v6431_v12  ;;  %vm12297_vm9 = vcmp.le.f32.partialorder %v6465_v54, 0.7853982 }
 0x390   :  { %v6541_v29 = vmul.u32 %v6539_v60, %v6514_v50  ;;  %v6542_v38 = vmul.u32 %v6538_v46, %v6515_v18  ;;  %v6540_v63 = vmul.u32 %v6538_v46, %v6514_v50  ;;  %v6543_v14 = vmul.u32 %v6539_v60, %v6515_v18  ;;  %v4414_v13 = vpop.f32.mrf.mxu0 }
 0x391   :  { %v6518_v57 = vmul.u32 %v6516_v19, %v6514_v50  ;;  %v6519_v51 = vmul.u32 %v6517_v55, %v6514_v50  ;;  %v6520_v5 = vmul.u32 %v6516_v19, %v6515_v18  ;;  %v6521_v58 = vmul.u32 %v6517_v55, %v6515_v18 }
 0x392   :  { %v6544_v10 = vshll.u32 %v6541_v29, 16  ;;  %v6546_v1 = vshll.u32 %v6542_v38, 16  ;;  %v6545_v45 = vshrl.u32 %v6541_v29, 16  ;;  %v6503_v50 = vsel %vm6499_vm8, %v6487_v20, %v6502_v35  ;;  %v4515_v27 = vpop.f32.mrf.mxu1 }
 0x393   :  { %v6522_v3 = vshll.u32 %v6519_v51, 16  ;;  %v6524_v44 = vshll.u32 %v6520_v5, 16  ;;  %v6523_v11 = vshrl.u32 %v6519_v51, 16  ;;  %v6525_v24 = vshrl.u32 %v6520_v5, 16 }
 0x394   :  { %vm6548_vm13 = vc.u32 %v6540_v63, %v6544_v10  ;;  %v6550_v56 = vadd.s32 %v6544_v10, %v6540_v63  ;;  %v6547_v33 = vshrl.u32 %v6542_v38, 16  ;;  %v6504_v8 = vsel %vm6498_vm11, %v6501_v52, %v6503_v50  ;;  %v4569_v19 = vpop.f32.mrf.mxu2 }
 0x395   :  { %vm6526_vm12 = vc.u32 %v6518_v57, %v6522_v3  ;;  %v6528_v28 = vadd.s32 %v6522_v3, %v6518_v57  ;;  %v6549_v6 = vsel %vm6548_vm13, 1, %v13251_v15  ;;  %v4516_v60 = vadd.f32 %v4515_v27, %v4414_v13 }
 0x396   :  { %v6527_v61 = vsel %vm6526_vm12, 1, %v13251_v15  ;;  %vm6552_vm1 = vc.u32 %v6550_v56, %v6546_v1  ;;  %v6551_v30 = vadd.s32 %v6549_v6, %v6543_v14  ;;  %v6554_v0 = vadd.s32 %v6550_v56, %v6546_v1 }
 0x397   :  { %v6529_v31 = vadd.s32 %v6527_v61, %v6521_v58  ;;  %vm6530_vm14 = vc.u32 %v6528_v28, %v6524_v44  ;;  %v6553_v41 = vsel %vm6552_vm1, 1, %v13251_v15  ;;  %v12260_v55 = vsel %vm12253_vm2, %v12047_v7, %v6433_v21 }
 0x398   :  { %v6531_v47 = vsel %vm6530_vm14, 1, %v13251_v15  ;;  %v6555_v18 = vadd.s32 %v6553_v41, %v6551_v30  ;;  %v6558_v29 = vmul.u32 %v12208_v9, %v6504_v8  ;;  %v4570_v38 = vadd.f32 %v4569_v19, %v4516_v60 }
 0x399   :  { %v6533_v53 = vadd.s32 %v6531_v47, %v6529_v31  ;;  %v6438_v57 = vmul.f32 %v12260_v55, %v12260_v55  ;;  %v4733_v1 = vperm.slane %v12174_v37, 4  ;;  %v6434_v56 = vsub.s32 4, %v12162_v23 }
 0x39a   :  { %v6556_v46 = vadd.s32 %v6555_v18, %v6545_v45  ;;  %v4608_v51 = vpop.f32.mrf.mxu3 }
 0x39b   :  { %v6534_v2 = vadd.s32 %v6533_v53, %v6523_v11  ;;  %v4609_v5 = vadd.f32 %v4608_v51, %v4570_v38  ;;  %v6439_v63 = vmul.f32 -0.001358992, %v6438_v57  ;;  %v6446_v10 = vmul.f32 -0.00019511016, %v6438_v57 }
 0x39c   :  { %v6557_v62 = vadd.s32 %v6556_v46, %v6547_v33  ;;  %v6435_v37 = vsel %vm6312_vm15, %v6434_v56, %v12162_v23 }
 0x39d   :  { %v6535_v34 = vadd.s32 %v6534_v2, %v6525_v24  ;;  %v6440_v9 = vadd.f32 0.041655596, %v6439_v63  ;;  %v6447_v28 = vadd.f32 0.008332121, %v6446_v10  ;;  %v6437_v50 = vsel %vm12253_vm2, 0, %v6435_v37 }
 0x39e   :  { %v6561_v17 = vadd.s32 1, %v6557_v62  ;;  %v6454_v13 = vadd.s32 3, %v6437_v50 }
 0x39f   :  { %vm6560_vm3 = vc.u32 %v6535_v34, %v6554_v0  ;;  %v6441_v31 = vmul.f32 %v6440_v9, %v6438_v57  ;;  %v6448_v40 = vmul.f32 %v6447_v28, %v6438_v57  ;;  %v6559_v46 = vadd.s32 %v6554_v0, %v6535_v34 }
 0x3a0   :  { %v6562_v43 = vsel %vm6560_vm3, %v6561_v17, %v6557_v62  ;;  %v12286_v51 = vand.u32 3, %v6454_v13 }
 0x3a1   :  { %v6563_v49 = vadd.s32 %v6562_v43, %v6558_v29  ;;  %v6442_v30 = vadd.f32 -0.4999988, %v6441_v31  ;;  %v6449_v52 = vadd.f32 -0.16666654, %v6448_v40 }
 0x3a2   :  { %vm6457_vm13 = vcmp.eq.s32.totalorder %v12286_v51, 0  ;;  %vm6460_vm1 = vcmp.eq.s32.totalorder %v12286_v51, 2  ;;  %vm6456_vm15 = vcmp.lt.s32.totalorder %v12286_v51, 2 }
 0x3a3   :  { %v6564_v58 = vadd.s32 536870912, %v6563_v49  ;;  %v6443_v18 = vmul.f32 %v6442_v30, %v6438_v57  ;;  %v6450_v21 = vmul.f32 %v6449_v52, %v6438_v57 }
 0x3a5   :  { %v12265_v12 = vshrl.u32 %v6564_v58, 30  ;;  %v12284_v38 = vadd.f32 1.0, %v6443_v18 }
 0x3a7   :  { %v6566_v14 = vshll.u32 %v12265_v12, 30  ;;  %v6589_v34 = vsub.s32 4, %v12265_v12 }
 0x3a8   :  { %v4677_v3 = vpop.f32.mrf.mxu0 }
 0x3a9   :  { %v4678_v44 = vadd.f32 %v4677_v3, %v4609_v5  ;;  %v6567_v35 = vsub.s32 %v6563_v49, %v6566_v14  ;;  %v6451_v49 = vadd.f32 1.0, %v6450_v21  ;;  %v6590_v50 = vsel %vm6467_vm7, %v6589_v34, %v12265_v12 }
 0x3ab   :  { %vm6568_vm4 = vcmp.lt.s32.totalorder %v6567_v35, 0  ;;  %v6569_v47 = vsub.s32 0, %v6567_v35 }
 0x3ad   :  { %v6570_v24 = vsel %vm6568_vm4, %v6569_v47, %v6567_v35 }
 0x3ae   :  { %v6571_v53 = vclz %v6570_v24 }
 0x3b0   :  { %v6911_v41 = vadd.s32 4294967294, %v6571_v53 }
 0x3b2   :  { %v4714_v48 = vpop.f32.mrf.mxu1  ;;  %vm6912_vm5 = vcmp.lt.s32.totalorder %v6911_v41, 0 }
 0x3b3   :  { %v12269_v61 = vadd.f32 %v4714_v48, %v4678_v44  ;;  %v6574_v8 = vsel %vm6912_vm5, 0, %v6911_v41 }
 0x3b4   :  { %v6575_v23 = vsub.s32 32, %v6574_v8  ;;  %v6579_v60 = vsub.s32 4294967266, %v6574_v8  ;;  %v6576_v20 = vshll.u32 %v6567_v35, %v6574_v8 }
 0x3b5   :  { %v12273_v11 = vadd.f32 %v4733_v1, %v12269_v61 }
 0x3b6   :  { %v6577_v29 = vshrl.u32 %v6559_v46, %v6575_v23  ;;  %v6580_v17 = vadd.s32 127, %v6579_v60  ;;  %v6592_v60 = vsel %vm12297_vm9, 0, %v6590_v50 }
 0x3b7   :  { %v6623_v6 = vand.u32 2139095040, %v12273_v11  ;;  %v6620_v2 = vand.u32 2147483647, %v12273_v11 }
 0x3b8   :  { %v6578_v57 = vor.u32 %v6577_v29, %v6576_v20  ;;  %v6581_v0 = vshll.u32 %v6580_v17, 23  ;;  %v6461_v29 = vxor.u32 2147483648, %v12284_v38 }
 0x3b9   :  { %v6624_v45 = vshrl.u32 %v6623_v6, 23  ;;  %v6627_v19 = vand.u32 8388607, %v6620_v2 }
 0x3ba   :  { %v6582_v44 = vor.u32 4788187, %v6581_v0  ;;  %v6585_v1 = vcvt.s32.f32 %v6578_v57 }
 0x3bb   :  { %v6913_v27 = vadd.s32 4294967169, %v6624_v45  ;;  %v6628_v5 = vor.u32 8388608, %v6627_v19  ;;  %v12325_v45 = vmul.f32 %v6451_v49, %v12260_v55 }
 0x3bc   :  { %v6583_v35 = vand.u32 2147483647, %v6582_v44 }
 0x3bd   :  { %v6630_v33 = vadd.s32 1, %v6913_v27  ;;  %v6458_v49 = vxor.u32 2147483648, %v12325_v45 }
 0x3be   :  { %v6586_v24 = vmul.f32 %v6585_v1, %v6583_v35 }
 0x3bf   :  { %vm6631_vm6 = vcmp.gt.s32.totalorder %v6630_v33, 0 }
 0x3c0   :  { %v6632_v62 = vsel %vm6631_vm6, %v6630_v33, 0  ;;  %v6587_v30 = vxor.u32 2147483648, %v6586_v24 }
 0x3c1   :  { %v6634_v43 = vand.u32 31, %v6632_v62  ;;  %v12290_v63 = vshrl.u32 %v6632_v62, 5 }
 0x3c2   :  { %v6588_v33 = vsel %vm6467_vm7, %v6587_v30, %v6586_v24 }
 0x3c3   :  { %v12292_v10 = vsub.s32 32, %v6634_v43  ;;  %v6637_v58 = vshll.u32 %v13269_v32, %v6634_v43  ;;  %v6640_v9 = vshll.u32 %v13270_v22, %v6634_v43  ;;  %v6643_v28 = vshll.u32 %v13271_v36, %v6634_v43 }
 0x3c4   :  { %v6646_v54 = vshll.u32 %v13242_v59, %v6634_v43  ;;  %v6649_v40 = vshll.u32 %v13272_v4, %v6634_v43  ;;  %vm6652_vm10 = vcmp.lt.s32.totalorder %v12290_v63, 1  ;;  %vm6655_vm8 = vcmp.lt.s32.totalorder %v12290_v63, 4 }
 0x3c5   :  { %v6638_v14 = vshrl.u32 %v13270_v22, %v12292_v10  ;;  %v6641_v48 = vshrl.u32 %v13271_v36, %v12292_v10  ;;  %v6644_v56 = vshrl.u32 %v13242_v59, %v12292_v10  ;;  %v6647_v31 = vshrl.u32 %v13272_v4, %v12292_v10 }
 0x3c6   :  { %v6650_v47 = vshrl.u32 %v13245_v39, %v12292_v10  ;;  %v12321_v36 = vshll.u32 %v6628_v5, 8  ;;  %vm6654_vm11 = vcmp.lt.s32.totalorder %v12290_v63, 3  ;;  %vm6653_vm12 = vcmp.lt.s32.totalorder %v12290_v63, 2 }
 0x3c7   :  { %v12315_v6 = vor.u32 %v6638_v14, %v6637_v58  ;;  %v12317_v22 = vor.u32 %v6641_v48, %v6640_v9  ;;  %v12319_v37 = vor.u32 %v6644_v56, %v6643_v28  ;;  %v6648_v53 = vor.u32 %v6647_v31, %v6646_v54 }
 0x3c8   :  { %v6651_v59 = vor.u32 %v6650_v47, %v6649_v40  ;;  %v6669_v12 = vand.u32 65535, %v12321_v36  ;;  %v6591_v13 = vsel %vm12297_vm9, %v12189_v25, %v6588_v33  ;;  %v6670_v8 = vshrl.u32 %v12321_v36, 16 }
 0x3c9   :  { %v6660_v39 = vsel %vm6652_vm10, %v12315_v6, %v12317_v22  ;;  %v6664_v4 = vsel %vm6652_vm10, %v12317_v22, %v12319_v37  ;;  %v6661_v52 = vsel %vm6655_vm8, %v6648_v53, 920167782  ;;  %v6593_v19 = vmul.f32 %v6591_v13, %v6591_v13 }
 0x3ca   :  { %v6665_v55 = vsel %vm6655_vm8, %v6651_v59, 1326507024  ;;  %v6662_v41 = vsel %vm6654_vm11, %v12319_v37, %v6661_v52  ;;  %v6609_v5 = vadd.s32 3, %v6592_v60 }
 0x3cb   :  { %v6666_v27 = vsel %vm6654_vm11, %v6648_v53, %v6665_v55  ;;  %v6663_v18 = vsel %vm6653_vm12, %v6660_v39, %v6662_v41  ;;  %v6594_v57 = vmul.f32 -0.001358992, %v6593_v19  ;;  %v6601_v0 = vmul.f32 -0.00019511016, %v6593_v19 }
 0x3cc   :  { %v6667_v21 = vsel %vm6653_vm12, %v6664_v4, %v6666_v27  ;;  %v6693_v62 = vand.u32 65535, %v6663_v18  ;;  %v6694_v20 = vshrl.u32 %v6663_v18, 16  ;;  %v6459_v27 = vsel %vm6457_vm13, %v12284_v38, %v6458_v49 }
 0x3cd   :  { %v6671_v46 = vand.u32 65535, %v6667_v21  ;;  %v6672_v23 = vshrl.u32 %v6667_v21, 16  ;;  %v6595_v3 = vadd.f32 0.041655596, %v6594_v57  ;;  %v6602_v9 = vadd.f32 0.008332121, %v6601_v0 }
 0x3ce   :  { %v6696_v34 = vmul.u32 %v6694_v20, %v6669_v12  ;;  %v6695_v14 = vmul.u32 %v6693_v62, %v6669_v12  ;;  %v6697_v56 = vmul.u32 %v6693_v62, %v6670_v8  ;;  %v6698_v53 = vmul.u32 %v6694_v20, %v6670_v8 }
 0x3cf   :  { %v6674_v17 = vmul.u32 %v6672_v23, %v6669_v12  ;;  %v6675_v43 = vmul.u32 %v6671_v46, %v6670_v8  ;;  %v6673_v58 = vmul.u32 %v6671_v46, %v6669_v12  ;;  %v6676_v44 = vmul.u32 %v6672_v23, %v6670_v8 }
 0x3d0   :  { %v6699_v54 = vshll.u32 %v6696_v34, 16  ;;  %v6596_v35 = vmul.f32 %v6595_v3, %v6593_v19  ;;  %v6603_v31 = vmul.f32 %v6602_v9, %v6593_v19  ;;  %v6701_v55 = vshll.u32 %v6697_v56, 16 }
 0x3d1   :  { %v6677_v1 = vshll.u32 %v6674_v17, 16  ;;  %v6679_v28 = vshll.u32 %v6675_v43, 16  ;;  %v6678_v40 = vshrl.u32 %v6674_v17, 16  ;;  %v6610_v21 = vand.u32 3, %v6609_v5 }
 0x3d2   :  { %vm6703_vm3 = vc.u32 %v6695_v14, %v6699_v54  ;;  %v6597_v59 = vadd.f32 -0.4999988, %v6596_v35  ;;  %v6604_v39 = vadd.f32 -0.16666654, %v6603_v31  ;;  %v6705_v50 = vadd.s32 %v6699_v54, %v6695_v14 }
 0x3d3   :  { %vm6681_vm14 = vc.u32 %v6673_v58, %v6677_v1  ;;  %v6683_v48 = vadd.s32 %v6677_v1, %v6673_v58  ;;  %v6704_v30 = vsel %vm6703_vm3, 1, %v13251_v15  ;;  %v6636_v12 = vshrl.u32 %v13269_v32, %v12292_v10 }
 0x3d4   :  { %v6682_v47 = vsel %vm6681_vm14, 1, %v13251_v15  ;;  %v6706_v41 = vadd.s32 %v6704_v30, %v6698_v53  ;;  %v6598_v33 = vmul.f32 %v6597_v59, %v6593_v19  ;;  %v6605_v18 = vmul.f32 %v6604_v39, %v6593_v19 }
 0x3d5   :  { %v6684_v24 = vadd.s32 %v6682_v47, %v6676_v44  ;;  %vm6685_vm2 = vc.u32 %v6683_v48, %v6679_v28  ;;  %v6657_v8 = vsel %vm6655_vm8, %v12319_v37, 2102212464  ;;  %vm6707_vm4 = vc.u32 %v6705_v50, %v6701_v55 }
 0x3d6   :  { %v6686_v4 = vsel %vm6685_vm2, 1, %v13251_v15  ;;  %v6599_v23 = vadd.f32 1.0, %v6598_v33  ;;  %v6606_v60 = vadd.f32 1.0, %v6605_v18  ;;  %v6680_v62 = vshrl.u32 %v6675_v43, 16 }
 0x3d7   :  { %v6688_v52 = vadd.s32 %v6686_v4, %v6684_v24  ;;  %v6708_v20 = vsel %vm6707_vm4, 1, %v13251_v15  ;;  %v6792_v17 = vperm.slane %v12159_v26, 3  ;;  %v6656_v38 = vsel %vm6652_vm10, %v6636_v12, %v12315_v6 }
 0x3d8   :  { %v6700_v19 = vshrl.u32 %v6696_v34, 16  ;;  %v6710_v49 = vadd.s32 %v6708_v20, %v6706_v41  ;;  %v6607_v32 = vmul.f32 %v6606_v60, %v6591_v13  ;;  %v6616_v10 = vxor.u32 2147483648, %v6599_v23 }
 0x3d9   :  { %v6689_v46 = vadd.s32 %v6688_v52, %v6678_v40  ;;  %v6658_v37 = vsel %vm6654_vm11, %v12317_v22, %v6657_v8  ;;  %v6462_v43 = vsel %vm6460_vm1, %v6461_v29, %v12325_v45  ;;  %v6791_v15 = vperm.slane %v12159_v26, 2 }
 0x3da   :  { %v6702_v0 = vshrl.u32 %v6697_v56, 16  ;;  %v6711_v5 = vadd.s32 %v6710_v49, %v6700_v19  ;;  %v6463_v6 = vsel %vm6456_vm15, %v6459_v27, %v6462_v43  ;;  %vm6611_vm5 = vcmp.lt.s32.totalorder %v6610_v21, 2 }
 0x3db   :  { %v6690_v57 = vadd.s32 %v6689_v46, %v6680_v62  ;;  %v6613_v34 = vxor.u32 2147483648, %v6607_v32  ;;  %v6709_v13 = vadd.s32 %v6705_v50, %v6701_v55  ;;  %vm6612_vm6 = vcmp.eq.s32.totalorder %v6610_v21, 0 }
 0x3dc   :  { %vm6615_vm7 = vcmp.eq.s32.totalorder %v6610_v21, 2  ;;  %v6659_v22 = vsel %vm6653_vm12, %v6656_v38, %v6658_v37  ;;  %v6712_v58 = vadd.s32 %v6711_v5, %v6702_v0  ;;  %vm6805_vm9 = vcmp.eq.s32.totalorder %v6792_v17, 1 }
 0x3dd   :  { %v6614_v44 = vsel %vm6612_vm6, %v6599_v23, %v6613_v34  ;;  %v6617_v1 = vsel %vm6615_vm7, %v6616_v10, %v6607_v32  ;;  %vm6715_vm10 = vc.u32 %v6690_v57, %v6709_v13  ;;  %vm6453_vm8 = vweird.f32 %v12047_v7 }
 0x3de   :  { %vm6608_vm11 = vweird.f32 %v12189_v25  ;;  %v6618_v45 = vsel %vm6611_vm5, %v6614_v44, %v6617_v1  ;;  %v6716_v51 = vadd.s32 1, %v6712_v58  ;;  %v6464_v29 = vsel %vm6453_vm8, nan, %v6463_v6 }
 0x3df   :  { %vm6804_vm13 = vcmp.eq.s32.totalorder %v6791_v15, 1  ;;  %v6619_v3 = vsel %vm6608_vm11, nan, %v6618_v45  ;;  %v6713_v9 = vmul.u32 %v12321_v36, %v6659_v22  ;;  %vm6621_vm1 = vcmp.le.f32.partialorder %v6620_v2, 0.7853982 }
 0x3e0   :  { %v6818_v28 = vsel %vm6805_vm9, %v12182_v16, %v6619_v3  ;;  %v6717_v63 = vsel %vm6715_vm10, %v6716_v51, %v6712_v58  ;;  %v6817_v56 = vsel %vm6804_vm13, %v12040_v42, %v6464_v29  ;;  %v6714_v16 = vadd.s32 %v6709_v13, %v6690_v57 }
 0x3e1   :  { %v6837_v14 = vrot.slane %v6818_v28, 4  ;;  %v6718_v48 = vadd.s32 %v6717_v63, %v6713_v9  ;;  %v6793_v34 = vperm.slane %v12159_v26, 4  ;;  %vm6763_vm5 = vweird.f32 %v12273_v11 }
 0x3e3   :  { %v6844_v54 = vsel %vm6838_vm0, %v6817_v56, %v6837_v14  ;;  %v6719_v35 = vadd.s32 536870912, %v6718_v48  ;;  %vm6622_vm0 = vcmp.lt.s32.totalorder %v12273_v11, 0  ;;  %vm6806_vm4 = vcmp.eq.s32.totalorder %v6793_v34, 1 }
 0x3e4   :  { %6856 = vst [vmem:[#allocation10 + $0x28] sm:$0xff] %v6844_v54 }
 0x3e5   :  { %v6720_v7 = vshrl.u32 %v6719_v35, 30 }
 0x3e7   :  { %v6721_v25 = vshll.u32 %v6720_v7, 30  ;;  %v6744_v12 = vsub.s32 4, %v6720_v7 }
 0x3e9   :  { %v6722_v31 = vsub.s32 %v6718_v48, %v6721_v25  ;;  %v6745_v62 = vsel %vm6622_vm0, %v6744_v12, %v6720_v7 }
 0x3ea   :  { %v6747_v38 = vsel %vm6621_vm1, 0, %v6745_v62 }
 0x3eb   :  { %vm6723_vm12 = vcmp.lt.s32.totalorder %v6722_v31, 0  ;;  %v6724_v40 = vsub.s32 0, %v6722_v31  ;;  %v6764_v37 = vadd.s32 3, %v6747_v38 }
 0x3ed   :  { %v6725_v47 = vsel %vm6723_vm12, %v6724_v40, %v6722_v31  ;;  %v6765_v0 = vand.u32 3, %v6764_v37 }
 0x3ee   :  { %v6726_v24 = vclz %v6725_v47 }
 0x3ef   :  { %vm6767_vm15 = vcmp.eq.s32.totalorder %v6765_v0, 0  ;;  %vm6770_vm2 = vcmp.eq.s32.totalorder %v6765_v0, 2  ;;  %vm6766_vm3 = vcmp.lt.s32.totalorder %v6765_v0, 2 }
 0x3f0   :  { %v6914_v53 = vadd.s32 4294967294, %v6726_v24 }
 0x3f2   :  { %vm6915_vm14 = vcmp.lt.s32.totalorder %v6914_v53, 0 }
 0x3f3   :  { %v6729_v36 = vsel %vm6915_vm14, 0, %v6914_v53 }
 0x3f4   :  { %v6730_v59 = vsub.s32 32, %v6729_v36  ;;  %v6734_v39 = vsub.s32 4294967266, %v6729_v36  ;;  %v6731_v4 = vshll.u32 %v6722_v31, %v6729_v36 }
 0x3f6   :  { %v6732_v30 = vshrl.u32 %v6714_v16, %v6730_v59  ;;  %v6735_v42 = vadd.s32 127, %v6734_v39 }
 0x3f8   :  { %v6733_v52 = vor.u32 %v6732_v30, %v6731_v4  ;;  %v6736_v55 = vshll.u32 %v6735_v42, 23 }
 0x3fa   :  { %v6737_v50 = vor.u32 4788187, %v6736_v55  ;;  %v6740_v27 = vcvt.s32.f32 %v6733_v52 }
 0x3fc   :  { %v6738_v41 = vand.u32 2147483647, %v6737_v50 }
 0x3fe   :  { %v6741_v33 = vmul.f32 %v6740_v27, %v6738_v41 }
 0x400   :  { %v6742_v18 = vxor.u32 2147483648, %v6741_v33 }
 0x402   :  { %v6743_v21 = vsel %vm6622_vm0, %v6742_v18, %v6741_v33 }
 0x403   :  { %v6746_v8 = vsel %vm6621_vm1, %v12273_v11, %v6743_v21 }
 0x404   :  { %v6748_v46 = vmul.f32 %v6746_v8, %v6746_v8 }
 0x406   :  { %v6749_v23 = vmul.f32 -0.001358992, %v6748_v46  ;;  %v6756_v60 = vmul.f32 -0.00019511016, %v6748_v46 }
 0x408   :  { %v6750_v20 = vadd.f32 0.041655596, %v6749_v23  ;;  %v6757_v17 = vadd.f32 0.008332121, %v6756_v60 }
 0x40a   :  { %v6751_v19 = vmul.f32 %v6750_v20, %v6748_v46  ;;  %v6758_v49 = vmul.f32 %v6757_v17, %v6748_v46 }
 0x40c   :  { %v6752_v32 = vadd.f32 -0.4999988, %v6751_v19  ;;  %v6759_v10 = vadd.f32 -0.16666654, %v6758_v49 }
 0x40e   :  { %v6753_v57 = vmul.f32 %v6752_v32, %v6748_v46  ;;  %v6760_v43 = vmul.f32 %v6759_v10, %v6748_v46 }
 0x410   :  { %v6754_v15 = vadd.f32 1.0, %v6753_v57  ;;  %v6761_v2 = vadd.f32 1.0, %v6760_v43 }
 0x412   :  { %v6762_v5 = vmul.f32 %v6761_v2, %v6746_v8  ;;  %v6771_v6 = vxor.u32 2147483648, %v6754_v15 }
 0x414   :  { %v6768_v13 = vxor.u32 2147483648, %v6762_v5  ;;  %v6772_v58 = vsel %vm6770_vm2, %v6771_v6, %v6762_v5 }
 0x416   :  { %v6769_v22 = vsel %vm6767_vm15, %v6754_v15, %v6768_v13 }
 0x417   :  { %v6773_v44 = vsel %vm6766_vm3, %v6769_v22, %v6772_v58 }
 0x418   :  { %v6774_v1 = vsel %vm6763_vm5, nan, %v6773_v44 }
 0x419   :  { %v6819_v26 = vsel %vm6806_vm4, %v12269_v61, %v6774_v1 }
 0x41a   :  { %6857 = vst [vmem:[#allocation10 + $0x30] sm:$0xf] %v6819_v26 }
 0x41b   :  { %6868 = dma.vmem_to_hbm [thread:$0]  %s6864_s3, 832, %s6866_s11, [#allocation4]  }
 0x41c   :  { %7060 = dma.done.wait [#allocation4], 832  }
 0x41d   :  { %7061 = vsyncadd [#allocation4], 4294966464 }
 0x41e   :  { %6873 = vsyncpa [#allocation3], 1 }
 0x41f   :  { %6874 = vsyncpa [#allocation6], 1 }
 0x420   :  { %6875 = vsyncpa [#allocation9], 1 }
 0x421   :  { %6876 = vsyncpa [#allocation4], 1 }

</bundles_post_ra>
